<compile_context>
chip_gen: v7x
topology: tpu7x:2x2x1
jax: 0.10.0
libtpu: 0.0.40
codegen_flags: <defaults>
</compile_context>

<pallas_src>
import math

import numpy as np
import jax
import jax.numpy as jnp
from jax.experimental import pallas as pl
from jax.experimental.pallas import tpu as pltpu


LANE_PAD = 128  # hidden / gate lane padding (one full vreg lane width)


# ----------------------------------------------------------------------------
# Fused kernel
# ----------------------------------------------------------------------------

def _lstm_unrolled(x_ref, wih_ref, whh_ref, b_ref, hs_ref):
    """Single-layer LSTM, PyTorch gate order (i, f, g, o), gates packed into
    128-lane-aligned chunks.  Writes per-step hidden states (padded to 128
    lanes) into hs_ref of shape (S, 128)."""
    S = x_ref.shape[0]
    GP = whh_ref.shape[0]                      # 128 (padded hidden width)

    # Hoisted input projection: one matmul for all time steps.
    gates_x = (jnp.dot(x_ref[...], wih_ref[...],
                       preferred_element_type=jnp.float32)
               + b_ref[...])                   # (S, 4*GP)
    whh = whh_ref[...]                         # load once, stays in vregs

    h = jnp.zeros((1, GP), jnp.float32)
    c = jnp.zeros((1, GP), jnp.float32)
    for t in range(S):                         # static unroll (S is small)
        g = gates_x[t:t + 1, :] + jnp.dot(h, whh,
                                          preferred_element_type=jnp.float32)
        i_g = jax.nn.sigmoid(g[:, 0 * GP:1 * GP])
        f_g = jax.nn.sigmoid(g[:, 1 * GP:2 * GP])
        g_g = jnp.tanh(g[:, 2 * GP:3 * GP])
        o_g = jax.nn.sigmoid(g[:, 3 * GP:4 * GP])
        c = f_g * c + i_g * g_g                # padded lanes stay exactly 0
        h = o_g * jnp.tanh(c)
        hs_ref[t:t + 1, :] = h


def tcsp_kernel(x_l_ref, x_a_ref, x_v_ref,
                wih_l_ref, whh_l_ref, b_l_ref,
                wih_a_ref, whh_a_ref, b_a_ref,
                wih_v_ref, whh_v_ref, b_v_ref,
                wp_l_ref, bp_l_ref, wp_a_ref, bp_a_ref, wp_v_ref, bp_v_ref,
                el_ref, ebl_ref, ea_ref, eba_ref, ev_ref, ebv_ref,
                w1_ref, b1_ref, w2_ref, b2_ref, w3_ref, b3_ref,
                out_ref, fus_ref,
                hs_l_ref, hs_a_ref, hs_v_ref):
    # --- three independent LSTM recurrences (scheduler interleaves them) ----
    _lstm_unrolled(x_l_ref, wih_l_ref, whh_l_ref, b_l_ref, hs_l_ref)
    _lstm_unrolled(x_a_ref, wih_a_ref, whh_a_ref, b_a_ref, hs_a_ref)
    _lstm_unrolled(x_v_ref, wih_v_ref, whh_v_ref, b_v_ref, hs_v_ref)

    # --- post-nets: Dropout(identity) + Linear + ReLU (128-lane padded) -----
    def post(hs_ref, wp_ref, bp_ref):
        return jnp.maximum(
            jnp.dot(hs_ref[...], wp_ref[...],
                    preferred_element_type=jnp.float32) + bp_ref[...], 0.0)

    hp_l = post(hs_l_ref, wp_l_ref, bp_l_ref)          # (S, 128)
    hp_a = post(hs_a_ref, wp_a_ref, bp_a_ref)
    hp_v = post(hs_v_ref, wp_v_ref, bp_v_ref)

    # --- tri-modal fusion, written lane-dense as (S, 1377) ------------------
    # expand(h, E, eb)[s, n] = [1, h[s]][idx(n)]  (the "+1" column is folded
    # into the eb bias row), so the elementwise product of the three expanded
    # arrays is exactly bmm(bmm(hl1,ha1).view(S,-1), hv1).view(S,-1).
    def expand(hp, e_ref, eb_ref):
        d = e_ref.shape[0]
        return (jnp.dot(hp[:, :d], e_ref[...],
                        preferred_element_type=jnp.float32) + eb_ref[...])

    fusion = (expand(hp_l, el_ref, ebl_ref)
              * expand(hp_a, ea_ref, eba_ref)
              * expand(hp_v, ev_ref, ebv_ref))          # (S, 1377)
    fus_ref[...] = fusion.astype(fus_ref.dtype)

    # --- output head: (Linear+ReLU) x3 (the final ReLU IS in the reference
    #     nn.Sequential), then sigmoid * 6 - 3 ---------------------------------
    h1 = jnp.maximum(
        jnp.dot(fusion, w1_ref[...], preferred_element_type=jnp.float32)
        + b1_ref[...], 0.0)
    h2 = jnp.maximum(
        jnp.dot(h1, w2_ref[...], preferred_element_type=jnp.float32)
        + b2_ref[...], 0.0)
    h3 = jnp.maximum(
        jnp.dot(h2, w3_ref[...], preferred_element_type=jnp.float32)
        + b3_ref[...], 0.0)
    d_out = out_ref.shape[1]
    out_ref[...] = (jax.nn.sigmoid(h3[:, :d_out]) * 6.0 - 3.0
                    ).astype(out_ref.dtype)


# ----------------------------------------------------------------------------
# Wrapper: single pallas_call, everything resident in VMEM (working set ~2 MB)
# ----------------------------------------------------------------------------

def make_tcsp_forward(cfg):
    fusion_dim = ((cfg["lstm_d_l"] + 1) * (cfg["lstm_d_a"] + 1)
                  * (cfg["lstm_d_v"] + 1))
    out_dim = cfg["output_dim"]

    @jax.jit
    def fwd(p, x_l, x_a, x_v):
        S = x_l.shape[0]
        args = (x_l, x_a, x_v,
                p["wih_l"], p["whh_l"], p["b_l"],
                p["wih_a"], p["whh_a"], p["b_a"],
                p["wih_v"], p["whh_v"], p["b_v"],
                p["wp_l"], p["bp_l"], p["wp_a"], p["bp_a"],
                p["wp_v"], p["bp_v"],
                p["el"], p["ebl"], p["ea"], p["eba"], p["ev"], p["ebv"],
                p["w1"], p["b1"], p["w2"], p["b2"], p["w3"], p["b3"])
        return pl.pallas_call(
            tcsp_kernel,
            out_shape=(jax.ShapeDtypeStruct((S, out_dim), jnp.float32),
                       jax.ShapeDtypeStruct((S, fusion_dim), jnp.float32)),
            in_specs=[pl.BlockSpec(memory_space=pltpu.MemorySpace.VMEM)]
                     * len(args),
            out_specs=(pl.BlockSpec(memory_space=pltpu.MemorySpace.VMEM),
                       pl.BlockSpec(memory_space=pltpu.MemorySpace.VMEM)),
            scratch_shapes=[pltpu.VMEM((S, LANE_PAD), jnp.float32)] * 3,
        )(*args)

    return fwd


# ----------------------------------------------------------------------------
# Parameter init (PyTorch-style uniform ranges) + lane-aligned packing
# ----------------------------------------------------------------------------

def _init_lstm_packed(key, d_in, d_h, gp=LANE_PAD):
    k = 1.0 / math.sqrt(d_h)
    k1, k2, k3, k4 = jax.random.split(key, 4)
    w_ih = jax.random.uniform(k1, (4 * d_h, d_in), jnp.float32, -k, k)
    w_hh = jax.random.uniform(k2, (4 * d_h, d_h), jnp.float32, -k, k)
    b_ih = jax.random.uniform(k3, (4 * d_h,), jnp.float32, -k, k)
    b_hh = jax.random.uniform(k4, (4 * d_h,), jnp.float32, -k, k)
    b = b_ih + b_hh
    wih_p = jnp.zeros((d_in, 4 * gp), jnp.float32)
    whh_p = jnp.zeros((gp, 4 * gp), jnp.float32)
    b_p = jnp.zeros((1, 4 * gp), jnp.float32)
    for g in range(4):                                  # gate order i, f, g, o
        wih_p = wih_p.at[:, g * gp:g * gp + d_h].set(w_ih[g * d_h:(g + 1) * d_h, :].T)
        whh_p = whh_p.at[:d_h, g * gp:g * gp + d_h].set(w_hh[g * d_h:(g + 1) * d_h, :].T)
        b_p = b_p.at[0, g * gp:g * gp + d_h].set(b[g * d_h:(g + 1) * d_h])
    return wih_p, whh_p, b_p


def _init_linear_packed(key, d_in, d_out, in_pad, out_pad):
    k = 1.0 / math.sqrt(d_in)
    k1, k2 = jax.random.split(key)
    w = jax.random.uniform(k1, (d_out, d_in), jnp.float32, -k, k)
    b = jax.random.uniform(k2, (d_out,), jnp.float32, -k, k)
    wp = jnp.zeros((in_pad, out_pad), jnp.float32).at[:d_in, :d_out].set(w.T)
    bp = jnp.zeros((1, out_pad), jnp.float32).at[0, :d_out].set(b)
    return wp, bp


def _expansion(dims, axis):
    """One-hot expansion matrix E ((d-1), F) and bias row ((1), F) so that
    h @ E + bias == [1, h] gathered along the flattened tri-modal index."""
    d1, d2, d3 = dims
    F = d1 * d2 * d3
    n = jnp.arange(F)
    if axis == 0:
        idx, d = n // (d2 * d3), d1
    elif axis == 1:
        idx, d = (n // d3) % d2, d2
    else:
        idx, d = n % d3, d3
    E = (idx[None, :] == jnp.arange(1, d)[:, None]).astype(jnp.float32)
    eb = (idx == 0).astype(jnp.float32)[None, :]
    return E, eb


def init_params(key, cfg):
    keys = jax.random.split(key, 9)
    p = {}
    p["wih_l"], p["whh_l"], p["b_l"] = _init_lstm_packed(
        keys[0], cfg["input_d_l"], cfg["lstm_d_l"])
    p["wih_a"], p["whh_a"], p["b_a"] = _init_lstm_packed(
        keys[1], cfg["input_d_a"], cfg["lstm_d_a"])
    p["wih_v"], p["whh_v"], p["b_v"] = _init_lstm_packed(
        keys[2], cfg["input_d_v"], cfg["lstm_d_v"])
    p["wp_l"], p["bp_l"] = _init_linear_packed(
        keys[3], cfg["lstm_d_l"], cfg["lstm_d_l"], LANE_PAD, LANE_PAD)
    p["wp_a"], p["bp_a"] = _init_linear_packed(
        keys[4], cfg["lstm_d_a"], cfg["lstm_d_a"], LANE_PAD, LANE_PAD)
    p["wp_v"], p["bp_v"] = _init_linear_packed(
        keys[5], cfg["lstm_d_v"], cfg["lstm_d_v"], LANE_PAD, LANE_PAD)

    dims = (cfg["lstm_d_l"] + 1, cfg["lstm_d_a"] + 1, cfg["lstm_d_v"] + 1)
    fusion_dim = dims[0] * dims[1] * dims[2]
    p["el"], p["ebl"] = _expansion(dims, 0)
    p["ea"], p["eba"] = _expansion(dims, 1)
    p["ev"], p["ebv"] = _expansion(dims, 2)

    mid = cfg["output_mid_dim"]
    p["w1"], p["b1"] = _init_linear_packed(keys[6], fusion_dim, mid,
                                           fusion_dim, LANE_PAD)
    p["w2"], p["b2"] = _init_linear_packed(keys[7], mid, mid,
                                           LANE_PAD, LANE_PAD)
    p["w3"], p["b3"] = _init_linear_packed(keys[8], mid, cfg["output_dim"],
                                           LANE_PAD, LANE_PAD)
    return p


# ----------------------------------------------------------------------------
# Pure-JAX reference (PyTorch-style: concat ones + bmm outer products)
# ----------------------------------------------------------------------------

def reference_forward(p, x_l, x_a, x_v, cfg):
    hi = jax.lax.Precision.HIGHEST

    def lstm_ref(x, wih_p, whh_p, b_p):
        gp = whh_p.shape[0]
        gx = jnp.dot(x, wih_p, precision=hi) + b_p
        h = jnp.zeros((1, gp), jnp.float32)
        c = jnp.zeros((1, gp), jnp.float32)
        hs = []
        for t in range(x.shape[0]):
            g = gx[t:t + 1] + jnp.dot(h, whh_p, precision=hi)
            i = jax.nn.sigmoid(g[:, :gp])
            f = jax.nn.sigmoid(g[:, gp:2 * gp])
            gg = jnp.tanh(g[:, 2 * gp:3 * gp])
            o = jax.nn.sigmoid(g[:, 3 * gp:4 * gp])
            c = f * c + i * gg
            h = o * jnp.tanh(c)
            hs.append(h)
        return jnp.concatenate(hs, axis=0)

    H_l, H_a, H_v = cfg["lstm_d_l"], cfg["lstm_d_a"], cfg["lstm_d_v"]
    hl = lstm_ref(x_l, p["wih_l"], p["whh_l"], p["b_l"])
    ha = lstm_ref(x_a, p["wih_a"], p["whh_a"], p["b_a"])
    hv = lstm_ref(x_v, p["wih_v"], p["whh_v"], p["b_v"])
    hl = jnp.maximum(jnp.dot(hl, p["wp_l"], precision=hi) + p["bp_l"], 0.0)[:, :H_l]
    ha = jnp.maximum(jnp.dot(ha, p["wp_a"], precision=hi) + p["bp_a"], 0.0)[:, :H_a]
    hv = jnp.maximum(jnp.dot(hv, p["wp_v"], precision=hi) + p["bp_v"], 0.0)[:, :H_v]

    S = hl.shape[0]
    ones = jnp.ones((S, 1), jnp.float32)
    hl1 = jnp.concatenate([ones, hl], axis=1)
    ha1 = jnp.concatenate([ones, ha], axis=1)
    hv1 = jnp.concatenate([ones, hv], axis=1)
    fusion = (hl1[:, :, None] * ha1[:, None, :]).reshape(S, -1)
    fusion = (fusion[:, :, None] * hv1[:, None, :]).reshape(S, -1)

    mid, od = cfg["output_mid_dim"], cfg["output_dim"]
    h1 = jnp.maximum(jnp.dot(fusion, p["w1"][:, :mid], precision=hi) + p["b1"][:, :mid], 0.0)
    h2 = jnp.maximum(jnp.dot(h1, p["w2"][:mid, :mid], precision=hi) + p["b2"][:, :mid], 0.0)
    h3 = jnp.maximum(jnp.dot(h2, p["w3"][:mid, :od], precision=hi) + p["b3"][:, :od], 0.0)
    out = jax.nn.sigmoid(h3) * 6.0 - 3.0
    return out, fusion


# ----------------------------------------------------------------------------

if __name__ == "__main__":
    cfg = dict(
        input_d_l=32, input_d_a=16, input_d_v=16,
        lstm_d_l=16, lstm_d_a=8, lstm_d_v=8,
        output_mid_dim=32, output_dim=1,
    )
    seq = 8
    fusion_dim = (cfg["lstm_d_l"] + 1) * (cfg["lstm_d_a"] + 1) * (cfg["lstm_d_v"] + 1)

    key = jax.random.PRNGKey(0)
    k_p, k_l, k_a, k_v = jax.random.split(key, 4)
    params = init_params(k_p, cfg)

    x_l = jax.random.normal(k_l, (seq, cfg["input_d_l"]), jnp.float32)
    x_a = jax.random.normal(k_a, (seq, cfg["input_d_a"]), jnp.float32)
    x_v = jax.random.normal(k_v, (seq, cfg["input_d_v"]), jnp.float32)

    fwd = make_tcsp_forward(cfg)
    output, fusion = fwd(params, x_l, x_a, x_v)
    jax.block_until_ready((output, fusion))

    assert output.shape == (seq, cfg["output_dim"])
    assert fusion.shape == (seq, fusion_dim)
    assert bool(jnp.all(jnp.isfinite(output))) and bool(jnp.all(jnp.isfinite(fusion)))
    # sigmoid(relu(.)) * 6 - 3  ->  range [0, 3)
    assert bool(jnp.all(output > -3.0)) and bool(jnp.all(output < 3.0))

    # Cross-check against a pure-JAX reference that uses the PyTorch-style
    # concat + bmm outer-product flattening (validates the expansion-matmul
    # fusion layout and the padded-gate LSTM).
    ref_out, ref_fus = reference_forward(params, x_l, x_a, x_v, cfg)
    assert np.allclose(np.asarray(fusion), np.asarray(ref_fus), rtol=5e-3, atol=5e-3)
    assert np.allclose(np.asarray(output), np.asarray(ref_out), rtol=5e-3, atol=5e-3)

    print("KERNEL_OK")
</pallas_src>

<mosaic_0001>
module attributes {stable_mosaic.version = 11 : i64} {
  func.func @tcsp_kernel(%arg0: memref<8x32xf32, #tpu.memory_space<vmem>>, %arg1: memref<8x16xf32, #tpu.memory_space<vmem>>, %arg2: memref<8x16xf32, #tpu.memory_space<vmem>>, %arg3: memref<32x512xf32, #tpu.memory_space<vmem>>, %arg4: memref<128x512xf32, #tpu.memory_space<vmem>>, %arg5: memref<1x512xf32, #tpu.memory_space<vmem>>, %arg6: memref<16x512xf32, #tpu.memory_space<vmem>>, %arg7: memref<128x512xf32, #tpu.memory_space<vmem>>, %arg8: memref<1x512xf32, #tpu.memory_space<vmem>>, %arg9: memref<16x512xf32, #tpu.memory_space<vmem>>, %arg10: memref<128x512xf32, #tpu.memory_space<vmem>>, %arg11: memref<1x512xf32, #tpu.memory_space<vmem>>, %arg12: memref<128x128xf32, #tpu.memory_space<vmem>>, %arg13: memref<1x128xf32, #tpu.memory_space<vmem>>, %arg14: memref<128x128xf32, #tpu.memory_space<vmem>>, %arg15: memref<1x128xf32, #tpu.memory_space<vmem>>, %arg16: memref<128x128xf32, #tpu.memory_space<vmem>>, %arg17: memref<1x128xf32, #tpu.memory_space<vmem>>, %arg18: memref<16x1377xf32, #tpu.memory_space<vmem>>, %arg19: memref<1x1377xf32, #tpu.memory_space<vmem>>, %arg20: memref<8x1377xf32, #tpu.memory_space<vmem>>, %arg21: memref<1x1377xf32, #tpu.memory_space<vmem>>, %arg22: memref<8x1377xf32, #tpu.memory_space<vmem>>, %arg23: memref<1x1377xf32, #tpu.memory_space<vmem>>, %arg24: memref<1377x128xf32, #tpu.memory_space<vmem>>, %arg25: memref<1x128xf32, #tpu.memory_space<vmem>>, %arg26: memref<128x128xf32, #tpu.memory_space<vmem>>, %arg27: memref<1x128xf32, #tpu.memory_space<vmem>>, %arg28: memref<128x128xf32, #tpu.memory_space<vmem>>, %arg29: memref<1x128xf32, #tpu.memory_space<vmem>>, %arg30: memref<8x1xf32, #tpu.memory_space<vmem>>, %arg31: memref<8x1377xf32, #tpu.memory_space<vmem>>, %arg32: memref<8x128xf32, #tpu.memory_space<vmem>>, %arg33: memref<8x128xf32, #tpu.memory_space<vmem>>, %arg34: memref<8x128xf32, #tpu.memory_space<vmem>>) attributes {dimension_semantics = [], scalar_prefetch = 0 : i64, scratch_operands = 3 : i64, tpu.core_type = #tpu.core_type<tc>} {
    %c0 = arith.constant 0 : index
    %c0_0 = arith.constant 0 : index
    %0 = vector.load %arg0[%c0, %c0_0] : memref<8x32xf32, #tpu.memory_space<vmem>>, vector<8x32xf32>
    %c0_1 = arith.constant 0 : index
    %c0_2 = arith.constant 0 : index
    %1 = vector.load %arg3[%c0_1, %c0_2] : memref<32x512xf32, #tpu.memory_space<vmem>>, vector<32x512xf32>
    %cst = arith.constant dense<0.000000e+00> : vector<8x512xf32>
    %2 = tpu.matmul %0, %1, %cst {dimension_numbers = #tpu.dot_dimension_numbers<[1], [0], [0], [1], [0, 0, 1, 1], [], []>} : vector<8x32xf32>, vector<32x512xf32>, vector<8x512xf32> -> vector<8x512xf32>
    %c0_3 = arith.constant 0 : index
    %c0_4 = arith.constant 0 : index
    %3 = vector.load %arg5[%c0_3, %c0_4] : memref<1x512xf32, #tpu.memory_space<vmem>>, vector<1x512xf32>
    %4 = vector.broadcast %3 : vector<1x512xf32> to vector<8x512xf32>
    %5 = arith.addf %2, %4 : vector<8x512xf32>
    %c0_5 = arith.constant 0 : index
    %c0_6 = arith.constant 0 : index
    %6 = vector.load %arg4[%c0_5, %c0_6] : memref<128x512xf32, #tpu.memory_space<vmem>>, vector<128x512xf32>
    %cst_7 = arith.constant 0.000000e+00 : f32
    %7 = vector.broadcast %cst_7 : f32 to vector<1x128xf32>
    %cst_8 = arith.constant 0.000000e+00 : f32
    %8 = vector.broadcast %cst_8 : f32 to vector<1x128xf32>
    %9 = vector.extract_strided_slice %5 {offsets = [0, 0], sizes = [1, 512], strides = [1, 1]} : vector<8x512xf32> to vector<1x512xf32>
    %cst_9 = arith.constant dense<0.000000e+00> : vector<1x512xf32>
    %10 = tpu.matmul %7, %6, %cst_9 {dimension_numbers = #tpu.dot_dimension_numbers<[1], [0], [0], [1], [0, 0, 1, 1], [], []>} : vector<1x128xf32>, vector<128x512xf32>, vector<1x512xf32> -> vector<1x512xf32>
    %11 = arith.addf %9, %10 : vector<1x512xf32>
    %12 = vector.extract_strided_slice %11 {offsets = [0, 0], sizes = [1, 128], strides = [1, 1]} : vector<1x512xf32> to vector<1x128xf32>
    %13 = arith.negf %12 : vector<1x128xf32>
    %14 = math.exp %13 : vector<1x128xf32>
    %cst_10 = arith.constant 1.000000e+00 : f32
    %15 = vector.broadcast %cst_10 : f32 to vector<1x128xf32>
    %16 = arith.addf %15, %14 : vector<1x128xf32>
    %17 = arith.divf %15, %16 : vector<1x128xf32>
    %18 = vector.extract_strided_slice %11 {offsets = [0, 128], sizes = [1, 128], strides = [1, 1]} : vector<1x512xf32> to vector<1x128xf32>
    %19 = arith.negf %18 : vector<1x128xf32>
    %20 = math.exp %19 : vector<1x128xf32>
    %cst_11 = arith.constant 1.000000e+00 : f32
    %21 = vector.broadcast %cst_11 : f32 to vector<1x128xf32>
    %22 = arith.addf %21, %20 : vector<1x128xf32>
    %23 = arith.divf %21, %22 : vector<1x128xf32>
    %24 = vector.extract_strided_slice %11 {offsets = [0, 256], sizes = [1, 128], strides = [1, 1]} : vector<1x512xf32> to vector<1x128xf32>
    %25 = math.tanh %24 : vector<1x128xf32>
    %26 = vector.extract_strided_slice %11 {offsets = [0, 384], sizes = [1, 128], strides = [1, 1]} : vector<1x512xf32> to vector<1x128xf32>
    %27 = arith.negf %26 : vector<1x128xf32>
    %28 = math.exp %27 : vector<1x128xf32>
    %cst_12 = arith.constant 1.000000e+00 : f32
    %29 = vector.broadcast %cst_12 : f32 to vector<1x128xf32>
    %30 = arith.addf %29, %28 : vector<1x128xf32>
    %31 = arith.divf %29, %30 : vector<1x128xf32>
    %32 = arith.mulf %23, %8 : vector<1x128xf32>
    %33 = arith.mulf %17, %25 : vector<1x128xf32>
    %34 = arith.addf %32, %33 : vector<1x128xf32>
    %35 = math.tanh %34 : vector<1x128xf32>
    %36 = arith.mulf %31, %35 : vector<1x128xf32>
    %c0_13 = arith.constant 0 : index
    %c0_14 = arith.constant 0 : index
    %37 = vector.load %arg32[%c0_13, %c0_14] : memref<8x128xf32, #tpu.memory_space<vmem>>, vector<1x128xf32>
    tpu.vector_store %arg32[%c0_13, %c0_14], %36 {strides = array<i32>} : memref<8x128xf32, #tpu.memory_space<vmem>>, vector<1x128xf32>,
    %38 = vector.extract_strided_slice %5 {offsets = [1, 0], sizes = [1, 512], strides = [1, 1]} : vector<8x512xf32> to vector<1x512xf32>
    %cst_15 = arith.constant dense<0.000000e+00> : vector<1x512xf32>
    %39 = tpu.matmul %36, %6, %cst_15 {dimension_numbers = #tpu.dot_dimension_numbers<[1], [0], [0], [1], [0, 0, 1, 1], [], []>} : vector<1x128xf32>, vector<128x512xf32>, vector<1x512xf32> -> vector<1x512xf32>
    %40 = arith.addf %38, %39 : vector<1x512xf32>
    %41 = vector.extract_strided_slice %40 {offsets = [0, 0], sizes = [1, 128], strides = [1, 1]} : vector<1x512xf32> to vector<1x128xf32>
    %42 = arith.negf %41 : vector<1x128xf32>
    %43 = math.exp %42 : vector<1x128xf32>
    %cst_16 = arith.constant 1.000000e+00 : f32
    %44 = vector.broadcast %cst_16 : f32 to vector<1x128xf32>
    %45 = arith.addf %44, %43 : vector<1x128xf32>
    %46 = arith.divf %44, %45 : vector<1x128xf32>
    %47 = vector.extract_strided_slice %40 {offsets = [0, 128], sizes = [1, 128], strides = [1, 1]} : vector<1x512xf32> to vector<1x128xf32>
    %48 = arith.negf %47 : vector<1x128xf32>
    %49 = math.exp %48 : vector<1x128xf32>
    %cst_17 = arith.constant 1.000000e+00 : f32
    %50 = vector.broadcast %cst_17 : f32 to vector<1x128xf32>
    %51 = arith.addf %50, %49 : vector<1x128xf32>
    %52 = arith.divf %50, %51 : vector<1x128xf32>
    %53 = vector.extract_strided_slice %40 {offsets = [0, 256], sizes = [1, 128], strides = [1, 1]} : vector<1x512xf32> to vector<1x128xf32>
    %54 = math.tanh %53 : vector<1x128xf32>
    %55 = vector.extract_strided_slice %40 {offsets = [0, 384], sizes = [1, 128], strides = [1, 1]} : vector<1x512xf32> to vector<1x128xf32>
    %56 = arith.negf %55 : vector<1x128xf32>
    %57 = math.exp %56 : vector<1x128xf32>
    %cst_18 = arith.constant 1.000000e+00 : f32
    %58 = vector.broadcast %cst_18 : f32 to vector<1x128xf32>
    %59 = arith.addf %58, %57 : vector<1x128xf32>
    %60 = arith.divf %58, %59 : vector<1x128xf32>
    %61 = arith.mulf %52, %34 : vector<1x128xf32>
    %62 = arith.mulf %46, %54 : vector<1x128xf32>
    %63 = arith.addf %61, %62 : vector<1x128xf32>
    %64 = math.tanh %63 : vector<1x128xf32>
    %65 = arith.mulf %60, %64 : vector<1x128xf32>
    %c1 = arith.constant 1 : index
    %c0_19 = arith.constant 0 : index
    %66 = vector.load %arg32[%c1, %c0_19] : memref<8x128xf32, #tpu.memory_space<vmem>>, vector<1x128xf32>
    tpu.vector_store %arg32[%c1, %c0_19], %65 {strides = array<i32>} : memref<8x128xf32, #tpu.memory_space<vmem>>, vector<1x128xf32>,
    %67 = vector.extract_strided_slice %5 {offsets = [2, 0], sizes = [1, 512], strides = [1, 1]} : vector<8x512xf32> to vector<1x512xf32>
    %cst_20 = arith.constant dense<0.000000e+00> : vector<1x512xf32>
    %68 = tpu.matmul %65, %6, %cst_20 {dimension_numbers = #tpu.dot_dimension_numbers<[1], [0], [0], [1], [0, 0, 1, 1], [], []>} : vector<1x128xf32>, vector<128x512xf32>, vector<1x512xf32> -> vector<1x512xf32>
    %69 = arith.addf %67, %68 : vector<1x512xf32>
    %70 = vector.extract_strided_slice %69 {offsets = [0, 0], sizes = [1, 128], strides = [1, 1]} : vector<1x512xf32> to vector<1x128xf32>
    %71 = arith.negf %70 : vector<1x128xf32>
    %72 = math.exp %71 : vector<1x128xf32>
    %cst_21 = arith.constant 1.000000e+00 : f32
    %73 = vector.broadcast %cst_21 : f32 to vector<1x128xf32>
    %74 = arith.addf %73, %72 : vector<1x128xf32>
    %75 = arith.divf %73, %74 : vector<1x128xf32>
    %76 = vector.extract_strided_slice %69 {offsets = [0, 128], sizes = [1, 128], strides = [1, 1]} : vector<1x512xf32> to vector<1x128xf32>
    %77 = arith.negf %76 : vector<1x128xf32>
    %78 = math.exp %77 : vector<1x128xf32>
    %cst_22 = arith.constant 1.000000e+00 : f32
    %79 = vector.broadcast %cst_22 : f32 to vector<1x128xf32>
    %80 = arith.addf %79, %78 : vector<1x128xf32>
    %81 = arith.divf %79, %80 : vector<1x128xf32>
    %82 = vector.extract_strided_slice %69 {offsets = [0, 256], sizes = [1, 128], strides = [1, 1]} : vector<1x512xf32> to vector<1x128xf32>
    %83 = math.tanh %82 : vector<1x128xf32>
    %84 = vector.extract_strided_slice %69 {offsets = [0, 384], sizes = [1, 128], strides = [1, 1]} : vector<1x512xf32> to vector<1x128xf32>
    %85 = arith.negf %84 : vector<1x128xf32>
    %86 = math.exp %85 : vector<1x128xf32>
    %cst_23 = arith.constant 1.000000e+00 : f32
    %87 = vector.broadcast %cst_23 : f32 to vector<1x128xf32>
    %88 = arith.addf %87, %86 : vector<1x128xf32>
    %89 = arith.divf %87, %88 : vector<1x128xf32>
    %90 = arith.mulf %81, %63 : vector<1x128xf32>
    %91 = arith.mulf %75, %83 : vector<1x128xf32>
    %92 = arith.addf %90, %91 : vector<1x128xf32>
    %93 = math.tanh %92 : vector<1x128xf32>
    %94 = arith.mulf %89, %93 : vector<1x128xf32>
    %c2 = arith.constant 2 : index
    %c0_24 = arith.constant 0 : index
    %95 = vector.load %arg32[%c2, %c0_24] : memref<8x128xf32, #tpu.memory_space<vmem>>, vector<1x128xf32>
    tpu.vector_store %arg32[%c2, %c0_24], %94 {strides = array<i32>} : memref<8x128xf32, #tpu.memory_space<vmem>>, vector<1x128xf32>,
    %96 = vector.extract_strided_slice %5 {offsets = [3, 0], sizes = [1, 512], strides = [1, 1]} : vector<8x512xf32> to vector<1x512xf32>
    %cst_25 = arith.constant dense<0.000000e+00> : vector<1x512xf32>
    %97 = tpu.matmul %94, %6, %cst_25 {dimension_numbers = #tpu.dot_dimension_numbers<[1], [0], [0], [1], [0, 0, 1, 1], [], []>} : vector<1x128xf32>, vector<128x512xf32>, vector<1x512xf32> -> vector<1x512xf32>
    %98 = arith.addf %96, %97 : vector<1x512xf32>
    %99 = vector.extract_strided_slice %98 {offsets = [0, 0], sizes = [1, 128], strides = [1, 1]} : vector<1x512xf32> to vector<1x128xf32>
    %100 = arith.negf %99 : vector<1x128xf32>
    %101 = math.exp %100 : vector<1x128xf32>
    %cst_26 = arith.constant 1.000000e+00 : f32
    %102 = vector.broadcast %cst_26 : f32 to vector<1x128xf32>
    %103 = arith.addf %102, %101 : vector<1x128xf32>
    %104 = arith.divf %102, %103 : vector<1x128xf32>
    %105 = vector.extract_strided_slice %98 {offsets = [0, 128], sizes = [1, 128], strides = [1, 1]} : vector<1x512xf32> to vector<1x128xf32>
    %106 = arith.negf %105 : vector<1x128xf32>
    %107 = math.exp %106 : vector<1x128xf32>
    %cst_27 = arith.constant 1.000000e+00 : f32
    %108 = vector.broadcast %cst_27 : f32 to vector<1x128xf32>
    %109 = arith.addf %108, %107 : vector<1x128xf32>
    %110 = arith.divf %108, %109 : vector<1x128xf32>
    %111 = vector.extract_strided_slice %98 {offsets = [0, 256], sizes = [1, 128], strides = [1, 1]} : vector<1x512xf32> to vector<1x128xf32>
    %112 = math.tanh %111 : vector<1x128xf32>
    %113 = vector.extract_strided_slice %98 {offsets = [0, 384], sizes = [1, 128], strides = [1, 1]} : vector<1x512xf32> to vector<1x128xf32>
    %114 = arith.negf %113 : vector<1x128xf32>
    %115 = math.exp %114 : vector<1x128xf32>
    %cst_28 = arith.constant 1.000000e+00 : f32
    %116 = vector.broadcast %cst_28 : f32 to vector<1x128xf32>
    %117 = arith.addf %116, %115 : vector<1x128xf32>
    %118 = arith.divf %116, %117 : vector<1x128xf32>
    %119 = arith.mulf %110, %92 : vector<1x128xf32>
    %120 = arith.mulf %104, %112 : vector<1x128xf32>
    %121 = arith.addf %119, %120 : vector<1x128xf32>
    %122 = math.tanh %121 : vector<1x128xf32>
    %123 = arith.mulf %118, %122 : vector<1x128xf32>
    %c3 = arith.constant 3 : index
    %c0_29 = arith.constant 0 : index
    %124 = vector.load %arg32[%c3, %c0_29] : memref<8x128xf32, #tpu.memory_space<vmem>>, vector<1x128xf32>
    tpu.vector_store %arg32[%c3, %c0_29], %123 {strides = array<i32>} : memref<8x128xf32, #tpu.memory_space<vmem>>, vector<1x128xf32>,
    %125 = vector.extract_strided_slice %5 {offsets = [4, 0], sizes = [1, 512], strides = [1, 1]} : vector<8x512xf32> to vector<1x512xf32>
    %cst_30 = arith.constant dense<0.000000e+00> : vector<1x512xf32>
    %126 = tpu.matmul %123, %6, %cst_30 {dimension_numbers = #tpu.dot_dimension_numbers<[1], [0], [0], [1], [0, 0, 1, 1], [], []>} : vector<1x128xf32>, vector<128x512xf32>, vector<1x512xf32> -> vector<1x512xf32>
    %127 = arith.addf %125, %126 : vector<1x512xf32>
    %128 = vector.extract_strided_slice %127 {offsets = [0, 0], sizes = [1, 128], strides = [1, 1]} : vector<1x512xf32> to vector<1x128xf32>
    %129 = arith.negf %128 : vector<1x128xf32>
    %130 = math.exp %129 : vector<1x128xf32>
    %cst_31 = arith.constant 1.000000e+00 : f32
    %131 = vector.broadcast %cst_31 : f32 to vector<1x128xf32>
    %132 = arith.addf %131, %130 : vector<1x128xf32>
    %133 = arith.divf %131, %132 : vector<1x128xf32>
    %134 = vector.extract_strided_slice %127 {offsets = [0, 128], sizes = [1, 128], strides = [1, 1]} : vector<1x512xf32> to vector<1x128xf32>
    %135 = arith.negf %134 : vector<1x128xf32>
    %136 = math.exp %135 : vector<1x128xf32>
    %cst_32 = arith.constant 1.000000e+00 : f32
    %137 = vector.broadcast %cst_32 : f32 to vector<1x128xf32>
    %138 = arith.addf %137, %136 : vector<1x128xf32>
    %139 = arith.divf %137, %138 : vector<1x128xf32>
    %140 = vector.extract_strided_slice %127 {offsets = [0, 256], sizes = [1, 128], strides = [1, 1]} : vector<1x512xf32> to vector<1x128xf32>
    %141 = math.tanh %140 : vector<1x128xf32>
    %142 = vector.extract_strided_slice %127 {offsets = [0, 384], sizes = [1, 128], strides = [1, 1]} : vector<1x512xf32> to vector<1x128xf32>
    %143 = arith.negf %142 : vector<1x128xf32>
    %144 = math.exp %143 : vector<1x128xf32>
    %cst_33 = arith.constant 1.000000e+00 : f32
    %145 = vector.broadcast %cst_33 : f32 to vector<1x128xf32>
    %146 = arith.addf %145, %144 : vector<1x128xf32>
    %147 = arith.divf %145, %146 : vector<1x128xf32>
    %148 = arith.mulf %139, %121 : vector<1x128xf32>
    %149 = arith.mulf %133, %141 : vector<1x128xf32>
    %150 = arith.addf %148, %149 : vector<1x128xf32>
    %151 = math.tanh %150 : vector<1x128xf32>
    %152 = arith.mulf %147, %151 : vector<1x128xf32>
    %c4 = arith.constant 4 : index
    %c0_34 = arith.constant 0 : index
    %153 = vector.load %arg32[%c4, %c0_34] : memref<8x128xf32, #tpu.memory_space<vmem>>, vector<1x128xf32>
    tpu.vector_store %arg32[%c4, %c0_34], %152 {strides = array<i32>} : memref<8x128xf32, #tpu.memory_space<vmem>>, vector<1x128xf32>,
    %154 = vector.extract_strided_slice %5 {offsets = [5, 0], sizes = [1, 512], strides = [1, 1]} : vector<8x512xf32> to vector<1x512xf32>
    %cst_35 = arith.constant dense<0.000000e+00> : vector<1x512xf32>
    %155 = tpu.matmul %152, %6, %cst_35 {dimension_numbers = #tpu.dot_dimension_numbers<[1], [0], [0], [1], [0, 0, 1, 1], [], []>} : vector<1x128xf32>, vector<128x512xf32>, vector<1x512xf32> -> vector<1x512xf32>
    %156 = arith.addf %154, %155 : vector<1x512xf32>
    %157 = vector.extract_strided_slice %156 {offsets = [0, 0], sizes = [1, 128], strides = [1, 1]} : vector<1x512xf32> to vector<1x128xf32>
    %158 = arith.negf %157 : vector<1x128xf32>
    %159 = math.exp %158 : vector<1x128xf32>
    %cst_36 = arith.constant 1.000000e+00 : f32
    %160 = vector.broadcast %cst_36 : f32 to vector<1x128xf32>
    %161 = arith.addf %160, %159 : vector<1x128xf32>
    %162 = arith.divf %160, %161 : vector<1x128xf32>
    %163 = vector.extract_strided_slice %156 {offsets = [0, 128], sizes = [1, 128], strides = [1, 1]} : vector<1x512xf32> to vector<1x128xf32>
    %164 = arith.negf %163 : vector<1x128xf32>
    %165 = math.exp %164 : vector<1x128xf32>
    %cst_37 = arith.constant 1.000000e+00 : f32
    %166 = vector.broadcast %cst_37 : f32 to vector<1x128xf32>
    %167 = arith.addf %166, %165 : vector<1x128xf32>
    %168 = arith.divf %166, %167 : vector<1x128xf32>
    %169 = vector.extract_strided_slice %156 {offsets = [0, 256], sizes = [1, 128], strides = [1, 1]} : vector<1x512xf32> to vector<1x128xf32>
    %170 = math.tanh %169 : vector<1x128xf32>
    %171 = vector.extract_strided_slice %156 {offsets = [0, 384], sizes = [1, 128], strides = [1, 1]} : vector<1x512xf32> to vector<1x128xf32>
    %172 = arith.negf %171 : vector<1x128xf32>
    %173 = math.exp %172 : vector<1x128xf32>
    %cst_38 = arith.constant 1.000000e+00 : f32
    %174 = vector.broadcast %cst_38 : f32 to vector<1x128xf32>
    %175 = arith.addf %174, %173 : vector<1x128xf32>
    %176 = arith.divf %174, %175 : vector<1x128xf32>
    %177 = arith.mulf %168, %150 : vector<1x128xf32>
    %178 = arith.mulf %162, %170 : vector<1x128xf32>
    %179 = arith.addf %177, %178 : vector<1x128xf32>
    %180 = math.tanh %179 : vector<1x128xf32>
    %181 = arith.mulf %176, %180 : vector<1x128xf32>
    %c5 = arith.constant 5 : index
    %c0_39 = arith.constant 0 : index
    %182 = vector.load %arg32[%c5, %c0_39] : memref<8x128xf32, #tpu.memory_space<vmem>>, vector<1x128xf32>
    tpu.vector_store %arg32[%c5, %c0_39], %181 {strides = array<i32>} : memref<8x128xf32, #tpu.memory_space<vmem>>, vector<1x128xf32>,
    %183 = vector.extract_strided_slice %5 {offsets = [6, 0], sizes = [1, 512], strides = [1, 1]} : vector<8x512xf32> to vector<1x512xf32>
    %cst_40 = arith.constant dense<0.000000e+00> : vector<1x512xf32>
    %184 = tpu.matmul %181, %6, %cst_40 {dimension_numbers = #tpu.dot_dimension_numbers<[1], [0], [0], [1], [0, 0, 1, 1], [], []>} : vector<1x128xf32>, vector<128x512xf32>, vector<1x512xf32> -> vector<1x512xf32>
    %185 = arith.addf %183, %184 : vector<1x512xf32>
    %186 = vector.extract_strided_slice %185 {offsets = [0, 0], sizes = [1, 128], strides = [1, 1]} : vector<1x512xf32> to vector<1x128xf32>
    %187 = arith.negf %186 : vector<1x128xf32>
    %188 = math.exp %187 : vector<1x128xf32>
    %cst_41 = arith.constant 1.000000e+00 : f32
    %189 = vector.broadcast %cst_41 : f32 to vector<1x128xf32>
    %190 = arith.addf %189, %188 : vector<1x128xf32>
    %191 = arith.divf %189, %190 : vector<1x128xf32>
    %192 = vector.extract_strided_slice %185 {offsets = [0, 128], sizes = [1, 128], strides = [1, 1]} : vector<1x512xf32> to vector<1x128xf32>
    %193 = arith.negf %192 : vector<1x128xf32>
    %194 = math.exp %193 : vector<1x128xf32>
    %cst_42 = arith.constant 1.000000e+00 : f32
    %195 = vector.broadcast %cst_42 : f32 to vector<1x128xf32>
    %196 = arith.addf %195, %194 : vector<1x128xf32>
    %197 = arith.divf %195, %196 : vector<1x128xf32>
    %198 = vector.extract_strided_slice %185 {offsets = [0, 256], sizes = [1, 128], strides = [1, 1]} : vector<1x512xf32> to vector<1x128xf32>
    %199 = math.tanh %198 : vector<1x128xf32>
    %200 = vector.extract_strided_slice %185 {offsets = [0, 384], sizes = [1, 128], strides = [1, 1]} : vector<1x512xf32> to vector<1x128xf32>
    %201 = arith.negf %200 : vector<1x128xf32>
    %202 = math.exp %201 : vector<1x128xf32>
    %cst_43 = arith.constant 1.000000e+00 : f32
    %203 = vector.broadcast %cst_43 : f32 to vector<1x128xf32>
    %204 = arith.addf %203, %202 : vector<1x128xf32>
    %205 = arith.divf %203, %204 : vector<1x128xf32>
    %206 = arith.mulf %197, %179 : vector<1x128xf32>
    %207 = arith.mulf %191, %199 : vector<1x128xf32>
    %208 = arith.addf %206, %207 : vector<1x128xf32>
    %209 = math.tanh %208 : vector<1x128xf32>
    %210 = arith.mulf %205, %209 : vector<1x128xf32>
    %c6 = arith.constant 6 : index
    %c0_44 = arith.constant 0 : index
    %211 = vector.load %arg32[%c6, %c0_44] : memref<8x128xf32, #tpu.memory_space<vmem>>, vector<1x128xf32>
    tpu.vector_store %arg32[%c6, %c0_44], %210 {strides = array<i32>} : memref<8x128xf32, #tpu.memory_space<vmem>>, vector<1x128xf32>,
    %212 = vector.extract_strided_slice %5 {offsets = [7, 0], sizes = [1, 512], strides = [1, 1]} : vector<8x512xf32> to vector<1x512xf32>
    %cst_45 = arith.constant dense<0.000000e+00> : vector<1x512xf32>
    %213 = tpu.matmul %210, %6, %cst_45 {dimension_numbers = #tpu.dot_dimension_numbers<[1], [0], [0], [1], [0, 0, 1, 1], [], []>} : vector<1x128xf32>, vector<128x512xf32>, vector<1x512xf32> -> vector<1x512xf32>
    %214 = arith.addf %212, %213 : vector<1x512xf32>
    %215 = vector.extract_strided_slice %214 {offsets = [0, 0], sizes = [1, 128], strides = [1, 1]} : vector<1x512xf32> to vector<1x128xf32>
    %216 = arith.negf %215 : vector<1x128xf32>
    %217 = math.exp %216 : vector<1x128xf32>
    %cst_46 = arith.constant 1.000000e+00 : f32
    %218 = vector.broadcast %cst_46 : f32 to vector<1x128xf32>
    %219 = arith.addf %218, %217 : vector<1x128xf32>
    %220 = arith.divf %218, %219 : vector<1x128xf32>
    %221 = vector.extract_strided_slice %214 {offsets = [0, 128], sizes = [1, 128], strides = [1, 1]} : vector<1x512xf32> to vector<1x128xf32>
    %222 = arith.negf %221 : vector<1x128xf32>
    %223 = math.exp %222 : vector<1x128xf32>
    %cst_47 = arith.constant 1.000000e+00 : f32
    %224 = vector.broadcast %cst_47 : f32 to vector<1x128xf32>
    %225 = arith.addf %224, %223 : vector<1x128xf32>
    %226 = arith.divf %224, %225 : vector<1x128xf32>
    %227 = vector.extract_strided_slice %214 {offsets = [0, 256], sizes = [1, 128], strides = [1, 1]} : vector<1x512xf32> to vector<1x128xf32>
    %228 = math.tanh %227 : vector<1x128xf32>
    %229 = vector.extract_strided_slice %214 {offsets = [0, 384], sizes = [1, 128], strides = [1, 1]} : vector<1x512xf32> to vector<1x128xf32>
    %230 = arith.negf %229 : vector<1x128xf32>
    %231 = math.exp %230 : vector<1x128xf32>
    %cst_48 = arith.constant 1.000000e+00 : f32
    %232 = vector.broadcast %cst_48 : f32 to vector<1x128xf32>
    %233 = arith.addf %232, %231 : vector<1x128xf32>
    %234 = arith.divf %232, %233 : vector<1x128xf32>
    %235 = arith.mulf %226, %208 : vector<1x128xf32>
    %236 = arith.mulf %220, %228 : vector<1x128xf32>
    %237 = arith.addf %235, %236 : vector<1x128xf32>
    %238 = math.tanh %237 : vector<1x128xf32>
    %239 = arith.mulf %234, %238 : vector<1x128xf32>
    %c7 = arith.constant 7 : index
    %c0_49 = arith.constant 0 : index
    %240 = vector.load %arg32[%c7, %c0_49] : memref<8x128xf32, #tpu.memory_space<vmem>>, vector<1x128xf32>
    tpu.vector_store %arg32[%c7, %c0_49], %239 {strides = array<i32>} : memref<8x128xf32, #tpu.memory_space<vmem>>, vector<1x128xf32>,
    %c0_50 = arith.constant 0 : index
    %c0_51 = arith.constant 0 : index
    %241 = vector.load %arg1[%c0_50, %c0_51] : memref<8x16xf32, #tpu.memory_space<vmem>>, vector<8x16xf32>
    %c0_52 = arith.constant 0 : index
    %c0_53 = arith.constant 0 : index
    %242 = vector.load %arg6[%c0_52, %c0_53] : memref<16x512xf32, #tpu.memory_space<vmem>>, vector<16x512xf32>
    %cst_54 = arith.constant dense<0.000000e+00> : vector<8x512xf32>
    %243 = tpu.matmul %241, %242, %cst_54 {dimension_numbers = #tpu.dot_dimension_numbers<[1], [0], [0], [1], [0, 0, 1, 1], [], []>} : vector<8x16xf32>, vector<16x512xf32>, vector<8x512xf32> -> vector<8x512xf32>
    %c0_55 = arith.constant 0 : index
    %c0_56 = arith.constant 0 : index
    %244 = vector.load %arg8[%c0_55, %c0_56] : memref<1x512xf32, #tpu.memory_space<vmem>>, vector<1x512xf32>
    %245 = vector.broadcast %244 : vector<1x512xf32> to vector<8x512xf32>
    %246 = arith.addf %243, %245 : vector<8x512xf32>
    %c0_57 = arith.constant 0 : index
    %c0_58 = arith.constant 0 : index
    %247 = vector.load %arg7[%c0_57, %c0_58] : memref<128x512xf32, #tpu.memory_space<vmem>>, vector<128x512xf32>
    %cst_59 = arith.constant 0.000000e+00 : f32
    %248 = vector.broadcast %cst_59 : f32 to vector<1x128xf32>
    %cst_60 = arith.constant 0.000000e+00 : f32
    %249 = vector.broadcast %cst_60 : f32 to vector<1x128xf32>
    %250 = vector.extract_strided_slice %246 {offsets = [0, 0], sizes = [1, 512], strides = [1, 1]} : vector<8x512xf32> to vector<1x512xf32>
    %cst_61 = arith.constant dense<0.000000e+00> : vector<1x512xf32>
    %251 = tpu.matmul %248, %247, %cst_61 {dimension_numbers = #tpu.dot_dimension_numbers<[1], [0], [0], [1], [0, 0, 1, 1], [], []>} : vector<1x128xf32>, vector<128x512xf32>, vector<1x512xf32> -> vector<1x512xf32>
    %252 = arith.addf %250, %251 : vector<1x512xf32>
    %253 = vector.extract_strided_slice %252 {offsets = [0, 0], sizes = [1, 128], strides = [1, 1]} : vector<1x512xf32> to vector<1x128xf32>
    %254 = arith.negf %253 : vector<1x128xf32>
    %255 = math.exp %254 : vector<1x128xf32>
    %cst_62 = arith.constant 1.000000e+00 : f32
    %256 = vector.broadcast %cst_62 : f32 to vector<1x128xf32>
    %257 = arith.addf %256, %255 : vector<1x128xf32>
    %258 = arith.divf %256, %257 : vector<1x128xf32>
    %259 = vector.extract_strided_slice %252 {offsets = [0, 128], sizes = [1, 128], strides = [1, 1]} : vector<1x512xf32> to vector<1x128xf32>
    %260 = arith.negf %259 : vector<1x128xf32>
    %261 = math.exp %260 : vector<1x128xf32>
    %cst_63 = arith.constant 1.000000e+00 : f32
    %262 = vector.broadcast %cst_63 : f32 to vector<1x128xf32>
    %263 = arith.addf %262, %261 : vector<1x128xf32>
    %264 = arith.divf %262, %263 : vector<1x128xf32>
    %265 = vector.extract_strided_slice %252 {offsets = [0, 256], sizes = [1, 128], strides = [1, 1]} : vector<1x512xf32> to vector<1x128xf32>
    %266 = math.tanh %265 : vector<1x128xf32>
    %267 = vector.extract_strided_slice %252 {offsets = [0, 384], sizes = [1, 128], strides = [1, 1]} : vector<1x512xf32> to vector<1x128xf32>
    %268 = arith.negf %267 : vector<1x128xf32>
    %269 = math.exp %268 : vector<1x128xf32>
    %cst_64 = arith.constant 1.000000e+00 : f32
    %270 = vector.broadcast %cst_64 : f32 to vector<1x128xf32>
    %271 = arith.addf %270, %269 : vector<1x128xf32>
    %272 = arith.divf %270, %271 : vector<1x128xf32>
    %273 = arith.mulf %264, %249 : vector<1x128xf32>
    %274 = arith.mulf %258, %266 : vector<1x128xf32>
    %275 = arith.addf %273, %274 : vector<1x128xf32>
    %276 = math.tanh %275 : vector<1x128xf32>
    %277 = arith.mulf %272, %276 : vector<1x128xf32>
    %c0_65 = arith.constant 0 : index
    %c0_66 = arith.constant 0 : index
    %278 = vector.load %arg33[%c0_65, %c0_66] : memref<8x128xf32, #tpu.memory_space<vmem>>, vector<1x128xf32>
    tpu.vector_store %arg33[%c0_65, %c0_66], %277 {strides = array<i32>} : memref<8x128xf32, #tpu.memory_space<vmem>>, vector<1x128xf32>,
    %279 = vector.extract_strided_slice %246 {offsets = [1, 0], sizes = [1, 512], strides = [1, 1]} : vector<8x512xf32> to vector<1x512xf32>
    %cst_67 = arith.constant dense<0.000000e+00> : vector<1x512xf32>
    %280 = tpu.matmul %277, %247, %cst_67 {dimension_numbers = #tpu.dot_dimension_numbers<[1], [0], [0], [1], [0, 0, 1, 1], [], []>} : vector<1x128xf32>, vector<128x512xf32>, vector<1x512xf32> -> vector<1x512xf32>
    %281 = arith.addf %279, %280 : vector<1x512xf32>
    %282 = vector.extract_strided_slice %281 {offsets = [0, 0], sizes = [1, 128], strides = [1, 1]} : vector<1x512xf32> to vector<1x128xf32>
    %283 = arith.negf %282 : vector<1x128xf32>
    %284 = math.exp %283 : vector<1x128xf32>
    %cst_68 = arith.constant 1.000000e+00 : f32
    %285 = vector.broadcast %cst_68 : f32 to vector<1x128xf32>
    %286 = arith.addf %285, %284 : vector<1x128xf32>
    %287 = arith.divf %285, %286 : vector<1x128xf32>
    %288 = vector.extract_strided_slice %281 {offsets = [0, 128], sizes = [1, 128], strides = [1, 1]} : vector<1x512xf32> to vector<1x128xf32>
    %289 = arith.negf %288 : vector<1x128xf32>
    %290 = math.exp %289 : vector<1x128xf32>
    %cst_69 = arith.constant 1.000000e+00 : f32
    %291 = vector.broadcast %cst_69 : f32 to vector<1x128xf32>
    %292 = arith.addf %291, %290 : vector<1x128xf32>
    %293 = arith.divf %291, %292 : vector<1x128xf32>
    %294 = vector.extract_strided_slice %281 {offsets = [0, 256], sizes = [1, 128], strides = [1, 1]} : vector<1x512xf32> to vector<1x128xf32>
    %295 = math.tanh %294 : vector<1x128xf32>
    %296 = vector.extract_strided_slice %281 {offsets = [0, 384], sizes = [1, 128], strides = [1, 1]} : vector<1x512xf32> to vector<1x128xf32>
    %297 = arith.negf %296 : vector<1x128xf32>
    %298 = math.exp %297 : vector<1x128xf32>
    %cst_70 = arith.constant 1.000000e+00 : f32
    %299 = vector.broadcast %cst_70 : f32 to vector<1x128xf32>
    %300 = arith.addf %299, %298 : vector<1x128xf32>
    %301 = arith.divf %299, %300 : vector<1x128xf32>
    %302 = arith.mulf %293, %275 : vector<1x128xf32>
    %303 = arith.mulf %287, %295 : vector<1x128xf32>
    %304 = arith.addf %302, %303 : vector<1x128xf32>
    %305 = math.tanh %304 : vector<1x128xf32>
    %306 = arith.mulf %301, %305 : vector<1x128xf32>
    %c1_71 = arith.constant 1 : index
    %c0_72 = arith.constant 0 : index
    %307 = vector.load %arg33[%c1_71, %c0_72] : memref<8x128xf32, #tpu.memory_space<vmem>>, vector<1x128xf32>
    tpu.vector_store %arg33[%c1_71, %c0_72], %306 {strides = array<i32>} : memref<8x128xf32, #tpu.memory_space<vmem>>, vector<1x128xf32>,
    %308 = vector.extract_strided_slice %246 {offsets = [2, 0], sizes = [1, 512], strides = [1, 1]} : vector<8x512xf32> to vector<1x512xf32>
    %cst_73 = arith.constant dense<0.000000e+00> : vector<1x512xf32>
    %309 = tpu.matmul %306, %247, %cst_73 {dimension_numbers = #tpu.dot_dimension_numbers<[1], [0], [0], [1], [0, 0, 1, 1], [], []>} : vector<1x128xf32>, vector<128x512xf32>, vector<1x512xf32> -> vector<1x512xf32>
    %310 = arith.addf %308, %309 : vector<1x512xf32>
    %311 = vector.extract_strided_slice %310 {offsets = [0, 0], sizes = [1, 128], strides = [1, 1]} : vector<1x512xf32> to vector<1x128xf32>
    %312 = arith.negf %311 : vector<1x128xf32>
    %313 = math.exp %312 : vector<1x128xf32>
    %cst_74 = arith.constant 1.000000e+00 : f32
    %314 = vector.broadcast %cst_74 : f32 to vector<1x128xf32>
    %315 = arith.addf %314, %313 : vector<1x128xf32>
    %316 = arith.divf %314, %315 : vector<1x128xf32>
    %317 = vector.extract_strided_slice %310 {offsets = [0, 128], sizes = [1, 128], strides = [1, 1]} : vector<1x512xf32> to vector<1x128xf32>
    %318 = arith.negf %317 : vector<1x128xf32>
    %319 = math.exp %318 : vector<1x128xf32>
    %cst_75 = arith.constant 1.000000e+00 : f32
    %320 = vector.broadcast %cst_75 : f32 to vector<1x128xf32>
    %321 = arith.addf %320, %319 : vector<1x128xf32>
    %322 = arith.divf %320, %321 : vector<1x128xf32>
    %323 = vector.extract_strided_slice %310 {offsets = [0, 256], sizes = [1, 128], strides = [1, 1]} : vector<1x512xf32> to vector<1x128xf32>
    %324 = math.tanh %323 : vector<1x128xf32>
    %325 = vector.extract_strided_slice %310 {offsets = [0, 384], sizes = [1, 128], strides = [1, 1]} : vector<1x512xf32> to vector<1x128xf32>
    %326 = arith.negf %325 : vector<1x128xf32>
    %327 = math.exp %326 : vector<1x128xf32>
    %cst_76 = arith.constant 1.000000e+00 : f32
    %328 = vector.broadcast %cst_76 : f32 to vector<1x128xf32>
    %329 = arith.addf %328, %327 : vector<1x128xf32>
    %330 = arith.divf %328, %329 : vector<1x128xf32>
    %331 = arith.mulf %322, %304 : vector<1x128xf32>
    %332 = arith.mulf %316, %324 : vector<1x128xf32>
    %333 = arith.addf %331, %332 : vector<1x128xf32>
    %334 = math.tanh %333 : vector<1x128xf32>
    %335 = arith.mulf %330, %334 : vector<1x128xf32>
    %c2_77 = arith.constant 2 : index
    %c0_78 = arith.constant 0 : index
    %336 = vector.load %arg33[%c2_77, %c0_78] : memref<8x128xf32, #tpu.memory_space<vmem>>, vector<1x128xf32>
    tpu.vector_store %arg33[%c2_77, %c0_78], %335 {strides = array<i32>} : memref<8x128xf32, #tpu.memory_space<vmem>>, vector<1x128xf32>,
    %337 = vector.extract_strided_slice %246 {offsets = [3, 0], sizes = [1, 512], strides = [1, 1]} : vector<8x512xf32> to vector<1x512xf32>
    %cst_79 = arith.constant dense<0.000000e+00> : vector<1x512xf32>
    %338 = tpu.matmul %335, %247, %cst_79 {dimension_numbers = #tpu.dot_dimension_numbers<[1], [0], [0], [1], [0, 0, 1, 1], [], []>} : vector<1x128xf32>, vector<128x512xf32>, vector<1x512xf32> -> vector<1x512xf32>
    %339 = arith.addf %337, %338 : vector<1x512xf32>
    %340 = vector.extract_strided_slice %339 {offsets = [0, 0], sizes = [1, 128], strides = [1, 1]} : vector<1x512xf32> to vector<1x128xf32>
    %341 = arith.negf %340 : vector<1x128xf32>
    %342 = math.exp %341 : vector<1x128xf32>
    %cst_80 = arith.constant 1.000000e+00 : f32
    %343 = vector.broadcast %cst_80 : f32 to vector<1x128xf32>
    %344 = arith.addf %343, %342 : vector<1x128xf32>
    %345 = arith.divf %343, %344 : vector<1x128xf32>
    %346 = vector.extract_strided_slice %339 {offsets = [0, 128], sizes = [1, 128], strides = [1, 1]} : vector<1x512xf32> to vector<1x128xf32>
    %347 = arith.negf %346 : vector<1x128xf32>
    %348 = math.exp %347 : vector<1x128xf32>
    %cst_81 = arith.constant 1.000000e+00 : f32
    %349 = vector.broadcast %cst_81 : f32 to vector<1x128xf32>
    %350 = arith.addf %349, %348 : vector<1x128xf32>
    %351 = arith.divf %349, %350 : vector<1x128xf32>
    %352 = vector.extract_strided_slice %339 {offsets = [0, 256], sizes = [1, 128], strides = [1, 1]} : vector<1x512xf32> to vector<1x128xf32>
    %353 = math.tanh %352 : vector<1x128xf32>
    %354 = vector.extract_strided_slice %339 {offsets = [0, 384], sizes = [1, 128], strides = [1, 1]} : vector<1x512xf32> to vector<1x128xf32>
    %355 = arith.negf %354 : vector<1x128xf32>
    %356 = math.exp %355 : vector<1x128xf32>
    %cst_82 = arith.constant 1.000000e+00 : f32
    %357 = vector.broadcast %cst_82 : f32 to vector<1x128xf32>
    %358 = arith.addf %357, %356 : vector<1x128xf32>
    %359 = arith.divf %357, %358 : vector<1x128xf32>
    %360 = arith.mulf %351, %333 : vector<1x128xf32>
    %361 = arith.mulf %345, %353 : vector<1x128xf32>
    %362 = arith.addf %360, %361 : vector<1x128xf32>
    %363 = math.tanh %362 : vector<1x128xf32>
    %364 = arith.mulf %359, %363 : vector<1x128xf32>
    %c3_83 = arith.constant 3 : index
    %c0_84 = arith.constant 0 : index
    %365 = vector.load %arg33[%c3_83, %c0_84] : memref<8x128xf32, #tpu.memory_space<vmem>>, vector<1x128xf32>
    tpu.vector_store %arg33[%c3_83, %c0_84], %364 {strides = array<i32>} : memref<8x128xf32, #tpu.memory_space<vmem>>, vector<1x128xf32>,
    %366 = vector.extract_strided_slice %246 {offsets = [4, 0], sizes = [1, 512], strides = [1, 1]} : vector<8x512xf32> to vector<1x512xf32>
    %cst_85 = arith.constant dense<0.000000e+00> : vector<1x512xf32>
    %367 = tpu.matmul %364, %247, %cst_85 {dimension_numbers = #tpu.dot_dimension_numbers<[1], [0], [0], [1], [0, 0, 1, 1], [], []>} : vector<1x128xf32>, vector<128x512xf32>, vector<1x512xf32> -> vector<1x512xf32>
    %368 = arith.addf %366, %367 : vector<1x512xf32>
    %369 = vector.extract_strided_slice %368 {offsets = [0, 0], sizes = [1, 128], strides = [1, 1]} : vector<1x512xf32> to vector<1x128xf32>
    %370 = arith.negf %369 : vector<1x128xf32>
    %371 = math.exp %370 : vector<1x128xf32>
    %cst_86 = arith.constant 1.000000e+00 : f32
    %372 = vector.broadcast %cst_86 : f32 to vector<1x128xf32>
    %373 = arith.addf %372, %371 : vector<1x128xf32>
    %374 = arith.divf %372, %373 : vector<1x128xf32>
    %375 = vector.extract_strided_slice %368 {offsets = [0, 128], sizes = [1, 128], strides = [1, 1]} : vector<1x512xf32> to vector<1x128xf32>
    %376 = arith.negf %375 : vector<1x128xf32>
    %377 = math.exp %376 : vector<1x128xf32>
    %cst_87 = arith.constant 1.000000e+00 : f32
    %378 = vector.broadcast %cst_87 : f32 to vector<1x128xf32>
    %379 = arith.addf %378, %377 : vector<1x128xf32>
    %380 = arith.divf %378, %379 : vector<1x128xf32>
    %381 = vector.extract_strided_slice %368 {offsets = [0, 256], sizes = [1, 128], strides = [1, 1]} : vector<1x512xf32> to vector<1x128xf32>
    %382 = math.tanh %381 : vector<1x128xf32>
    %383 = vector.extract_strided_slice %368 {offsets = [0, 384], sizes = [1, 128], strides = [1, 1]} : vector<1x512xf32> to vector<1x128xf32>
    %384 = arith.negf %383 : vector<1x128xf32>
    %385 = math.exp %384 : vector<1x128xf32>
    %cst_88 = arith.constant 1.000000e+00 : f32
    %386 = vector.broadcast %cst_88 : f32 to vector<1x128xf32>
    %387 = arith.addf %386, %385 : vector<1x128xf32>
    %388 = arith.divf %386, %387 : vector<1x128xf32>
    %389 = arith.mulf %380, %362 : vector<1x128xf32>
    %390 = arith.mulf %374, %382 : vector<1x128xf32>
    %391 = arith.addf %389, %390 : vector<1x128xf32>
    %392 = math.tanh %391 : vector<1x128xf32>
    %393 = arith.mulf %388, %392 : vector<1x128xf32>
    %c4_89 = arith.constant 4 : index
    %c0_90 = arith.constant 0 : index
    %394 = vector.load %arg33[%c4_89, %c0_90] : memref<8x128xf32, #tpu.memory_space<vmem>>, vector<1x128xf32>
    tpu.vector_store %arg33[%c4_89, %c0_90], %393 {strides = array<i32>} : memref<8x128xf32, #tpu.memory_space<vmem>>, vector<1x128xf32>,
    %395 = vector.extract_strided_slice %246 {offsets = [5, 0], sizes = [1, 512], strides = [1, 1]} : vector<8x512xf32> to vector<1x512xf32>
    %cst_91 = arith.constant dense<0.000000e+00> : vector<1x512xf32>
    %396 = tpu.matmul %393, %247, %cst_91 {dimension_numbers = #tpu.dot_dimension_numbers<[1], [0], [0], [1], [0, 0, 1, 1], [], []>} : vector<1x128xf32>, vector<128x512xf32>, vector<1x512xf32> -> vector<1x512xf32>
    %397 = arith.addf %395, %396 : vector<1x512xf32>
    %398 = vector.extract_strided_slice %397 {offsets = [0, 0], sizes = [1, 128], strides = [1, 1]} : vector<1x512xf32> to vector<1x128xf32>
    %399 = arith.negf %398 : vector<1x128xf32>
    %400 = math.exp %399 : vector<1x128xf32>
    %cst_92 = arith.constant 1.000000e+00 : f32
    %401 = vector.broadcast %cst_92 : f32 to vector<1x128xf32>
    %402 = arith.addf %401, %400 : vector<1x128xf32>
    %403 = arith.divf %401, %402 : vector<1x128xf32>
    %404 = vector.extract_strided_slice %397 {offsets = [0, 128], sizes = [1, 128], strides = [1, 1]} : vector<1x512xf32> to vector<1x128xf32>
    %405 = arith.negf %404 : vector<1x128xf32>
    %406 = math.exp %405 : vector<1x128xf32>
    %cst_93 = arith.constant 1.000000e+00 : f32
    %407 = vector.broadcast %cst_93 : f32 to vector<1x128xf32>
    %408 = arith.addf %407, %406 : vector<1x128xf32>
    %409 = arith.divf %407, %408 : vector<1x128xf32>
    %410 = vector.extract_strided_slice %397 {offsets = [0, 256], sizes = [1, 128], strides = [1, 1]} : vector<1x512xf32> to vector<1x128xf32>
    %411 = math.tanh %410 : vector<1x128xf32>
    %412 = vector.extract_strided_slice %397 {offsets = [0, 384], sizes = [1, 128], strides = [1, 1]} : vector<1x512xf32> to vector<1x128xf32>
    %413 = arith.negf %412 : vector<1x128xf32>
    %414 = math.exp %413 : vector<1x128xf32>
    %cst_94 = arith.constant 1.000000e+00 : f32
    %415 = vector.broadcast %cst_94 : f32 to vector<1x128xf32>
    %416 = arith.addf %415, %414 : vector<1x128xf32>
    %417 = arith.divf %415, %416 : vector<1x128xf32>
    %418 = arith.mulf %409, %391 : vector<1x128xf32>
    %419 = arith.mulf %403, %411 : vector<1x128xf32>
    %420 = arith.addf %418, %419 : vector<1x128xf32>
    %421 = math.tanh %420 : vector<1x128xf32>
    %422 = arith.mulf %417, %421 : vector<1x128xf32>
    %c5_95 = arith.constant 5 : index
    %c0_96 = arith.constant 0 : index
    %423 = vector.load %arg33[%c5_95, %c0_96] : memref<8x128xf32, #tpu.memory_space<vmem>>, vector<1x128xf32>
    tpu.vector_store %arg33[%c5_95, %c0_96], %422 {strides = array<i32>} : memref<8x128xf32, #tpu.memory_space<vmem>>, vector<1x128xf32>,
    %424 = vector.extract_strided_slice %246 {offsets = [6, 0], sizes = [1, 512], strides = [1, 1]} : vector<8x512xf32> to vector<1x512xf32>
    %cst_97 = arith.constant dense<0.000000e+00> : vector<1x512xf32>
    %425 = tpu.matmul %422, %247, %cst_97 {dimension_numbers = #tpu.dot_dimension_numbers<[1], [0], [0], [1], [0, 0, 1, 1], [], []>} : vector<1x128xf32>, vector<128x512xf32>, vector<1x512xf32> -> vector<1x512xf32>
    %426 = arith.addf %424, %425 : vector<1x512xf32>
    %427 = vector.extract_strided_slice %426 {offsets = [0, 0], sizes = [1, 128], strides = [1, 1]} : vector<1x512xf32> to vector<1x128xf32>
    %428 = arith.negf %427 : vector<1x128xf32>
    %429 = math.exp %428 : vector<1x128xf32>
    %cst_98 = arith.constant 1.000000e+00 : f32
    %430 = vector.broadcast %cst_98 : f32 to vector<1x128xf32>
    %431 = arith.addf %430, %429 : vector<1x128xf32>
    %432 = arith.divf %430, %431 : vector<1x128xf32>
    %433 = vector.extract_strided_slice %426 {offsets = [0, 128], sizes = [1, 128], strides = [1, 1]} : vector<1x512xf32> to vector<1x128xf32>
    %434 = arith.negf %433 : vector<1x128xf32>
    %435 = math.exp %434 : vector<1x128xf32>
    %cst_99 = arith.constant 1.000000e+00 : f32
    %436 = vector.broadcast %cst_99 : f32 to vector<1x128xf32>
    %437 = arith.addf %436, %435 : vector<1x128xf32>
    %438 = arith.divf %436, %437 : vector<1x128xf32>
    %439 = vector.extract_strided_slice %426 {offsets = [0, 256], sizes = [1, 128], strides = [1, 1]} : vector<1x512xf32> to vector<1x128xf32>
    %440 = math.tanh %439 : vector<1x128xf32>
    %441 = vector.extract_strided_slice %426 {offsets = [0, 384], sizes = [1, 128], strides = [1, 1]} : vector<1x512xf32> to vector<1x128xf32>
    %442 = arith.negf %441 : vector<1x128xf32>
    %443 = math.exp %442 : vector<1x128xf32>
    %cst_100 = arith.constant 1.000000e+00 : f32
    %444 = vector.broadcast %cst_100 : f32 to vector<1x128xf32>
    %445 = arith.addf %444, %443 : vector<1x128xf32>
    %446 = arith.divf %444, %445 : vector<1x128xf32>
    %447 = arith.mulf %438, %420 : vector<1x128xf32>
    %448 = arith.mulf %432, %440 : vector<1x128xf32>
    %449 = arith.addf %447, %448 : vector<1x128xf32>
    %450 = math.tanh %449 : vector<1x128xf32>
    %451 = arith.mulf %446, %450 : vector<1x128xf32>
    %c6_101 = arith.constant 6 : index
    %c0_102 = arith.constant 0 : index
    %452 = vector.load %arg33[%c6_101, %c0_102] : memref<8x128xf32, #tpu.memory_space<vmem>>, vector<1x128xf32>
    tpu.vector_store %arg33[%c6_101, %c0_102], %451 {strides = array<i32>} : memref<8x128xf32, #tpu.memory_space<vmem>>, vector<1x128xf32>,
    %453 = vector.extract_strided_slice %246 {offsets = [7, 0], sizes = [1, 512], strides = [1, 1]} : vector<8x512xf32> to vector<1x512xf32>
    %cst_103 = arith.constant dense<0.000000e+00> : vector<1x512xf32>
    %454 = tpu.matmul %451, %247, %cst_103 {dimension_numbers = #tpu.dot_dimension_numbers<[1], [0], [0], [1], [0, 0, 1, 1], [], []>} : vector<1x128xf32>, vector<128x512xf32>, vector<1x512xf32> -> vector<1x512xf32>
    %455 = arith.addf %453, %454 : vector<1x512xf32>
    %456 = vector.extract_strided_slice %455 {offsets = [0, 0], sizes = [1, 128], strides = [1, 1]} : vector<1x512xf32> to vector<1x128xf32>
    %457 = arith.negf %456 : vector<1x128xf32>
    %458 = math.exp %457 : vector<1x128xf32>
    %cst_104 = arith.constant 1.000000e+00 : f32
    %459 = vector.broadcast %cst_104 : f32 to vector<1x128xf32>
    %460 = arith.addf %459, %458 : vector<1x128xf32>
    %461 = arith.divf %459, %460 : vector<1x128xf32>
    %462 = vector.extract_strided_slice %455 {offsets = [0, 128], sizes = [1, 128], strides = [1, 1]} : vector<1x512xf32> to vector<1x128xf32>
    %463 = arith.negf %462 : vector<1x128xf32>
    %464 = math.exp %463 : vector<1x128xf32>
    %cst_105 = arith.constant 1.000000e+00 : f32
    %465 = vector.broadcast %cst_105 : f32 to vector<1x128xf32>
    %466 = arith.addf %465, %464 : vector<1x128xf32>
    %467 = arith.divf %465, %466 : vector<1x128xf32>
    %468 = vector.extract_strided_slice %455 {offsets = [0, 256], sizes = [1, 128], strides = [1, 1]} : vector<1x512xf32> to vector<1x128xf32>
    %469 = math.tanh %468 : vector<1x128xf32>
    %470 = vector.extract_strided_slice %455 {offsets = [0, 384], sizes = [1, 128], strides = [1, 1]} : vector<1x512xf32> to vector<1x128xf32>
    %471 = arith.negf %470 : vector<1x128xf32>
    %472 = math.exp %471 : vector<1x128xf32>
    %cst_106 = arith.constant 1.000000e+00 : f32
    %473 = vector.broadcast %cst_106 : f32 to vector<1x128xf32>
    %474 = arith.addf %473, %472 : vector<1x128xf32>
    %475 = arith.divf %473, %474 : vector<1x128xf32>
    %476 = arith.mulf %467, %449 : vector<1x128xf32>
    %477 = arith.mulf %461, %469 : vector<1x128xf32>
    %478 = arith.addf %476, %477 : vector<1x128xf32>
    %479 = math.tanh %478 : vector<1x128xf32>
    %480 = arith.mulf %475, %479 : vector<1x128xf32>
    %c7_107 = arith.constant 7 : index
    %c0_108 = arith.constant 0 : index
    %481 = vector.load %arg33[%c7_107, %c0_108] : memref<8x128xf32, #tpu.memory_space<vmem>>, vector<1x128xf32>
    tpu.vector_store %arg33[%c7_107, %c0_108], %480 {strides = array<i32>} : memref<8x128xf32, #tpu.memory_space<vmem>>, vector<1x128xf32>,
    %c0_109 = arith.constant 0 : index
    %c0_110 = arith.constant 0 : index
    %482 = vector.load %arg2[%c0_109, %c0_110] : memref<8x16xf32, #tpu.memory_space<vmem>>, vector<8x16xf32>
    %c0_111 = arith.constant 0 : index
    %c0_112 = arith.constant 0 : index
    %483 = vector.load %arg9[%c0_111, %c0_112] : memref<16x512xf32, #tpu.memory_space<vmem>>, vector<16x512xf32>
    %cst_113 = arith.constant dense<0.000000e+00> : vector<8x512xf32>
    %484 = tpu.matmul %482, %483, %cst_113 {dimension_numbers = #tpu.dot_dimension_numbers<[1], [0], [0], [1], [0, 0, 1, 1], [], []>} : vector<8x16xf32>, vector<16x512xf32>, vector<8x512xf32> -> vector<8x512xf32>
    %c0_114 = arith.constant 0 : index
    %c0_115 = arith.constant 0 : index
    %485 = vector.load %arg11[%c0_114, %c0_115] : memref<1x512xf32, #tpu.memory_space<vmem>>, vector<1x512xf32>
    %486 = vector.broadcast %485 : vector<1x512xf32> to vector<8x512xf32>
    %487 = arith.addf %484, %486 : vector<8x512xf32>
    %c0_116 = arith.constant 0 : index
    %c0_117 = arith.constant 0 : index
    %488 = vector.load %arg10[%c0_116, %c0_117] : memref<128x512xf32, #tpu.memory_space<vmem>>, vector<128x512xf32>
    %cst_118 = arith.constant 0.000000e+00 : f32
    %489 = vector.broadcast %cst_118 : f32 to vector<1x128xf32>
    %cst_119 = arith.constant 0.000000e+00 : f32
    %490 = vector.broadcast %cst_119 : f32 to vector<1x128xf32>
    %491 = vector.extract_strided_slice %487 {offsets = [0, 0], sizes = [1, 512], strides = [1, 1]} : vector<8x512xf32> to vector<1x512xf32>
    %cst_120 = arith.constant dense<0.000000e+00> : vector<1x512xf32>
    %492 = tpu.matmul %489, %488, %cst_120 {dimension_numbers = #tpu.dot_dimension_numbers<[1], [0], [0], [1], [0, 0, 1, 1], [], []>} : vector<1x128xf32>, vector<128x512xf32>, vector<1x512xf32> -> vector<1x512xf32>
    %493 = arith.addf %491, %492 : vector<1x512xf32>
    %494 = vector.extract_strided_slice %493 {offsets = [0, 0], sizes = [1, 128], strides = [1, 1]} : vector<1x512xf32> to vector<1x128xf32>
    %495 = arith.negf %494 : vector<1x128xf32>
    %496 = math.exp %495 : vector<1x128xf32>
    %cst_121 = arith.constant 1.000000e+00 : f32
    %497 = vector.broadcast %cst_121 : f32 to vector<1x128xf32>
    %498 = arith.addf %497, %496 : vector<1x128xf32>
    %499 = arith.divf %497, %498 : vector<1x128xf32>
    %500 = vector.extract_strided_slice %493 {offsets = [0, 128], sizes = [1, 128], strides = [1, 1]} : vector<1x512xf32> to vector<1x128xf32>
    %501 = arith.negf %500 : vector<1x128xf32>
    %502 = math.exp %501 : vector<1x128xf32>
    %cst_122 = arith.constant 1.000000e+00 : f32
    %503 = vector.broadcast %cst_122 : f32 to vector<1x128xf32>
    %504 = arith.addf %503, %502 : vector<1x128xf32>
    %505 = arith.divf %503, %504 : vector<1x128xf32>
    %506 = vector.extract_strided_slice %493 {offsets = [0, 256], sizes = [1, 128], strides = [1, 1]} : vector<1x512xf32> to vector<1x128xf32>
    %507 = math.tanh %506 : vector<1x128xf32>
    %508 = vector.extract_strided_slice %493 {offsets = [0, 384], sizes = [1, 128], strides = [1, 1]} : vector<1x512xf32> to vector<1x128xf32>
    %509 = arith.negf %508 : vector<1x128xf32>
    %510 = math.exp %509 : vector<1x128xf32>
    %cst_123 = arith.constant 1.000000e+00 : f32
    %511 = vector.broadcast %cst_123 : f32 to vector<1x128xf32>
    %512 = arith.addf %511, %510 : vector<1x128xf32>
    %513 = arith.divf %511, %512 : vector<1x128xf32>
    %514 = arith.mulf %505, %490 : vector<1x128xf32>
    %515 = arith.mulf %499, %507 : vector<1x128xf32>
    %516 = arith.addf %514, %515 : vector<1x128xf32>
    %517 = math.tanh %516 : vector<1x128xf32>
    %518 = arith.mulf %513, %517 : vector<1x128xf32>
    %c0_124 = arith.constant 0 : index
    %c0_125 = arith.constant 0 : index
    %519 = vector.load %arg34[%c0_124, %c0_125] : memref<8x128xf32, #tpu.memory_space<vmem>>, vector<1x128xf32>
    tpu.vector_store %arg34[%c0_124, %c0_125], %518 {strides = array<i32>} : memref<8x128xf32, #tpu.memory_space<vmem>>, vector<1x128xf32>,
    %520 = vector.extract_strided_slice %487 {offsets = [1, 0], sizes = [1, 512], strides = [1, 1]} : vector<8x512xf32> to vector<1x512xf32>
    %cst_126 = arith.constant dense<0.000000e+00> : vector<1x512xf32>
    %521 = tpu.matmul %518, %488, %cst_126 {dimension_numbers = #tpu.dot_dimension_numbers<[1], [0], [0], [1], [0, 0, 1, 1], [], []>} : vector<1x128xf32>, vector<128x512xf32>, vector<1x512xf32> -> vector<1x512xf32>
    %522 = arith.addf %520, %521 : vector<1x512xf32>
    %523 = vector.extract_strided_slice %522 {offsets = [0, 0], sizes = [1, 128], strides = [1, 1]} : vector<1x512xf32> to vector<1x128xf32>
    %524 = arith.negf %523 : vector<1x128xf32>
    %525 = math.exp %524 : vector<1x128xf32>
    %cst_127 = arith.constant 1.000000e+00 : f32
    %526 = vector.broadcast %cst_127 : f32 to vector<1x128xf32>
    %527 = arith.addf %526, %525 : vector<1x128xf32>
    %528 = arith.divf %526, %527 : vector<1x128xf32>
    %529 = vector.extract_strided_slice %522 {offsets = [0, 128], sizes = [1, 128], strides = [1, 1]} : vector<1x512xf32> to vector<1x128xf32>
    %530 = arith.negf %529 : vector<1x128xf32>
    %531 = math.exp %530 : vector<1x128xf32>
    %cst_128 = arith.constant 1.000000e+00 : f32
    %532 = vector.broadcast %cst_128 : f32 to vector<1x128xf32>
    %533 = arith.addf %532, %531 : vector<1x128xf32>
    %534 = arith.divf %532, %533 : vector<1x128xf32>
    %535 = vector.extract_strided_slice %522 {offsets = [0, 256], sizes = [1, 128], strides = [1, 1]} : vector<1x512xf32> to vector<1x128xf32>
    %536 = math.tanh %535 : vector<1x128xf32>
    %537 = vector.extract_strided_slice %522 {offsets = [0, 384], sizes = [1, 128], strides = [1, 1]} : vector<1x512xf32> to vector<1x128xf32>
    %538 = arith.negf %537 : vector<1x128xf32>
    %539 = math.exp %538 : vector<1x128xf32>
    %cst_129 = arith.constant 1.000000e+00 : f32
    %540 = vector.broadcast %cst_129 : f32 to vector<1x128xf32>
    %541 = arith.addf %540, %539 : vector<1x128xf32>
    %542 = arith.divf %540, %541 : vector<1x128xf32>
    %543 = arith.mulf %534, %516 : vector<1x128xf32>
    %544 = arith.mulf %528, %536 : vector<1x128xf32>
    %545 = arith.addf %543, %544 : vector<1x128xf32>
    %546 = math.tanh %545 : vector<1x128xf32>
    %547 = arith.mulf %542, %546 : vector<1x128xf32>
    %c1_130 = arith.constant 1 : index
    %c0_131 = arith.constant 0 : index
    %548 = vector.load %arg34[%c1_130, %c0_131] : memref<8x128xf32, #tpu.memory_space<vmem>>, vector<1x128xf32>
    tpu.vector_store %arg34[%c1_130, %c0_131], %547 {strides = array<i32>} : memref<8x128xf32, #tpu.memory_space<vmem>>, vector<1x128xf32>,
    %549 = vector.extract_strided_slice %487 {offsets = [2, 0], sizes = [1, 512], strides = [1, 1]} : vector<8x512xf32> to vector<1x512xf32>
    %cst_132 = arith.constant dense<0.000000e+00> : vector<1x512xf32>
    %550 = tpu.matmul %547, %488, %cst_132 {dimension_numbers = #tpu.dot_dimension_numbers<[1], [0], [0], [1], [0, 0, 1, 1], [], []>} : vector<1x128xf32>, vector<128x512xf32>, vector<1x512xf32> -> vector<1x512xf32>
    %551 = arith.addf %549, %550 : vector<1x512xf32>
    %552 = vector.extract_strided_slice %551 {offsets = [0, 0], sizes = [1, 128], strides = [1, 1]} : vector<1x512xf32> to vector<1x128xf32>
    %553 = arith.negf %552 : vector<1x128xf32>
    %554 = math.exp %553 : vector<1x128xf32>
    %cst_133 = arith.constant 1.000000e+00 : f32
    %555 = vector.broadcast %cst_133 : f32 to vector<1x128xf32>
    %556 = arith.addf %555, %554 : vector<1x128xf32>
    %557 = arith.divf %555, %556 : vector<1x128xf32>
    %558 = vector.extract_strided_slice %551 {offsets = [0, 128], sizes = [1, 128], strides = [1, 1]} : vector<1x512xf32> to vector<1x128xf32>
    %559 = arith.negf %558 : vector<1x128xf32>
    %560 = math.exp %559 : vector<1x128xf32>
    %cst_134 = arith.constant 1.000000e+00 : f32
    %561 = vector.broadcast %cst_134 : f32 to vector<1x128xf32>
    %562 = arith.addf %561, %560 : vector<1x128xf32>
    %563 = arith.divf %561, %562 : vector<1x128xf32>
    %564 = vector.extract_strided_slice %551 {offsets = [0, 256], sizes = [1, 128], strides = [1, 1]} : vector<1x512xf32> to vector<1x128xf32>
    %565 = math.tanh %564 : vector<1x128xf32>
    %566 = vector.extract_strided_slice %551 {offsets = [0, 384], sizes = [1, 128], strides = [1, 1]} : vector<1x512xf32> to vector<1x128xf32>
    %567 = arith.negf %566 : vector<1x128xf32>
    %568 = math.exp %567 : vector<1x128xf32>
    %cst_135 = arith.constant 1.000000e+00 : f32
    %569 = vector.broadcast %cst_135 : f32 to vector<1x128xf32>
    %570 = arith.addf %569, %568 : vector<1x128xf32>
    %571 = arith.divf %569, %570 : vector<1x128xf32>
    %572 = arith.mulf %563, %545 : vector<1x128xf32>
    %573 = arith.mulf %557, %565 : vector<1x128xf32>
    %574 = arith.addf %572, %573 : vector<1x128xf32>
    %575 = math.tanh %574 : vector<1x128xf32>
    %576 = arith.mulf %571, %575 : vector<1x128xf32>
    %c2_136 = arith.constant 2 : index
    %c0_137 = arith.constant 0 : index
    %577 = vector.load %arg34[%c2_136, %c0_137] : memref<8x128xf32, #tpu.memory_space<vmem>>, vector<1x128xf32>
    tpu.vector_store %arg34[%c2_136, %c0_137], %576 {strides = array<i32>} : memref<8x128xf32, #tpu.memory_space<vmem>>, vector<1x128xf32>,
    %578 = vector.extract_strided_slice %487 {offsets = [3, 0], sizes = [1, 512], strides = [1, 1]} : vector<8x512xf32> to vector<1x512xf32>
    %cst_138 = arith.constant dense<0.000000e+00> : vector<1x512xf32>
    %579 = tpu.matmul %576, %488, %cst_138 {dimension_numbers = #tpu.dot_dimension_numbers<[1], [0], [0], [1], [0, 0, 1, 1], [], []>} : vector<1x128xf32>, vector<128x512xf32>, vector<1x512xf32> -> vector<1x512xf32>
    %580 = arith.addf %578, %579 : vector<1x512xf32>
    %581 = vector.extract_strided_slice %580 {offsets = [0, 0], sizes = [1, 128], strides = [1, 1]} : vector<1x512xf32> to vector<1x128xf32>
    %582 = arith.negf %581 : vector<1x128xf32>
    %583 = math.exp %582 : vector<1x128xf32>
    %cst_139 = arith.constant 1.000000e+00 : f32
    %584 = vector.broadcast %cst_139 : f32 to vector<1x128xf32>
    %585 = arith.addf %584, %583 : vector<1x128xf32>
    %586 = arith.divf %584, %585 : vector<1x128xf32>
    %587 = vector.extract_strided_slice %580 {offsets = [0, 128], sizes = [1, 128], strides = [1, 1]} : vector<1x512xf32> to vector<1x128xf32>
    %588 = arith.negf %587 : vector<1x128xf32>
    %589 = math.exp %588 : vector<1x128xf32>
    %cst_140 = arith.constant 1.000000e+00 : f32
    %590 = vector.broadcast %cst_140 : f32 to vector<1x128xf32>
    %591 = arith.addf %590, %589 : vector<1x128xf32>
    %592 = arith.divf %590, %591 : vector<1x128xf32>
    %593 = vector.extract_strided_slice %580 {offsets = [0, 256], sizes = [1, 128], strides = [1, 1]} : vector<1x512xf32> to vector<1x128xf32>
    %594 = math.tanh %593 : vector<1x128xf32>
    %595 = vector.extract_strided_slice %580 {offsets = [0, 384], sizes = [1, 128], strides = [1, 1]} : vector<1x512xf32> to vector<1x128xf32>
    %596 = arith.negf %595 : vector<1x128xf32>
    %597 = math.exp %596 : vector<1x128xf32>
    %cst_141 = arith.constant 1.000000e+00 : f32
    %598 = vector.broadcast %cst_141 : f32 to vector<1x128xf32>
    %599 = arith.addf %598, %597 : vector<1x128xf32>
    %600 = arith.divf %598, %599 : vector<1x128xf32>
    %601 = arith.mulf %592, %574 : vector<1x128xf32>
    %602 = arith.mulf %586, %594 : vector<1x128xf32>
    %603 = arith.addf %601, %602 : vector<1x128xf32>
    %604 = math.tanh %603 : vector<1x128xf32>
    %605 = arith.mulf %600, %604 : vector<1x128xf32>
    %c3_142 = arith.constant 3 : index
    %c0_143 = arith.constant 0 : index
    %606 = vector.load %arg34[%c3_142, %c0_143] : memref<8x128xf32, #tpu.memory_space<vmem>>, vector<1x128xf32>
    tpu.vector_store %arg34[%c3_142, %c0_143], %605 {strides = array<i32>} : memref<8x128xf32, #tpu.memory_space<vmem>>, vector<1x128xf32>,
    %607 = vector.extract_strided_slice %487 {offsets = [4, 0], sizes = [1, 512], strides = [1, 1]} : vector<8x512xf32> to vector<1x512xf32>
    %cst_144 = arith.constant dense<0.000000e+00> : vector<1x512xf32>
    %608 = tpu.matmul %605, %488, %cst_144 {dimension_numbers = #tpu.dot_dimension_numbers<[1], [0], [0], [1], [0, 0, 1, 1], [], []>} : vector<1x128xf32>, vector<128x512xf32>, vector<1x512xf32> -> vector<1x512xf32>
    %609 = arith.addf %607, %608 : vector<1x512xf32>
    %610 = vector.extract_strided_slice %609 {offsets = [0, 0], sizes = [1, 128], strides = [1, 1]} : vector<1x512xf32> to vector<1x128xf32>
    %611 = arith.negf %610 : vector<1x128xf32>
    %612 = math.exp %611 : vector<1x128xf32>
    %cst_145 = arith.constant 1.000000e+00 : f32
    %613 = vector.broadcast %cst_145 : f32 to vector<1x128xf32>
    %614 = arith.addf %613, %612 : vector<1x128xf32>
    %615 = arith.divf %613, %614 : vector<1x128xf32>
    %616 = vector.extract_strided_slice %609 {offsets = [0, 128], sizes = [1, 128], strides = [1, 1]} : vector<1x512xf32> to vector<1x128xf32>
    %617 = arith.negf %616 : vector<1x128xf32>
    %618 = math.exp %617 : vector<1x128xf32>
    %cst_146 = arith.constant 1.000000e+00 : f32
    %619 = vector.broadcast %cst_146 : f32 to vector<1x128xf32>
    %620 = arith.addf %619, %618 : vector<1x128xf32>
    %621 = arith.divf %619, %620 : vector<1x128xf32>
    %622 = vector.extract_strided_slice %609 {offsets = [0, 256], sizes = [1, 128], strides = [1, 1]} : vector<1x512xf32> to vector<1x128xf32>
    %623 = math.tanh %622 : vector<1x128xf32>
    %624 = vector.extract_strided_slice %609 {offsets = [0, 384], sizes = [1, 128], strides = [1, 1]} : vector<1x512xf32> to vector<1x128xf32>
    %625 = arith.negf %624 : vector<1x128xf32>
    %626 = math.exp %625 : vector<1x128xf32>
    %cst_147 = arith.constant 1.000000e+00 : f32
    %627 = vector.broadcast %cst_147 : f32 to vector<1x128xf32>
    %628 = arith.addf %627, %626 : vector<1x128xf32>
    %629 = arith.divf %627, %628 : vector<1x128xf32>
    %630 = arith.mulf %621, %603 : vector<1x128xf32>
    %631 = arith.mulf %615, %623 : vector<1x128xf32>
    %632 = arith.addf %630, %631 : vector<1x128xf32>
    %633 = math.tanh %632 : vector<1x128xf32>
    %634 = arith.mulf %629, %633 : vector<1x128xf32>
    %c4_148 = arith.constant 4 : index
    %c0_149 = arith.constant 0 : index
    %635 = vector.load %arg34[%c4_148, %c0_149] : memref<8x128xf32, #tpu.memory_space<vmem>>, vector<1x128xf32>
    tpu.vector_store %arg34[%c4_148, %c0_149], %634 {strides = array<i32>} : memref<8x128xf32, #tpu.memory_space<vmem>>, vector<1x128xf32>,
    %636 = vector.extract_strided_slice %487 {offsets = [5, 0], sizes = [1, 512], strides = [1, 1]} : vector<8x512xf32> to vector<1x512xf32>
    %cst_150 = arith.constant dense<0.000000e+00> : vector<1x512xf32>
    %637 = tpu.matmul %634, %488, %cst_150 {dimension_numbers = #tpu.dot_dimension_numbers<[1], [0], [0], [1], [0, 0, 1, 1], [], []>} : vector<1x128xf32>, vector<128x512xf32>, vector<1x512xf32> -> vector<1x512xf32>
    %638 = arith.addf %636, %637 : vector<1x512xf32>
    %639 = vector.extract_strided_slice %638 {offsets = [0, 0], sizes = [1, 128], strides = [1, 1]} : vector<1x512xf32> to vector<1x128xf32>
    %640 = arith.negf %639 : vector<1x128xf32>
    %641 = math.exp %640 : vector<1x128xf32>
    %cst_151 = arith.constant 1.000000e+00 : f32
    %642 = vector.broadcast %cst_151 : f32 to vector<1x128xf32>
    %643 = arith.addf %642, %641 : vector<1x128xf32>
    %644 = arith.divf %642, %643 : vector<1x128xf32>
    %645 = vector.extract_strided_slice %638 {offsets = [0, 128], sizes = [1, 128], strides = [1, 1]} : vector<1x512xf32> to vector<1x128xf32>
    %646 = arith.negf %645 : vector<1x128xf32>
    %647 = math.exp %646 : vector<1x128xf32>
    %cst_152 = arith.constant 1.000000e+00 : f32
    %648 = vector.broadcast %cst_152 : f32 to vector<1x128xf32>
    %649 = arith.addf %648, %647 : vector<1x128xf32>
    %650 = arith.divf %648, %649 : vector<1x128xf32>
    %651 = vector.extract_strided_slice %638 {offsets = [0, 256], sizes = [1, 128], strides = [1, 1]} : vector<1x512xf32> to vector<1x128xf32>
    %652 = math.tanh %651 : vector<1x128xf32>
    %653 = vector.extract_strided_slice %638 {offsets = [0, 384], sizes = [1, 128], strides = [1, 1]} : vector<1x512xf32> to vector<1x128xf32>
    %654 = arith.negf %653 : vector<1x128xf32>
    %655 = math.exp %654 : vector<1x128xf32>
    %cst_153 = arith.constant 1.000000e+00 : f32
    %656 = vector.broadcast %cst_153 : f32 to vector<1x128xf32>
    %657 = arith.addf %656, %655 : vector<1x128xf32>
    %658 = arith.divf %656, %657 : vector<1x128xf32>
    %659 = arith.mulf %650, %632 : vector<1x128xf32>
    %660 = arith.mulf %644, %652 : vector<1x128xf32>
    %661 = arith.addf %659, %660 : vector<1x128xf32>
    %662 = math.tanh %661 : vector<1x128xf32>
    %663 = arith.mulf %658, %662 : vector<1x128xf32>
    %c5_154 = arith.constant 5 : index
    %c0_155 = arith.constant 0 : index
    %664 = vector.load %arg34[%c5_154, %c0_155] : memref<8x128xf32, #tpu.memory_space<vmem>>, vector<1x128xf32>
    tpu.vector_store %arg34[%c5_154, %c0_155], %663 {strides = array<i32>} : memref<8x128xf32, #tpu.memory_space<vmem>>, vector<1x128xf32>,
    %665 = vector.extract_strided_slice %487 {offsets = [6, 0], sizes = [1, 512], strides = [1, 1]} : vector<8x512xf32> to vector<1x512xf32>
    %cst_156 = arith.constant dense<0.000000e+00> : vector<1x512xf32>
    %666 = tpu.matmul %663, %488, %cst_156 {dimension_numbers = #tpu.dot_dimension_numbers<[1], [0], [0], [1], [0, 0, 1, 1], [], []>} : vector<1x128xf32>, vector<128x512xf32>, vector<1x512xf32> -> vector<1x512xf32>
    %667 = arith.addf %665, %666 : vector<1x512xf32>
    %668 = vector.extract_strided_slice %667 {offsets = [0, 0], sizes = [1, 128], strides = [1, 1]} : vector<1x512xf32> to vector<1x128xf32>
    %669 = arith.negf %668 : vector<1x128xf32>
    %670 = math.exp %669 : vector<1x128xf32>
    %cst_157 = arith.constant 1.000000e+00 : f32
    %671 = vector.broadcast %cst_157 : f32 to vector<1x128xf32>
    %672 = arith.addf %671, %670 : vector<1x128xf32>
    %673 = arith.divf %671, %672 : vector<1x128xf32>
    %674 = vector.extract_strided_slice %667 {offsets = [0, 128], sizes = [1, 128], strides = [1, 1]} : vector<1x512xf32> to vector<1x128xf32>
    %675 = arith.negf %674 : vector<1x128xf32>
    %676 = math.exp %675 : vector<1x128xf32>
    %cst_158 = arith.constant 1.000000e+00 : f32
    %677 = vector.broadcast %cst_158 : f32 to vector<1x128xf32>
    %678 = arith.addf %677, %676 : vector<1x128xf32>
    %679 = arith.divf %677, %678 : vector<1x128xf32>
    %680 = vector.extract_strided_slice %667 {offsets = [0, 256], sizes = [1, 128], strides = [1, 1]} : vector<1x512xf32> to vector<1x128xf32>
    %681 = math.tanh %680 : vector<1x128xf32>
    %682 = vector.extract_strided_slice %667 {offsets = [0, 384], sizes = [1, 128], strides = [1, 1]} : vector<1x512xf32> to vector<1x128xf32>
    %683 = arith.negf %682 : vector<1x128xf32>
    %684 = math.exp %683 : vector<1x128xf32>
    %cst_159 = arith.constant 1.000000e+00 : f32
    %685 = vector.broadcast %cst_159 : f32 to vector<1x128xf32>
    %686 = arith.addf %685, %684 : vector<1x128xf32>
    %687 = arith.divf %685, %686 : vector<1x128xf32>
    %688 = arith.mulf %679, %661 : vector<1x128xf32>
    %689 = arith.mulf %673, %681 : vector<1x128xf32>
    %690 = arith.addf %688, %689 : vector<1x128xf32>
    %691 = math.tanh %690 : vector<1x128xf32>
    %692 = arith.mulf %687, %691 : vector<1x128xf32>
    %c6_160 = arith.constant 6 : index
    %c0_161 = arith.constant 0 : index
    %693 = vector.load %arg34[%c6_160, %c0_161] : memref<8x128xf32, #tpu.memory_space<vmem>>, vector<1x128xf32>
    tpu.vector_store %arg34[%c6_160, %c0_161], %692 {strides = array<i32>} : memref<8x128xf32, #tpu.memory_space<vmem>>, vector<1x128xf32>,
    %694 = vector.extract_strided_slice %487 {offsets = [7, 0], sizes = [1, 512], strides = [1, 1]} : vector<8x512xf32> to vector<1x512xf32>
    %cst_162 = arith.constant dense<0.000000e+00> : vector<1x512xf32>
    %695 = tpu.matmul %692, %488, %cst_162 {dimension_numbers = #tpu.dot_dimension_numbers<[1], [0], [0], [1], [0, 0, 1, 1], [], []>} : vector<1x128xf32>, vector<128x512xf32>, vector<1x512xf32> -> vector<1x512xf32>
    %696 = arith.addf %694, %695 : vector<1x512xf32>
    %697 = vector.extract_strided_slice %696 {offsets = [0, 0], sizes = [1, 128], strides = [1, 1]} : vector<1x512xf32> to vector<1x128xf32>
    %698 = arith.negf %697 : vector<1x128xf32>
    %699 = math.exp %698 : vector<1x128xf32>
    %cst_163 = arith.constant 1.000000e+00 : f32
    %700 = vector.broadcast %cst_163 : f32 to vector<1x128xf32>
    %701 = arith.addf %700, %699 : vector<1x128xf32>
    %702 = arith.divf %700, %701 : vector<1x128xf32>
    %703 = vector.extract_strided_slice %696 {offsets = [0, 128], sizes = [1, 128], strides = [1, 1]} : vector<1x512xf32> to vector<1x128xf32>
    %704 = arith.negf %703 : vector<1x128xf32>
    %705 = math.exp %704 : vector<1x128xf32>
    %cst_164 = arith.constant 1.000000e+00 : f32
    %706 = vector.broadcast %cst_164 : f32 to vector<1x128xf32>
    %707 = arith.addf %706, %705 : vector<1x128xf32>
    %708 = arith.divf %706, %707 : vector<1x128xf32>
    %709 = vector.extract_strided_slice %696 {offsets = [0, 256], sizes = [1, 128], strides = [1, 1]} : vector<1x512xf32> to vector<1x128xf32>
    %710 = math.tanh %709 : vector<1x128xf32>
    %711 = vector.extract_strided_slice %696 {offsets = [0, 384], sizes = [1, 128], strides = [1, 1]} : vector<1x512xf32> to vector<1x128xf32>
    %712 = arith.negf %711 : vector<1x128xf32>
    %713 = math.exp %712 : vector<1x128xf32>
    %cst_165 = arith.constant 1.000000e+00 : f32
    %714 = vector.broadcast %cst_165 : f32 to vector<1x128xf32>
    %715 = arith.addf %714, %713 : vector<1x128xf32>
    %716 = arith.divf %714, %715 : vector<1x128xf32>
    %717 = arith.mulf %708, %690 : vector<1x128xf32>
    %718 = arith.mulf %702, %710 : vector<1x128xf32>
    %719 = arith.addf %717, %718 : vector<1x128xf32>
    %720 = math.tanh %719 : vector<1x128xf32>
    %721 = arith.mulf %716, %720 : vector<1x128xf32>
    %c7_166 = arith.constant 7 : index
    %c0_167 = arith.constant 0 : index
    %722 = vector.load %arg34[%c7_166, %c0_167] : memref<8x128xf32, #tpu.memory_space<vmem>>, vector<1x128xf32>
    tpu.vector_store %arg34[%c7_166, %c0_167], %721 {strides = array<i32>} : memref<8x128xf32, #tpu.memory_space<vmem>>, vector<1x128xf32>,
    %c0_168 = arith.constant 0 : index
    %c0_169 = arith.constant 0 : index
    %723 = vector.load %arg32[%c0_168, %c0_169] : memref<8x128xf32, #tpu.memory_space<vmem>>, vector<8x128xf32>
    %c0_170 = arith.constant 0 : index
    %c0_171 = arith.constant 0 : index
    %724 = vector.load %arg12[%c0_170, %c0_171] : memref<128x128xf32, #tpu.memory_space<vmem>>, vector<128x128xf32>
    %cst_172 = arith.constant dense<0.000000e+00> : vector<8x128xf32>
    %725 = tpu.matmul %723, %724, %cst_172 {dimension_numbers = #tpu.dot_dimension_numbers<[1], [0], [0], [1], [0, 0, 1, 1], [], []>} : vector<8x128xf32>, vector<128x128xf32>, vector<8x128xf32> -> vector<8x128xf32>
    %c0_173 = arith.constant 0 : index
    %c0_174 = arith.constant 0 : index
    %726 = vector.load %arg13[%c0_173, %c0_174] : memref<1x128xf32, #tpu.memory_space<vmem>>, vector<1x128xf32>
    %727 = vector.broadcast %726 : vector<1x128xf32> to vector<8x128xf32>
    %728 = arith.addf %725, %727 : vector<8x128xf32>
    %cst_175 = arith.constant 0.000000e+00 : f32
    %729 = vector.broadcast %cst_175 : f32 to vector<8x128xf32>
    %730 = arith.maximumf %728, %729 : vector<8x128xf32>
    %c0_176 = arith.constant 0 : index
    %c0_177 = arith.constant 0 : index
    %731 = vector.load %arg33[%c0_176, %c0_177] : memref<8x128xf32, #tpu.memory_space<vmem>>, vector<8x128xf32>
    %c0_178 = arith.constant 0 : index
    %c0_179 = arith.constant 0 : index
    %732 = vector.load %arg14[%c0_178, %c0_179] : memref<128x128xf32, #tpu.memory_space<vmem>>, vector<128x128xf32>
    %cst_180 = arith.constant dense<0.000000e+00> : vector<8x128xf32>
    %733 = tpu.matmul %731, %732, %cst_180 {dimension_numbers = #tpu.dot_dimension_numbers<[1], [0], [0], [1], [0, 0, 1, 1], [], []>} : vector<8x128xf32>, vector<128x128xf32>, vector<8x128xf32> -> vector<8x128xf32>
    %c0_181 = arith.constant 0 : index
    %c0_182 = arith.constant 0 : index
    %734 = vector.load %arg15[%c0_181, %c0_182] : memref<1x128xf32, #tpu.memory_space<vmem>>, vector<1x128xf32>
    %735 = vector.broadcast %734 : vector<1x128xf32> to vector<8x128xf32>
    %736 = arith.addf %733, %735 : vector<8x128xf32>
    %cst_183 = arith.constant 0.000000e+00 : f32
    %737 = vector.broadcast %cst_183 : f32 to vector<8x128xf32>
    %738 = arith.maximumf %736, %737 : vector<8x128xf32>
    %c0_184 = arith.constant 0 : index
    %c0_185 = arith.constant 0 : index
    %739 = vector.load %arg34[%c0_184, %c0_185] : memref<8x128xf32, #tpu.memory_space<vmem>>, vector<8x128xf32>
    %c0_186 = arith.constant 0 : index
    %c0_187 = arith.constant 0 : index
    %740 = vector.load %arg16[%c0_186, %c0_187] : memref<128x128xf32, #tpu.memory_space<vmem>>, vector<128x128xf32>
    %cst_188 = arith.constant dense<0.000000e+00> : vector<8x128xf32>
    %741 = tpu.matmul %739, %740, %cst_188 {dimension_numbers = #tpu.dot_dimension_numbers<[1], [0], [0], [1], [0, 0, 1, 1], [], []>} : vector<8x128xf32>, vector<128x128xf32>, vector<8x128xf32> -> vector<8x128xf32>
    %c0_189 = arith.constant 0 : index
    %c0_190 = arith.constant 0 : index
    %742 = vector.load %arg17[%c0_189, %c0_190] : memref<1x128xf32, #tpu.memory_space<vmem>>, vector<1x128xf32>
    %743 = vector.broadcast %742 : vector<1x128xf32> to vector<8x128xf32>
    %744 = arith.addf %741, %743 : vector<8x128xf32>
    %cst_191 = arith.constant 0.000000e+00 : f32
    %745 = vector.broadcast %cst_191 : f32 to vector<8x128xf32>
    %746 = arith.maximumf %744, %745 : vector<8x128xf32>
    %747 = vector.extract_strided_slice %730 {offsets = [0, 0], sizes = [8, 16], strides = [1, 1]} : vector<8x128xf32> to vector<8x16xf32>
    %c0_192 = arith.constant 0 : index
    %c0_193 = arith.constant 0 : index
    %748 = vector.load %arg18[%c0_192, %c0_193] : memref<16x1377xf32, #tpu.memory_space<vmem>>, vector<16x1377xf32>
    %cst_194 = arith.constant dense<0.000000e+00> : vector<8x1377xf32>
    %749 = tpu.matmul %747, %748, %cst_194 {dimension_numbers = #tpu.dot_dimension_numbers<[1], [0], [0], [1], [0, 0, 1, 1], [], []>} : vector<8x16xf32>, vector<16x1377xf32>, vector<8x1377xf32> -> vector<8x1377xf32>
    %c0_195 = arith.constant 0 : index
    %c0_196 = arith.constant 0 : index
    %750 = vector.load %arg19[%c0_195, %c0_196] : memref<1x1377xf32, #tpu.memory_space<vmem>>, vector<1x1377xf32>
    %751 = vector.broadcast %750 : vector<1x1377xf32> to vector<8x1377xf32>
    %752 = arith.addf %749, %751 : vector<8x1377xf32>
    %753 = vector.extract_strided_slice %738 {offsets = [0, 0], sizes = [8, 8], strides = [1, 1]} : vector<8x128xf32> to vector<8x8xf32>
    %c0_197 = arith.constant 0 : index
    %c0_198 = arith.constant 0 : index
    %754 = vector.load %arg20[%c0_197, %c0_198] : memref<8x1377xf32, #tpu.memory_space<vmem>>, vector<8x1377xf32>
    %cst_199 = arith.constant dense<0.000000e+00> : vector<8x1377xf32>
    %755 = tpu.matmul %753, %754, %cst_199 {dimension_numbers = #tpu.dot_dimension_numbers<[1], [0], [0], [1], [0, 0, 1, 1], [], []>} : vector<8x8xf32>, vector<8x1377xf32>, vector<8x1377xf32> -> vector<8x1377xf32>
    %c0_200 = arith.constant 0 : index
    %c0_201 = arith.constant 0 : index
    %756 = vector.load %arg21[%c0_200, %c0_201] : memref<1x1377xf32, #tpu.memory_space<vmem>>, vector<1x1377xf32>
    %757 = vector.broadcast %756 : vector<1x1377xf32> to vector<8x1377xf32>
    %758 = arith.addf %755, %757 : vector<8x1377xf32>
    %759 = arith.mulf %752, %758 : vector<8x1377xf32>
    %760 = vector.extract_strided_slice %746 {offsets = [0, 0], sizes = [8, 8], strides = [1, 1]} : vector<8x128xf32> to vector<8x8xf32>
    %c0_202 = arith.constant 0 : index
    %c0_203 = arith.constant 0 : index
    %761 = vector.load %arg22[%c0_202, %c0_203] : memref<8x1377xf32, #tpu.memory_space<vmem>>, vector<8x1377xf32>
    %cst_204 = arith.constant dense<0.000000e+00> : vector<8x1377xf32>
    %762 = tpu.matmul %760, %761, %cst_204 {dimension_numbers = #tpu.dot_dimension_numbers<[1], [0], [0], [1], [0, 0, 1, 1], [], []>} : vector<8x8xf32>, vector<8x1377xf32>, vector<8x1377xf32> -> vector<8x1377xf32>
    %c0_205 = arith.constant 0 : index
    %c0_206 = arith.constant 0 : index
    %763 = vector.load %arg23[%c0_205, %c0_206] : memref<1x1377xf32, #tpu.memory_space<vmem>>, vector<1x1377xf32>
    %764 = vector.broadcast %763 : vector<1x1377xf32> to vector<8x1377xf32>
    %765 = arith.addf %762, %764 : vector<8x1377xf32>
    %766 = arith.mulf %759, %765 : vector<8x1377xf32>
    %c0_207 = arith.constant 0 : index
    %c0_208 = arith.constant 0 : index
    %767 = vector.load %arg31[%c0_207, %c0_208] : memref<8x1377xf32, #tpu.memory_space<vmem>>, vector<8x1377xf32>
    tpu.vector_store %arg31[%c0_207, %c0_208], %766 {strides = array<i32>} : memref<8x1377xf32, #tpu.memory_space<vmem>>, vector<8x1377xf32>,
    %c0_209 = arith.constant 0 : index
    %c0_210 = arith.constant 0 : index
    %768 = vector.load %arg24[%c0_209, %c0_210] : memref<1377x128xf32, #tpu.memory_space<vmem>>, vector<1377x128xf32>
    %cst_211 = arith.constant dense<0.000000e+00> : vector<8x128xf32>
    %769 = tpu.matmul %766, %768, %cst_211 {dimension_numbers = #tpu.dot_dimension_numbers<[1], [0], [0], [1], [0, 0, 1, 1], [], []>} : vector<8x1377xf32>, vector<1377x128xf32>, vector<8x128xf32> -> vector<8x128xf32>
    %c0_212 = arith.constant 0 : index
    %c0_213 = arith.constant 0 : index
    %770 = vector.load %arg25[%c0_212, %c0_213] : memref<1x128xf32, #tpu.memory_space<vmem>>, vector<1x128xf32>
    %771 = vector.broadcast %770 : vector<1x128xf32> to vector<8x128xf32>
    %772 = arith.addf %769, %771 : vector<8x128xf32>
    %cst_214 = arith.constant 0.000000e+00 : f32
    %773 = vector.broadcast %cst_214 : f32 to vector<8x128xf32>
    %774 = arith.maximumf %772, %773 : vector<8x128xf32>
    %c0_215 = arith.constant 0 : index
    %c0_216 = arith.constant 0 : index
    %775 = vector.load %arg26[%c0_215, %c0_216] : memref<128x128xf32, #tpu.memory_space<vmem>>, vector<128x128xf32>
    %cst_217 = arith.constant dense<0.000000e+00> : vector<8x128xf32>
    %776 = tpu.matmul %774, %775, %cst_217 {dimension_numbers = #tpu.dot_dimension_numbers<[1], [0], [0], [1], [0, 0, 1, 1], [], []>} : vector<8x128xf32>, vector<128x128xf32>, vector<8x128xf32> -> vector<8x128xf32>
    %c0_218 = arith.constant 0 : index
    %c0_219 = arith.constant 0 : index
    %777 = vector.load %arg27[%c0_218, %c0_219] : memref<1x128xf32, #tpu.memory_space<vmem>>, vector<1x128xf32>
    %778 = vector.broadcast %777 : vector<1x128xf32> to vector<8x128xf32>
    %779 = arith.addf %776, %778 : vector<8x128xf32>
    %cst_220 = arith.constant 0.000000e+00 : f32
    %780 = vector.broadcast %cst_220 : f32 to vector<8x128xf32>
    %781 = arith.maximumf %779, %780 : vector<8x128xf32>
    %c0_221 = arith.constant 0 : index
    %c0_222 = arith.constant 0 : index
    %782 = vector.load %arg28[%c0_221, %c0_222] : memref<128x128xf32, #tpu.memory_space<vmem>>, vector<128x128xf32>
    %cst_223 = arith.constant dense<0.000000e+00> : vector<8x128xf32>
    %783 = tpu.matmul %781, %782, %cst_223 {dimension_numbers = #tpu.dot_dimension_numbers<[1], [0], [0], [1], [0, 0, 1, 1], [], []>} : vector<8x128xf32>, vector<128x128xf32>, vector<8x128xf32> -> vector<8x128xf32>
    %c0_224 = arith.constant 0 : index
    %c0_225 = arith.constant 0 : index
    %784 = vector.load %arg29[%c0_224, %c0_225] : memref<1x128xf32, #tpu.memory_space<vmem>>, vector<1x128xf32>
    %785 = vector.broadcast %784 : vector<1x128xf32> to vector<8x128xf32>
    %786 = arith.addf %783, %785 : vector<8x128xf32>
    %cst_226 = arith.constant 0.000000e+00 : f32
    %787 = vector.broadcast %cst_226 : f32 to vector<8x128xf32>
    %788 = arith.maximumf %786, %787 : vector<8x128xf32>
    %789 = vector.extract_strided_slice %788 {offsets = [0, 0], sizes = [8, 1], strides = [1, 1]} : vector<8x128xf32> to vector<8x1xf32>
    %790 = arith.negf %789 : vector<8x1xf32>
    %791 = math.exp %790 : vector<8x1xf32>
    %cst_227 = arith.constant 1.000000e+00 : f32
    %792 = vector.broadcast %cst_227 : f32 to vector<8x1xf32>
    %793 = arith.addf %792, %791 : vector<8x1xf32>
    %794 = arith.divf %792, %793 : vector<8x1xf32>
    %cst_228 = arith.constant 6.000000e+00 : f32
    %795 = vector.broadcast %cst_228 : f32 to vector<8x1xf32>
    %796 = arith.mulf %794, %795 : vector<8x1xf32>
    %cst_229 = arith.constant 3.000000e+00 : f32
    %797 = vector.broadcast %cst_229 : f32 to vector<8x1xf32>
    %798 = arith.subf %796, %797 : vector<8x1xf32>
    %c0_230 = arith.constant 0 : index
    %c0_231 = arith.constant 0 : index
    %799 = vector.load %arg30[%c0_230, %c0_231] : memref<8x1xf32, #tpu.memory_space<vmem>>, vector<8x1xf32>
    tpu.vector_store %arg30[%c0_230, %c0_231], %798 {strides = array<i32>} : memref<8x1xf32, #tpu.memory_space<vmem>>, vector<8x1xf32>,
    return
  }
}

</mosaic_0001>

<bundles_post_ra>
// kernel: fwd.1
= control target key start
LH: loop header
LB: loop body
LE: loop exit
PB: predicated region body
PF: predicated region fallthrough
CT: control target
= control target key end

     0   :  { %s11889_s6 = smov 1   ;;  %s11890_s10 = smov 2   ;;  %s13880_s0 = inlined_call_operand.smem [shape: u32[32], index: -1, kind: input, shape index: {}] }
   0x1   :  { %s11963_s5 = sld [smem:[%s13880_s0]]   ;;  %s11891_s14 = smov 3  }
   0x2   :  { %s11968_s9 = sld [smem:[%s13880_s0 + %s11889_s6]]   ;;  %s11892_s18 = smov 4  }
   0x3   :  { %s11973_s13 = sld [smem:[%s13880_s0 + %s11890_s10]]   ;;  %s11893_s22 = smov 5  }
   0x4   :  { %s11978_s17 = sld [smem:[%s13880_s0 + %s11891_s14]]   ;;  %s11894_s26 = smov 6  }
   0x5   :  { %s11983_s21 = sld [smem:[%s13880_s0 + %s11892_s18]]   ;;  %s11895_s30 = smov 7  }
   0x6   :  { %s11988_s25 = sld [smem:[%s13880_s0 + %s11893_s22]]   ;;  %s11896_s4 = smov 8  }
   0x7   :  { %13894 = sst [smem:[#allocation59_spill]] %s11963_s5  ;;  %s11897_s10 = smov 9  }
   0x8   :  { %13895 = sst [smem:[#allocation60_spill]] %s11968_s9  ;;  %s11898_s15 = smov 10  }
   0x9   :  { %13896 = sst [smem:[#allocation61_spill]] %s11973_s13  ;;  %s11899_s20 = smov 11  }
   0xa   :  { %s11993_s29 = sld [smem:[%s13880_s0 + %s11894_s26]]   ;;  %s11900_s26 = smov 12  }
   0xb   :  { %s11998_s3 = sld [smem:[%s13880_s0 + %s11895_s30]]   ;;  %s11901_s1 = smov 13  }
   0xc   :  { %s12003_s8 = sld [smem:[%s13880_s0 + %s11896_s4]]   ;;  %s11902_s7 = smov 14  }
   0xd   :  { %s12008_s14 = sld [smem:[%s13880_s0 + %s11897_s10]]   ;;  %s11904_s22 = smov 16  }
   0xe   :  { %s12013_s19 = sld [smem:[%s13880_s0 + %s11898_s15]]   ;;  %s11903_s15 = smov 15  }
   0xf   :  { %s12018_s24 = sld [smem:[%s13880_s0 + %s11899_s20]]   ;;  %s11905_s28 = smov 17  }
  0x10   :  { %13897 = sst [smem:[#allocation62_spill]] %s11993_s29 }
  0x11   :  { %s12023_s30 = sld [smem:[%s13880_s0 + %s11900_s26]]  }
  0x12   :  { %s12028_s6 = sld [smem:[%s13880_s0 + %s11901_s1]]  }
  0x13   :  { %s12033_s12 = sld [smem:[%s13880_s0 + %s11902_s7]]   ;;  %s11906_s7 = smov 18  }
  0x14   :  { %13898 = sst [smem:[#allocation63_spill]] %s12013_s19 }
  0x15   :  { %s12038_s20 = sld [smem:[%s13880_s0 + %s11903_s15]]   ;;  %s11907_s15 = smov 19  }
  0x16   :  { %s12043_s27 = sld [smem:[%s13880_s0 + %s11904_s22]]   ;;  %s11908_s22 = smov 20  }
  0x17   :  { %13899 = sst [smem:[#allocation64_spill]] %s12023_s30 }
  0x18   :  { %s12048_s4 = sld [smem:[%s13880_s0 + %s11905_s28]]   ;;  %s11909_s28 = smov 21  }
  0x19   :  { %13900 = sst [smem:[#allocation65_spill]] %s12033_s12 }
  0x1a   :  { %s12053_s13 = sld [smem:[%s13880_s0 + %s11906_s7]]   ;;  %s11910_s7 = smov 22  }
  0x1b   :  { %s12058_s9 = sld [smem:[%s13880_s0 + %s11907_s15]]   ;;  %s11911_s15 = smov 23  }
  0x1c   :  { %13901 = sst [smem:[#allocation66_spill]] %s12043_s27 }
  0x1d   :  { %s12063_s29 = sld [smem:[%s13880_s0 + %s11908_s22]]   ;;  %s11912_s22 = smov 24  }
  0x1e   :  { %s12068_s5 = sld [smem:[%s13880_s0 + %s11909_s28]]   ;;  %s11913_s28 = smov 25  }
  0x1f   :  { %s12083_s27 = sld [smem:[%s13880_s0 + %s11912_s22]]   ;;  %s11916_s22 = smov 28  }
  0x20   :  { %13902 = sst [smem:[#allocation67_spill]] %s12053_s13 }
  0x21   :  { %13903 = sst [smem:[#allocation68_spill]] %s12058_s9 }
  0x22   :  { %s12073_s13 = sld [smem:[%s13880_s0 + %s11910_s7]]   ;;  %s11914_s7 = smov 26  }
  0x23   :  { %s12078_s9 = sld [smem:[%s13880_s0 + %s11911_s15]]   ;;  %s11915_s15 = smov 27  }
  0x24   :  { %13904 = sst [smem:[#allocation69_spill]] %s12068_s5 }
  0x25   :  { %s12088_s5 = sld [smem:[%s13880_s0 + %s11913_s28]]   ;;  %s11917_s28 = smov 29  }
  0x26   :  { %s12093_s12 = sld [smem:[%s13880_s0 + %s11914_s7]]   ;;  %s11918_s7 = smov 30  }
  0x27   :  { %s12103_s30 = sld [smem:[%s13880_s0 + %s11916_s22]]  }
  0x28   :  { %s12113_s19 = sld [smem:[%s13880_s0 + %s11918_s7]]  }
  0x29   :  { %13905 = sst [smem:[#allocation70_spill]] %s12078_s9 }
  0x2a   :  { %s12098_s9 = sld [smem:[%s13880_s0 + %s11915_s15]]   ;;  %s11919_s15 = smov 31  }
  0x2b   :  { %13906 = sst [smem:[#allocation71_spill]] %s12088_s5 }
  0x2c   :  { %s12108_s5 = sld [smem:[%s13880_s0 + %s11917_s28]]  }
  0x30   :  { %13907 = sst [smem:[#allocation72_spill]] %s12098_s9 }
  0x31   :  { %s12118_s9 = sld [smem:[%s13880_s0 + %s11919_s15]]  }
  0x32   :  { %69 = vsyncpa [#allocation6], 0 }
  0x33   :  { %70 = vsyncpa [#allocation9], 0 }
  0x34   :  { %71 = vsyncpa [#allocation12], 0 }
  0x35   :  { %72 = vsyncpa [#allocation15], 0 }
  0x36   :  { %73 = vsyncpa [#allocation18], 0 }
  0x37   :  { %74 = vsyncpa [#allocation21], 0 }
  0x38   :  { %75 = vsyncpa [#allocation24], 0 }
  0x39   :  { %76 = vsyncpa [#allocation27], 0 }
  0x3a   :  { %77 = vsyncpa [#allocation30], 0 }
  0x3b   :  { %78 = vsyncpa [#allocation33], 0 }
  0x3c   :  { %79 = vsyncpa [#allocation36], 0 }
  0x3d   :  { %80 = vsyncpa [#allocation39], 0 }
  0x3e   :  { %81 = vsyncpa [#allocation42], 0 }
  0x3f   :  { %82 = vsyncpa [#allocation7], 0  ;;  %s11920_s22 = smov [#allocation8]   ;;  %s11921_s23 = smov [#allocation11]  }
  0x40   :  { %s106_s0 = sshll.u32 %s11920_s22, 4  ;;  %s130_s26 = sshll.u32 %s11921_s23, 4  ;;  %s107_s0 = int_to_ptr.vmem [resolvable:$true] %s106_s0  ;;  %s12120_s26 = int_to_ptr.vmem [resolvable:$true] %s130_s26 }
  0x41   :  { %s11289_s28 = scalar_lea.hbm %s11983_s21, 8192 }
  0x42   :  { %p11290_p0 = scmp.ne.s32.totalorder %s11983_s21, %s11289_s28  ;;  %p11293_p1 = scmp.lt.u32.totalorder %s11289_s28, %s11983_s21 }
  0x44   :  { %p11295_p2 = pnand %p11293_p1, %p11290_p0 }
  0x46   :  { %11298 = shalt.err (!%p11295_p2)
}
  0x47   :  { %s11299_s1 = scalar_lea.vmem %s107_s0, 8192  ;;  %p11304_p4 = scmp.lt.s32.totalorder %s107_s0, %s107_s0 }
  0x48   :  { %p11300_p3 = scmp.ne.s32.totalorder %s107_s0, %s11299_s1  ;;  %p11305_p5 = scmp.lt.s32.totalorder %s11299_s1, %s11299_s1 }
  0x4a   :  { %p11306_p6 = por %p11305_p5, %p11304_p4 }
  0x4c   :  { %p11307_p7 = pnand %p11306_p6, %p11300_p3 }
  0x4e   :  { %11310 = shalt.err (!%p11307_p7)
}
  0x4f   :  { %s11922_s2 = smov 512   ;;  %s11923_s7 = smov 32  }
  0x50   :  { %112 = dma.hbm_to_vmem [thread:$0]  %s11983_s21, 8192, %s107_s0, [#allocation9], %s11922_s2, %s11922_s2, %s11923_s7  }
  0x51   :  { %s11311_s10 = scalar_lea.hbm %s11998_s3, 8192 }
  0x52   :  { %p11312_p8 = scmp.ne.s32.totalorder %s11998_s3, %s11311_s10  ;;  %p11315_p9 = scmp.lt.u32.totalorder %s11311_s10, %s11998_s3 }
  0x54   :  { %p11317_p10 = pnand %p11315_p9, %p11312_p8 }
  0x56   :  { %11320 = shalt.err (!%p11317_p10)
}
  0x57   :  { %s11321_s11 = scalar_lea.vmem %s12120_s26, 8192  ;;  %p11326_p12 = scmp.lt.s32.totalorder %s12120_s26, %s12120_s26 }
  0x58   :  { %p11322_p11 = scmp.ne.s32.totalorder %s12120_s26, %s11321_s11  ;;  %p11327_p13 = scmp.lt.s32.totalorder %s11321_s11, %s11321_s11 }
  0x5a   :  { %p11328_p0 = por %p11327_p13, %p11326_p12 }
  0x5c   :  { %p11329_p1 = pnand %p11328_p0, %p11322_p11 }
  0x5e   :  { %11332 = shalt.err (!%p11329_p1)
}
  0x5f   :  { %136 = dma.hbm_to_vmem [thread:$0]  %s11998_s3, 8192, %s12120_s26, [#allocation12], %s11922_s2, %s11922_s2, %s11923_s7  }
  0x60   :  { %s11924_s21 = smov [#allocation14]   ;;  %s11925_s16 = smov [#allocation17]  }
  0x61   :  { %s152_s15 = sshll.u32 %s11924_s21, 4  ;;  %s177_s18 = sshll.u32 %s11925_s16, 4  ;;  %s153_s15 = int_to_ptr.vmem [resolvable:$true] %s152_s15  ;;  %s178_s18 = int_to_ptr.vmem [resolvable:$true] %s177_s18 }
  0x62   :  { %s11333_s22 = scalar_lea.hbm %s12008_s14, 1024 }
  0x63   :  { %p11334_p2 = scmp.ne.s32.totalorder %s12008_s14, %s11333_s22  ;;  %p11337_p3 = scmp.lt.u32.totalorder %s11333_s22, %s12008_s14 }
  0x65   :  { %p11339_p4 = pnand %p11337_p3, %p11334_p2 }
  0x67   :  { %11342 = shalt.err (!%p11339_p4)
}
  0x68   :  { %s11343_s0 = scalar_lea.vmem %s153_s15, 1024  ;;  %p11348_p6 = scmp.lt.s32.totalorder %s153_s15, %s153_s15 }
  0x69   :  { %p11344_p5 = scmp.ne.s32.totalorder %s153_s15, %s11343_s0  ;;  %p11349_p7 = scmp.lt.s32.totalorder %s11343_s0, %s11343_s0 }
  0x6b   :  { %p11350_p8 = por %p11349_p7, %p11348_p6 }
  0x6d   :  { %p11351_p9 = pnand %p11350_p8, %p11344_p5 }
  0x6f   :  { %11354 = shalt.err (!%p11351_p9)
}
  0x70   :  { %158 = dma.hbm_to_vmem [thread:$0]  %s12008_s14, 1024, %s153_s15, [#allocation15], %s11922_s2, %s11922_s2, %s11923_s7  }
  0x71   :  { %s11355_s3 = scalar_lea.hbm %s12018_s24, 64 }
  0x72   :  { %p11356_p10 = scmp.ne.s32.totalorder %s12018_s24, %s11355_s3  ;;  %p11359_p11 = scmp.lt.u32.totalorder %s11355_s3, %s12018_s24 }
  0x74   :  { %p11361_p12 = pnand %p11359_p11, %p11356_p10 }
  0x76   :  { %11364 = shalt.err (!%p11361_p12)
}
  0x77   :  { %s11365_s23 = scalar_lea.vmem %s178_s18, 64  ;;  %p11370_p0 = scmp.lt.s32.totalorder %s178_s18, %s178_s18 }
  0x78   :  { %p11366_p13 = scmp.ne.s32.totalorder %s178_s18, %s11365_s23  ;;  %p11371_p1 = scmp.lt.s32.totalorder %s11365_s23, %s11365_s23 }
  0x7a   :  { %p11372_p2 = por %p11371_p1, %p11370_p0 }
  0x7c   :  { %p11373_p3 = pnand %p11372_p2, %p11366_p13 }
  0x7e   :  { %11376 = shalt.err (!%p11373_p3)
}
  0x7f   :  { %180 = dma.hbm_to_vmem [thread:$0]  %s12018_s24, 64, %s178_s18, [#allocation18]  }
  0x80   :  { %s11926_s26 = smov [#allocation20]   ;;  %s11927_s14 = smov [#allocation23]  }
  0x81   :  { %s199_s28 = sshll.u32 %s11926_s26, 4  ;;  %s221_s1 = sshll.u32 %s11927_s14, 4  ;;  %s200_s28 = int_to_ptr.vmem [resolvable:$true] %s199_s28  ;;  %s222_s1 = int_to_ptr.vmem [resolvable:$true] %s221_s1 }
  0x82   :  { %s11377_s10 = scalar_lea.hbm %s12028_s6, 16 }
  0x83   :  { %p11378_p4 = scmp.ne.s32.totalorder %s12028_s6, %s11377_s10  ;;  %p11381_p5 = scmp.lt.u32.totalorder %s11377_s10, %s12028_s6 }
  0x85   :  { %p11383_p6 = pnand %p11381_p5, %p11378_p4 }
  0x87   :  { %11386 = shalt.err (!%p11383_p6)
}
  0x88   :  { %s11387_s11 = scalar_lea.vmem %s200_s28, 16  ;;  %s11391_s21 = scalar_lea.vmem %s200_s28, 32 }
  0x89   :  { %p11388_p7 = scmp.ne.s32.totalorder %s200_s28, %s11387_s11  ;;  %p11392_p8 = scmp.lt.s32.totalorder %s200_s28, %s200_s28 }
  0x8a   :  { %p11393_p9 = scmp.lt.s32.totalorder %s11391_s21, %s11387_s11 }
  0x8c   :  { %p11394_p10 = por %p11393_p9, %p11392_p8 }
  0x8e   :  { %p11395_p11 = pnand %p11394_p10, %p11388_p7 }
  0x90   :  { %11398 = shalt.err (!%p11395_p11)
}
  0x91   :  { %202 = dma.hbm_to_vmem [thread:$0]  %s12028_s6, 16, %s200_s28, [#allocation21]  }
  0x92   :  { %s11399_s24 = scalar_lea.hbm %s12038_s20, 16 }
  0x93   :  { %p11400_p12 = scmp.ne.s32.totalorder %s12038_s20, %s11399_s24  ;;  %p11403_p13 = scmp.lt.u32.totalorder %s11399_s24, %s12038_s20 }
  0x95   :  { %p11405_p0 = pnand %p11403_p13, %p11400_p12 }
  0x97   :  { %11408 = shalt.err (!%p11405_p0)
}
  0x98   :  { %s11409_s15 = scalar_lea.vmem %s222_s1, 16  ;;  %s11413_s16 = scalar_lea.vmem %s222_s1, 32 }
  0x99   :  { %p11410_p1 = scmp.ne.s32.totalorder %s222_s1, %s11409_s15  ;;  %p11414_p2 = scmp.lt.s32.totalorder %s222_s1, %s222_s1 }
  0x9a   :  { %p11415_p3 = scmp.lt.s32.totalorder %s11413_s16, %s11409_s15 }
  0x9c   :  { %p11416_p4 = por %p11415_p3, %p11414_p2 }
  0x9e   :  { %p11417_p5 = pnand %p11416_p4, %p11410_p1 }
  0xa0   :  { %11420 = shalt.err (!%p11417_p5)
}
  0xa1   :  { %224 = dma.hbm_to_vmem [thread:$0]  %s12038_s20, 16, %s222_s1, [#allocation24]  }
  0xa2   :  { %s11928_s18 = smov [#allocation26]   ;;  %s11929_s22 = smov [#allocation29]  }
  0xa3   :  { %s243_s6 = sshll.u32 %s11928_s18, 4  ;;  %s267_s0 = sshll.u32 %s11929_s22, 4  ;;  %s244_s6 = int_to_ptr.vmem [resolvable:$true] %s243_s6  ;;  %s268_s0 = int_to_ptr.vmem [resolvable:$true] %s267_s0 }
  0xa4   :  { %s11421_s3 = scalar_lea.hbm %s12048_s4, 16 }
  0xa5   :  { %p11422_p6 = scmp.ne.s32.totalorder %s12048_s4, %s11421_s3  ;;  %p11425_p7 = scmp.lt.u32.totalorder %s11421_s3, %s12048_s4 }
  0xa7   :  { %p11427_p8 = pnand %p11425_p7, %p11422_p6 }
  0xa9   :  { %11430 = shalt.err (!%p11427_p8)
}
  0xaa   :  { %s11431_s23 = scalar_lea.vmem %s244_s6, 16  ;;  %s11435_s26 = scalar_lea.vmem %s244_s6, 32 }
  0xab   :  { %p11432_p9 = scmp.ne.s32.totalorder %s244_s6, %s11431_s23  ;;  %p11436_p10 = scmp.lt.s32.totalorder %s244_s6, %s244_s6 }
  0xac   :  { %p11437_p11 = scmp.lt.s32.totalorder %s11435_s26, %s11431_s23 }
  0xae   :  { %p11438_p12 = por %p11437_p11, %p11436_p10 }
  0xb0   :  { %p11439_p13 = pnand %p11438_p12, %p11432_p9 }
  0xb2   :  { %11442 = shalt.err (!%p11439_p13)
}
  0xb3   :  { %246 = dma.hbm_to_vmem [thread:$0]  %s12048_s4, 16, %s244_s6, [#allocation27]  }
  0xb4   :  { %s11443_s20 = scalar_lea.hbm %s12063_s29, 1408 }
  0xb5   :  { %p11444_p0 = scmp.ne.s32.totalorder %s12063_s29, %s11443_s20  ;;  %p11447_p1 = scmp.lt.u32.totalorder %s11443_s20, %s12063_s29 }
  0xb7   :  { %p11449_p2 = pnand %p11447_p1, %p11444_p0 }
  0xb9   :  { %11452 = shalt.err (!%p11449_p2)
}
  0xba   :  { %s11453_s28 = scalar_lea.vmem %s268_s0, 1408  ;;  %p11458_p4 = scmp.lt.s32.totalorder %s268_s0, %s268_s0 }
  0xbb   :  { %p11454_p3 = scmp.ne.s32.totalorder %s268_s0, %s11453_s28  ;;  %p11459_p5 = scmp.lt.s32.totalorder %s11453_s28, %s11453_s28 }
  0xbd   :  { %p11460_p6 = por %p11459_p5, %p11458_p4 }
  0xbf   :  { %p11461_p7 = pnand %p11460_p6, %p11454_p3 }
  0xc1   :  { %11464 = shalt.err (!%p11461_p7)
}
  0xc2   :  { %270 = dma.hbm_to_vmem [thread:$0]  %s12063_s29, 1408, %s268_s0, [#allocation30]  }
  0xc3   :  { %s11930_s14 = smov [#allocation32]   ;;  %s11465_s4 = scalar_lea.hbm %s12073_s13, 1408 }
  0xc4   :  { %s287_s1 = sshll.u32 %s11930_s14, 4  ;;  %p11466_p8 = scmp.ne.s32.totalorder %s12073_s13, %s11465_s4  ;;  %s288_s1 = int_to_ptr.vmem [resolvable:$true] %s287_s1 }
  0xc5   :  { %p11469_p9 = scmp.lt.u32.totalorder %s11465_s4, %s12073_s13 }
  0xc7   :  { %p11471_p10 = pnand %p11469_p9, %p11466_p8 }
  0xc9   :  { %11474 = shalt.err (!%p11471_p10)
}
  0xca   :  { %s11475_s10 = scalar_lea.vmem %s288_s1, 1408  ;;  %p11480_p12 = scmp.lt.s32.totalorder %s288_s1, %s288_s1 }
  0xcb   :  { %p11476_p11 = scmp.ne.s32.totalorder %s288_s1, %s11475_s10  ;;  %p11481_p13 = scmp.lt.s32.totalorder %s11475_s10, %s11475_s10 }
  0xcd   :  { %p11482_p0 = por %p11481_p13, %p11480_p12 }
  0xcf   :  { %p11483_p1 = pnand %p11482_p0, %p11476_p11 }
  0xd1   :  { %11486 = shalt.err (!%p11483_p1)
}
  0xd2   :  { %290 = dma.hbm_to_vmem [thread:$0]  %s12073_s13, 1408, %s288_s1, [#allocation33]  }
  0xd3   :  { %s11931_s29 = smov [#allocation35]   ;;  %s11932_s21 = smov [#allocation38]  }
  0xd4   :  { %s306_s11 = sshll.u32 %s11931_s29, 4  ;;  %s328_s24 = sshll.u32 %s11932_s21, 4  ;;  %s307_s11 = int_to_ptr.vmem [resolvable:$true] %s306_s11  ;;  %s329_s24 = int_to_ptr.vmem [resolvable:$true] %s328_s24 }
  0xd5   :  { %s11487_s15 = scalar_lea.hbm %s12083_s27, 22144 }
  0xd6   :  { %p11488_p2 = scmp.ne.s32.totalorder %s12083_s27, %s11487_s15  ;;  %p11491_p3 = scmp.lt.u32.totalorder %s11487_s15, %s12083_s27 }
  0xd8   :  { %p11493_p4 = pnand %p11491_p3, %p11488_p2 }
  0xda   :  { %11496 = shalt.err (!%p11493_p4)
}
  0xdb   :  { %s11497_s16 = scalar_lea.vmem %s307_s11, 22144  ;;  %p11502_p6 = scmp.lt.s32.totalorder %s307_s11, %s307_s11 }
  0xdc   :  { %p11498_p5 = scmp.ne.s32.totalorder %s307_s11, %s11497_s16  ;;  %p11503_p7 = scmp.lt.s32.totalorder %s11497_s16, %s11497_s16 }
  0xde   :  { %p11504_p8 = por %p11503_p7, %p11502_p6 }
  0xe0   :  { %p11505_p9 = pnand %p11504_p8, %p11498_p5 }
  0xe2   :  { %11508 = shalt.err (!%p11505_p9)
}
  0xe3   :  { %s11933_s18 = smov 128   ;;  %s11934_s13 = smov 8  }
  0xe4   :  { %312 = dma.hbm_to_vmem [thread:$0]  %s12083_s27, 22144, %s307_s11, [#allocation36], %s11933_s18, %s11933_s18, %s11934_s13  }
  0xe5   :  { %s11509_s6 = scalar_lea.hbm %s12093_s12, 2048 }
  0xe6   :  { %p11510_p10 = scmp.ne.s32.totalorder %s12093_s12, %s11509_s6  ;;  %p11513_p11 = scmp.lt.u32.totalorder %s11509_s6, %s12093_s12 }
  0xe8   :  { %p11515_p12 = pnand %p11513_p11, %p11510_p10 }
  0xea   :  { %11518 = shalt.err (!%p11515_p12)
}
  0xeb   :  { %s11519_s22 = scalar_lea.vmem %s329_s24, 2048  ;;  %p11524_p0 = scmp.lt.s32.totalorder %s329_s24, %s329_s24 }
  0xec   :  { %p11520_p13 = scmp.ne.s32.totalorder %s329_s24, %s11519_s22  ;;  %p11525_p1 = scmp.lt.s32.totalorder %s11519_s22, %s11519_s22 }
  0xee   :  { %p11526_p2 = por %p11525_p1, %p11524_p0 }
  0xf0   :  { %p11527_p3 = pnand %p11526_p2, %p11520_p13 }
  0xf2   :  { %11530 = shalt.err (!%p11527_p3)
}
  0xf3   :  { %334 = dma.hbm_to_vmem [thread:$0]  %s12093_s12, 2048, %s329_s24, [#allocation39], %s11933_s18, %s11933_s18, %s11934_s13  }
  0xf4   :  { %s11935_s27 = smov [#allocation41]   ;;  %s11936_s3 = smov [#allocation5]  }
  0xf5   :  { %s350_s0 = sshll.u32 %s11935_s27, 4  ;;  %s94_s23 = sshll.u32 %s11936_s3, 4  ;;  %s351_s0 = int_to_ptr.vmem [resolvable:$true] %s350_s0  ;;  %s95_s23 = int_to_ptr.vmem [resolvable:$true] %s94_s23 }
  0xf6   :  { %s11531_s26 = scalar_lea.hbm %s12103_s30, 2048 }
  0xf7   :  { %p11532_p4 = scmp.ne.s32.totalorder %s12103_s30, %s11531_s26  ;;  %p11535_p5 = scmp.lt.u32.totalorder %s11531_s26, %s12103_s30 }
  0xf9   :  { %p11537_p6 = pnand %p11535_p5, %p11532_p4 }
  0xfb   :  { %11540 = shalt.err (!%p11537_p6)
}
  0xfc   :  { %s11541_s20 = scalar_lea.vmem %s351_s0, 2048  ;;  %p11546_p8 = scmp.lt.s32.totalorder %s351_s0, %s351_s0 }
  0xfd   :  { %p11542_p7 = scmp.ne.s32.totalorder %s351_s0, %s11541_s20  ;;  %p11547_p9 = scmp.lt.s32.totalorder %s11541_s20, %s11541_s20 }
  0xff   :  { %p11548_p10 = por %p11547_p9, %p11546_p8 }
 0x101   :  { %p11549_p11 = pnand %p11548_p10, %p11542_p7 }
 0x103   :  { %11552 = shalt.err (!%p11549_p11)
}
 0x104   :  { %356 = dma.hbm_to_vmem [thread:$0]  %s12103_s30, 2048, %s351_s0, [#allocation42], %s11933_s18, %s11933_s18, %s11934_s13  }
 0x105   :  { %s11553_s12 = scalar_lea.hbm %s11978_s17, 2048 }
 0x106   :  { %p11554_p12 = scmp.ne.s32.totalorder %s11978_s17, %s11553_s12  ;;  %p11557_p13 = scmp.lt.u32.totalorder %s11553_s12, %s11978_s17 }
 0x108   :  { %p11559_p0 = pnand %p11557_p13, %p11554_p12 }
 0x10a   :  { %11562 = shalt.err (!%p11559_p0)
}
 0x10b   :  { %s11563_s28 = scalar_lea.vmem %s95_s23, 2048  ;;  %p11568_p2 = scmp.lt.s32.totalorder %s95_s23, %s95_s23 }
 0x10c   :  { %p11564_p1 = scmp.ne.s32.totalorder %s95_s23, %s11563_s28  ;;  %p11569_p3 = scmp.lt.s32.totalorder %s11563_s28, %s11563_s28 }
 0x10e   :  { %p11570_p4 = por %p11569_p3, %p11568_p2 }
 0x110   :  { %p11571_p5 = pnand %p11570_p4, %p11564_p1 }
 0x112   :  { %11574 = shalt.err (!%p11571_p5)
}
 0x113   :  { %100 = dma.hbm_to_vmem [thread:$0]  %s11978_s17, 2048, %s95_s23, [#allocation6], %s11922_s2, %s11922_s2, %s11923_s7  }
 0x114   :  { %s11937_s30 = smov [#allocation10]   ;;  %s11938_s1 = smov [#allocation13]  }
 0x115   :  { %s119_s14 = sshll.u32 %s11937_s30, 4  ;;  %s143_s4 = sshll.u32 %s11938_s1, 4  ;;  %s120_s14 = int_to_ptr.vmem [resolvable:$true] %s119_s14  ;;  %s144_s4 = int_to_ptr.vmem [resolvable:$true] %s143_s4 }
 0x116   :  { %s11575_s10 = scalar_lea.hbm %s11988_s25, 64 }
 0x117   :  { %p11576_p6 = scmp.ne.s32.totalorder %s11988_s25, %s11575_s10  ;;  %p11579_p7 = scmp.lt.u32.totalorder %s11575_s10, %s11988_s25 }
 0x119   :  { %p11581_p8 = pnand %p11579_p7, %p11576_p6 }
 0x11b   :  { %11584 = shalt.err (!%p11581_p8)
}
 0x11c   :  { %s11585_s29 = scalar_lea.vmem %s120_s14, 64  ;;  %p11590_p10 = scmp.lt.s32.totalorder %s120_s14, %s120_s14 }
 0x11d   :  { %p11586_p9 = scmp.ne.s32.totalorder %s120_s14, %s11585_s29  ;;  %p11591_p11 = scmp.lt.s32.totalorder %s11585_s29, %s11585_s29 }
 0x11f   :  { %p11592_p12 = por %p11591_p11, %p11590_p10 }
 0x121   :  { %p11593_p13 = pnand %p11592_p12, %p11586_p9 }
 0x123   :  { %11596 = shalt.err (!%p11593_p13)
}
 0x124   :  { %122 = dma.hbm_to_vmem [thread:$0]  %s11988_s25, 64, %s120_s14, [#allocation9]  }
 0x125   :  { %s11597_s17 = scalar_lea.hbm %s12003_s8, 64 }
 0x126   :  { %p11598_p0 = scmp.ne.s32.totalorder %s12003_s8, %s11597_s17  ;;  %p11601_p1 = scmp.lt.u32.totalorder %s11597_s17, %s12003_s8 }
 0x128   :  { %p11603_p2 = pnand %p11601_p1, %p11598_p0 }
 0x12a   :  { %11606 = shalt.err (!%p11603_p2)
}
 0x12b   :  { %s11607_s11 = scalar_lea.vmem %s144_s4, 64  ;;  %p11612_p4 = scmp.lt.s32.totalorder %s144_s4, %s144_s4 }
 0x12c   :  { %p11608_p3 = scmp.ne.s32.totalorder %s144_s4, %s11607_s11  ;;  %p11613_p5 = scmp.lt.s32.totalorder %s11607_s11, %s11607_s11 }
 0x12e   :  { %p11614_p6 = por %p11613_p5, %p11612_p4 }
 0x130   :  { %p11615_p7 = pnand %p11614_p6, %p11608_p3 }
 0x132   :  { %11618 = shalt.err (!%p11615_p7)
}
 0x133   :  { %s13908_s21 = sld [smem:[#allocation63_spill]]  ;;  %s11939_s24 = smov [#allocation16]  }
 0x134   :  { %146 = dma.hbm_to_vmem [thread:$0]  %s12003_s8, 64, %s144_s4, [#allocation12]  }
 0x135   :  { %s164_s25 = sshll.u32 %s11939_s24, 4  ;;  %s11940_s15 = smov [#allocation19]   ;;  %s165_s25 = int_to_ptr.vmem [resolvable:$true] %s164_s25 }
 0x136   :  { %s186_s16 = sshll.u32 %s11940_s15, 4  ;;  %s187_s16 = int_to_ptr.vmem [resolvable:$true] %s186_s16 }
 0x139   :  { %s11619_s6 = scalar_lea.hbm %s13908_s21, 8192 }
 0x13a   :  { %p11620_p8 = scmp.ne.s32.totalorder %s13908_s21, %s11619_s6  ;;  %p11623_p9 = scmp.lt.u32.totalorder %s11619_s6, %s13908_s21 }
 0x13c   :  { %p11625_p10 = pnand %p11623_p9, %p11620_p8 }
 0x13e   :  { %11628 = shalt.err (!%p11625_p10)
}
 0x13f   :  { %s11629_s22 = scalar_lea.vmem %s165_s25, 8192  ;;  %p11634_p12 = scmp.lt.s32.totalorder %s165_s25, %s165_s25 }
 0x140   :  { %p11630_p11 = scmp.ne.s32.totalorder %s165_s25, %s11629_s22  ;;  %p11635_p13 = scmp.lt.s32.totalorder %s11629_s22, %s11629_s22 }
 0x142   :  { %p11636_p0 = por %p11635_p13, %p11634_p12 }
 0x144   :  { %p11637_p1 = pnand %p11636_p0, %p11630_p11 }
 0x146   :  { %11640 = shalt.err (!%p11637_p1)
}
 0x147   :  { %s13909_s8 = sld [smem:[#allocation64_spill]] }
 0x148   :  { %170 = dma.hbm_to_vmem [thread:$0]  %s13908_s21, 8192, %s165_s25, [#allocation15], %s11922_s2, %s11922_s2, %s11923_s7  }
 0x14d   :  { %s11641_s27 = scalar_lea.hbm %s13909_s8, 2048 }
 0x14e   :  { %p11642_p2 = scmp.ne.s32.totalorder %s13909_s8, %s11641_s27  ;;  %p11645_p3 = scmp.lt.u32.totalorder %s11641_s27, %s13909_s8 }
 0x150   :  { %p11647_p4 = pnand %p11645_p3, %p11642_p2 }
 0x152   :  { %11650 = shalt.err (!%p11647_p4)
}
 0x153   :  { %s11651_s0 = scalar_lea.vmem %s187_s16, 2048  ;;  %p11656_p6 = scmp.lt.s32.totalorder %s187_s16, %s187_s16 }
 0x154   :  { %p11652_p5 = scmp.ne.s32.totalorder %s187_s16, %s11651_s0  ;;  %p11657_p7 = scmp.lt.s32.totalorder %s11651_s0, %s11651_s0 }
 0x156   :  { %p11658_p8 = por %p11657_p7, %p11656_p6 }
 0x158   :  { %p11659_p9 = pnand %p11658_p8, %p11652_p5 }
 0x15a   :  { %11662 = shalt.err (!%p11659_p9)
}
 0x15b   :  { %s13910_s3 = sld [smem:[#allocation65_spill]]  ;;  %s11941_s2 = smov [#allocation22]  }
 0x15c   :  { %192 = dma.hbm_to_vmem [thread:$0]  %s13909_s8, 2048, %s187_s16, [#allocation18], %s11933_s18, %s11933_s18, %s11934_s13  }
 0x15d   :  { %s208_s7 = sshll.u32 %s11941_s2, 4  ;;  %s11942_s23 = smov [#allocation25]   ;;  %s209_s7 = int_to_ptr.vmem [resolvable:$true] %s208_s7 }
 0x15e   :  { %s230_s26 = sshll.u32 %s11942_s23, 4  ;;  %s231_s26 = int_to_ptr.vmem [resolvable:$true] %s230_s26 }
 0x161   :  { %s11663_s20 = scalar_lea.hbm %s13910_s3, 2048 }
 0x162   :  { %p11664_p10 = scmp.ne.s32.totalorder %s13910_s3, %s11663_s20  ;;  %p11667_p11 = scmp.lt.u32.totalorder %s11663_s20, %s13910_s3 }
 0x164   :  { %p11669_p12 = pnand %p11667_p11, %p11664_p10 }
 0x166   :  { %11672 = shalt.err (!%p11669_p12)
}
 0x167   :  { %s11673_s12 = scalar_lea.vmem %s209_s7, 2048  ;;  %p11678_p0 = scmp.lt.s32.totalorder %s209_s7, %s209_s7 }
 0x168   :  { %p11674_p13 = scmp.ne.s32.totalorder %s209_s7, %s11673_s12  ;;  %p11679_p1 = scmp.lt.s32.totalorder %s11673_s12, %s11673_s12 }
 0x16a   :  { %p11680_p2 = por %p11679_p1, %p11678_p0 }
 0x16c   :  { %p11681_p3 = pnand %p11680_p2, %p11674_p13 }
 0x16e   :  { %11684 = shalt.err (!%p11681_p3)
}
 0x16f   :  { %s13911_s28 = sld [smem:[#allocation66_spill]] }
 0x170   :  { %214 = dma.hbm_to_vmem [thread:$0]  %s13910_s3, 2048, %s209_s7, [#allocation21], %s11933_s18, %s11933_s18, %s11934_s13  }
 0x175   :  { %s11685_s30 = scalar_lea.hbm %s13911_s28, 2048 }
 0x176   :  { %p11686_p4 = scmp.ne.s32.totalorder %s13911_s28, %s11685_s30  ;;  %p11689_p5 = scmp.lt.u32.totalorder %s11685_s30, %s13911_s28 }
 0x178   :  { %p11691_p6 = pnand %p11689_p5, %p11686_p4 }
 0x17a   :  { %11694 = shalt.err (!%p11691_p6)
}
 0x17b   :  { %s11695_s14 = scalar_lea.vmem %s231_s26, 2048  ;;  %p11700_p8 = scmp.lt.s32.totalorder %s231_s26, %s231_s26 }
 0x17c   :  { %p11696_p7 = scmp.ne.s32.totalorder %s231_s26, %s11695_s14  ;;  %p11701_p9 = scmp.lt.s32.totalorder %s11695_s14, %s11695_s14 }
 0x17e   :  { %p11702_p10 = por %p11701_p9, %p11700_p8 }
 0x180   :  { %p11703_p11 = pnand %p11702_p10, %p11696_p7 }
 0x182   :  { %11706 = shalt.err (!%p11703_p11)
}
 0x183   :  { %s13912_s1 = sld [smem:[#allocation67_spill]]  ;;  %s11943_s4 = smov [#allocation28]  }
 0x184   :  { %236 = dma.hbm_to_vmem [thread:$0]  %s13911_s28, 2048, %s231_s26, [#allocation24], %s11933_s18, %s11933_s18, %s11934_s13  }
 0x185   :  { %s252_s10 = sshll.u32 %s11943_s4, 4  ;;  %s253_s10 = int_to_ptr.vmem [resolvable:$true] %s252_s10 }
 0x189   :  { %s11707_s29 = scalar_lea.hbm %s13912_s1, 2816 }
 0x18a   :  { %p11708_p12 = scmp.ne.s32.totalorder %s13912_s1, %s11707_s29  ;;  %p11711_p13 = scmp.lt.u32.totalorder %s11707_s29, %s13912_s1 }
 0x18c   :  { %p11713_p0 = pnand %p11711_p13, %p11708_p12 }
 0x18e   :  { %11716 = shalt.err (!%p11713_p0)
}
 0x18f   :  { %s11717_s17 = scalar_lea.vmem %s253_s10, 2816  ;;  %p11722_p2 = scmp.lt.s32.totalorder %s253_s10, %s253_s10 }
 0x190   :  { %p11718_p1 = scmp.ne.s32.totalorder %s253_s10, %s11717_s17  ;;  %p11723_p3 = scmp.lt.s32.totalorder %s11717_s17, %s11717_s17 }
 0x192   :  { %p11724_p4 = por %p11723_p3, %p11722_p2 }
 0x194   :  { %p11725_p5 = pnand %p11724_p4, %p11718_p1 }
 0x196   :  { %11728 = shalt.err (!%p11725_p5)
}
 0x197   :  { %s11944_s11 = smov 1408   ;;  %s13913_s21 = sld [smem:[#allocation69_spill]] }
 0x198   :  { %s11945_s18 = smov 88   ;;  %s11946_s13 = smov [#allocation31]  }
 0x199   :  { %258 = dma.hbm_to_vmem [thread:$0]  %s13912_s1, 2816, %s253_s10, [#allocation27], %s11944_s11, %s11944_s11, %s11945_s18  }
 0x19a   :  { %s277_s24 = sshll.u32 %s11946_s13, 4  ;;  %s11947_s25 = smov [#allocation34]   ;;  %s278_s24 = int_to_ptr.vmem [resolvable:$true] %s277_s24 }
 0x19b   :  { %s297_s15 = sshll.u32 %s11947_s25, 4  ;;  %s298_s15 = int_to_ptr.vmem [resolvable:$true] %s297_s15 }
 0x19d   :  { %s11729_s16 = scalar_lea.hbm %s13913_s21, 176 }
 0x19e   :  { %p11730_p6 = scmp.ne.s32.totalorder %s13913_s21, %s11729_s16  ;;  %p11733_p7 = scmp.lt.u32.totalorder %s11729_s16, %s13913_s21 }
 0x1a0   :  { %p11735_p8 = pnand %p11733_p7, %p11730_p6 }
 0x1a2   :  { %11738 = shalt.err (!%p11735_p8)
}
 0x1a3   :  { %s11739_s6 = scalar_lea.vmem %s278_s24, 176  ;;  %s11743_s22 = scalar_lea.vmem %s278_s24, 192 }
 0x1a4   :  { %p11740_p9 = scmp.ne.s32.totalorder %s278_s24, %s11739_s6  ;;  %p11744_p10 = scmp.lt.s32.totalorder %s278_s24, %s278_s24 }
 0x1a5   :  { %p11745_p11 = scmp.lt.s32.totalorder %s11743_s22, %s11739_s6 }
 0x1a7   :  { %p11746_p12 = por %p11745_p11, %p11744_p10 }
 0x1a9   :  { %p11747_p13 = pnand %p11746_p12, %p11740_p9 }
 0x1ab   :  { %11750 = shalt.err (!%p11747_p13)
}
 0x1ac   :  { %s13914_s8 = sld [smem:[#allocation70_spill]] }
 0x1ad   :  { %280 = dma.hbm_to_vmem [thread:$0]  %s13913_s21, 176, %s278_s24, [#allocation30]  }
 0x1b2   :  { %s11751_s27 = scalar_lea.hbm %s13914_s8, 176 }
 0x1b3   :  { %p11752_p0 = scmp.ne.s32.totalorder %s13914_s8, %s11751_s27  ;;  %p11755_p1 = scmp.lt.u32.totalorder %s11751_s27, %s13914_s8 }
 0x1b5   :  { %p11757_p2 = pnand %p11755_p1, %p11752_p0 }
 0x1b7   :  { %11760 = shalt.err (!%p11757_p2)
}
 0x1b8   :  { %s11761_s0 = scalar_lea.vmem %s298_s15, 176  ;;  %s11765_s3 = scalar_lea.vmem %s298_s15, 192 }
 0x1b9   :  { %p11762_p3 = scmp.ne.s32.totalorder %s298_s15, %s11761_s0  ;;  %p11766_p4 = scmp.lt.s32.totalorder %s298_s15, %s298_s15 }
 0x1ba   :  { %p11767_p5 = scmp.lt.s32.totalorder %s11765_s3, %s11761_s0 }
 0x1bc   :  { %p11768_p6 = por %p11767_p5, %p11766_p4 }
 0x1be   :  { %p11769_p7 = pnand %p11768_p6, %p11762_p3 }
 0x1c0   :  { %11772 = shalt.err (!%p11769_p7)
}
 0x1c1   :  { %s13915_s2 = sld [smem:[#allocation71_spill]]  ;;  %s11948_s7 = smov [#allocation37]  }
 0x1c2   :  { %300 = dma.hbm_to_vmem [thread:$0]  %s13914_s8, 176, %s298_s15, [#allocation33]  }
 0x1c3   :  { %s319_s23 = sshll.u32 %s11948_s7, 4  ;;  %s11949_s26 = smov [#allocation40]   ;;  %s320_s23 = int_to_ptr.vmem [resolvable:$true] %s319_s23 }
 0x1c4   :  { %s341_s20 = sshll.u32 %s11949_s26, 4  ;;  %s342_s20 = int_to_ptr.vmem [resolvable:$true] %s341_s20 }
 0x1c7   :  { %s11773_s12 = scalar_lea.hbm %s13915_s2, 16 }
 0x1c8   :  { %p11774_p8 = scmp.ne.s32.totalorder %s13915_s2, %s11773_s12  ;;  %p11777_p9 = scmp.lt.u32.totalorder %s11773_s12, %s13915_s2 }
 0x1ca   :  { %p11779_p10 = pnand %p11777_p9, %p11774_p8 }
 0x1cc   :  { %11782 = shalt.err (!%p11779_p10)
}
 0x1cd   :  { %s11783_s28 = scalar_lea.vmem %s320_s23, 16  ;;  %s11787_s30 = scalar_lea.vmem %s320_s23, 32 }
 0x1ce   :  { %p11784_p11 = scmp.ne.s32.totalorder %s320_s23, %s11783_s28  ;;  %p11788_p12 = scmp.lt.s32.totalorder %s320_s23, %s320_s23 }
 0x1cf   :  { %p11789_p13 = scmp.lt.s32.totalorder %s11787_s30, %s11783_s28 }
 0x1d1   :  { %p11790_p0 = por %p11789_p13, %p11788_p12 }
 0x1d3   :  { %p11791_p1 = pnand %p11790_p0, %p11784_p11 }
 0x1d5   :  { %11794 = shalt.err (!%p11791_p1)
}
 0x1d6   :  { %s13916_s14 = sld [smem:[#allocation72_spill]] }
 0x1d7   :  { %322 = dma.hbm_to_vmem [thread:$0]  %s13915_s2, 16, %s320_s23, [#allocation36]  }
 0x1dc   :  { %s11795_s1 = scalar_lea.hbm %s13916_s14, 16 }
 0x1dd   :  { %p11796_p2 = scmp.ne.s32.totalorder %s13916_s14, %s11795_s1  ;;  %p11799_p3 = scmp.lt.u32.totalorder %s11795_s1, %s13916_s14 }
 0x1df   :  { %p11801_p4 = pnand %p11799_p3, %p11796_p2 }
 0x1e1   :  { %11804 = shalt.err (!%p11801_p4)
}
 0x1e2   :  { %s11805_s4 = scalar_lea.vmem %s342_s20, 16  ;;  %s11809_s10 = scalar_lea.vmem %s342_s20, 32 }
 0x1e3   :  { %p11806_p5 = scmp.ne.s32.totalorder %s342_s20, %s11805_s4  ;;  %p11810_p6 = scmp.lt.s32.totalorder %s342_s20, %s342_s20 }
 0x1e4   :  { %p11811_p7 = scmp.lt.s32.totalorder %s11809_s10, %s11805_s4 }
 0x1e6   :  { %p11812_p8 = por %p11811_p7, %p11810_p6 }
 0x1e8   :  { %p11813_p9 = pnand %p11812_p8, %p11806_p5 }
 0x1ea   :  { %11816 = shalt.err (!%p11813_p9)
}
 0x1eb   :  { %344 = dma.hbm_to_vmem [thread:$0]  %s13916_s14, 16, %s342_s20, [#allocation39]  }
 0x1ec   :  { %s11950_s29 = smov [#allocation43]   ;;  %s11817_s11 = scalar_lea.hbm %s12108_s5, 16 }
 0x1ed   :  { %s363_s17 = sshll.u32 %s11950_s29, 4  ;;  %p11818_p10 = scmp.ne.s32.totalorder %s12108_s5, %s11817_s11  ;;  %s364_s17 = int_to_ptr.vmem [resolvable:$true] %s363_s17 }
 0x1ee   :  { %p11821_p11 = scmp.lt.u32.totalorder %s11817_s11, %s12108_s5 }
 0x1f0   :  { %p11823_p12 = pnand %p11821_p11, %p11818_p10 }
 0x1f2   :  { %11826 = shalt.err (!%p11823_p12)
}
 0x1f3   :  { %s11827_s21 = scalar_lea.vmem %s364_s17, 16  ;;  %s11831_s18 = scalar_lea.vmem %s364_s17, 32 }
 0x1f4   :  { %p11828_p13 = scmp.ne.s32.totalorder %s364_s17, %s11827_s21  ;;  %p11832_p0 = scmp.lt.s32.totalorder %s364_s17, %s364_s17 }
 0x1f5   :  { %p11833_p1 = scmp.lt.s32.totalorder %s11831_s18, %s11827_s21 }
 0x1f7   :  { %p11834_p2 = por %p11833_p1, %p11832_p0 }
 0x1f9   :  { %p11835_p3 = pnand %p11834_p2, %p11828_p13 }
 0x1fb   :  { %11838 = shalt.err (!%p11835_p3)
}
 0x1fc   :  { %366 = dma.hbm_to_vmem [thread:$0]  %s12108_s5, 16, %s364_s17, [#allocation42]  }
 0x1fd   :  { %11861 = dma.done.wait [#allocation6], 2048  }
 0x1fe   :  { %11862 = vsyncadd [#allocation6], 4294965248 }
 0x1ff   :  { %11863 = dma.done.wait [#allocation9], 8256  }
 0x200   :  { %11864 = vsyncadd [#allocation9], 4294959040 }
 0x201   :  { %11865 = dma.done.wait [#allocation12], 8256  }
 0x202   :  { %11866 = vsyncadd [#allocation12], 4294959040 }
 0x203   :  { %11867 = dma.done.wait [#allocation15], 9216  }
 0x204   :  { %11868 = vsyncadd [#allocation15], 4294958080 }
 0x205   :  { %11869 = dma.done.wait [#allocation18], 2112  }
 0x206   :  { %11870 = vsyncadd [#allocation18], 4294965184 }
 0x207   :  { %11871 = dma.done.wait [#allocation21], 2064  }
 0x208   :  { %11872 = vsyncadd [#allocation21], 4294965232 }
 0x209   :  { %11873 = dma.done.wait [#allocation24], 2064  }
 0x20a   :  { %11874 = vsyncadd [#allocation24], 4294965232 }
 0x20b   :  { %11875 = dma.done.wait [#allocation27], 2832  }
 0x20c   :  { %11876 = vsyncadd [#allocation27], 4294964464 }
 0x20d   :  { %11877 = dma.done.wait [#allocation30], 1584  }
 0x20e   :  { %11878 = vsyncadd [#allocation30], 4294965712 }
 0x20f   :  { %11879 = dma.done.wait [#allocation33], 1584  }
 0x210   :  { %11880 = vsyncadd [#allocation33], 4294965712 }
 0x211   :  { %11881 = dma.done.wait [#allocation36], 22160  }
 0x212   :  { %11882 = vsyncadd [#allocation36], 4294945136 }
 0x213   :  { %11883 = dma.done.wait [#allocation39], 2064  }
 0x214   :  { %11884 = vsyncadd [#allocation39], 4294965232 }
 0x215   :  { %11885 = dma.done.wait [#allocation42], 2064  }
 0x216   :  { %11886 = vsyncadd [#allocation42], 4294965232  ;;  %v11951_v0 = vmov 0.0   ;;  %v444_v1 = vld [vmem:[#allocation5 + $0x8] sm:$0xff]  ;;  %v446_v3 = vld [vmem:[#allocation5 + $0x18] sm:$0xff]  ;;  %s13917_s5 = sld [smem:[#allocation59_spill]] }
 0x217   :  { %549 = vmatprep.mubr.f32.mxu0 %v11951_v0  ;;  %620 = vmatprep.mubr.f32.mxu1 %v11951_v0  ;;  %v448_v2 = vld [vmem:[#allocation5 + $0x28] sm:$0xff]  ;;  %v450_v5 = vld [vmem:[#allocation5 + $0x38] sm:$0xff]  ;;  %v443_v6 = vld [vmem:[#allocation5] sm:$0xff]  ;;  %vm481_vm0 = vcmask 261120   ;;  %s13918_s13 = sld [smem:[#allocation62_spill]]  ;;  %s13919_s24 = sld [smem:[#allocation60_spill]] }
 0x218   :  { %v8946_v4 = vpack.c.bf16 %v448_v2, %v444_v1  ;;  %v447_v7 = vld [vmem:[#allocation5 + $0x20] sm:$0xff]  ;;  %v8954_v8 = vpack.c.bf16 %v450_v5, %v446_v3  ;;  %v445_v10 = vld [vmem:[#allocation5 + $0x10] sm:$0xff]  ;;  %v452_v12 = vld [vmem:[#allocation5 + $0x48] sm:$0xff]  ;;  %vm2213_vm1 = vcmask 130048   ;;  %s13920_s25 = sld [smem:[#allocation61_spill]]  ;;  %vm11953_vm2 = vmmov 0  }
 0x219   :  { %v8948_v9 = vpack.c.bf16 %v447_v7, %v443_v6  ;;  %v449_v11 = vld [vmem:[#allocation5 + $0x30] sm:$0xff]  ;;  %v456_v14 = vld [vmem:[#allocation5 + $0x68] sm:$0xff]  ;;  %v454_v15 = vld [vmem:[#allocation5 + $0x58] sm:$0xff]  ;;  %vm6509_vm3 = vcmask 64512   ;;  %s13921_s15 = sld [smem:[#allocation68_spill]]  ;;  %vm7468_vm4 = vcmask 793600  }
 0x21a   :  { %8947 = vmatprep.subr.bf16.mxu0 %v8946_v4  ;;  %v8956_v13 = vpack.c.bf16 %v449_v11, %v445_v10  ;;  %v458_v16 = vld [vmem:[#allocation5 + $0x78] sm:$0xff]  ;;  %8955 = vmatprep.subr.bf16.mxu1 %v8954_v8  ;;  %v8950_v17 = vpack.c.bf16 %v456_v14, %v452_v12  ;;  %v451_v19 = vld [vmem:[#allocation5 + $0x40] sm:$0xff]  ;;  %v453_v21 = vld [vmem:[#allocation5 + $0x50] sm:$0xff]  ;;  %vm7653_vm5 = vcmask 1040384   ;;  %s11954_s16 = smov [#allocation44]  }
 0x21b   :  { %8949 = vmatpush1.bf16.msra.mxu0 %v8948_v9  ;;  %v8958_v18 = vpack.c.bf16 %v458_v16, %v454_v15  ;;  %v455_v20 = vld [vmem:[#allocation5 + $0x60] sm:$0xff]  ;;  %v457_v23 = vld [vmem:[#allocation5 + $0x70] sm:$0xff]  ;;  %v628_v24 = vld [vmem:[#allocation8 + $0x8] sm:$0xff]  ;;  %s8284_s6 = sshll.u32 %s11954_s16, 4  ;;  %s8285_s6 = int_to_ptr.vmem [resolvable:$true] %s8284_s6 }
 0x21c   :  { %8957 = vmatpush1.bf16.msra.mxu1 %v8956_v13  ;;  %v8952_v22 = vpack.c.bf16 %v455_v20, %v451_v19  ;;  %8951 = vmatprep.subr.bf16.mxu0 %v8950_v17  ;;  %v8960_v25 = vpack.c.bf16 %v457_v23, %v453_v21  ;;  %v442_v26 = vld [vmem:[%s13917_s5] sm:$0xff]  ;;  %v632_v27 = vld [vmem:[#allocation8 + $0x28] sm:$0xff]  ;;  %v627_v32 = vld [vmem:[#allocation8] sm:$0xff]  ;;  %s11839_s22 = scalar_lea.vmem %s8285_s6, 1408  ;;  %p11844_p5 = scmp.lt.s32.totalorder %s8285_s6, %s8285_s6 }
 0x21d   :  { %8959 = vmatprep.subr.bf16.mxu1 %v8958_v18  ;;  %v630_v28 = vld [vmem:[#allocation8 + $0x18] sm:$0xff]  ;;  %v12263_v30 = vpack.c.bf16 %v632_v27, %v628_v24  ;;  %v631_v33 = vld [vmem:[#allocation8 + $0x20] sm:$0xff]  ;;  %v629_v34 = vld [vmem:[#allocation8 + $0x10] sm:$0xff]  ;;  %p11840_p4 = scmp.ne.s32.totalorder %s8285_s6, %s11839_s22  ;;  %p11845_p6 = scmp.lt.s32.totalorder %s11839_s22, %s11839_s22 }
 0x21e   :  { %v634_v29 = vld [vmem:[#allocation8 + $0x38] sm:$0xff]  ;;  %v12267_v35 = vpack.c.bf16 %v631_v33, %v627_v32  ;;  %v633_v36 = vld [vmem:[#allocation8 + $0x30] sm:$0xff]  ;;  %v636_v37 = vld [vmem:[#allocation8 + $0x48] sm:$0xff] }
 0x21f   :  { %v12265_v31 = vpack.c.bf16 %v634_v29, %v630_v28  ;;  %8953 = vmatpush1.bf16.msra.mxu0 %v8952_v22  ;;  %v640_v38 = vld [vmem:[#allocation8 + $0x68] sm:$0xff]  ;;  %v12270_v39 = vpack.c.bf16 %v633_v36, %v629_v34  ;;  %v638_v41 = vld [vmem:[#allocation8 + $0x58] sm:$0xff]  ;;  %v635_v43 = vld [vmem:[#allocation8 + $0x40] sm:$0xff]  ;;  %p11846_p7 = por %p11845_p6, %p11844_p5 }
 0x220   :  { %8961 = vmatpush1.bf16.msra.mxu1 %v8960_v25  ;;  %8963 = vmatprep.subr.bf16.mxu0 %v12263_v30  ;;  %v12272_v40 = vpack.c.bf16 %v640_v38, %v636_v37  ;;  %v642_v42 = vld [vmem:[#allocation8 + $0x78] sm:$0xff]  ;;  %v639_v45 = vld [vmem:[#allocation8 + $0x60] sm:$0xff]  ;;  %v637_v46 = vld [vmem:[#allocation8 + $0x50] sm:$0xff] }
 0x221   :  { %8995 = vmatprep.subr.bf16.mxu1 %v12265_v31  ;;  %v12275_v44 = vpack.c.bf16 %v642_v42, %v638_v41  ;;  %v641_v47 = vld [vmem:[#allocation8 + $0x70] sm:$0xff]  ;;  %v644_v48 = vld [vmem:[#allocation8 + $0x88] sm:$0xff]  ;;  %v646_v50 = vld [vmem:[#allocation8 + $0x98] sm:$0xff]  ;;  %v12280_v51 = vpack.c.bf16 %v639_v45, %v635_v43  ;;  %p11847_p8 = pnand %p11846_p7, %p11840_p4 }
 0x222   :  { %8338 = vmatmul.mubr.msk.f32.vlgmr.msra.gmra.mrb[0].mxu0 %vm481_vm0, %v442_v26  ;;  %v648_v49 = vld [vmem:[#allocation8 + $0xa8] sm:$0xff]  ;;  %v650_v52 = vld [vmem:[#allocation8 + $0xb8] sm:$0xff]  ;;  %v12284_v53 = vpack.c.bf16 %v641_v47, %v637_v46  ;;  %v643_v55 = vld [vmem:[#allocation8 + $0x80] sm:$0xff] }
 0x223   :  { %8339 = vmatmul.mubr.msk.f32.vlgmr.msra.gmra.mrb[0].mxu1 %vm481_vm0, %v442_v26  ;;  %8965 = vmatpush1.bf16.msra.mxu0 %v12267_v35  ;;  %v12286_v54 = vpack.c.bf16 %v648_v49, %v644_v48  ;;  %v647_v56 = vld [vmem:[#allocation8 + $0xa0] sm:$0xff]  ;;  %v645_v57 = vld [vmem:[#allocation8 + $0x90] sm:$0xff]  ;;  %v12289_v58 = vpack.c.bf16 %v650_v52, %v646_v50  ;;  %v652_v60 = vld [vmem:[#allocation8 + $0xc8] sm:$0xff] }
 0x224   :  { %8997 = vmatpush1.bf16.msra.mxu1 %v12270_v39  ;;  %8967 = vmatprep.subr.bf16.mxu0 %v12272_v40  ;;  %v649_v59 = vld [vmem:[#allocation8 + $0xb0] sm:$0xff]  ;;  %v656_v61 = vld [vmem:[#allocation8 + $0xe8] sm:$0xff]  ;;  %v654_v62 = vld [vmem:[#allocation8 + $0xd8] sm:$0xff]  ;;  %v12294_v1 = vpack.c.bf16 %v647_v56, %v643_v55 }
 0x225   :  { %8999 = vmatprep.subr.bf16.mxu1 %v12275_v44  ;;  %755 = vmatprep.mubr.f32.mxu0 %v11951_v0  ;;  %v658_v63 = vld [vmem:[#allocation8 + $0xf8] sm:$0xff]  ;;  %v12298_v2 = vpack.c.bf16 %v649_v59, %v645_v57  ;;  %v12300_v3 = vpack.c.bf16 %v656_v61, %v652_v60  ;;  %v651_v4 = vld [vmem:[#allocation8 + $0xc0] sm:$0xff]  ;;  %v653_v6 = vld [vmem:[#allocation8 + $0xd0] sm:$0xff] }
 0x226   :  { %826 = vmatprep.mubr.f32.mxu1 %v11951_v0  ;;  %v655_v5 = vld [vmem:[#allocation8 + $0xe0] sm:$0xff]  ;;  %v12303_v7 = vpack.c.bf16 %v658_v63, %v654_v62  ;;  %v657_v8 = vld [vmem:[#allocation8 + $0xf0] sm:$0xff]  ;;  %v660_v9 = vld [vmem:[#allocation8 + $0x108] sm:$0xff] }
 0x227   :  { %8969 = vmatpush1.bf16.msra.mxu0 %v12280_v51  ;;  %v664_v10 = vld [vmem:[#allocation8 + $0x128] sm:$0xff]  ;;  %v662_v11 = vld [vmem:[#allocation8 + $0x118] sm:$0xff]  ;;  %v12306_v13 = vpack.c.bf16 %v655_v5, %v651_v4  ;;  %v12310_v14 = vpack.c.bf16 %v657_v8, %v653_v6  ;;  %v659_v16 = vld [vmem:[#allocation8 + $0x100] sm:$0xff] }
 0x228   :  { %9001 = vmatpush1.bf16.msra.mxu1 %v12284_v53  ;;  %8971 = vmatprep.subr.bf16.mxu0 %v12286_v54  ;;  %v666_v12 = vld [vmem:[#allocation8 + $0x138] sm:$0xff]  ;;  %v12312_v15 = vpack.c.bf16 %v664_v10, %v660_v9  ;;  %v663_v17 = vld [vmem:[#allocation8 + $0x120] sm:$0xff]  ;;  %v661_v18 = vld [vmem:[#allocation8 + $0x110] sm:$0xff] }
 0x229   :  { %9003 = vmatprep.subr.bf16.mxu1 %v12289_v58  ;;  %v12315_v19 = vpack.c.bf16 %v666_v12, %v662_v11  ;;  %v665_v20 = vld [vmem:[#allocation8 + $0x130] sm:$0xff]  ;;  %v668_v21 = vld [vmem:[#allocation8 + $0x148] sm:$0xff]  ;;  %v670_v23 = vld [vmem:[#allocation8 + $0x158] sm:$0xff]  ;;  %v12318_v25 = vpack.c.bf16 %v663_v17, %v659_v16  ;;  %v461_v17 = vlaneseq }
 0x22a   :  { %v672_v22 = vld [vmem:[#allocation8 + $0x168] sm:$0xff]  ;;  %v674_v24 = vld [vmem:[#allocation8 + $0x178] sm:$0xff]  ;;  %v12322_v26 = vpack.c.bf16 %v665_v20, %v661_v18  ;;  %v667_v28 = vld [vmem:[#allocation8 + $0x140] sm:$0xff] }
 0x22b   :  { %8973 = vmatpush1.bf16.msra.mxu0 %v12294_v1  ;;  %v12324_v27 = vpack.c.bf16 %v672_v22, %v668_v21  ;;  %v671_v29 = vld [vmem:[#allocation8 + $0x160] sm:$0xff]  ;;  %v669_v32 = vld [vmem:[#allocation8 + $0x150] sm:$0xff]  ;;  %v12327_v33 = vpack.c.bf16 %v674_v24, %v670_v23  ;;  %v676_v36 = vld [vmem:[#allocation8 + $0x188] sm:$0xff]  ;;  %v12401_v18 = vshrl.u32 %v461_v17, 7 }
 0x22c   :  { %9005 = vmatpush1.bf16.msra.mxu1 %v12298_v2  ;;  %8975 = vmatprep.subr.bf16.mxu0 %v12300_v3  ;;  %v673_v34 = vld [vmem:[#allocation8 + $0x170] sm:$0xff]  ;;  %v680_v37 = vld [vmem:[#allocation8 + $0x1a8] sm:$0xff]  ;;  %v678_v38 = vld [vmem:[#allocation8 + $0x198] sm:$0xff]  ;;  %v12330_v42 = vpack.c.bf16 %v671_v29, %v667_v28 }
 0x22d   :  { %9007 = vmatprep.subr.bf16.mxu1 %v12303_v7  ;;  %v682_v41 = vld [vmem:[#allocation8 + $0x1b8] sm:$0xff]  ;;  %v12334_v43 = vpack.c.bf16 %v673_v34, %v669_v32  ;;  %v12336_v45 = vpack.c.bf16 %v680_v37, %v676_v36  ;;  %v675_v46 = vld [vmem:[#allocation8 + $0x180] sm:$0xff]  ;;  %v677_v48 = vld [vmem:[#allocation8 + $0x190] sm:$0xff]  ;;  %v12404_v20 = vsub.s32 0, %v12401_v18  ;;  %v12407_v22 = vsub.s32 1, %v12401_v18 }
 0x22e   :  { %v679_v47 = vld [vmem:[#allocation8 + $0x1a0] sm:$0xff]  ;;  %v12339_v49 = vpack.c.bf16 %v682_v41, %v678_v38  ;;  %v681_v50 = vld [vmem:[#allocation8 + $0x1b0] sm:$0xff]  ;;  %v684_v52 = vld [vmem:[#allocation8 + $0x1c8] sm:$0xff]  ;;  %v12412_v28 = vsub.s32 3, %v12401_v18 }
 0x22f   :  { %8977 = vmatpush1.bf16.msra.mxu0 %v12306_v13  ;;  %v688_v55 = vld [vmem:[#allocation8 + $0x1e8] sm:$0xff]  ;;  %v686_v56 = vld [vmem:[#allocation8 + $0x1d8] sm:$0xff]  ;;  %v12342_v59 = vpack.c.bf16 %v679_v47, %v675_v46  ;;  %v12346_v60 = vpack.c.bf16 %v681_v50, %v677_v48  ;;  %v683_v62 = vld [vmem:[#allocation8 + $0x1c0] sm:$0xff]  ;;  %v12422_v48 = vsub.s32 2, %v12401_v18 }
 0x230   :  { %9009 = vmatpush1.bf16.msra.mxu1 %v12310_v14  ;;  %8979 = vmatprep.subr.bf16.mxu0 %v12312_v15  ;;  %v690_v57 = vld [vmem:[#allocation8 + $0x1f8] sm:$0xff]  ;;  %v12348_v61 = vpack.c.bf16 %v688_v55, %v684_v52  ;;  %v687_v63 = vld [vmem:[#allocation8 + $0x1e0] sm:$0xff]  ;;  %v685_v5 = vld [vmem:[#allocation8 + $0x1d0] sm:$0xff] }
 0x231   :  { %9011 = vmatprep.subr.bf16.mxu1 %v12315_v19  ;;  %v12351_v4 = vpack.c.bf16 %v690_v57, %v686_v56  ;;  %v689_v6 = vld [vmem:[#allocation8 + $0x1f0] sm:$0xff]  ;;  %v12354_v8 = vpack.c.bf16 %v687_v63, %v683_v62  ;;  %v459_v21 = vld [vmem:[#allocation10] sm:$0xf] }
 0x232   :  { %v12358_v9 = vpack.c.bf16 %v689_v6, %v685_v5  ;;  %v464_v23 = vrot.slane %v459_v21, %v12404_v20  ;;  %v468_v24 = vrot.slane %v459_v21, %v12407_v22  ;;  %v476_v41 = vrot.slane %v459_v21, %v12412_v28 }
 0x233   :  { %8981 = vmatpush1.bf16.msra.mxu0 %v12318_v25  ;;  %v472_v56 = vrot.slane %v459_v21, %v12422_v48 }
 0x234   :  { %9013 = vmatpush1.bf16.msra.mxu1 %v12322_v26  ;;  %8983 = vmatprep.subr.bf16.mxu0 %v12324_v27 }
 0x235   :  { %9015 = vmatprep.subr.bf16.mxu1 %v12327_v33 }
 0x237   :  { %8985 = vmatpush1.bf16.msra.mxu0 %v12330_v42 }
 0x238   :  { %9017 = vmatpush1.bf16.msra.mxu1 %v12334_v43  ;;  %8987 = vmatprep.subr.bf16.mxu0 %v12336_v45 }
 0x239   :  { %9019 = vmatprep.subr.bf16.mxu1 %v12339_v49 }
 0x23b   :  { %8989 = vmatpush1.bf16.msra.mxu0 %v12342_v59 }
 0x23c   :  { %9021 = vmatpush1.bf16.msra.mxu1 %v12346_v60  ;;  %8991 = vmatprep.subr.bf16.mxu0 %v12348_v61 }
 0x23d   :  { %9023 = vmatprep.subr.bf16.mxu1 %v12351_v4 }
 0x23f   :  { %8993 = vmatpush1.bf16.msra.mxu0 %v12354_v8 }
 0x240   :  { %9025 = vmatpush1.bf16.msra.mxu1 %v12358_v9  ;;  %9027 = vmatprep.subr.bf16.mxu0 %v12263_v30 }
 0x241   :  { %9059 = vmatprep.subr.bf16.mxu1 %v12265_v31 }
 0x242   :  { %756 = vmatmul.mubr.f32.vlgmr.msra.gmra.mrb[2].mxu0 %v11951_v0 }
 0x243   :  { %827 = vmatmul.mubr.f32.vlgmr.msra.gmra.mrb[2].mxu1 %v11951_v0  ;;  %9029 = vmatpush1.bf16.msra.mxu0 %v12267_v35 }
 0x244   :  { %9061 = vmatpush1.bf16.msra.mxu1 %v12270_v39  ;;  %9031 = vmatprep.subr.bf16.mxu0 %v12272_v40 }
 0x245   :  { %9063 = vmatprep.subr.bf16.mxu1 %v12275_v44  ;;  %926 = vmatprep.mubr.f32.mxu0 %v11951_v0 }
 0x246   :  { %997 = vmatprep.mubr.f32.mxu1 %v11951_v0 }
 0x247   :  { %9033 = vmatpush1.bf16.msra.mxu0 %v12280_v51 }
 0x248   :  { %9065 = vmatpush1.bf16.msra.mxu1 %v12284_v53  ;;  %9035 = vmatprep.subr.bf16.mxu0 %v12286_v54 }
 0x249   :  { %9067 = vmatprep.subr.bf16.mxu1 %v12289_v58 }
 0x24b   :  { %9037 = vmatpush1.bf16.msra.mxu0 %v12294_v1 }
 0x24c   :  { %9069 = vmatpush1.bf16.msra.mxu1 %v12298_v2  ;;  %9039 = vmatprep.subr.bf16.mxu0 %v12300_v3 }
 0x24d   :  { %9071 = vmatprep.subr.bf16.mxu1 %v12303_v7 }
 0x24f   :  { %9041 = vmatpush1.bf16.msra.mxu0 %v12306_v13 }
 0x250   :  { %9073 = vmatpush1.bf16.msra.mxu1 %v12310_v14  ;;  %9043 = vmatprep.subr.bf16.mxu0 %v12312_v15 }
 0x251   :  { %9075 = vmatprep.subr.bf16.mxu1 %v12315_v19 }
 0x253   :  { %9045 = vmatpush1.bf16.msra.mxu0 %v12318_v25 }
 0x254   :  { %9077 = vmatpush1.bf16.msra.mxu1 %v12322_v26  ;;  %9047 = vmatprep.subr.bf16.mxu0 %v12324_v27 }
 0x255   :  { %9079 = vmatprep.subr.bf16.mxu1 %v12327_v33 }
 0x257   :  { %9049 = vmatpush1.bf16.msra.mxu0 %v12330_v42 }
 0x258   :  { %9081 = vmatpush1.bf16.msra.mxu1 %v12334_v43  ;;  %9051 = vmatprep.subr.bf16.mxu0 %v12336_v45 }
 0x259   :  { %9083 = vmatprep.subr.bf16.mxu1 %v12339_v49 }
 0x25b   :  { %9053 = vmatpush1.bf16.msra.mxu0 %v12342_v59 }
 0x25c   :  { %9085 = vmatpush1.bf16.msra.mxu1 %v12346_v60  ;;  %9055 = vmatprep.subr.bf16.mxu0 %v12348_v61 }
 0x25d   :  { %9087 = vmatprep.subr.bf16.mxu1 %v12351_v4 }
 0x25f   :  { %9057 = vmatpush1.bf16.msra.mxu0 %v12354_v8 }
 0x260   :  { %9089 = vmatpush1.bf16.msra.mxu1 %v12358_v9  ;;  %9091 = vmatprep.subr.bf16.mxu0 %v12263_v30 }
 0x261   :  { %9123 = vmatprep.subr.bf16.mxu1 %v12265_v31 }
 0x2f5   :  { %v551_v10 = vpop.f32.mrb[0].mxu0 }
 0x2f6   :  { %v553_v11 = vpop.f32.mrb[1].mxu0  ;;  %v622_v12 = vpop.f32.mrb[0].mxu1  ;;  %v12414_v29 = vadd.f32 %v551_v10, %v464_v23 }
 0x2f7   :  { %v624_v16 = vpop.f32.mrb[1].mxu1  ;;  %v12416_v32 = vadd.f32 %v553_v11, %v468_v24  ;;  %v12428_v62 = vadd.f32 %v622_v12, %v472_v56 }
 0x2f8   :  { %v12424_v55 = vadd.f32 %v624_v16, %v476_v41 }
 0x315   :  { %v757_v34 = vpop.f32.mrb[2].mxu0 }
 0x316   :  { %v833_v36 = vadd.f32 %v757_v34, %v12414_v29  ;;  %v828_v37 = vpop.f32.mrb[2].mxu1  ;;  %v759_v38 = vpop.f32.mrb[3].mxu0 }
 0x317   :  { %v834_v46 = vadd.f32 %v759_v38, %v12416_v32  ;;  %v830_v47 = vpop.f32.mrb[3].mxu1  ;;  %v835_v5 = vadd.f32 %v828_v37, %v12428_v62 }
 0x318   :  { %v8340_v50 = vmul.f32 -1.442695, %v833_v36  ;;  %v836_v57 = vadd.f32 %v830_v47, %v12424_v55 }
 0x319   :  { %v8341_v52 = vmul.f32 -1.442695, %v834_v46 }
 0x31a   :  { %10901 = vpow2.f32 %v8340_v50  ;;  %v8342_v63 = vmul.f32 -1.442695, %v836_v57 }
 0x31b   :  { %10903 = vpow2.f32 %v8341_v52 }
 0x31c   :  { %10905 = vpow2.f32 %v8342_v63 }
 0x31d   :  { %10907 = vtanh.f32 %v835_v5 }
 0x324   :  { %v10902_v6 = vpop.eup %10901 }
 0x325   :  { %v10904_v10 = vpop.eup %10903  ;;  %v840_v11 = vadd.f32 1.0, %v10902_v6 }
 0x326   :  { %v846_v17 = vadd.f32 1.0, %v10904_v10  ;;  %v10906_v16 = vpop.eup %10905 }
 0x327   :  { %10909 = vrcp.f32 %v840_v11  ;;  %v10908_v23 = vpop.eup %10907  ;;  %v853_v36 = vadd.f32 1.0, %v10906_v16 }
 0x328   :  { %10911 = vrcp.f32 %v846_v17 }
 0x329   :  { %10913 = vrcp.f32 %v853_v36 }
 0x331   :  { %v10910_v24 = vpop.eup %10909 }
 0x332   :  { %v10912_v34 = vpop.eup %10911  ;;  %v857_v21 = vmul.f32 %v10910_v24, %v10908_v23 }
 0x333   :  { %v856_v38 = vmul.f32 0.0, %v10912_v34  ;;  %v10914_v37 = vpop.eup %10913 }
 0x335   :  { %v12431_v12 = vadd.f32 %v857_v21, %v856_v38 }
 0x337   :  { %10915 = vtanh.f32 %v12431_v12 }
 0x341   :  { %v10916_v41 = vpop.eup %10915 }
 0x342   :  { %v860_v46 = vmul.f32 %v10916_v41, %v10914_v37 }
 0x344   :  { %861 = vst [vmem:[#allocation2] sm:$0x1] %v860_v46  ;;  %927 = vmatmul.mubr.f32.vlgmr.msra.gmra.mrb[4].mxu0 %v860_v46  ;;  %998 = vmatmul.mubr.f32.vlgmr.msra.gmra.mrb[4].mxu1 %v860_v46 }
 0x345   :  { %9093 = vmatpush1.bf16.msra.mxu0 %v12267_v35  ;;  %9125 = vmatpush1.bf16.msra.mxu1 %v12270_v39 }
 0x346   :  { %9095 = vmatprep.subr.bf16.mxu0 %v12272_v40  ;;  %9127 = vmatprep.subr.bf16.mxu1 %v12275_v44 }
 0x347   :  { %1115 = vmatprep.mubr.f32.mxu0 %v11951_v0  ;;  %1186 = vmatprep.mubr.f32.mxu1 %v11951_v0 }
 0x349   :  { %9097 = vmatpush1.bf16.msra.mxu0 %v12280_v51  ;;  %9129 = vmatpush1.bf16.msra.mxu1 %v12284_v53 }
 0x34a   :  { %9099 = vmatprep.subr.bf16.mxu0 %v12286_v54  ;;  %9131 = vmatprep.subr.bf16.mxu1 %v12289_v58 }
 0x34d   :  { %9101 = vmatpush1.bf16.msra.mxu0 %v12294_v1  ;;  %9133 = vmatpush1.bf16.msra.mxu1 %v12298_v2 }
 0x34e   :  { %9103 = vmatprep.subr.bf16.mxu0 %v12300_v3  ;;  %9135 = vmatprep.subr.bf16.mxu1 %v12303_v7 }
 0x351   :  { %9105 = vmatpush1.bf16.msra.mxu0 %v12306_v13  ;;  %9137 = vmatpush1.bf16.msra.mxu1 %v12310_v14 }
 0x352   :  { %9107 = vmatprep.subr.bf16.mxu0 %v12312_v15  ;;  %9139 = vmatprep.subr.bf16.mxu1 %v12315_v19 }
 0x355   :  { %9109 = vmatpush1.bf16.msra.mxu0 %v12318_v25  ;;  %9141 = vmatpush1.bf16.msra.mxu1 %v12322_v26 }
 0x356   :  { %9111 = vmatprep.subr.bf16.mxu0 %v12324_v27  ;;  %9143 = vmatprep.subr.bf16.mxu1 %v12327_v33 }
 0x359   :  { %9113 = vmatpush1.bf16.msra.mxu0 %v12330_v42  ;;  %9145 = vmatpush1.bf16.msra.mxu1 %v12334_v43 }
 0x35a   :  { %9115 = vmatprep.subr.bf16.mxu0 %v12336_v45  ;;  %9147 = vmatprep.subr.bf16.mxu1 %v12339_v49 }
 0x35d   :  { %9117 = vmatpush1.bf16.msra.mxu0 %v12342_v59  ;;  %9149 = vmatpush1.bf16.msra.mxu1 %v12346_v60 }
 0x35e   :  { %9119 = vmatprep.subr.bf16.mxu0 %v12348_v61  ;;  %9151 = vmatprep.subr.bf16.mxu1 %v12351_v4 }
 0x361   :  { %9121 = vmatpush1.bf16.msra.mxu0 %v12354_v8  ;;  %9153 = vmatpush1.bf16.msra.mxu1 %v12358_v9 }
 0x362   :  { %9155 = vmatprep.subr.bf16.mxu0 %v12263_v30  ;;  %9187 = vmatprep.subr.bf16.mxu1 %v12265_v31 }
 0x417   :  { %v928_v47 = vpop.f32.mrb[4].mxu0  ;;  %v999_v50 = vpop.f32.mrb[4].mxu1 }
 0x418   :  { %v1008_v52 = vrot.slane %v928_v47, 7  ;;  %v930_v56 = vpop.f32.mrb[5].mxu0  ;;  %v1001_v57 = vpop.f32.mrb[5].mxu1  ;;  %v1010_v23 = vrot.slane %v999_v50, 7 }
 0x419   :  { %v1009_v63 = vrot.slane %v930_v56, 7  ;;  %v1011_v17 = vrot.slane %v1001_v57, 7 }
 0x41a   :  { %v1016_v5 = vadd.f32 %v1008_v52, %v12414_v29  ;;  %v1018_v34 = vadd.f32 %v1010_v23, %v12428_v62  ;;  %v1040_v52 = vrot.slane %v12431_v12, 7 }
 0x41b   :  { %v1017_v6 = vadd.f32 %v1009_v63, %v12416_v32  ;;  %v1019_v16 = vadd.f32 %v1011_v17, %v12424_v55 }
 0x41c   :  { %v8343_v10 = vmul.f32 -1.442695, %v1016_v5 }
 0x41d   :  { %v8344_v11 = vmul.f32 -1.442695, %v1017_v6  ;;  %v8345_v24 = vmul.f32 -1.442695, %v1019_v16 }
 0x41e   :  { %10917 = vpow2.f32 %v8343_v10 }
 0x41f   :  { %10919 = vpow2.f32 %v8344_v11 }
 0x420   :  { %10921 = vpow2.f32 %v8345_v24 }
 0x421   :  { %10923 = vtanh.f32 %v1018_v34 }
 0x428   :  { %v10918_v21 = vpop.eup %10917 }
 0x429   :  { %v10920_v36 = vpop.eup %10919  ;;  %v1023_v38 = vadd.f32 1.0, %v10918_v21 }
 0x42a   :  { %v1029_v37 = vadd.f32 1.0, %v10920_v36  ;;  %v10922_v41 = vpop.eup %10921 }
 0x42b   :  { %10925 = vrcp.f32 %v1023_v38  ;;  %v10924_v46 = vpop.eup %10923  ;;  %v1036_v63 = vadd.f32 1.0, %v10922_v41 }
 0x42c   :  { %10927 = vrcp.f32 %v1029_v37 }
 0x42d   :  { %10929 = vrcp.f32 %v1036_v63 }
 0x435   :  { %v10926_v47 = vpop.eup %10925 }
 0x436   :  { %v10928_v56 = vpop.eup %10927  ;;  %v1043_v57 = vmul.f32 %v10926_v47, %v10924_v46 }
 0x437   :  { %v1042_v50 = vmul.f32 %v10928_v56, %v1040_v52  ;;  %v10930_v6 = vpop.eup %10929 }
 0x439   :  { %v12473_v5 = vadd.f32 %v1043_v57, %v1042_v50 }
 0x43b   :  { %10931 = vtanh.f32 %v12473_v5 }
 0x445   :  { %v10932_v10 = vpop.eup %10931 }
 0x446   :  { %v1046_v11 = vmul.f32 %v10932_v10, %v10930_v6 }
 0x448   :  { %1047 = vst [vmem:[#allocation2] sm:$0x2] %v1046_v11  ;;  %v1049_v17 = vrot.slane %v1046_v11, 1 }
 0x44a   :  { %1116 = vmatmul.mubr.f32.vlgmr.msra.gmra.mrb[6].mxu0 %v1049_v17  ;;  %1187 = vmatmul.mubr.f32.vlgmr.msra.gmra.mrb[6].mxu1 %v1049_v17 }
 0x44b   :  { %9157 = vmatpush1.bf16.msra.mxu0 %v12267_v35  ;;  %9189 = vmatpush1.bf16.msra.mxu1 %v12270_v39 }
 0x44c   :  { %9159 = vmatprep.subr.bf16.mxu0 %v12272_v40  ;;  %9191 = vmatprep.subr.bf16.mxu1 %v12275_v44 }
 0x44d   :  { %1304 = vmatprep.mubr.f32.mxu0 %v11951_v0  ;;  %1375 = vmatprep.mubr.f32.mxu1 %v11951_v0 }
 0x44f   :  { %9161 = vmatpush1.bf16.msra.mxu0 %v12280_v51  ;;  %9193 = vmatpush1.bf16.msra.mxu1 %v12284_v53 }
 0x450   :  { %9163 = vmatprep.subr.bf16.mxu0 %v12286_v54  ;;  %9195 = vmatprep.subr.bf16.mxu1 %v12289_v58 }
 0x453   :  { %9165 = vmatpush1.bf16.msra.mxu0 %v12294_v1  ;;  %9197 = vmatpush1.bf16.msra.mxu1 %v12298_v2 }
 0x454   :  { %9167 = vmatprep.subr.bf16.mxu0 %v12300_v3  ;;  %9199 = vmatprep.subr.bf16.mxu1 %v12303_v7 }
 0x457   :  { %9169 = vmatpush1.bf16.msra.mxu0 %v12306_v13  ;;  %9201 = vmatpush1.bf16.msra.mxu1 %v12310_v14 }
 0x458   :  { %9171 = vmatprep.subr.bf16.mxu0 %v12312_v15  ;;  %9203 = vmatprep.subr.bf16.mxu1 %v12315_v19 }
 0x45b   :  { %9173 = vmatpush1.bf16.msra.mxu0 %v12318_v25  ;;  %9205 = vmatpush1.bf16.msra.mxu1 %v12322_v26 }
 0x45c   :  { %9175 = vmatprep.subr.bf16.mxu0 %v12324_v27  ;;  %9207 = vmatprep.subr.bf16.mxu1 %v12327_v33 }
 0x45f   :  { %9177 = vmatpush1.bf16.msra.mxu0 %v12330_v42  ;;  %9209 = vmatpush1.bf16.msra.mxu1 %v12334_v43 }
 0x460   :  { %9179 = vmatprep.subr.bf16.mxu0 %v12336_v45  ;;  %9211 = vmatprep.subr.bf16.mxu1 %v12339_v49 }
 0x463   :  { %9181 = vmatpush1.bf16.msra.mxu0 %v12342_v59  ;;  %9213 = vmatpush1.bf16.msra.mxu1 %v12346_v60 }
 0x464   :  { %9183 = vmatprep.subr.bf16.mxu0 %v12348_v61  ;;  %9215 = vmatprep.subr.bf16.mxu1 %v12351_v4 }
 0x467   :  { %9185 = vmatpush1.bf16.msra.mxu0 %v12354_v8  ;;  %9217 = vmatpush1.bf16.msra.mxu1 %v12358_v9 }
 0x468   :  { %9219 = vmatprep.subr.bf16.mxu0 %v12263_v30  ;;  %9251 = vmatprep.subr.bf16.mxu1 %v12265_v31 }
 0x51d   :  { %v1117_v12 = vpop.f32.mrb[6].mxu0  ;;  %v1188_v16 = vpop.f32.mrb[6].mxu1 }
 0x51e   :  { %v1197_v23 = vrot.slane %v1117_v12, 6  ;;  %v1119_v24 = vpop.f32.mrb[7].mxu0  ;;  %v1190_v34 = vpop.f32.mrb[7].mxu1  ;;  %v1199_v52 = vrot.slane %v1188_v16, 6 }
 0x51f   :  { %v1198_v21 = vrot.slane %v1119_v24, 6  ;;  %v1200_v46 = vrot.slane %v1190_v34, 6 }
 0x520   :  { %v1205_v36 = vadd.f32 %v1197_v23, %v12414_v29  ;;  %v1207_v57 = vadd.f32 %v1199_v52, %v12428_v62  ;;  %v1229_v23 = vrot.slane %v12473_v5, 7 }
 0x521   :  { %v1206_v38 = vadd.f32 %v1198_v21, %v12416_v32  ;;  %v1208_v47 = vadd.f32 %v1200_v46, %v12424_v55 }
 0x522   :  { %v8346_v37 = vmul.f32 -1.442695, %v1205_v36 }
 0x523   :  { %v8347_v41 = vmul.f32 -1.442695, %v1206_v38  ;;  %v8348_v56 = vmul.f32 -1.442695, %v1208_v47 }
 0x524   :  { %10933 = vpow2.f32 %v8346_v37 }
 0x525   :  { %10935 = vpow2.f32 %v8347_v41 }
 0x526   :  { %10937 = vpow2.f32 %v8348_v56 }
 0x527   :  { %10939 = vtanh.f32 %v1207_v57 }
 0x52e   :  { %v10934_v63 = vpop.eup %10933 }
 0x52f   :  { %v10936_v50 = vpop.eup %10935  ;;  %v1212_v6 = vadd.f32 1.0, %v10934_v63 }
 0x530   :  { %v1218_v10 = vadd.f32 1.0, %v10936_v50  ;;  %v10938_v11 = vpop.eup %10937 }
 0x531   :  { %10941 = vrcp.f32 %v1212_v6  ;;  %v10940_v17 = vpop.eup %10939  ;;  %v1225_v21 = vadd.f32 1.0, %v10938_v11 }
 0x532   :  { %10943 = vrcp.f32 %v1218_v10 }
 0x533   :  { %10945 = vrcp.f32 %v1225_v21 }
 0x53b   :  { %v10942_v12 = vpop.eup %10941 }
 0x53c   :  { %v10944_v24 = vpop.eup %10943  ;;  %v1232_v34 = vmul.f32 %v10942_v12, %v10940_v17 }
 0x53d   :  { %v1231_v16 = vmul.f32 %v10944_v24, %v1229_v23  ;;  %v10946_v38 = vpop.eup %10945 }
 0x53f   :  { %v12515_v36 = vadd.f32 %v1232_v34, %v1231_v16 }
 0x541   :  { %10947 = vtanh.f32 %v12515_v36 }
 0x54b   :  { %v10948_v37 = vpop.eup %10947 }
 0x54c   :  { %v1235_v41 = vmul.f32 %v10948_v37, %v10946_v38 }
 0x54e   :  { %1236 = vst [vmem:[#allocation2] sm:$0x4] %v1235_v41  ;;  %v1238_v46 = vrot.slane %v1235_v41, 2 }
 0x550   :  { %1305 = vmatmul.mubr.f32.vlgmr.msra.gmra.mrb[8].mxu0 %v1238_v46  ;;  %1376 = vmatmul.mubr.f32.vlgmr.msra.gmra.mrb[8].mxu1 %v1238_v46 }
 0x551   :  { %9221 = vmatpush1.bf16.msra.mxu0 %v12267_v35  ;;  %9253 = vmatpush1.bf16.msra.mxu1 %v12270_v39 }
 0x552   :  { %9223 = vmatprep.subr.bf16.mxu0 %v12272_v40  ;;  %9255 = vmatprep.subr.bf16.mxu1 %v12275_v44 }
 0x553   :  { %1493 = vmatprep.mubr.f32.mxu0 %v11951_v0  ;;  %1564 = vmatprep.mubr.f32.mxu1 %v11951_v0 }
 0x555   :  { %9225 = vmatpush1.bf16.msra.mxu0 %v12280_v51  ;;  %9257 = vmatpush1.bf16.msra.mxu1 %v12284_v53 }
 0x556   :  { %9227 = vmatprep.subr.bf16.mxu0 %v12286_v54  ;;  %9259 = vmatprep.subr.bf16.mxu1 %v12289_v58 }
 0x559   :  { %9229 = vmatpush1.bf16.msra.mxu0 %v12294_v1  ;;  %9261 = vmatpush1.bf16.msra.mxu1 %v12298_v2 }
 0x55a   :  { %9231 = vmatprep.subr.bf16.mxu0 %v12300_v3  ;;  %9263 = vmatprep.subr.bf16.mxu1 %v12303_v7 }
 0x55d   :  { %9233 = vmatpush1.bf16.msra.mxu0 %v12306_v13  ;;  %9265 = vmatpush1.bf16.msra.mxu1 %v12310_v14 }
 0x55e   :  { %9235 = vmatprep.subr.bf16.mxu0 %v12312_v15  ;;  %9267 = vmatprep.subr.bf16.mxu1 %v12315_v19 }
 0x561   :  { %9237 = vmatpush1.bf16.msra.mxu0 %v12318_v25  ;;  %9269 = vmatpush1.bf16.msra.mxu1 %v12322_v26 }
 0x562   :  { %9239 = vmatprep.subr.bf16.mxu0 %v12324_v27  ;;  %9271 = vmatprep.subr.bf16.mxu1 %v12327_v33 }
 0x565   :  { %9241 = vmatpush1.bf16.msra.mxu0 %v12330_v42  ;;  %9273 = vmatpush1.bf16.msra.mxu1 %v12334_v43 }
 0x566   :  { %9243 = vmatprep.subr.bf16.mxu0 %v12336_v45  ;;  %9275 = vmatprep.subr.bf16.mxu1 %v12339_v49 }
 0x569   :  { %9245 = vmatpush1.bf16.msra.mxu0 %v12342_v59  ;;  %9277 = vmatpush1.bf16.msra.mxu1 %v12346_v60 }
 0x56a   :  { %9247 = vmatprep.subr.bf16.mxu0 %v12348_v61  ;;  %9279 = vmatprep.subr.bf16.mxu1 %v12351_v4 }
 0x56d   :  { %9249 = vmatpush1.bf16.msra.mxu0 %v12354_v8  ;;  %9281 = vmatpush1.bf16.msra.mxu1 %v12358_v9 }
 0x56e   :  { %9283 = vmatprep.subr.bf16.mxu0 %v12263_v30  ;;  %9315 = vmatprep.subr.bf16.mxu1 %v12265_v31 }
 0x623   :  { %v1306_v5 = vpop.f32.mrb[8].mxu0  ;;  %v1377_v47 = vpop.f32.mrb[8].mxu1 }
 0x624   :  { %v1386_v52 = vrot.slane %v1306_v5, 5  ;;  %v1308_v56 = vpop.f32.mrb[9].mxu0  ;;  %v1379_v57 = vpop.f32.mrb[9].mxu1  ;;  %v1388_v23 = vrot.slane %v1377_v47, 5 }
 0x625   :  { %v1387_v63 = vrot.slane %v1308_v56, 5  ;;  %v1389_v17 = vrot.slane %v1379_v57, 5 }
 0x626   :  { %v1394_v50 = vadd.f32 %v1386_v52, %v12414_v29  ;;  %v1396_v34 = vadd.f32 %v1388_v23, %v12428_v62  ;;  %v1418_v52 = vrot.slane %v12515_v36, 7 }
 0x627   :  { %v1395_v6 = vadd.f32 %v1387_v63, %v12416_v32  ;;  %v1397_v12 = vadd.f32 %v1389_v17, %v12424_v55 }
 0x628   :  { %v8349_v10 = vmul.f32 -1.442695, %v1394_v50 }
 0x629   :  { %v8350_v11 = vmul.f32 -1.442695, %v1395_v6  ;;  %v8351_v24 = vmul.f32 -1.442695, %v1397_v12 }
 0x62a   :  { %10949 = vpow2.f32 %v8349_v10 }
 0x62b   :  { %10951 = vpow2.f32 %v8350_v11 }
 0x62c   :  { %10953 = vpow2.f32 %v8351_v24 }
 0x62d   :  { %10955 = vtanh.f32 %v1396_v34 }
 0x634   :  { %v10950_v21 = vpop.eup %10949 }
 0x635   :  { %v10952_v16 = vpop.eup %10951  ;;  %v1401_v38 = vadd.f32 1.0, %v10950_v21 }
 0x636   :  { %v1407_v37 = vadd.f32 1.0, %v10952_v16  ;;  %v10954_v41 = vpop.eup %10953 }
 0x637   :  { %10957 = vrcp.f32 %v1401_v38  ;;  %v10956_v46 = vpop.eup %10955  ;;  %v1414_v63 = vadd.f32 1.0, %v10954_v41 }
 0x638   :  { %10959 = vrcp.f32 %v1407_v37 }
 0x639   :  { %10961 = vrcp.f32 %v1414_v63 }
 0x641   :  { %v10958_v5 = vpop.eup %10957 }
 0x642   :  { %v10960_v56 = vpop.eup %10959  ;;  %v1421_v57 = vmul.f32 %v10958_v5, %v10956_v46 }
 0x643   :  { %v1420_v47 = vmul.f32 %v10960_v56, %v1418_v52  ;;  %v10962_v6 = vpop.eup %10961 }
 0x645   :  { %v12557_v50 = vadd.f32 %v1421_v57, %v1420_v47 }
 0x647   :  { %10963 = vtanh.f32 %v12557_v50 }
 0x651   :  { %v10964_v10 = vpop.eup %10963 }
 0x652   :  { %v1424_v11 = vmul.f32 %v10964_v10, %v10962_v6 }
 0x654   :  { %1425 = vst [vmem:[#allocation2] sm:$0x8] %v1424_v11  ;;  %v1427_v17 = vrot.slane %v1424_v11, 3 }
 0x656   :  { %1494 = vmatmul.mubr.f32.vlgmr.msra.gmra.mrb[10].mxu0 %v1427_v17  ;;  %1565 = vmatmul.mubr.f32.vlgmr.msra.gmra.mrb[10].mxu1 %v1427_v17 }
 0x657   :  { %9285 = vmatpush1.bf16.msra.mxu0 %v12267_v35  ;;  %9317 = vmatpush1.bf16.msra.mxu1 %v12270_v39 }
 0x658   :  { %9287 = vmatprep.subr.bf16.mxu0 %v12272_v40  ;;  %9319 = vmatprep.subr.bf16.mxu1 %v12275_v44 }
 0x659   :  { %1682 = vmatprep.mubr.f32.mxu0 %v11951_v0  ;;  %1753 = vmatprep.mubr.f32.mxu1 %v11951_v0 }
 0x65b   :  { %9289 = vmatpush1.bf16.msra.mxu0 %v12280_v51  ;;  %9321 = vmatpush1.bf16.msra.mxu1 %v12284_v53 }
 0x65c   :  { %9291 = vmatprep.subr.bf16.mxu0 %v12286_v54  ;;  %9323 = vmatprep.subr.bf16.mxu1 %v12289_v58 }
 0x65f   :  { %9293 = vmatpush1.bf16.msra.mxu0 %v12294_v1  ;;  %9325 = vmatpush1.bf16.msra.mxu1 %v12298_v2 }
 0x660   :  { %9295 = vmatprep.subr.bf16.mxu0 %v12300_v3  ;;  %9327 = vmatprep.subr.bf16.mxu1 %v12303_v7 }
 0x663   :  { %9297 = vmatpush1.bf16.msra.mxu0 %v12306_v13  ;;  %9329 = vmatpush1.bf16.msra.mxu1 %v12310_v14 }
 0x664   :  { %9299 = vmatprep.subr.bf16.mxu0 %v12312_v15  ;;  %9331 = vmatprep.subr.bf16.mxu1 %v12315_v19 }
 0x667   :  { %9301 = vmatpush1.bf16.msra.mxu0 %v12318_v25  ;;  %9333 = vmatpush1.bf16.msra.mxu1 %v12322_v26 }
 0x668   :  { %9303 = vmatprep.subr.bf16.mxu0 %v12324_v27  ;;  %9335 = vmatprep.subr.bf16.mxu1 %v12327_v33 }
 0x66b   :  { %9305 = vmatpush1.bf16.msra.mxu0 %v12330_v42  ;;  %9337 = vmatpush1.bf16.msra.mxu1 %v12334_v43 }
 0x66c   :  { %9307 = vmatprep.subr.bf16.mxu0 %v12336_v45  ;;  %9339 = vmatprep.subr.bf16.mxu1 %v12339_v49 }
 0x66f   :  { %9309 = vmatpush1.bf16.msra.mxu0 %v12342_v59  ;;  %9341 = vmatpush1.bf16.msra.mxu1 %v12346_v60 }
 0x670   :  { %9311 = vmatprep.subr.bf16.mxu0 %v12348_v61  ;;  %9343 = vmatprep.subr.bf16.mxu1 %v12351_v4 }
 0x673   :  { %9313 = vmatpush1.bf16.msra.mxu0 %v12354_v8  ;;  %9345 = vmatpush1.bf16.msra.mxu1 %v12358_v9 }
 0x674   :  { %9347 = vmatprep.subr.bf16.mxu0 %v12263_v30  ;;  %9379 = vmatprep.subr.bf16.mxu1 %v12265_v31 }
 0x729   :  { %v1495_v36 = vpop.f32.mrb[10].mxu0  ;;  %v1566_v12 = vpop.f32.mrb[10].mxu1 }
 0x72a   :  { %v1575_v23 = vrot.slane %v1495_v36, 4  ;;  %v1497_v24 = vpop.f32.mrb[11].mxu0  ;;  %v1568_v34 = vpop.f32.mrb[11].mxu1  ;;  %v1577_v52 = vrot.slane %v1566_v12, 4 }
 0x72b   :  { %v1576_v21 = vrot.slane %v1497_v24, 4  ;;  %v1578_v46 = vrot.slane %v1568_v34, 4 }
 0x72c   :  { %v1583_v16 = vadd.f32 %v1575_v23, %v12414_v29  ;;  %v1585_v57 = vadd.f32 %v1577_v52, %v12428_v62  ;;  %v1607_v23 = vrot.slane %v12557_v50, 7 }
 0x72d   :  { %v1584_v38 = vadd.f32 %v1576_v21, %v12416_v32  ;;  %v1586_v5 = vadd.f32 %v1578_v46, %v12424_v55 }
 0x72e   :  { %v8352_v37 = vmul.f32 -1.442695, %v1583_v16 }
 0x72f   :  { %v8353_v41 = vmul.f32 -1.442695, %v1584_v38  ;;  %v8354_v56 = vmul.f32 -1.442695, %v1586_v5 }
 0x730   :  { %10965 = vpow2.f32 %v8352_v37 }
 0x731   :  { %10967 = vpow2.f32 %v8353_v41 }
 0x732   :  { %10969 = vpow2.f32 %v8354_v56 }
 0x733   :  { %10971 = vtanh.f32 %v1585_v57 }
 0x73a   :  { %v10966_v63 = vpop.eup %10965 }
 0x73b   :  { %v10968_v47 = vpop.eup %10967  ;;  %v1590_v6 = vadd.f32 1.0, %v10966_v63 }
 0x73c   :  { %v1596_v10 = vadd.f32 1.0, %v10968_v47  ;;  %v10970_v11 = vpop.eup %10969 }
 0x73d   :  { %10973 = vrcp.f32 %v1590_v6  ;;  %v10972_v17 = vpop.eup %10971  ;;  %v1603_v21 = vadd.f32 1.0, %v10970_v11 }
 0x73e   :  { %10975 = vrcp.f32 %v1596_v10 }
 0x73f   :  { %10977 = vrcp.f32 %v1603_v21 }
 0x747   :  { %v10974_v36 = vpop.eup %10973 }
 0x748   :  { %v10976_v24 = vpop.eup %10975  ;;  %v1610_v34 = vmul.f32 %v10974_v36, %v10972_v17 }
 0x749   :  { %v1609_v12 = vmul.f32 %v10976_v24, %v1607_v23  ;;  %v10978_v38 = vpop.eup %10977 }
 0x74b   :  { %v12599_v16 = vadd.f32 %v1610_v34, %v1609_v12 }
 0x74d   :  { %10979 = vtanh.f32 %v12599_v16 }
 0x757   :  { %v10980_v37 = vpop.eup %10979 }
 0x758   :  { %v1613_v41 = vmul.f32 %v10980_v37, %v10978_v38 }
 0x75a   :  { %1614 = vst [vmem:[#allocation2] sm:$0x10] %v1613_v41  ;;  %v1616_v46 = vrot.slane %v1613_v41, 4 }
 0x75c   :  { %1683 = vmatmul.mubr.f32.vlgmr.msra.gmra.mrb[12].mxu0 %v1616_v46  ;;  %1754 = vmatmul.mubr.f32.vlgmr.msra.gmra.mrb[12].mxu1 %v1616_v46  ;;  %v1796_v46 = vrot.slane %v12599_v16, 7 }
 0x75d   :  { %9349 = vmatpush1.bf16.msra.mxu0 %v12267_v35  ;;  %9381 = vmatpush1.bf16.msra.mxu1 %v12270_v39 }
 0x75e   :  { %9351 = vmatprep.subr.bf16.mxu0 %v12272_v40  ;;  %9383 = vmatprep.subr.bf16.mxu1 %v12275_v44 }
 0x75f   :  { %1871 = vmatprep.mubr.f32.mxu0 %v11951_v0  ;;  %1942 = vmatprep.mubr.f32.mxu1 %v11951_v0 }
 0x761   :  { %9353 = vmatpush1.bf16.msra.mxu0 %v12280_v51  ;;  %9385 = vmatpush1.bf16.msra.mxu1 %v12284_v53 }
 0x762   :  { %9355 = vmatprep.subr.bf16.mxu0 %v12286_v54  ;;  %9387 = vmatprep.subr.bf16.mxu1 %v12289_v58 }
 0x765   :  { %9357 = vmatpush1.bf16.msra.mxu0 %v12294_v1  ;;  %9389 = vmatpush1.bf16.msra.mxu1 %v12298_v2 }
 0x766   :  { %9359 = vmatprep.subr.bf16.mxu0 %v12300_v3  ;;  %9391 = vmatprep.subr.bf16.mxu1 %v12303_v7 }
 0x769   :  { %9361 = vmatpush1.bf16.msra.mxu0 %v12306_v13  ;;  %9393 = vmatpush1.bf16.msra.mxu1 %v12310_v14 }
 0x76a   :  { %9363 = vmatprep.subr.bf16.mxu0 %v12312_v15  ;;  %9395 = vmatprep.subr.bf16.mxu1 %v12315_v19 }
 0x76d   :  { %9365 = vmatpush1.bf16.msra.mxu0 %v12318_v25  ;;  %9397 = vmatpush1.bf16.msra.mxu1 %v12322_v26 }
 0x76e   :  { %9367 = vmatprep.subr.bf16.mxu0 %v12324_v27  ;;  %9399 = vmatprep.subr.bf16.mxu1 %v12327_v33 }
 0x771   :  { %9369 = vmatpush1.bf16.msra.mxu0 %v12330_v42  ;;  %9401 = vmatpush1.bf16.msra.mxu1 %v12334_v43 }
 0x772   :  { %9371 = vmatprep.subr.bf16.mxu0 %v12336_v45  ;;  %9403 = vmatprep.subr.bf16.mxu1 %v12339_v49 }
 0x775   :  { %9373 = vmatpush1.bf16.msra.mxu0 %v12342_v59  ;;  %9405 = vmatpush1.bf16.msra.mxu1 %v12346_v60 }
 0x776   :  { %9375 = vmatprep.subr.bf16.mxu0 %v12348_v61  ;;  %9407 = vmatprep.subr.bf16.mxu1 %v12351_v4 }
 0x779   :  { %9377 = vmatpush1.bf16.msra.mxu0 %v12354_v8  ;;  %9409 = vmatpush1.bf16.msra.mxu1 %v12358_v9 }
 0x77a   :  { %9411 = vmatprep.subr.bf16.mxu0 %v12263_v30  ;;  %9443 = vmatprep.subr.bf16.mxu1 %v12265_v31 }
 0x82f   :  { %v1684_v50 = vpop.f32.mrb[12].mxu0  ;;  %v1755_v5 = vpop.f32.mrb[12].mxu1 }
 0x830   :  { %v1764_v52 = vrot.slane %v1684_v50, 3  ;;  %v1686_v56 = vpop.f32.mrb[13].mxu0  ;;  %v1757_v57 = vpop.f32.mrb[13].mxu1  ;;  %v1766_v30 = vrot.slane %v1755_v5, 3 }
 0x831   :  { %v1765_v63 = vrot.slane %v1686_v56, 3  ;;  %v1767_v17 = vrot.slane %v1757_v57, 3 }
 0x832   :  { %v1772_v47 = vadd.f32 %v1764_v52, %v12414_v29  ;;  %v1774_v31 = vadd.f32 %v1766_v30, %v12428_v62  ;;  %v2183_v30 = vld [vmem:[%s13918_s13] sm:$0xff] }
 0x833   :  { %v1773_v6 = vadd.f32 %v1765_v63, %v12416_v32  ;;  %v1775_v36 = vadd.f32 %v1767_v17, %v12424_v55 }
 0x834   :  { %v8355_v10 = vmul.f32 -1.442695, %v1772_v47 }
 0x835   :  { %v8356_v11 = vmul.f32 -1.442695, %v1773_v6  ;;  %v8357_v23 = vmul.f32 -1.442695, %v1775_v36 }
 0x836   :  { %10981 = vpow2.f32 %v8355_v10 }
 0x837   :  { %10983 = vpow2.f32 %v8356_v11 }
 0x838   :  { %10985 = vpow2.f32 %v8357_v23 }
 0x839   :  { %10987 = vtanh.f32 %v1774_v31  ;;  %v2187_v31 = vld [vmem:[%s13918_s13 + $0x20] sm:$0xff] }
 0x840   :  { %v10982_v24 = vpop.eup %10981 }
 0x841   :  { %v10984_v34 = vpop.eup %10983  ;;  %v1779_v21 = vadd.f32 1.0, %v10982_v24  ;;  %v2359_v24 = vld [vmem:[#allocation11] sm:$0xff] }
 0x842   :  { %v1785_v12 = vadd.f32 1.0, %v10984_v34  ;;  %v10986_v38 = vpop.eup %10985  ;;  %v2363_v34 = vld [vmem:[#allocation11 + $0x20] sm:$0xff] }
 0x843   :  { %10989 = vrcp.f32 %v1779_v21  ;;  %v10988_v37 = vpop.eup %10987  ;;  %v1792_v56 = vadd.f32 1.0, %v10986_v38  ;;  %v2190_v38 = vld [vmem:[%s13918_s13 + $0x38] sm:$0xff] }
 0x844   :  { %10991 = vrcp.f32 %v1785_v12  ;;  %v2186_v12 = vld [vmem:[%s13918_s13 + $0x18] sm:$0xff] }
 0x845   :  { %10993 = vrcp.f32 %v1792_v56  ;;  %v2185_v56 = vld [vmem:[%s13918_s13 + $0x10] sm:$0xff] }
 0x84d   :  { %v10990_v41 = vpop.eup %10989 }
 0x84e   :  { %v10992_v50 = vpop.eup %10991  ;;  %v1799_v52 = vmul.f32 %v10990_v41, %v10988_v37  ;;  %v2368_v41 = vld [vmem:[#allocation11 + $0x48] sm:$0xff] }
 0x84f   :  { %v1798_v5 = vmul.f32 %v10992_v50, %v1796_v46  ;;  %v10994_v63 = vpop.eup %10993  ;;  %v2372_v46 = vld [vmem:[#allocation11 + $0x68] sm:$0xff]  ;;  %v9476_v50 = vpack.c.bf16 %v2187_v31, %v2183_v30  ;;  %v2395_v30 = vld [vmem:[#allocation11 + $0x120] sm:$0xff] }
 0x851   :  { %v12641_v57 = vadd.f32 %v1799_v52, %v1798_v5  ;;  %v12693_v52 = vpack.c.bf16 %v2363_v34, %v2359_v24  ;;  %v2377_v24 = vld [vmem:[#allocation11 + $0x90] sm:$0xff] }
 0x852   :  { %v2381_v34 = vld [vmem:[#allocation11 + $0xb0] sm:$0xff] }
 0x853   :  { %10995 = vtanh.f32 %v12641_v57 }
 0x85d   :  { %v10996_v47 = vpop.eup %10995 }
 0x85e   :  { %v1802_v6 = vmul.f32 %v10996_v47, %v10994_v63  ;;  %v2189_v63 = vld [vmem:[%s13918_s13 + $0x30] sm:$0xff] }
 0x85f   :  { %v2367_v47 = vld [vmem:[#allocation11 + $0x40] sm:$0xff] }
 0x860   :  { %1803 = vst [vmem:[#allocation2] sm:$0x20] %v1802_v6  ;;  %v1805_v10 = vrot.slane %v1802_v6, 5  ;;  %v2371_v6 = vld [vmem:[#allocation11 + $0x60] sm:$0xff] }
 0x862   :  { %1872 = vmatmul.mubr.f32.vlgmr.msra.gmra.mrb[14].mxu0 %v1805_v10  ;;  %1943 = vmatmul.mubr.f32.vlgmr.msra.gmra.mrb[14].mxu1 %v1805_v10  ;;  %v12697_v10 = vpack.c.bf16 %v2372_v46, %v2368_v41  ;;  %v12741_v46 = vpack.c.bf16 %v2381_v34, %v2377_v24  ;;  %v2414_v24 = vld [vmem:[#allocation11 + $0x1b8] sm:$0xff] }
 0x863   :  { %9413 = vmatpush1.bf16.msra.mxu0 %v12267_v35  ;;  %9445 = vmatpush1.bf16.msra.mxu1 %v12270_v39  ;;  %v2184_v35 = vld [vmem:[%s13918_s13 + $0x8] sm:$0xff] }
 0x864   :  { %9415 = vmatprep.subr.bf16.mxu0 %v12272_v40  ;;  %9447 = vmatprep.subr.bf16.mxu1 %v12275_v44  ;;  %v2188_v39 = vld [vmem:[%s13918_s13 + $0x28] sm:$0xff]  ;;  %v2360_v40 = vld [vmem:[#allocation11 + $0x8] sm:$0xff] }
 0x865   :  { %2060 = vmatprep.mubr.f32.mxu0 %v11951_v0  ;;  %2131 = vmatprep.mubr.f32.mxu1 %v11951_v0  ;;  %v9474_v44 = vpack.c.bf16 %v2188_v39, %v2184_v35  ;;  %v2376_v35 = vld [vmem:[#allocation11 + $0x88] sm:$0xff] }
 0x866   :  { %v2380_v39 = vld [vmem:[#allocation11 + $0xa8] sm:$0xff] }
 0x867   :  { %9417 = vmatpush1.bf16.msra.mxu0 %v12280_v51  ;;  %9449 = vmatpush1.bf16.msra.mxu1 %v12284_v53  ;;  %v2364_v51 = vld [vmem:[#allocation11 + $0x28] sm:$0xff] }
 0x868   :  { %9419 = vmatprep.subr.bf16.mxu0 %v12286_v54  ;;  %9451 = vmatprep.subr.bf16.mxu1 %v12289_v58  ;;  %v12678_v53 = vpack.c.bf16 %v2364_v51, %v2360_v40  ;;  %v2362_v40 = vld [vmem:[#allocation11 + $0x18] sm:$0xff] }
 0x869   :  { %v2182_v51 = vld [vmem:[%s13919_s24] sm:$0xff] }
 0x86b   :  { %9421 = vmatpush1.bf16.msra.mxu0 %v12294_v1  ;;  %9453 = vmatpush1.bf16.msra.mxu1 %v12298_v2 }
 0x86c   :  { %9423 = vmatprep.subr.bf16.mxu0 %v12300_v3  ;;  %9455 = vmatprep.subr.bf16.mxu1 %v12303_v7 }
 0x86f   :  { %9425 = vmatpush1.bf16.msra.mxu0 %v12306_v13  ;;  %9457 = vmatpush1.bf16.msra.mxu1 %v12310_v14 }
 0x870   :  { %9427 = vmatprep.subr.bf16.mxu0 %v12312_v15  ;;  %9459 = vmatprep.subr.bf16.mxu1 %v12315_v19 }
 0x873   :  { %9429 = vmatpush1.bf16.msra.mxu0 %v12318_v25  ;;  %9461 = vmatpush1.bf16.msra.mxu1 %v12322_v26 }
 0x874   :  { %9431 = vmatprep.subr.bf16.mxu0 %v12324_v27  ;;  %9463 = vmatprep.subr.bf16.mxu1 %v12327_v33 }
 0x877   :  { %9433 = vmatpush1.bf16.msra.mxu0 %v12330_v42  ;;  %9465 = vmatpush1.bf16.msra.mxu1 %v12334_v43 }
 0x878   :  { %9435 = vmatprep.subr.bf16.mxu0 %v12336_v45  ;;  %9467 = vmatprep.subr.bf16.mxu1 %v12339_v49 }
 0x87b   :  { %9437 = vmatpush1.bf16.msra.mxu0 %v12342_v59  ;;  %9469 = vmatpush1.bf16.msra.mxu1 %v12346_v60 }
 0x87c   :  { %9439 = vmatprep.subr.bf16.mxu0 %v12348_v61  ;;  %9471 = vmatprep.subr.bf16.mxu1 %v12351_v4 }
 0x87f   :  { %9441 = vmatpush1.bf16.msra.mxu0 %v12354_v8  ;;  %9473 = vmatpush1.bf16.msra.mxu1 %v12358_v9  ;;  %v1985_v8 = vrot.slane %v12641_v57, 7  ;;  %v9478_v57 = vpack.c.bf16 %v2190_v38, %v2186_v12  ;;  %v2404_v12 = vld [vmem:[#allocation11 + $0x168] sm:$0xff]  ;;  %v2386_v38 = vld [vmem:[#allocation11 + $0xd8] sm:$0xff] }
 0x880   :  { %9475 = vmatprep.subr.bf16.mxu1 %v9474_v44  ;;  %9483 = vmatprep.subr.bf16.mxu0 %v12678_v53  ;;  %v2366_v44 = vld [vmem:[#allocation11 + $0x38] sm:$0xff] }
 0x935   :  { %v1873_v54 = vpop.f32.mrb[14].mxu0  ;;  %v1944_v58 = vpop.f32.mrb[14].mxu1 }
 0x936   :  { %v1953_v1 = vrot.slane %v1873_v54, 2  ;;  %v1875_v2 = vpop.f32.mrb[15].mxu0  ;;  %v1946_v3 = vpop.f32.mrb[15].mxu1  ;;  %v1955_v27 = vrot.slane %v1944_v58, 2  ;;  %v9480_v54 = vpack.c.bf16 %v2189_v63, %v2185_v56  ;;  %v12701_v58 = vpack.c.bf16 %v2371_v6, %v2367_v47  ;;  %v2403_v56 = vld [vmem:[#allocation11 + $0x160] sm:$0xff]  ;;  %v2385_v63 = vld [vmem:[#allocation11 + $0xd0] sm:$0xff] }
 0x937   :  { %v1954_v7 = vrot.slane %v1875_v2, 2  ;;  %v1956_v25 = vrot.slane %v1946_v3, 2  ;;  %v2379_v2 = vld [vmem:[#allocation11 + $0xa0] sm:$0xff]  ;;  %v12704_v3 = vpack.c.bf16 %v2380_v39, %v2376_v35  ;;  %v2389_v47 = vld [vmem:[#allocation11 + $0xf0] sm:$0xff]  ;;  %v2408_v6 = vld [vmem:[#allocation11 + $0x188] sm:$0xff] }
 0x938   :  { %v1961_v13 = vadd.f32 %v1953_v1, %v12414_v29  ;;  %v1963_v42 = vadd.f32 %v1955_v27, %v12428_v62  ;;  %v2375_v1 = vld [vmem:[#allocation11 + $0x80] sm:$0xff]  ;;  %v2412_v35 = vld [vmem:[#allocation11 + $0x1a8] sm:$0xff]  ;;  %v2394_v39 = vld [vmem:[#allocation11 + $0x118] sm:$0xff] }
 0x939   :  { %v1962_v14 = vadd.f32 %v1954_v7, %v12416_v32  ;;  %v1964_v26 = vadd.f32 %v1956_v25, %v12424_v55  ;;  %v2361_v7 = vld [vmem:[#allocation11 + $0x10] sm:$0xff]  ;;  %v2370_v25 = vld [vmem:[#allocation11 + $0x58] sm:$0xff]  ;;  %v12712_v27 = vpack.c.bf16 %v2379_v2, %v2375_v1  ;;  %v2411_v1 = vld [vmem:[#allocation11 + $0x1a0] sm:$0xff]  ;;  %v12757_v2 = vpack.c.bf16 %v2412_v35, %v2408_v6 }
 0x93a   :  { %v8358_v15 = vmul.f32 -1.442695, %v1961_v13  ;;  %v2365_v13 = vld [vmem:[#allocation11 + $0x30] sm:$0xff] }
 0x93b   :  { %v8359_v19 = vmul.f32 -1.442695, %v1962_v14  ;;  %v8360_v33 = vmul.f32 -1.442695, %v1964_v26  ;;  %v2384_v14 = vld [vmem:[#allocation11 + $0xc8] sm:$0xff]  ;;  %v2374_v26 = vld [vmem:[#allocation11 + $0x78] sm:$0xff] }
 0x93c   :  { %10997 = vpow2.f32 %v8358_v15  ;;  %v12707_v15 = vpack.c.bf16 %v2366_v44, %v2362_v40  ;;  %v2398_v40 = vld [vmem:[#allocation11 + $0x138] sm:$0xff]  ;;  %v2417_v6 = vld [vmem:[#allocation11 + $0x1d0] sm:$0xff] }
 0x93d   :  { %10999 = vpow2.f32 %v8359_v19  ;;  %v2388_v19 = vld [vmem:[#allocation11 + $0xe8] sm:$0xff]  ;;  %v2421_v35 = vld [vmem:[#allocation11 + $0x1f0] sm:$0xff] }
 0x93e   :  { %11001 = vpow2.f32 %v8360_v33  ;;  %v12714_v33 = vpack.c.bf16 %v2365_v13, %v2361_v7  ;;  %v12759_v7 = vpack.c.bf16 %v2398_v40, %v2394_v39  ;;  %v2393_v13 = vld [vmem:[#allocation11 + $0x110] sm:$0xff]  ;;  %v12793_v39 = vpack.c.bf16 %v2421_v35, %v2417_v6 }
 0x93f   :  { %11003 = vtanh.f32 %v1963_v42  ;;  %v2383_v42 = vld [vmem:[#allocation11 + $0xc0] sm:$0xff] }
 0x946   :  { %v10998_v43 = vpop.eup %10997 }
 0x947   :  { %v11000_v45 = vpop.eup %10999  ;;  %v1968_v49 = vadd.f32 1.0, %v10998_v43  ;;  %v2387_v43 = vld [vmem:[#allocation11 + $0xe0] sm:$0xff] }
 0x948   :  { %v1974_v59 = vadd.f32 1.0, %v11000_v45  ;;  %v11002_v60 = vpop.eup %11001  ;;  %v12718_v45 = vpack.c.bf16 %v2388_v19, %v2384_v14  ;;  %v2397_v14 = vld [vmem:[#allocation11 + $0x130] sm:$0xff]  ;;  %v2416_v19 = vld [vmem:[#allocation11 + $0x1c8] sm:$0xff] }
 0x949   :  { %11005 = vrcp.f32 %v1968_v49  ;;  %v11004_v61 = vpop.eup %11003  ;;  %v1981_v11 = vadd.f32 1.0, %v11002_v60  ;;  %v12720_v49 = vpack.c.bf16 %v2374_v26, %v2370_v25  ;;  %v2373_v60 = vld [vmem:[#allocation11 + $0x70] sm:$0xff]  ;;  %v2420_v25 = vld [vmem:[#allocation11 + $0x1e8] sm:$0xff]  ;;  %v2402_v26 = vld [vmem:[#allocation11 + $0x158] sm:$0xff] }
 0x94a   :  { %11007 = vrcp.f32 %v1974_v59  ;;  %v2369_v59 = vld [vmem:[#allocation11 + $0x50] sm:$0xff] }
 0x94b   :  { %11009 = vrcp.f32 %v1981_v11  ;;  %v12728_v11 = vpack.c.bf16 %v2373_v60, %v2369_v59  ;;  %v12765_v59 = vpack.c.bf16 %v2397_v14, %v2393_v13  ;;  %v2415_v60 = vld [vmem:[#allocation11 + $0x1c0] sm:$0xff] }
 0x953   :  { %v11006_v4 = vpop.eup %11005 }
 0x954   :  { %v11008_v9 = vpop.eup %11007  ;;  %v1988_v16 = vmul.f32 %v11006_v4, %v11004_v61  ;;  %v2392_v61 = vld [vmem:[#allocation11 + $0x108] sm:$0xff] }
 0x955   :  { %v1987_v17 = vmul.f32 %v11008_v9, %v1985_v8  ;;  %v11010_v23 = vpop.eup %11009  ;;  %v2396_v4 = vld [vmem:[#allocation11 + $0x128] sm:$0xff]  ;;  %v2378_v8 = vld [vmem:[#allocation11 + $0x98] sm:$0xff] }
 0x956   :  { %v2382_v9 = vld [vmem:[#allocation11 + $0xb8] sm:$0xff] }
 0x957   :  { %v12686_v36 = vadd.f32 %v1988_v16, %v1987_v17  ;;  %v12726_v16 = vpack.c.bf16 %v2387_v43, %v2383_v42  ;;  %v2391_v17 = vld [vmem:[#allocation11 + $0x100] sm:$0xff]  ;;  %v12734_v31 = vpack.c.bf16 %v2382_v9, %v2378_v8  ;;  %v2406_v42 = vld [vmem:[#allocation11 + $0x178] sm:$0xff]  ;;  %v2401_v9 = vld [vmem:[#allocation11 + $0x150] sm:$0xff] }
 0x958   :  { %v12739_v41 = vpack.c.bf16 %v2395_v30, %v2391_v17  ;;  %v2419_v8 = vld [vmem:[#allocation11 + $0x1e0] sm:$0xff]  ;;  %v2405_v17 = vld [vmem:[#allocation11 + $0x170] sm:$0xff]  ;;  %v2410_v30 = vld [vmem:[#allocation11 + $0x198] sm:$0xff] }
 0x959   :  { %11011 = vtanh.f32 %v12686_v36  ;;  %v12775_v34 = vpack.c.bf16 %v2419_v8, %v2415_v60 }
 0x963   :  { %v11012_v21 = vpop.eup %11011 }
 0x964   :  { %v1991_v37 = vmul.f32 %v11012_v21, %v11010_v23  ;;  %v12732_v23 = vpack.c.bf16 %v2396_v4, %v2392_v61  ;;  %v2400_v21 = vld [vmem:[#allocation11 + $0x148] sm:$0xff]  ;;  %v12769_v61 = vpack.c.bf16 %v2420_v25, %v2416_v19  ;;  %v12771_v4 = vpack.c.bf16 %v2406_v42, %v2402_v26 }
 0x966   :  { %1992 = vst [vmem:[#allocation2] sm:$0x40] %v1991_v37  ;;  %v1994_v5 = vrot.slane %v1991_v37, 6  ;;  %v2390_v37 = vld [vmem:[#allocation11 + $0xf8] sm:$0xff] }
 0x968   :  { %2061 = vmatmul.mubr.f32.vlgmr.msra.gmra.mrb[16].mxu0 %v1994_v5  ;;  %2132 = vmatmul.mubr.f32.vlgmr.msra.gmra.mrb[16].mxu1 %v1994_v5  ;;  %v12745_v5 = vpack.c.bf16 %v2404_v12, %v2400_v21  ;;  %v12777_v21 = vpack.c.bf16 %v2405_v17, %v2401_v9  ;;  %v12781_v12 = vpack.c.bf16 %v2414_v24, %v2410_v30 }
 0x969   :  { %9477 = vmatpush1.bf16.msra.mxu1 %v9476_v50  ;;  %9485 = vmatpush1.bf16.msra.mxu0 %v12693_v52  ;;  %v2399_v50 = vld [vmem:[#allocation11 + $0x140] sm:$0xff] }
 0x96a   :  { %2281 = vmatprep.mubr.f32.mxu1 %v11951_v0  ;;  %9479 = vmatprep.subr.bf16.mxu1 %v9478_v57  ;;  %v12747_v57 = vpack.c.bf16 %v2390_v37, %v2386_v38  ;;  %v12751_v44 = vpack.c.bf16 %v2403_v56, %v2399_v50  ;;  %v2409_v38 = vld [vmem:[#allocation11 + $0x190] sm:$0xff]  ;;  %v2418_v50 = vld [vmem:[#allocation11 + $0x1d8] sm:$0xff] }
 0x96b   :  { %9487 = vmatprep.subr.bf16.mxu0 %v12697_v10  ;;  %2487 = vmatprep.mubr.f32.mxu0 %v11951_v0  ;;  %v2413_v37 = vld [vmem:[#allocation11 + $0x1b0] sm:$0xff]  ;;  %v2422_v56 = vld [vmem:[#allocation11 + $0x1f8] sm:$0xff] }
 0x96c   :  { %8364 = vmatmul.mubr.msk.f32.vlgmr.msra.gmra.mrb[18].mxu1 %vm2213_vm1, %v2182_v51 }
 0x96d   :  { %9481 = vmatpush1.bf16.msra.mxu1 %v9480_v54  ;;  %9489 = vmatpush1.bf16.msra.mxu0 %v12701_v58  ;;  %v2407_v54 = vld [vmem:[#allocation11 + $0x180] sm:$0xff] }
 0x96e   :  { %2352 = vmatprep.mubr.f32.mxu1 %v11951_v0  ;;  %9491 = vmatprep.subr.bf16.mxu0 %v12704_v3  ;;  %v12763_v43 = vpack.c.bf16 %v2411_v1, %v2407_v54 }
 0x96f   :  { %9515 = vmatprep.subr.bf16.mxu1 %v12707_v15 }
 0x970   :  { %8365 = vmatmul.mubr.msk.f32.vlgmr.msra.gmra.mrb[20].mxu1 %vm2213_vm1, %v2182_v51  ;;  %v12753_v51 = vpack.c.bf16 %v2389_v47, %v2385_v63  ;;  %v12785_v63 = vpack.c.bf16 %v2413_v37, %v2409_v38  ;;  %v12788_v47 = vpack.c.bf16 %v2422_v56, %v2418_v50 }
 0x971   :  { %9493 = vmatpush1.bf16.msra.mxu0 %v12712_v27  ;;  %9517 = vmatpush1.bf16.msra.mxu1 %v12714_v33 }
 0x972   :  { %9495 = vmatprep.subr.bf16.mxu0 %v12718_v45  ;;  %9519 = vmatprep.subr.bf16.mxu1 %v12720_v49 }
 0x973   :  { %2558 = vmatprep.mubr.f32.mxu1 %v11951_v0 }
 0x975   :  { %9497 = vmatpush1.bf16.msra.mxu0 %v12726_v16  ;;  %9521 = vmatpush1.bf16.msra.mxu1 %v12728_v11 }
 0x976   :  { %9499 = vmatprep.subr.bf16.mxu0 %v12732_v23  ;;  %9523 = vmatprep.subr.bf16.mxu1 %v12734_v31 }
 0x979   :  { %9501 = vmatpush1.bf16.msra.mxu0 %v12739_v41  ;;  %9525 = vmatpush1.bf16.msra.mxu1 %v12741_v46 }
 0x97a   :  { %9503 = vmatprep.subr.bf16.mxu0 %v12745_v5  ;;  %9527 = vmatprep.subr.bf16.mxu1 %v12747_v57 }
 0x97d   :  { %9505 = vmatpush1.bf16.msra.mxu0 %v12751_v44  ;;  %9529 = vmatpush1.bf16.msra.mxu1 %v12753_v51 }
 0x97e   :  { %9507 = vmatprep.subr.bf16.mxu0 %v12757_v2  ;;  %9531 = vmatprep.subr.bf16.mxu1 %v12759_v7 }
 0x981   :  { %9509 = vmatpush1.bf16.msra.mxu0 %v12763_v43  ;;  %9533 = vmatpush1.bf16.msra.mxu1 %v12765_v59 }
 0x982   :  { %9511 = vmatprep.subr.bf16.mxu0 %v12769_v61  ;;  %9535 = vmatprep.subr.bf16.mxu1 %v12771_v4 }
 0x985   :  { %9513 = vmatpush1.bf16.msra.mxu0 %v12775_v34  ;;  %9537 = vmatpush1.bf16.msra.mxu1 %v12777_v21 }
 0x986   :  { %9539 = vmatprep.subr.bf16.mxu1 %v12781_v12  ;;  %9547 = vmatprep.subr.bf16.mxu0 %v12678_v53 }
 0x988   :  { %2488 = vmatmul.mubr.f32.vlgmr.msra.gmra.mrb[18].mxu0 %v11951_v0 }
 0x989   :  { %9541 = vmatpush1.bf16.msra.mxu1 %v12785_v63  ;;  %9549 = vmatpush1.bf16.msra.mxu0 %v12693_v52 }
 0x98a   :  { %9543 = vmatprep.subr.bf16.mxu1 %v12788_v47  ;;  %9551 = vmatprep.subr.bf16.mxu0 %v12697_v10 }
 0x98b   :  { %2658 = vmatprep.mubr.f32.mxu0 %v11951_v0 }
 0x98d   :  { %9545 = vmatpush1.bf16.msra.mxu1 %v12793_v39  ;;  %9553 = vmatpush1.bf16.msra.mxu0 %v12701_v58 }
 0x98e   :  { %9579 = vmatprep.subr.bf16.mxu1 %v12707_v15  ;;  %9555 = vmatprep.subr.bf16.mxu0 %v12704_v3 }
 0x990   :  { %2559 = vmatmul.mubr.f32.vlgmr.msra.gmra.mrb[22].mxu1 %v11951_v0 }
 0x991   :  { %9581 = vmatpush1.bf16.msra.mxu1 %v12714_v33  ;;  %9557 = vmatpush1.bf16.msra.mxu0 %v12712_v27 }
 0x992   :  { %9583 = vmatprep.subr.bf16.mxu1 %v12720_v49  ;;  %9559 = vmatprep.subr.bf16.mxu0 %v12718_v45 }
 0x993   :  { %2729 = vmatprep.mubr.f32.mxu1 %v11951_v0 }
 0x995   :  { %9585 = vmatpush1.bf16.msra.mxu1 %v12728_v11  ;;  %9561 = vmatpush1.bf16.msra.mxu0 %v12726_v16 }
 0x996   :  { %9587 = vmatprep.subr.bf16.mxu1 %v12734_v31  ;;  %9563 = vmatprep.subr.bf16.mxu0 %v12732_v23 }
 0x999   :  { %9589 = vmatpush1.bf16.msra.mxu1 %v12741_v46  ;;  %9565 = vmatpush1.bf16.msra.mxu0 %v12739_v41 }
 0x99a   :  { %9591 = vmatprep.subr.bf16.mxu1 %v12747_v57  ;;  %9567 = vmatprep.subr.bf16.mxu0 %v12745_v5 }
 0x99d   :  { %9593 = vmatpush1.bf16.msra.mxu1 %v12753_v51  ;;  %9569 = vmatpush1.bf16.msra.mxu0 %v12751_v44 }
 0x99e   :  { %9595 = vmatprep.subr.bf16.mxu1 %v12759_v7  ;;  %9571 = vmatprep.subr.bf16.mxu0 %v12757_v2 }
 0x9a1   :  { %9597 = vmatpush1.bf16.msra.mxu1 %v12765_v59  ;;  %9573 = vmatpush1.bf16.msra.mxu0 %v12763_v43 }
 0x9a2   :  { %9599 = vmatprep.subr.bf16.mxu1 %v12771_v4  ;;  %9575 = vmatprep.subr.bf16.mxu0 %v12769_v61 }
 0x9a5   :  { %9601 = vmatpush1.bf16.msra.mxu1 %v12777_v21  ;;  %9577 = vmatpush1.bf16.msra.mxu0 %v12775_v34 }
 0x9a6   :  { %9603 = vmatprep.subr.bf16.mxu1 %v12781_v12  ;;  %9611 = vmatprep.subr.bf16.mxu0 %v12678_v53 }
 0x9a9   :  { %9605 = vmatpush1.bf16.msra.mxu1 %v12785_v63 }
 0x9aa   :  { %9607 = vmatprep.subr.bf16.mxu1 %v12788_v47 }
 0x9ad   :  { %9609 = vmatpush1.bf16.msra.mxu1 %v12793_v39 }
 0x9ae   :  { %9643 = vmatprep.subr.bf16.mxu1 %v12707_v15 }
 0xa3b   :  { %v2062_v40 = vpop.f32.mrb[16].mxu0  ;;  %v2133_v54 = vpop.f32.mrb[16].mxu1 }
 0xa3c   :  { %v2142_v1 = vrot.slane %v2062_v40, 1  ;;  %v2064_v13 = vpop.f32.mrb[17].mxu0  ;;  %v2135_v14 = vpop.f32.mrb[17].mxu1  ;;  %v2144_v37 = vrot.slane %v2133_v54, 1  ;;  %v2191_v40 = vld [vmem:[#allocation13] sm:$0xf] }
 0xa3d   :  { %v2143_v19 = vrot.slane %v2064_v13, 1  ;;  %v2145_v17 = vrot.slane %v2135_v14, 1  ;;  %v2200_v14 = vrot.slane %v2191_v40, %v12407_v22  ;;  %v2174_v54 = vrot.slane %v12686_v36, 7 }
 0xa3e   :  { %v2150_v25 = vadd.f32 %v2142_v1, %v12414_v29  ;;  %v2152_v56 = vadd.f32 %v2144_v37, %v12428_v62  ;;  %v2196_v1 = vrot.slane %v2191_v40, %v12404_v20  ;;  %v2208_v36 = vrot.slane %v2191_v40, %v12412_v28 }
 0xa3f   :  { %v2151_v26 = vadd.f32 %v2143_v19, %v12416_v32  ;;  %v2283_v42 = vpop.f32.mrb[18].mxu1  ;;  %v2153_v38 = vadd.f32 %v2145_v17, %v12424_v55 }
 0xa40   :  { %v8361_v60 = vmul.f32 -1.442695, %v2150_v25  ;;  %v2285_v8 = vpop.f32.mrb[19].mxu1 }
 0xa41   :  { %v8362_v9 = vmul.f32 -1.442695, %v2151_v26  ;;  %v8363_v50 = vmul.f32 -1.442695, %v2153_v38  ;;  %v12842_v17 = vadd.f32 %v2285_v8, %v2200_v14 }
 0xa42   :  { %11013 = vpow2.f32 %v8361_v60  ;;  %v12840_v60 = vadd.f32 %v2283_v42, %v2196_v1  ;;  %v2204_v42 = vrot.slane %v2191_v40, %v12422_v48 }
 0xa43   :  { %11015 = vpow2.f32 %v8362_v9  ;;  %v2354_v30 = vpop.f32.mrb[20].mxu1 }
 0xa44   :  { %v2356_v24 = vpop.f32.mrb[21].mxu1  ;;  %11017 = vpow2.f32 %v8363_v50  ;;  %v12851_v14 = vadd.f32 %v2354_v30, %v2204_v42 }
 0xa45   :  { %11019 = vtanh.f32 %v2152_v56 }
 0xa4c   :  { %v11014_v6 = vpop.eup %11013 }
 0xa4d   :  { %v11016_v35 = vpop.eup %11015  ;;  %v2157_v29 = vadd.f32 1.0, %v11014_v6 }
 0xa4e   :  { %v2163_v32 = vadd.f32 1.0, %v11016_v35  ;;  %v11018_v13 = vpop.eup %11017 }
 0xa4f   :  { %11021 = vrcp.f32 %v2157_v29  ;;  %v11020_v19 = vpop.eup %11019  ;;  %v2170_v26 = vadd.f32 1.0, %v11018_v13 }
 0xa50   :  { %11023 = vrcp.f32 %v2163_v32  ;;  %v12848_v32 = vadd.f32 %v2356_v24, %v2208_v36 }
 0xa51   :  { %11025 = vrcp.f32 %v2170_v26 }
 0xa59   :  { %v11022_v55 = vpop.eup %11021 }
 0xa5a   :  { %v11024_v25 = vpop.eup %11023  ;;  %v2177_v62 = vmul.f32 %v11022_v55, %v11020_v19 }
 0xa5b   :  { %v2176_v9 = vmul.f32 %v11024_v25, %v2174_v54  ;;  %v2489_v38 = vpop.f32.mrb[18].mxu0  ;;  %v11026_v55 = vpop.eup %11025 }
 0xa5c   :  { %v2565_v37 = vadd.f32 %v2489_v38, %v12840_v60  ;;  %v2491_v50 = vpop.f32.mrb[19].mxu0 }
 0xa5d   :  { %v2178_v56 = vadd.f32 %v2177_v62, %v2176_v9  ;;  %v2566_v6 = vadd.f32 %v2491_v50, %v12842_v17 }
 0xa5e   :  { %v8366_v35 = vmul.f32 -1.442695, %v2565_v37 }
 0xa5f   :  { %11027 = vtanh.f32 %v2178_v56  ;;  %v8367_v29 = vmul.f32 -1.442695, %v2566_v6 }
 0xa60   :  { %11029 = vpow2.f32 %v8366_v35 }
 0xa61   :  { %11031 = vpow2.f32 %v8367_v29 }
 0xa63   :  { %v2560_v8 = vpop.f32.mrb[22].mxu1 }
 0xa64   :  { %v2562_v1 = vpop.f32.mrb[23].mxu1  ;;  %v2567_v54 = vadd.f32 %v2560_v8, %v12851_v14 }
 0xa65   :  { %v2568_v13 = vadd.f32 %v2562_v1, %v12848_v32 }
 0xa67   :  { %v8368_v19 = vmul.f32 -1.442695, %v2568_v13 }
 0xa69   :  { %v11028_v25 = vpop.eup %11027  ;;  %11033 = vpow2.f32 %v8368_v19 }
 0xa6a   :  { %v11030_v62 = vpop.eup %11029  ;;  %v2180_v26 = vmul.f32 %v11028_v25, %v11026_v55  ;;  %11035 = vtanh.f32 %v2567_v54 }
 0xa6b   :  { %v11032_v9 = vpop.eup %11031  ;;  %v2572_v38 = vadd.f32 1.0, %v11030_v62 }
 0xa6c   :  { %2181 = vst [vmem:[#allocation2] sm:$0x80] %v2180_v26  ;;  %v2578_v40 = vadd.f32 1.0, %v11032_v9 }
 0xa6d   :  { %11037 = vrcp.f32 %v2572_v38 }
 0xa6e   :  { %11039 = vrcp.f32 %v2578_v40 }
 0xa73   :  { %v11034_v24 = vpop.eup %11033 }
 0xa74   :  { %v11036_v37 = vpop.eup %11035  ;;  %v2585_v6 = vadd.f32 1.0, %v11034_v24 }
 0xa76   :  { %11041 = vrcp.f32 %v2585_v6 }
 0xa77   :  { %v11038_v50 = vpop.eup %11037 }
 0xa78   :  { %v11040_v30 = vpop.eup %11039  ;;  %v2589_v56 = vmul.f32 %v11038_v50, %v11036_v37 }
 0xa79   :  { %v2588_v35 = vmul.f32 0.0, %v11040_v30 }
 0xa7b   :  { %v12854_v36 = vadd.f32 %v2589_v56, %v2588_v35 }
 0xa7d   :  { %11043 = vtanh.f32 %v12854_v36 }
 0xa80   :  { %v11042_v29 = vpop.eup %11041 }
 0xa87   :  { %v11044_v42 = vpop.eup %11043 }
 0xa88   :  { %v2592_v8 = vmul.f32 %v11044_v42, %v11042_v29 }
 0xa8a   :  { %2593 = vst [vmem:[#allocation3] sm:$0x1] %v2592_v8  ;;  %2659 = vmatmul.mubr.f32.vlgmr.msra.gmra.mrb[20].mxu0 %v2592_v8  ;;  %2730 = vmatmul.mubr.f32.vlgmr.msra.gmra.mrb[24].mxu1 %v2592_v8 }
 0xa8b   :  { %9613 = vmatpush1.bf16.msra.mxu0 %v12693_v52  ;;  %9645 = vmatpush1.bf16.msra.mxu1 %v12714_v33 }
 0xa8c   :  { %9615 = vmatprep.subr.bf16.mxu0 %v12697_v10  ;;  %9647 = vmatprep.subr.bf16.mxu1 %v12720_v49 }
 0xa8d   :  { %2847 = vmatprep.mubr.f32.mxu0 %v11951_v0  ;;  %2918 = vmatprep.mubr.f32.mxu1 %v11951_v0 }
 0xa8f   :  { %9617 = vmatpush1.bf16.msra.mxu0 %v12701_v58  ;;  %9649 = vmatpush1.bf16.msra.mxu1 %v12728_v11 }
 0xa90   :  { %9619 = vmatprep.subr.bf16.mxu0 %v12704_v3  ;;  %9651 = vmatprep.subr.bf16.mxu1 %v12734_v31 }
 0xa93   :  { %9621 = vmatpush1.bf16.msra.mxu0 %v12712_v27  ;;  %9653 = vmatpush1.bf16.msra.mxu1 %v12741_v46 }
 0xa94   :  { %9623 = vmatprep.subr.bf16.mxu0 %v12718_v45  ;;  %9655 = vmatprep.subr.bf16.mxu1 %v12747_v57 }
 0xa97   :  { %9625 = vmatpush1.bf16.msra.mxu0 %v12726_v16  ;;  %9657 = vmatpush1.bf16.msra.mxu1 %v12753_v51 }
 0xa98   :  { %9627 = vmatprep.subr.bf16.mxu0 %v12732_v23  ;;  %9659 = vmatprep.subr.bf16.mxu1 %v12759_v7 }
 0xa9b   :  { %9629 = vmatpush1.bf16.msra.mxu0 %v12739_v41  ;;  %9661 = vmatpush1.bf16.msra.mxu1 %v12765_v59 }
 0xa9c   :  { %9631 = vmatprep.subr.bf16.mxu0 %v12745_v5  ;;  %9663 = vmatprep.subr.bf16.mxu1 %v12771_v4 }
 0xa9f   :  { %9633 = vmatpush1.bf16.msra.mxu0 %v12751_v44  ;;  %9665 = vmatpush1.bf16.msra.mxu1 %v12777_v21 }
 0xaa0   :  { %9635 = vmatprep.subr.bf16.mxu0 %v12757_v2  ;;  %9667 = vmatprep.subr.bf16.mxu1 %v12781_v12 }
 0xaa3   :  { %9637 = vmatpush1.bf16.msra.mxu0 %v12763_v43  ;;  %9669 = vmatpush1.bf16.msra.mxu1 %v12785_v63 }
 0xaa4   :  { %9639 = vmatprep.subr.bf16.mxu0 %v12769_v61  ;;  %9671 = vmatprep.subr.bf16.mxu1 %v12788_v47 }
 0xaa7   :  { %9641 = vmatpush1.bf16.msra.mxu0 %v12775_v34  ;;  %9673 = vmatpush1.bf16.msra.mxu1 %v12793_v39 }
 0xaa8   :  { %9675 = vmatprep.subr.bf16.mxu0 %v12678_v53  ;;  %9707 = vmatprep.subr.bf16.mxu1 %v12707_v15 }
 0xb5d   :  { %v2660_v1 = vpop.f32.mrb[20].mxu0  ;;  %v2731_v13 = vpop.f32.mrb[24].mxu1 }
 0xb5e   :  { %v2740_v19 = vrot.slane %v2660_v1, 7  ;;  %v2662_v55 = vpop.f32.mrb[21].mxu0  ;;  %v2733_v54 = vpop.f32.mrb[25].mxu1  ;;  %v2742_v37 = vrot.slane %v2731_v13, 7 }
 0xb5f   :  { %v2741_v25 = vrot.slane %v2662_v55, 7  ;;  %v2743_v40 = vrot.slane %v2733_v54, 7 }
 0xb60   :  { %v2748_v62 = vadd.f32 %v2740_v19, %v12840_v60  ;;  %v2750_v30 = vadd.f32 %v2742_v37, %v12851_v14  ;;  %v2772_v19 = vrot.slane %v12854_v36, 7 }
 0xb61   :  { %v2749_v26 = vadd.f32 %v2741_v25, %v12842_v17  ;;  %v2751_v24 = vadd.f32 %v2743_v40, %v12848_v32 }
 0xb62   :  { %v8369_v9 = vmul.f32 -1.442695, %v2748_v62 }
 0xb63   :  { %v8370_v38 = vmul.f32 -1.442695, %v2749_v26  ;;  %v8371_v50 = vmul.f32 -1.442695, %v2751_v24 }
 0xb64   :  { %11045 = vpow2.f32 %v8369_v9 }
 0xb65   :  { %11047 = vpow2.f32 %v8370_v38 }
 0xb66   :  { %11049 = vpow2.f32 %v8371_v50 }
 0xb67   :  { %11051 = vtanh.f32 %v2750_v30 }
 0xb6e   :  { %v11046_v56 = vpop.eup %11045 }
 0xb6f   :  { %v11048_v6 = vpop.eup %11047  ;;  %v2755_v35 = vadd.f32 1.0, %v11046_v56 }
 0xb70   :  { %v2761_v29 = vadd.f32 1.0, %v11048_v6  ;;  %v11050_v42 = vpop.eup %11049 }
 0xb71   :  { %11053 = vrcp.f32 %v2755_v35  ;;  %v11052_v8 = vpop.eup %11051  ;;  %v2768_v25 = vadd.f32 1.0, %v11050_v42 }
 0xb72   :  { %11055 = vrcp.f32 %v2761_v29 }
 0xb73   :  { %11057 = vrcp.f32 %v2768_v25 }
 0xb7b   :  { %v11054_v1 = vpop.eup %11053 }
 0xb7c   :  { %v11056_v55 = vpop.eup %11055  ;;  %v2775_v54 = vmul.f32 %v11054_v1, %v11052_v8 }
 0xb7d   :  { %v2774_v13 = vmul.f32 %v11056_v55, %v2772_v19  ;;  %v11058_v26 = vpop.eup %11057 }
 0xb7f   :  { %v12896_v62 = vadd.f32 %v2775_v54, %v2774_v13 }
 0xb81   :  { %11059 = vtanh.f32 %v12896_v62 }
 0xb8b   :  { %v11060_v9 = vpop.eup %11059 }
 0xb8c   :  { %v2778_v38 = vmul.f32 %v11060_v9, %v11058_v26 }
 0xb8e   :  { %2779 = vst [vmem:[#allocation3] sm:$0x2] %v2778_v38  ;;  %v2781_v40 = vrot.slane %v2778_v38, 1 }
 0xb90   :  { %2848 = vmatmul.mubr.f32.vlgmr.msra.gmra.mrb[22].mxu0 %v2781_v40  ;;  %2919 = vmatmul.mubr.f32.vlgmr.msra.gmra.mrb[26].mxu1 %v2781_v40 }
 0xb91   :  { %9677 = vmatpush1.bf16.msra.mxu0 %v12693_v52  ;;  %9709 = vmatpush1.bf16.msra.mxu1 %v12714_v33 }
 0xb92   :  { %9679 = vmatprep.subr.bf16.mxu0 %v12697_v10  ;;  %9711 = vmatprep.subr.bf16.mxu1 %v12720_v49 }
 0xb93   :  { %3036 = vmatprep.mubr.f32.mxu0 %v11951_v0  ;;  %3107 = vmatprep.mubr.f32.mxu1 %v11951_v0 }
 0xb95   :  { %9681 = vmatpush1.bf16.msra.mxu0 %v12701_v58  ;;  %9713 = vmatpush1.bf16.msra.mxu1 %v12728_v11 }
 0xb96   :  { %9683 = vmatprep.subr.bf16.mxu0 %v12704_v3  ;;  %9715 = vmatprep.subr.bf16.mxu1 %v12734_v31 }
 0xb99   :  { %9685 = vmatpush1.bf16.msra.mxu0 %v12712_v27  ;;  %9717 = vmatpush1.bf16.msra.mxu1 %v12741_v46 }
 0xb9a   :  { %9687 = vmatprep.subr.bf16.mxu0 %v12718_v45  ;;  %9719 = vmatprep.subr.bf16.mxu1 %v12747_v57 }
 0xb9d   :  { %9689 = vmatpush1.bf16.msra.mxu0 %v12726_v16  ;;  %9721 = vmatpush1.bf16.msra.mxu1 %v12753_v51 }
 0xb9e   :  { %9691 = vmatprep.subr.bf16.mxu0 %v12732_v23  ;;  %9723 = vmatprep.subr.bf16.mxu1 %v12759_v7 }
 0xba1   :  { %9693 = vmatpush1.bf16.msra.mxu0 %v12739_v41  ;;  %9725 = vmatpush1.bf16.msra.mxu1 %v12765_v59 }
 0xba2   :  { %9695 = vmatprep.subr.bf16.mxu0 %v12745_v5  ;;  %9727 = vmatprep.subr.bf16.mxu1 %v12771_v4 }
 0xba5   :  { %9697 = vmatpush1.bf16.msra.mxu0 %v12751_v44  ;;  %9729 = vmatpush1.bf16.msra.mxu1 %v12777_v21 }
 0xba6   :  { %9699 = vmatprep.subr.bf16.mxu0 %v12757_v2  ;;  %9731 = vmatprep.subr.bf16.mxu1 %v12781_v12 }
 0xba9   :  { %9701 = vmatpush1.bf16.msra.mxu0 %v12763_v43  ;;  %9733 = vmatpush1.bf16.msra.mxu1 %v12785_v63 }
 0xbaa   :  { %9703 = vmatprep.subr.bf16.mxu0 %v12769_v61  ;;  %9735 = vmatprep.subr.bf16.mxu1 %v12788_v47 }
 0xbad   :  { %9705 = vmatpush1.bf16.msra.mxu0 %v12775_v34  ;;  %9737 = vmatpush1.bf16.msra.mxu1 %v12793_v39 }
 0xbae   :  { %9739 = vmatprep.subr.bf16.mxu0 %v12678_v53  ;;  %9771 = vmatprep.subr.bf16.mxu1 %v12707_v15 }
 0xc63   :  { %v2849_v36 = vpop.f32.mrb[22].mxu0  ;;  %v2920_v24 = vpop.f32.mrb[26].mxu1 }
 0xc64   :  { %v2929_v37 = vrot.slane %v2849_v36, 6  ;;  %v2851_v50 = vpop.f32.mrb[23].mxu0  ;;  %v2922_v30 = vpop.f32.mrb[27].mxu1  ;;  %v2931_v19 = vrot.slane %v2920_v24, 6 }
 0xc65   :  { %v2930_v56 = vrot.slane %v2851_v50, 6  ;;  %v2932_v8 = vrot.slane %v2922_v30, 6 }
 0xc66   :  { %v2937_v6 = vadd.f32 %v2929_v37, %v12840_v60  ;;  %v2939_v54 = vadd.f32 %v2931_v19, %v12851_v14  ;;  %v2961_v37 = vrot.slane %v12896_v62, 7 }
 0xc67   :  { %v2938_v35 = vadd.f32 %v2930_v56, %v12842_v17  ;;  %v2940_v1 = vadd.f32 %v2932_v8, %v12848_v32 }
 0xc68   :  { %v8372_v29 = vmul.f32 -1.442695, %v2937_v6 }
 0xc69   :  { %v8373_v42 = vmul.f32 -1.442695, %v2938_v35  ;;  %v8374_v55 = vmul.f32 -1.442695, %v2940_v1 }
 0xc6a   :  { %11061 = vpow2.f32 %v8372_v29 }
 0xc6b   :  { %11063 = vpow2.f32 %v8373_v42 }
 0xc6c   :  { %11065 = vpow2.f32 %v8374_v55 }
 0xc6d   :  { %11067 = vtanh.f32 %v2939_v54 }
 0xc74   :  { %v11062_v25 = vpop.eup %11061 }
 0xc75   :  { %v11064_v13 = vpop.eup %11063  ;;  %v2944_v26 = vadd.f32 1.0, %v11062_v25 }
 0xc76   :  { %v2950_v9 = vadd.f32 1.0, %v11064_v13  ;;  %v11066_v38 = vpop.eup %11065 }
 0xc77   :  { %11069 = vrcp.f32 %v2944_v26  ;;  %v11068_v40 = vpop.eup %11067  ;;  %v2957_v56 = vadd.f32 1.0, %v11066_v38 }
 0xc78   :  { %11071 = vrcp.f32 %v2950_v9 }
 0xc79   :  { %11073 = vrcp.f32 %v2957_v56 }
 0xc81   :  { %v11070_v36 = vpop.eup %11069 }
 0xc82   :  { %v11072_v50 = vpop.eup %11071  ;;  %v2964_v30 = vmul.f32 %v11070_v36, %v11068_v40 }
 0xc83   :  { %v2963_v24 = vmul.f32 %v11072_v50, %v2961_v37  ;;  %v11074_v35 = vpop.eup %11073 }
 0xc85   :  { %v12938_v6 = vadd.f32 %v2964_v30, %v2963_v24 }
 0xc87   :  { %11075 = vtanh.f32 %v12938_v6 }
 0xc91   :  { %v11076_v29 = vpop.eup %11075 }
 0xc92   :  { %v2967_v42 = vmul.f32 %v11076_v29, %v11074_v35 }
 0xc94   :  { %2968 = vst [vmem:[#allocation3] sm:$0x4] %v2967_v42  ;;  %v2970_v8 = vrot.slane %v2967_v42, 2 }
 0xc96   :  { %3037 = vmatmul.mubr.f32.vlgmr.msra.gmra.mrb[24].mxu0 %v2970_v8  ;;  %3108 = vmatmul.mubr.f32.vlgmr.msra.gmra.mrb[28].mxu1 %v2970_v8 }
 0xc97   :  { %9741 = vmatpush1.bf16.msra.mxu0 %v12693_v52  ;;  %9773 = vmatpush1.bf16.msra.mxu1 %v12714_v33 }
 0xc98   :  { %9743 = vmatprep.subr.bf16.mxu0 %v12697_v10  ;;  %9775 = vmatprep.subr.bf16.mxu1 %v12720_v49 }
 0xc99   :  { %3225 = vmatprep.mubr.f32.mxu0 %v11951_v0  ;;  %3296 = vmatprep.mubr.f32.mxu1 %v11951_v0 }
 0xc9b   :  { %9745 = vmatpush1.bf16.msra.mxu0 %v12701_v58  ;;  %9777 = vmatpush1.bf16.msra.mxu1 %v12728_v11 }
 0xc9c   :  { %9747 = vmatprep.subr.bf16.mxu0 %v12704_v3  ;;  %9779 = vmatprep.subr.bf16.mxu1 %v12734_v31 }
 0xc9f   :  { %9749 = vmatpush1.bf16.msra.mxu0 %v12712_v27  ;;  %9781 = vmatpush1.bf16.msra.mxu1 %v12741_v46 }
 0xca0   :  { %9751 = vmatprep.subr.bf16.mxu0 %v12718_v45  ;;  %9783 = vmatprep.subr.bf16.mxu1 %v12747_v57 }
 0xca3   :  { %9753 = vmatpush1.bf16.msra.mxu0 %v12726_v16  ;;  %9785 = vmatpush1.bf16.msra.mxu1 %v12753_v51 }
 0xca4   :  { %9755 = vmatprep.subr.bf16.mxu0 %v12732_v23  ;;  %9787 = vmatprep.subr.bf16.mxu1 %v12759_v7 }
 0xca7   :  { %9757 = vmatpush1.bf16.msra.mxu0 %v12739_v41  ;;  %9789 = vmatpush1.bf16.msra.mxu1 %v12765_v59 }
 0xca8   :  { %9759 = vmatprep.subr.bf16.mxu0 %v12745_v5  ;;  %9791 = vmatprep.subr.bf16.mxu1 %v12771_v4 }
 0xcab   :  { %9761 = vmatpush1.bf16.msra.mxu0 %v12751_v44  ;;  %9793 = vmatpush1.bf16.msra.mxu1 %v12777_v21 }
 0xcac   :  { %9763 = vmatprep.subr.bf16.mxu0 %v12757_v2  ;;  %9795 = vmatprep.subr.bf16.mxu1 %v12781_v12 }
 0xcaf   :  { %9765 = vmatpush1.bf16.msra.mxu0 %v12763_v43  ;;  %9797 = vmatpush1.bf16.msra.mxu1 %v12785_v63 }
 0xcb0   :  { %9767 = vmatprep.subr.bf16.mxu0 %v12769_v61  ;;  %9799 = vmatprep.subr.bf16.mxu1 %v12788_v47 }
 0xcb3   :  { %9769 = vmatpush1.bf16.msra.mxu0 %v12775_v34  ;;  %9801 = vmatpush1.bf16.msra.mxu1 %v12793_v39 }
 0xcb4   :  { %9803 = vmatprep.subr.bf16.mxu0 %v12678_v53  ;;  %9835 = vmatprep.subr.bf16.mxu1 %v12707_v15 }
 0xd69   :  { %v3038_v62 = vpop.f32.mrb[24].mxu0  ;;  %v3109_v1 = vpop.f32.mrb[28].mxu1 }
 0xd6a   :  { %v3118_v19 = vrot.slane %v3038_v62, 5  ;;  %v3040_v55 = vpop.f32.mrb[25].mxu0  ;;  %v3111_v54 = vpop.f32.mrb[29].mxu1  ;;  %v3120_v37 = vrot.slane %v3109_v1, 5 }
 0xd6b   :  { %v3119_v25 = vrot.slane %v3040_v55, 5  ;;  %v3121_v40 = vrot.slane %v3111_v54, 5 }
 0xd6c   :  { %v3126_v13 = vadd.f32 %v3118_v19, %v12840_v60  ;;  %v3128_v30 = vadd.f32 %v3120_v37, %v12851_v14  ;;  %v3150_v19 = vrot.slane %v12938_v6, 7 }
 0xd6d   :  { %v3127_v26 = vadd.f32 %v3119_v25, %v12842_v17  ;;  %v3129_v36 = vadd.f32 %v3121_v40, %v12848_v32 }
 0xd6e   :  { %v8375_v9 = vmul.f32 -1.442695, %v3126_v13 }
 0xd6f   :  { %v8376_v38 = vmul.f32 -1.442695, %v3127_v26  ;;  %v8377_v50 = vmul.f32 -1.442695, %v3129_v36 }
 0xd70   :  { %11077 = vpow2.f32 %v8375_v9 }
 0xd71   :  { %11079 = vpow2.f32 %v8376_v38 }
 0xd72   :  { %11081 = vpow2.f32 %v8377_v50 }
 0xd73   :  { %11083 = vtanh.f32 %v3128_v30 }
 0xd7a   :  { %v11078_v56 = vpop.eup %11077 }
 0xd7b   :  { %v11080_v24 = vpop.eup %11079  ;;  %v3133_v35 = vadd.f32 1.0, %v11078_v56 }
 0xd7c   :  { %v3139_v29 = vadd.f32 1.0, %v11080_v24  ;;  %v11082_v42 = vpop.eup %11081 }
 0xd7d   :  { %11085 = vrcp.f32 %v3133_v35  ;;  %v11084_v8 = vpop.eup %11083  ;;  %v3146_v25 = vadd.f32 1.0, %v11082_v42 }
 0xd7e   :  { %11087 = vrcp.f32 %v3139_v29 }
 0xd7f   :  { %11089 = vrcp.f32 %v3146_v25 }
 0xd87   :  { %v11086_v62 = vpop.eup %11085 }
 0xd88   :  { %v11088_v55 = vpop.eup %11087  ;;  %v3153_v54 = vmul.f32 %v11086_v62, %v11084_v8 }
 0xd89   :  { %v3152_v1 = vmul.f32 %v11088_v55, %v3150_v19  ;;  %v11090_v26 = vpop.eup %11089 }
 0xd8b   :  { %v12980_v13 = vadd.f32 %v3153_v54, %v3152_v1 }
 0xd8d   :  { %11091 = vtanh.f32 %v12980_v13 }
 0xd97   :  { %v11092_v9 = vpop.eup %11091 }
 0xd98   :  { %v3156_v38 = vmul.f32 %v11092_v9, %v11090_v26 }
 0xd9a   :  { %3157 = vst [vmem:[#allocation3] sm:$0x8] %v3156_v38  ;;  %v3159_v40 = vrot.slane %v3156_v38, 3 }
 0xd9c   :  { %3226 = vmatmul.mubr.f32.vlgmr.msra.gmra.mrb[26].mxu0 %v3159_v40  ;;  %3297 = vmatmul.mubr.f32.vlgmr.msra.gmra.mrb[30].mxu1 %v3159_v40 }
 0xd9d   :  { %9805 = vmatpush1.bf16.msra.mxu0 %v12693_v52  ;;  %9837 = vmatpush1.bf16.msra.mxu1 %v12714_v33 }
 0xd9e   :  { %9807 = vmatprep.subr.bf16.mxu0 %v12697_v10  ;;  %9839 = vmatprep.subr.bf16.mxu1 %v12720_v49 }
 0xd9f   :  { %3414 = vmatprep.mubr.f32.mxu0 %v11951_v0  ;;  %3485 = vmatprep.mubr.f32.mxu1 %v11951_v0 }
 0xda1   :  { %9809 = vmatpush1.bf16.msra.mxu0 %v12701_v58  ;;  %9841 = vmatpush1.bf16.msra.mxu1 %v12728_v11 }
 0xda2   :  { %9811 = vmatprep.subr.bf16.mxu0 %v12704_v3  ;;  %9843 = vmatprep.subr.bf16.mxu1 %v12734_v31 }
 0xda5   :  { %9813 = vmatpush1.bf16.msra.mxu0 %v12712_v27  ;;  %9845 = vmatpush1.bf16.msra.mxu1 %v12741_v46 }
 0xda6   :  { %9815 = vmatprep.subr.bf16.mxu0 %v12718_v45  ;;  %9847 = vmatprep.subr.bf16.mxu1 %v12747_v57 }
 0xda9   :  { %9817 = vmatpush1.bf16.msra.mxu0 %v12726_v16  ;;  %9849 = vmatpush1.bf16.msra.mxu1 %v12753_v51 }
 0xdaa   :  { %9819 = vmatprep.subr.bf16.mxu0 %v12732_v23  ;;  %9851 = vmatprep.subr.bf16.mxu1 %v12759_v7 }
 0xdad   :  { %9821 = vmatpush1.bf16.msra.mxu0 %v12739_v41  ;;  %9853 = vmatpush1.bf16.msra.mxu1 %v12765_v59 }
 0xdae   :  { %9823 = vmatprep.subr.bf16.mxu0 %v12745_v5  ;;  %9855 = vmatprep.subr.bf16.mxu1 %v12771_v4 }
 0xdb1   :  { %9825 = vmatpush1.bf16.msra.mxu0 %v12751_v44  ;;  %9857 = vmatpush1.bf16.msra.mxu1 %v12777_v21 }
 0xdb2   :  { %9827 = vmatprep.subr.bf16.mxu0 %v12757_v2  ;;  %9859 = vmatprep.subr.bf16.mxu1 %v12781_v12 }
 0xdb5   :  { %9829 = vmatpush1.bf16.msra.mxu0 %v12763_v43  ;;  %9861 = vmatpush1.bf16.msra.mxu1 %v12785_v63 }
 0xdb6   :  { %9831 = vmatprep.subr.bf16.mxu0 %v12769_v61  ;;  %9863 = vmatprep.subr.bf16.mxu1 %v12788_v47 }
 0xdb9   :  { %9833 = vmatpush1.bf16.msra.mxu0 %v12775_v34  ;;  %9865 = vmatpush1.bf16.msra.mxu1 %v12793_v39 }
 0xdba   :  { %9867 = vmatprep.subr.bf16.mxu0 %v12678_v53  ;;  %9899 = vmatprep.subr.bf16.mxu1 %v12707_v15 }
 0xe6f   :  { %v3227_v6 = vpop.f32.mrb[26].mxu0  ;;  %v3298_v36 = vpop.f32.mrb[30].mxu1 }
 0xe70   :  { %v3307_v37 = vrot.slane %v3227_v6, 4  ;;  %v3229_v50 = vpop.f32.mrb[27].mxu0  ;;  %v3300_v30 = vpop.f32.mrb[31].mxu1  ;;  %v3309_v19 = vrot.slane %v3298_v36, 4 }
 0xe71   :  { %v3308_v56 = vrot.slane %v3229_v50, 4  ;;  %v3310_v8 = vrot.slane %v3300_v30, 4 }
 0xe72   :  { %v3315_v24 = vadd.f32 %v3307_v37, %v12840_v60  ;;  %v3317_v54 = vadd.f32 %v3309_v19, %v12851_v14  ;;  %v3339_v37 = vrot.slane %v12980_v13, 7 }
 0xe73   :  { %v3316_v35 = vadd.f32 %v3308_v56, %v12842_v17  ;;  %v3318_v62 = vadd.f32 %v3310_v8, %v12848_v32 }
 0xe74   :  { %v8378_v29 = vmul.f32 -1.442695, %v3315_v24 }
 0xe75   :  { %v8379_v42 = vmul.f32 -1.442695, %v3316_v35  ;;  %v8380_v55 = vmul.f32 -1.442695, %v3318_v62 }
 0xe76   :  { %11093 = vpow2.f32 %v8378_v29 }
 0xe77   :  { %11095 = vpow2.f32 %v8379_v42 }
 0xe78   :  { %11097 = vpow2.f32 %v8380_v55 }
 0xe79   :  { %11099 = vtanh.f32 %v3317_v54 }
 0xe80   :  { %v11094_v25 = vpop.eup %11093 }
 0xe81   :  { %v11096_v1 = vpop.eup %11095  ;;  %v3322_v26 = vadd.f32 1.0, %v11094_v25 }
 0xe82   :  { %v3328_v9 = vadd.f32 1.0, %v11096_v1  ;;  %v11098_v38 = vpop.eup %11097 }
 0xe83   :  { %11101 = vrcp.f32 %v3322_v26  ;;  %v11100_v40 = vpop.eup %11099  ;;  %v3335_v56 = vadd.f32 1.0, %v11098_v38 }
 0xe84   :  { %11103 = vrcp.f32 %v3328_v9 }
 0xe85   :  { %11105 = vrcp.f32 %v3335_v56 }
 0xe8d   :  { %v11102_v6 = vpop.eup %11101 }
 0xe8e   :  { %v11104_v50 = vpop.eup %11103  ;;  %v3342_v30 = vmul.f32 %v11102_v6, %v11100_v40 }
 0xe8f   :  { %v3341_v36 = vmul.f32 %v11104_v50, %v3339_v37  ;;  %v11106_v35 = vpop.eup %11105 }
 0xe91   :  { %v13022_v24 = vadd.f32 %v3342_v30, %v3341_v36 }
 0xe93   :  { %11107 = vtanh.f32 %v13022_v24 }
 0xe9d   :  { %v11108_v29 = vpop.eup %11107 }
 0xe9e   :  { %v3345_v42 = vmul.f32 %v11108_v29, %v11106_v35 }
 0xea0   :  { %3346 = vst [vmem:[#allocation3] sm:$0x10] %v3345_v42  ;;  %v3348_v8 = vrot.slane %v3345_v42, 4 }
 0xea2   :  { %3415 = vmatmul.mubr.f32.vlgmr.msra.gmra.mrb[28].mxu0 %v3348_v8  ;;  %3486 = vmatmul.mubr.f32.vlgmr.msra.gmra.mrb[32].mxu1 %v3348_v8  ;;  %v3528_v8 = vrot.slane %v13022_v24, 7 }
 0xea3   :  { %9869 = vmatpush1.bf16.msra.mxu0 %v12693_v52  ;;  %9901 = vmatpush1.bf16.msra.mxu1 %v12714_v33 }
 0xea4   :  { %9871 = vmatprep.subr.bf16.mxu0 %v12697_v10  ;;  %9903 = vmatprep.subr.bf16.mxu1 %v12720_v49 }
 0xea5   :  { %3603 = vmatprep.mubr.f32.mxu0 %v11951_v0  ;;  %3674 = vmatprep.mubr.f32.mxu1 %v11951_v0 }
 0xea7   :  { %9873 = vmatpush1.bf16.msra.mxu0 %v12701_v58  ;;  %9905 = vmatpush1.bf16.msra.mxu1 %v12728_v11 }
 0xea8   :  { %9875 = vmatprep.subr.bf16.mxu0 %v12704_v3  ;;  %9907 = vmatprep.subr.bf16.mxu1 %v12734_v31 }
 0xeab   :  { %9877 = vmatpush1.bf16.msra.mxu0 %v12712_v27  ;;  %9909 = vmatpush1.bf16.msra.mxu1 %v12741_v46 }
 0xeac   :  { %9879 = vmatprep.subr.bf16.mxu0 %v12718_v45  ;;  %9911 = vmatprep.subr.bf16.mxu1 %v12747_v57 }
 0xeaf   :  { %9881 = vmatpush1.bf16.msra.mxu0 %v12726_v16  ;;  %9913 = vmatpush1.bf16.msra.mxu1 %v12753_v51 }
 0xeb0   :  { %9883 = vmatprep.subr.bf16.mxu0 %v12732_v23  ;;  %9915 = vmatprep.subr.bf16.mxu1 %v12759_v7 }
 0xeb3   :  { %9885 = vmatpush1.bf16.msra.mxu0 %v12739_v41  ;;  %9917 = vmatpush1.bf16.msra.mxu1 %v12765_v59 }
 0xeb4   :  { %9887 = vmatprep.subr.bf16.mxu0 %v12745_v5  ;;  %9919 = vmatprep.subr.bf16.mxu1 %v12771_v4 }
 0xeb7   :  { %9889 = vmatpush1.bf16.msra.mxu0 %v12751_v44  ;;  %9921 = vmatpush1.bf16.msra.mxu1 %v12777_v21 }
 0xeb8   :  { %9891 = vmatprep.subr.bf16.mxu0 %v12757_v2  ;;  %9923 = vmatprep.subr.bf16.mxu1 %v12781_v12 }
 0xebb   :  { %9893 = vmatpush1.bf16.msra.mxu0 %v12763_v43  ;;  %9925 = vmatpush1.bf16.msra.mxu1 %v12785_v63 }
 0xebc   :  { %9895 = vmatprep.subr.bf16.mxu0 %v12769_v61  ;;  %9927 = vmatprep.subr.bf16.mxu1 %v12788_v47 }
 0xebf   :  { %9897 = vmatpush1.bf16.msra.mxu0 %v12775_v34  ;;  %9929 = vmatpush1.bf16.msra.mxu1 %v12793_v39 }
 0xec0   :  { %9931 = vmatprep.subr.bf16.mxu0 %v12678_v53  ;;  %9963 = vmatprep.subr.bf16.mxu1 %v12707_v15 }
 0xf75   :  { %v3416_v13 = vpop.f32.mrb[28].mxu0  ;;  %v3487_v62 = vpop.f32.mrb[32].mxu1 }
 0xf76   :  { %v3496_v19 = vrot.slane %v3416_v13, 3  ;;  %v3418_v55 = vpop.f32.mrb[29].mxu0  ;;  %v3489_v54 = vpop.f32.mrb[33].mxu1  ;;  %v3498_v53 = vrot.slane %v3487_v62, 3 }
 0xf77   :  { %v3497_v25 = vrot.slane %v3418_v55, 3  ;;  %v3499_v40 = vrot.slane %v3489_v54, 3 }
 0xf78   :  { %v3504_v1 = vadd.f32 %v3496_v19, %v12840_v60  ;;  %v3506_v15 = vadd.f32 %v3498_v53, %v12851_v14  ;;  %v3915_v53 = vld [vmem:[#allocation14] sm:$0xff] }
 0xf79   :  { %v3505_v26 = vadd.f32 %v3497_v25, %v12842_v17  ;;  %v3507_v6 = vadd.f32 %v3499_v40, %v12848_v32 }
 0xf7a   :  { %v8381_v9 = vmul.f32 -1.442695, %v3504_v1 }
 0xf7b   :  { %v8382_v38 = vmul.f32 -1.442695, %v3505_v26  ;;  %v8383_v37 = vmul.f32 -1.442695, %v3507_v6 }
 0xf7c   :  { %11109 = vpow2.f32 %v8381_v9 }
 0xf7d   :  { %11111 = vpow2.f32 %v8382_v38 }
 0xf7e   :  { %11113 = vpow2.f32 %v8383_v37 }
 0xf7f   :  { %11115 = vtanh.f32 %v3506_v15  ;;  %v3919_v15 = vld [vmem:[#allocation14 + $0x20] sm:$0xff] }
 0xf86   :  { %v11110_v50 = vpop.eup %11109 }
 0xf87   :  { %v11112_v30 = vpop.eup %11111  ;;  %v3511_v56 = vadd.f32 1.0, %v11110_v50  ;;  %v3917_v50 = vld [vmem:[#allocation14 + $0x10] sm:$0xff] }
 0xf88   :  { %v3517_v36 = vadd.f32 1.0, %v11112_v30  ;;  %v11114_v35 = vpop.eup %11113  ;;  %v3921_v30 = vld [vmem:[#allocation14 + $0x30] sm:$0xff] }
 0xf89   :  { %11117 = vrcp.f32 %v3511_v56  ;;  %v11116_v29 = vpop.eup %11115  ;;  %v3524_v55 = vadd.f32 1.0, %v11114_v35 }
 0xf8a   :  { %11119 = vrcp.f32 %v3517_v36  ;;  %v4091_v36 = vld [vmem:[#allocation16 + $0x8] sm:$0xff] }
 0xf8b   :  { %11121 = vrcp.f32 %v3524_v55  ;;  %v4090_v55 = vld [vmem:[#allocation16] sm:$0xff] }
 0xf93   :  { %v11118_v42 = vpop.eup %11117 }
 0xf94   :  { %v11120_v13 = vpop.eup %11119  ;;  %v3531_v19 = vmul.f32 %v11118_v42, %v11116_v29  ;;  %v4095_v29 = vld [vmem:[#allocation16 + $0x28] sm:$0xff]  ;;  %v4093_v42 = vld [vmem:[#allocation16 + $0x18] sm:$0xff] }
 0xf95   :  { %v3530_v62 = vmul.f32 %v11120_v13, %v3528_v8  ;;  %v11122_v25 = vpop.eup %11121  ;;  %v4097_v8 = vld [vmem:[#allocation16 + $0x38] sm:$0xff]  ;;  %v9996_v13 = vpack.c.bf16 %v3919_v15, %v3915_v53  ;;  %v4116_v15 = vld [vmem:[#allocation16 + $0xd0] sm:$0xff] }
 0xf97   :  { %v13064_v54 = vadd.f32 %v3531_v19, %v3530_v62  ;;  %v10000_v19 = vpack.c.bf16 %v3921_v30, %v3917_v50  ;;  %v4094_v62 = vld [vmem:[#allocation16 + $0x20] sm:$0xff]  ;;  %v4120_v50 = vld [vmem:[#allocation16 + $0xf0] sm:$0xff]  ;;  %v4123_v30 = vld [vmem:[#allocation16 + $0x108] sm:$0xff] }
 0xf99   :  { %11123 = vtanh.f32 %v13064_v54 }
 0xfa3   :  { %v11124_v1 = vpop.eup %11123 }
 0xfa4   :  { %v3534_v26 = vmul.f32 %v11124_v1, %v11122_v25  ;;  %v4092_v25 = vld [vmem:[#allocation16 + $0x10] sm:$0xff] }
 0xfa5   :  { %v4096_v1 = vld [vmem:[#allocation16 + $0x30] sm:$0xff] }
 0xfa6   :  { %3535 = vst [vmem:[#allocation3] sm:$0x20] %v3534_v26  ;;  %v3537_v9 = vrot.slane %v3534_v26, 5  ;;  %v4099_v26 = vld [vmem:[#allocation16 + $0x48] sm:$0xff] }
 0xfa8   :  { %3604 = vmatmul.mubr.f32.vlgmr.msra.gmra.mrb[30].mxu0 %v3537_v9  ;;  %3675 = vmatmul.mubr.f32.vlgmr.msra.gmra.mrb[34].mxu1 %v3537_v9  ;;  %v13107_v9 = vpack.c.bf16 %v4095_v29, %v4091_v36  ;;  %v4125_v36 = vld [vmem:[#allocation16 + $0x118] sm:$0xff] }
 0xfa9   :  { %9933 = vmatpush1.bf16.msra.mxu0 %v12693_v52  ;;  %9965 = vmatpush1.bf16.msra.mxu1 %v12714_v33  ;;  %v3916_v52 = vld [vmem:[#allocation14 + $0x8] sm:$0xff] }
 0xfaa   :  { %9935 = vmatprep.subr.bf16.mxu0 %v12697_v10  ;;  %9967 = vmatprep.subr.bf16.mxu1 %v12720_v49  ;;  %v3920_v10 = vld [vmem:[#allocation14 + $0x28] sm:$0xff] }
 0xfab   :  { %3792 = vmatprep.mubr.f32.mxu0 %v11951_v0  ;;  %3863 = vmatprep.mubr.f32.mxu1 %v11951_v0 }
 0xfad   :  { %9937 = vmatpush1.bf16.msra.mxu0 %v12701_v58  ;;  %9969 = vmatpush1.bf16.msra.mxu1 %v12728_v11  ;;  %v3918_v58 = vld [vmem:[#allocation14 + $0x18] sm:$0xff] }
 0xfae   :  { %9939 = vmatprep.subr.bf16.mxu0 %v12704_v3  ;;  %9971 = vmatprep.subr.bf16.mxu1 %v12734_v31  ;;  %v9994_v3 = vpack.c.bf16 %v3920_v10, %v3916_v52  ;;  %v13109_v52 = vpack.c.bf16 %v4097_v8, %v4093_v42  ;;  %v4103_v10 = vld [vmem:[#allocation16 + $0x68] sm:$0xff]  ;;  %v13156_v42 = vpack.c.bf16 %v4120_v50, %v4116_v15  ;;  %v4122_v8 = vld [vmem:[#allocation16 + $0x100] sm:$0xff]  ;;  %v4149_v50 = vld [vmem:[#allocation16 + $0x1d8] sm:$0xff] }
 0xfaf   :  { %v4151_v15 = vld [vmem:[#allocation16 + $0x1e8] sm:$0xff] }
 0xfb1   :  { %9941 = vmatpush1.bf16.msra.mxu0 %v12712_v27  ;;  %9973 = vmatpush1.bf16.msra.mxu1 %v12741_v46  ;;  %v3922_v27 = vld [vmem:[#allocation14 + $0x38] sm:$0xff] }
 0xfb2   :  { %9943 = vmatprep.subr.bf16.mxu0 %v12718_v45  ;;  %9975 = vmatprep.subr.bf16.mxu1 %v12747_v57  ;;  %v9998_v33 = vpack.c.bf16 %v3922_v27, %v3918_v58  ;;  %v4101_v58 = vld [vmem:[#allocation16 + $0x58] sm:$0xff]  ;;  %v3914_v27 = vld [vmem:[%s13920_s25] sm:$0xff] }
 0xfb5   :  { %9945 = vmatpush1.bf16.msra.mxu0 %v12726_v16  ;;  %9977 = vmatpush1.bf16.msra.mxu1 %v12753_v51 }
 0xfb6   :  { %9947 = vmatprep.subr.bf16.mxu0 %v12732_v23  ;;  %9979 = vmatprep.subr.bf16.mxu1 %v12759_v7 }
 0xfb9   :  { %9949 = vmatpush1.bf16.msra.mxu0 %v12739_v41  ;;  %9981 = vmatpush1.bf16.msra.mxu1 %v12765_v59 }
 0xfba   :  { %9951 = vmatprep.subr.bf16.mxu0 %v12745_v5  ;;  %9983 = vmatprep.subr.bf16.mxu1 %v12771_v4 }
 0xfbd   :  { %9953 = vmatpush1.bf16.msra.mxu0 %v12751_v44  ;;  %9985 = vmatpush1.bf16.msra.mxu1 %v12777_v21 }
 0xfbe   :  { %9955 = vmatprep.subr.bf16.mxu0 %v12757_v2  ;;  %9987 = vmatprep.subr.bf16.mxu1 %v12781_v12 }
 0xfc1   :  { %9957 = vmatpush1.bf16.msra.mxu0 %v12763_v43  ;;  %9989 = vmatpush1.bf16.msra.mxu1 %v12785_v63 }
 0xfc2   :  { %9959 = vmatprep.subr.bf16.mxu0 %v12769_v61  ;;  %9991 = vmatprep.subr.bf16.mxu1 %v12788_v47  ;;  %v3717_v47 = vrot.slane %v13064_v54, 7 }
 0xfc5   :  { %9961 = vmatpush1.bf16.msra.mxu0 %v12775_v34  ;;  %9993 = vmatpush1.bf16.msra.mxu1 %v12793_v39 }
 0xfc6   :  { %9995 = vmatprep.subr.bf16.mxu0 %v9994_v3  ;;  %9999 = vmatprep.subr.bf16.mxu1 %v9998_v33  ;;  %v4105_v3 = vld [vmem:[#allocation16 + $0x78] sm:$0xff]  ;;  %v13112_v33 = vpack.c.bf16 %v4094_v62, %v4090_v55  ;;  %v4124_v62 = vld [vmem:[#allocation16 + $0x110] sm:$0xff] }
0x107b   :  { %v3605_v45 = vpop.f32.mrb[30].mxu0  ;;  %v3676_v49 = vpop.f32.mrb[34].mxu1 }
0x107c   :  { %v3685_v16 = vrot.slane %v3605_v45, 2  ;;  %v3607_v11 = vpop.f32.mrb[31].mxu0  ;;  %v3678_v23 = vpop.f32.mrb[35].mxu1  ;;  %v3687_v2 = vrot.slane %v3676_v49, 2  ;;  %v13114_v45 = vpack.c.bf16 %v4096_v1, %v4092_v25  ;;  %v4098_v49 = vld [vmem:[#allocation16 + $0x40] sm:$0xff]  ;;  %v4131_v25 = vld [vmem:[#allocation16 + $0x148] sm:$0xff] }
0x107d   :  { %v3686_v31 = vrot.slane %v3607_v11, 2  ;;  %v3688_v44 = vrot.slane %v3678_v23, 2  ;;  %v13118_v11 = vpack.c.bf16 %v4103_v10, %v4099_v26  ;;  %v13120_v23 = vpack.c.bf16 %v4105_v3, %v4101_v58  ;;  %v4135_v1 = vld [vmem:[#allocation16 + $0x168] sm:$0xff]  ;;  %v4133_v26 = vld [vmem:[#allocation16 + $0x158] sm:$0xff] }
0x107e   :  { %v3693_v41 = vadd.f32 %v3685_v16, %v12840_v60  ;;  %v3695_v43 = vadd.f32 %v3687_v2, %v12851_v14  ;;  %v4102_v16 = vld [vmem:[#allocation16 + $0x60] sm:$0xff]  ;;  %v4137_v10 = vld [vmem:[#allocation16 + $0x178] sm:$0xff] }
0x107f   :  { %v3694_v46 = vadd.f32 %v3686_v31, %v12842_v17  ;;  %v3696_v51 = vadd.f32 %v3688_v44, %v12848_v32  ;;  %v4100_v31 = vld [vmem:[#allocation16 + $0x50] sm:$0xff]  ;;  %v4113_v44 = vld [vmem:[#allocation16 + $0xb8] sm:$0xff] }
0x1080   :  { %v8384_v5 = vmul.f32 -1.442695, %v3693_v41  ;;  %v4104_v41 = vld [vmem:[#allocation16 + $0x70] sm:$0xff] }
0x1081   :  { %v8385_v57 = vmul.f32 -1.442695, %v3694_v46  ;;  %v8386_v7 = vmul.f32 -1.442695, %v3696_v51  ;;  %v4107_v46 = vld [vmem:[#allocation16 + $0x88] sm:$0xff]  ;;  %v13128_v51 = vpack.c.bf16 %v4102_v16, %v4098_v49  ;;  %v13130_v2 = vpack.c.bf16 %v4104_v41, %v4100_v31  ;;  %v4134_v49 = vld [vmem:[#allocation16 + $0x160] sm:$0xff] }
0x1082   :  { %11125 = vpow2.f32 %v8384_v5  ;;  %v4111_v5 = vld [vmem:[#allocation16 + $0xa8] sm:$0xff]  ;;  %v13172_v16 = vpack.c.bf16 %v4135_v1, %v4131_v25  ;;  %v13174_v31 = vpack.c.bf16 %v4137_v10, %v4133_v26  ;;  %v4132_v41 = vld [vmem:[#allocation16 + $0x150] sm:$0xff] }
0x1083   :  { %11127 = vpow2.f32 %v8385_v57  ;;  %v4109_v57 = vld [vmem:[#allocation16 + $0x98] sm:$0xff]  ;;  %v4152_v25 = vld [vmem:[#allocation16 + $0x1f0] sm:$0xff] }
0x1084   :  { %11129 = vpow2.f32 %v8386_v7  ;;  %v4106_v7 = vld [vmem:[#allocation16 + $0x80] sm:$0xff] }
0x1085   :  { %11131 = vtanh.f32 %v3695_v43  ;;  %v4110_v43 = vld [vmem:[#allocation16 + $0xa0] sm:$0xff] }
0x108c   :  { %v11126_v59 = vpop.eup %11125 }
0x108d   :  { %v11128_v61 = vpop.eup %11127  ;;  %v3700_v4 = vadd.f32 1.0, %v11126_v59  ;;  %v13134_v59 = vpack.c.bf16 %v4111_v5, %v4107_v46  ;;  %v4136_v46 = vld [vmem:[#allocation16 + $0x170] sm:$0xff]  ;;  %v4139_v5 = vld [vmem:[#allocation16 + $0x188] sm:$0xff] }
0x108e   :  { %v3706_v34 = vadd.f32 1.0, %v11128_v61  ;;  %v11130_v21 = vpop.eup %11129  ;;  %v13136_v61 = vpack.c.bf16 %v4113_v44, %v4109_v57  ;;  %v4143_v57 = vld [vmem:[#allocation16 + $0x1a8] sm:$0xff]  ;;  %v4141_v44 = vld [vmem:[#allocation16 + $0x198] sm:$0xff] }
0x108f   :  { %11133 = vrcp.f32 %v3700_v4  ;;  %v11132_v12 = vpop.eup %11131  ;;  %v3713_v38 = vadd.f32 1.0, %v11130_v21  ;;  %v4108_v4 = vld [vmem:[#allocation16 + $0x90] sm:$0xff]  ;;  %v4115_v21 = vld [vmem:[#allocation16 + $0xc8] sm:$0xff] }
0x1090   :  { %11135 = vrcp.f32 %v3706_v34  ;;  %v4112_v34 = vld [vmem:[#allocation16 + $0xb0] sm:$0xff] }
0x1091   :  { %11137 = vrcp.f32 %v3713_v38  ;;  %v4114_v38 = vld [vmem:[#allocation16 + $0xc0] sm:$0xff] }
0x1099   :  { %v11134_v63 = vpop.eup %11133 }
0x109a   :  { %v11136_v39 = vpop.eup %11135  ;;  %v3720_v24 = vmul.f32 %v11134_v63, %v11132_v12  ;;  %v4119_v12 = vld [vmem:[#allocation16 + $0xe8] sm:$0xff]  ;;  %v4117_v63 = vld [vmem:[#allocation16 + $0xd8] sm:$0xff] }
0x109b   :  { %v3719_v40 = vmul.f32 %v11136_v39, %v3717_v47  ;;  %v11138_v37 = vpop.eup %11137  ;;  %v4121_v47 = vld [vmem:[#allocation16 + $0xf8] sm:$0xff]  ;;  %v13142_v39 = vpack.c.bf16 %v4110_v43, %v4106_v7  ;;  %v13148_v53 = vpack.c.bf16 %v4119_v12, %v4115_v21  ;;  %v4142_v21 = vld [vmem:[#allocation16 + $0x1a0] sm:$0xff]  ;;  %v13184_v12 = vpack.c.bf16 %v4143_v57, %v4139_v5 }
0x109c   :  { %v4145_v7 = vld [vmem:[#allocation16 + $0x1b8] sm:$0xff] }
0x109d   :  { %v13104_v6 = vadd.f32 %v3720_v24, %v3719_v40  ;;  %v13144_v24 = vpack.c.bf16 %v4112_v34, %v4108_v4  ;;  %v4118_v40 = vld [vmem:[#allocation16 + $0xe0] sm:$0xff]  ;;  %v13180_v4 = vpack.c.bf16 %v4136_v46, %v4132_v41 }
0x109e   :  { %v13154_v29 = vpack.c.bf16 %v4118_v40, %v4114_v38  ;;  %v4138_v34 = vld [vmem:[#allocation16 + $0x180] sm:$0xff]  ;;  %v4144_v38 = vld [vmem:[#allocation16 + $0x1b0] sm:$0xff]  ;;  %v4147_v40 = vld [vmem:[#allocation16 + $0x1c8] sm:$0xff] }
0x109f   :  { %11139 = vtanh.f32 %v13104_v6 }
0x10a9   :  { %v11140_v56 = vpop.eup %11139 }
0x10aa   :  { %v3723_v35 = vmul.f32 %v11140_v56, %v11138_v37  ;;  %v13150_v37 = vpack.c.bf16 %v4121_v47, %v4117_v63  ;;  %v4127_v56 = vld [vmem:[#allocation16 + $0x128] sm:$0xff]  ;;  %v13186_v63 = vpack.c.bf16 %v4145_v7, %v4141_v44  ;;  %v4140_v47 = vld [vmem:[#allocation16 + $0x190] sm:$0xff] }
0x10ac   :  { %3724 = vst [vmem:[#allocation3] sm:$0x40] %v3723_v35  ;;  %v3726_v54 = vrot.slane %v3723_v35, 6  ;;  %v4129_v35 = vld [vmem:[#allocation16 + $0x138] sm:$0xff] }
0x10ad   :  { %v13162_v55 = vpack.c.bf16 %v4129_v35, %v4125_v36  ;;  %v13192_v36 = vpack.c.bf16 %v4144_v38, %v4140_v47  ;;  %v4146_v35 = vld [vmem:[#allocation16 + $0x1c0] sm:$0xff] }
0x10ae   :  { %3793 = vmatmul.mubr.f32.vlgmr.msra.gmra.mrb[32].mxu0 %v3726_v54  ;;  %3864 = vmatmul.mubr.f32.vlgmr.msra.gmra.mrb[36].mxu1 %v3726_v54  ;;  %v4128_v54 = vld [vmem:[#allocation16 + $0x130] sm:$0xff] }
0x10af   :  { %9997 = vmatpush1.bf16.msra.mxu0 %v9996_v13  ;;  %10001 = vmatpush1.bf16.msra.mxu1 %v10000_v19  ;;  %v4126_v13 = vld [vmem:[#allocation16 + $0x120] sm:$0xff]  ;;  %v13160_v19 = vpack.c.bf16 %v4127_v56, %v4123_v30  ;;  %v13168_v3 = vpack.c.bf16 %v4128_v54, %v4124_v62  ;;  %v4153_v30 = vld [vmem:[#allocation16 + $0x1f8] sm:$0xff]  ;;  %v13190_v56 = vpack.c.bf16 %v4142_v21, %v4138_v34  ;;  %v4148_v54 = vld [vmem:[#allocation16 + $0x1d0] sm:$0xff] }
0x10b0   :  { %4012 = vmatprep.mubr.f32.mxu0 %v11951_v0  ;;  %4083 = vmatprep.mubr.f32.mxu1 %v11951_v0  ;;  %v13166_v58 = vpack.c.bf16 %v4126_v13, %v4122_v8  ;;  %v13196_v8 = vpack.c.bf16 %v4151_v15, %v4147_v40  ;;  %v13198_v13 = vpack.c.bf16 %v4153_v30, %v4149_v50  ;;  %v4150_v62 = vld [vmem:[#allocation16 + $0x1e0] sm:$0xff] }
0x10b1   :  { %10003 = vmatprep.subr.bf16.mxu0 %v13107_v9  ;;  %10035 = vmatprep.subr.bf16.mxu1 %v13109_v52  ;;  %v13202_v1 = vpack.c.bf16 %v4150_v62, %v4146_v35  ;;  %v13204_v26 = vpack.c.bf16 %v4152_v25, %v4148_v54 }
0x10b2   :  { %8390 = vmatmul.mubr.msk.f32.vlgmr.msra.gmra.mrb[34].mxu0 %vm2213_vm1, %v3914_v27  ;;  %8391 = vmatmul.mubr.msk.f32.vlgmr.msra.gmra.mrb[38].mxu1 %vm2213_vm1, %v3914_v27  ;;  %v4130_v27 = vld [vmem:[#allocation16 + $0x140] sm:$0xff] }
0x10b3   :  { %10005 = vmatpush1.bf16.msra.mxu0 %v13112_v33  ;;  %10037 = vmatpush1.bf16.msra.mxu1 %v13114_v45  ;;  %v13178_v43 = vpack.c.bf16 %v4134_v49, %v4130_v27 }
0x10b4   :  { %10007 = vmatprep.subr.bf16.mxu0 %v13118_v11  ;;  %10039 = vmatprep.subr.bf16.mxu1 %v13120_v23 }
0x10b5   :  { %4218 = vmatprep.mubr.f32.mxu0 %v11951_v0  ;;  %4289 = vmatprep.mubr.f32.mxu1 %v11951_v0 }
0x10b7   :  { %10009 = vmatpush1.bf16.msra.mxu0 %v13128_v51  ;;  %10041 = vmatpush1.bf16.msra.mxu1 %v13130_v2 }
0x10b8   :  { %10011 = vmatprep.subr.bf16.mxu0 %v13134_v59  ;;  %10043 = vmatprep.subr.bf16.mxu1 %v13136_v61 }
0x10bb   :  { %10013 = vmatpush1.bf16.msra.mxu0 %v13142_v39  ;;  %10045 = vmatpush1.bf16.msra.mxu1 %v13144_v24 }
0x10bc   :  { %10015 = vmatprep.subr.bf16.mxu0 %v13148_v53  ;;  %10047 = vmatprep.subr.bf16.mxu1 %v13150_v37 }
0x10bf   :  { %10017 = vmatpush1.bf16.msra.mxu0 %v13154_v29  ;;  %10049 = vmatpush1.bf16.msra.mxu1 %v13156_v42 }
0x10c0   :  { %10019 = vmatprep.subr.bf16.mxu0 %v13160_v19  ;;  %10051 = vmatprep.subr.bf16.mxu1 %v13162_v55 }
0x10c3   :  { %10021 = vmatpush1.bf16.msra.mxu0 %v13166_v58  ;;  %10053 = vmatpush1.bf16.msra.mxu1 %v13168_v3 }
0x10c4   :  { %10023 = vmatprep.subr.bf16.mxu0 %v13172_v16  ;;  %10055 = vmatprep.subr.bf16.mxu1 %v13174_v31 }
0x10c7   :  { %10025 = vmatpush1.bf16.msra.mxu0 %v13178_v43  ;;  %10057 = vmatpush1.bf16.msra.mxu1 %v13180_v4 }
0x10c8   :  { %10027 = vmatprep.subr.bf16.mxu0 %v13184_v12  ;;  %10059 = vmatprep.subr.bf16.mxu1 %v13186_v63 }
0x10cb   :  { %10029 = vmatpush1.bf16.msra.mxu0 %v13190_v56  ;;  %10061 = vmatpush1.bf16.msra.mxu1 %v13192_v36 }
0x10cc   :  { %10031 = vmatprep.subr.bf16.mxu0 %v13196_v8  ;;  %10063 = vmatprep.subr.bf16.mxu1 %v13198_v13 }
0x10cf   :  { %10033 = vmatpush1.bf16.msra.mxu0 %v13202_v1  ;;  %10065 = vmatpush1.bf16.msra.mxu1 %v13204_v26 }
0x10d0   :  { %10067 = vmatprep.subr.bf16.mxu0 %v13107_v9  ;;  %10099 = vmatprep.subr.bf16.mxu1 %v13109_v52 }
0x10d2   :  { %4219 = vmatmul.mubr.f32.vlgmr.msra.gmra.mrb[36].mxu0 %v11951_v0  ;;  %4290 = vmatmul.mubr.f32.vlgmr.msra.gmra.mrb[40].mxu1 %v11951_v0 }
0x10d3   :  { %10069 = vmatpush1.bf16.msra.mxu0 %v13112_v33  ;;  %10101 = vmatpush1.bf16.msra.mxu1 %v13114_v45 }
0x10d4   :  { %10071 = vmatprep.subr.bf16.mxu0 %v13118_v11  ;;  %10103 = vmatprep.subr.bf16.mxu1 %v13120_v23 }
0x10d5   :  { %4389 = vmatprep.mubr.f32.mxu0 %v11951_v0  ;;  %4460 = vmatprep.mubr.f32.mxu1 %v11951_v0 }
0x10d7   :  { %10073 = vmatpush1.bf16.msra.mxu0 %v13128_v51  ;;  %10105 = vmatpush1.bf16.msra.mxu1 %v13130_v2 }
0x10d8   :  { %10075 = vmatprep.subr.bf16.mxu0 %v13134_v59  ;;  %10107 = vmatprep.subr.bf16.mxu1 %v13136_v61 }
0x10db   :  { %10077 = vmatpush1.bf16.msra.mxu0 %v13142_v39  ;;  %10109 = vmatpush1.bf16.msra.mxu1 %v13144_v24 }
0x10dc   :  { %10079 = vmatprep.subr.bf16.mxu0 %v13148_v53  ;;  %10111 = vmatprep.subr.bf16.mxu1 %v13150_v37 }
0x10df   :  { %10081 = vmatpush1.bf16.msra.mxu0 %v13154_v29  ;;  %10113 = vmatpush1.bf16.msra.mxu1 %v13156_v42 }
0x10e0   :  { %10083 = vmatprep.subr.bf16.mxu0 %v13160_v19  ;;  %10115 = vmatprep.subr.bf16.mxu1 %v13162_v55 }
0x10e3   :  { %10085 = vmatpush1.bf16.msra.mxu0 %v13166_v58  ;;  %10117 = vmatpush1.bf16.msra.mxu1 %v13168_v3 }
0x10e4   :  { %10087 = vmatprep.subr.bf16.mxu0 %v13172_v16  ;;  %10119 = vmatprep.subr.bf16.mxu1 %v13174_v31 }
0x10e7   :  { %10089 = vmatpush1.bf16.msra.mxu0 %v13178_v43  ;;  %10121 = vmatpush1.bf16.msra.mxu1 %v13180_v4 }
0x10e8   :  { %10091 = vmatprep.subr.bf16.mxu0 %v13184_v12  ;;  %10123 = vmatprep.subr.bf16.mxu1 %v13186_v63 }
0x10eb   :  { %10093 = vmatpush1.bf16.msra.mxu0 %v13190_v56  ;;  %10125 = vmatpush1.bf16.msra.mxu1 %v13192_v36 }
0x10ec   :  { %10095 = vmatprep.subr.bf16.mxu0 %v13196_v8  ;;  %10127 = vmatprep.subr.bf16.mxu1 %v13198_v13 }
0x10ef   :  { %10097 = vmatpush1.bf16.msra.mxu0 %v13202_v1  ;;  %10129 = vmatpush1.bf16.msra.mxu1 %v13204_v26 }
0x10f0   :  { %10131 = vmatprep.subr.bf16.mxu0 %v13107_v9  ;;  %10163 = vmatprep.subr.bf16.mxu1 %v13109_v52 }
0x1181   :  { %v3794_v10 = vpop.f32.mrb[32].mxu0  ;;  %v3865_v27 = vpop.f32.mrb[36].mxu1 }
0x1182   :  { %v3874_v49 = vrot.slane %v3794_v10, 1  ;;  %v3796_v41 = vpop.f32.mrb[33].mxu0  ;;  %v3867_v46 = vpop.f32.mrb[37].mxu1  ;;  %v3876_v30 = vrot.slane %v3865_v27, 1 }
0x1183   :  { %v3875_v5 = vrot.slane %v3796_v41, 1  ;;  %v3877_v15 = vrot.slane %v3867_v46, 1 }
0x1184   :  { %v3882_v57 = vadd.f32 %v3874_v49, %v12840_v60  ;;  %v3884_v62 = vadd.f32 %v3876_v30, %v12851_v14  ;;  %v3923_v49 = vld [vmem:[#allocation17] sm:$0xf] }
0x1185   :  { %v3883_v44 = vadd.f32 %v3875_v5, %v12842_v17  ;;  %v4014_v7 = vpop.f32.mrb[34].mxu0  ;;  %v4085_v34 = vpop.f32.mrb[38].mxu1  ;;  %v3885_v50 = vadd.f32 %v3877_v15, %v12848_v32  ;;  %v3906_v5 = vrot.slane %v13104_v6, 7 }
0x1186   :  { %v8387_v21 = vmul.f32 -1.442695, %v3882_v57  ;;  %v4016_v47 = vpop.f32.mrb[35].mxu0  ;;  %v4087_v38 = vpop.f32.mrb[39].mxu1 }
0x1187   :  { %v8388_v40 = vmul.f32 -1.442695, %v3883_v44  ;;  %v8389_v35 = vmul.f32 -1.442695, %v3885_v50  ;;  %v3928_v44 = vrot.slane %v3923_v49, %v12404_v20 }
0x1188   :  { %11141 = vpow2.f32 %v8387_v21  ;;  %v3932_v21 = vrot.slane %v3923_v49, %v12407_v22 }
0x1189   :  { %11143 = vpow2.f32 %v8388_v40  ;;  %v13255_v15 = vadd.f32 %v4014_v7, %v3928_v44  ;;  %v3936_v7 = vrot.slane %v3923_v49, %v12422_v48 }
0x118a   :  { %11145 = vpow2.f32 %v8389_v35  ;;  %v13257_v50 = vadd.f32 %v4016_v47, %v3932_v21 }
0x118b   :  { %11147 = vtanh.f32 %v3884_v62 }
0x1192   :  { %v11142_v54 = vpop.eup %11141 }
0x1193   :  { %v11144_v25 = vpop.eup %11143  ;;  %v3889_v60 = vadd.f32 1.0, %v11142_v54 }
0x1194   :  { %v3895_v17 = vadd.f32 1.0, %v11144_v25  ;;  %v11146_v10 = vpop.eup %11145  ;;  %v3940_v25 = vrot.slane %v3923_v49, %v12412_v28 }
0x1195   :  { %11149 = vrcp.f32 %v3889_v60  ;;  %v11148_v41 = vpop.eup %11147  ;;  %v3902_v27 = vadd.f32 1.0, %v11146_v10 }
0x1196   :  { %11151 = vrcp.f32 %v3895_v17 }
0x1197   :  { %11153 = vrcp.f32 %v3902_v27 }
0x119f   :  { %v11150_v46 = vpop.eup %11149 }
0x11a0   :  { %v11152_v57 = vpop.eup %11151  ;;  %v3909_v32 = vmul.f32 %v11150_v46, %v11148_v41  ;;  %v13262_v41 = vadd.f32 %v4087_v38, %v3940_v25 }
0x11a1   :  { %v3908_v14 = vmul.f32 %v11152_v57, %v3906_v5  ;;  %v11154_v46 = vpop.eup %11153 }
0x11a3   :  { %v3910_v40 = vadd.f32 %v3909_v32, %v3908_v14  ;;  %v13266_v32 = vadd.f32 %v4085_v34, %v3936_v7 }
0x11a5   :  { %11155 = vtanh.f32 %v3910_v40  ;;  %v4220_v30 = vpop.f32.mrb[36].mxu0  ;;  %v4291_v35 = vpop.f32.mrb[40].mxu1 }
0x11a6   :  { %v4296_v62 = vadd.f32 %v4220_v30, %v13255_v15  ;;  %v4222_v6 = vpop.f32.mrb[37].mxu0  ;;  %v4293_v54 = vpop.f32.mrb[41].mxu1  ;;  %v4298_v44 = vadd.f32 %v4291_v35, %v13266_v32 }
0x11a7   :  { %v4297_v60 = vadd.f32 %v4222_v6, %v13257_v50  ;;  %v4299_v47 = vadd.f32 %v4293_v54, %v13262_v41 }
0x11a8   :  { %v8392_v17 = vmul.f32 -1.442695, %v4296_v62 }
0x11a9   :  { %v8393_v10 = vmul.f32 -1.442695, %v4297_v60  ;;  %v8394_v27 = vmul.f32 -1.442695, %v4299_v47 }
0x11aa   :  { %11157 = vpow2.f32 %v8392_v17 }
0x11ab   :  { %11159 = vpow2.f32 %v8393_v10 }
0x11ac   :  { %11161 = vpow2.f32 %v8394_v27 }
0x11ad   :  { %11163 = vtanh.f32 %v4298_v44 }
0x11af   :  { %v11156_v5 = vpop.eup %11155 }
0x11b0   :  { %v3912_v57 = vmul.f32 %v11156_v5, %v11154_v46 }
0x11b2   :  { %3913 = vst [vmem:[#allocation3] sm:$0x80] %v3912_v57 }
0x11b4   :  { %v11158_v14 = vpop.eup %11157 }
0x11b5   :  { %v11160_v21 = vpop.eup %11159  ;;  %v4303_v40 = vadd.f32 1.0, %v11158_v14 }
0x11b6   :  { %v4309_v38 = vadd.f32 1.0, %v11160_v21  ;;  %v11162_v49 = vpop.eup %11161 }
0x11b7   :  { %11165 = vrcp.f32 %v4303_v40  ;;  %v11164_v30 = vpop.eup %11163  ;;  %v4316_v25 = vadd.f32 1.0, %v11162_v49 }
0x11b8   :  { %11167 = vrcp.f32 %v4309_v38 }
0x11b9   :  { %11169 = vrcp.f32 %v4316_v25 }
0x11c1   :  { %v11166_v62 = vpop.eup %11165 }
0x11c2   :  { %v11168_v6 = vpop.eup %11167  ;;  %v4320_v54 = vmul.f32 %v11166_v62, %v11164_v30 }
0x11c3   :  { %v4319_v34 = vmul.f32 0.0, %v11168_v6  ;;  %v11170_v35 = vpop.eup %11169 }
0x11c5   :  { %v13269_v60 = vadd.f32 %v4320_v54, %v4319_v34 }
0x11c7   :  { %11171 = vtanh.f32 %v13269_v60 }
0x11d1   :  { %v11172_v17 = vpop.eup %11171 }
0x11d2   :  { %v4323_v10 = vmul.f32 %v11172_v17, %v11170_v35 }
0x11d4   :  { %4324 = vst [vmem:[#allocation4] sm:$0x1] %v4323_v10  ;;  %4390 = vmatmul.mubr.f32.vlgmr.msra.gmra.mrb[38].mxu0 %v4323_v10  ;;  %4461 = vmatmul.mubr.f32.vlgmr.msra.gmra.mrb[42].mxu1 %v4323_v10 }
0x11d5   :  { %10133 = vmatpush1.bf16.msra.mxu0 %v13112_v33  ;;  %10165 = vmatpush1.bf16.msra.mxu1 %v13114_v45 }
0x11d6   :  { %10135 = vmatprep.subr.bf16.mxu0 %v13118_v11  ;;  %10167 = vmatprep.subr.bf16.mxu1 %v13120_v23 }
0x11d7   :  { %4578 = vmatprep.mubr.f32.mxu0 %v11951_v0  ;;  %4649 = vmatprep.mubr.f32.mxu1 %v11951_v0 }
0x11d9   :  { %10137 = vmatpush1.bf16.msra.mxu0 %v13128_v51  ;;  %10169 = vmatpush1.bf16.msra.mxu1 %v13130_v2 }
0x11da   :  { %10139 = vmatprep.subr.bf16.mxu0 %v13134_v59  ;;  %10171 = vmatprep.subr.bf16.mxu1 %v13136_v61 }
0x11dd   :  { %10141 = vmatpush1.bf16.msra.mxu0 %v13142_v39  ;;  %10173 = vmatpush1.bf16.msra.mxu1 %v13144_v24 }
0x11de   :  { %10143 = vmatprep.subr.bf16.mxu0 %v13148_v53  ;;  %10175 = vmatprep.subr.bf16.mxu1 %v13150_v37 }
0x11e1   :  { %10145 = vmatpush1.bf16.msra.mxu0 %v13154_v29  ;;  %10177 = vmatpush1.bf16.msra.mxu1 %v13156_v42 }
0x11e2   :  { %10147 = vmatprep.subr.bf16.mxu0 %v13160_v19  ;;  %10179 = vmatprep.subr.bf16.mxu1 %v13162_v55 }
0x11e5   :  { %10149 = vmatpush1.bf16.msra.mxu0 %v13166_v58  ;;  %10181 = vmatpush1.bf16.msra.mxu1 %v13168_v3 }
0x11e6   :  { %10151 = vmatprep.subr.bf16.mxu0 %v13172_v16  ;;  %10183 = vmatprep.subr.bf16.mxu1 %v13174_v31 }
0x11e9   :  { %10153 = vmatpush1.bf16.msra.mxu0 %v13178_v43  ;;  %10185 = vmatpush1.bf16.msra.mxu1 %v13180_v4 }
0x11ea   :  { %10155 = vmatprep.subr.bf16.mxu0 %v13184_v12  ;;  %10187 = vmatprep.subr.bf16.mxu1 %v13186_v63 }
0x11ed   :  { %10157 = vmatpush1.bf16.msra.mxu0 %v13190_v56  ;;  %10189 = vmatpush1.bf16.msra.mxu1 %v13192_v36 }
0x11ee   :  { %10159 = vmatprep.subr.bf16.mxu0 %v13196_v8  ;;  %10191 = vmatprep.subr.bf16.mxu1 %v13198_v13 }
0x11f1   :  { %10161 = vmatpush1.bf16.msra.mxu0 %v13202_v1  ;;  %10193 = vmatpush1.bf16.msra.mxu1 %v13204_v26 }
0x11f2   :  { %10195 = vmatprep.subr.bf16.mxu0 %v13107_v9  ;;  %10227 = vmatprep.subr.bf16.mxu1 %v13109_v52 }
0x12a7   :  { %v4391_v7 = vpop.f32.mrb[38].mxu0  ;;  %v4462_v47 = vpop.f32.mrb[42].mxu1 }
0x12a8   :  { %v4471_v46 = vrot.slane %v4391_v7, 7  ;;  %v4393_v5 = vpop.f32.mrb[39].mxu0  ;;  %v4464_v57 = vpop.f32.mrb[43].mxu1  ;;  %v4473_v30 = vrot.slane %v4462_v47, 7 }
0x12a9   :  { %v4472_v27 = vrot.slane %v4393_v5, 7  ;;  %v4474_v38 = vrot.slane %v4464_v57, 7 }
0x12aa   :  { %v4479_v44 = vadd.f32 %v4471_v46, %v13255_v15  ;;  %v4481_v6 = vadd.f32 %v4473_v30, %v13266_v32  ;;  %v4503_v46 = vrot.slane %v13269_v60, 7 }
0x12ab   :  { %v4480_v14 = vadd.f32 %v4472_v27, %v13257_v50  ;;  %v4482_v49 = vadd.f32 %v4474_v38, %v13262_v41 }
0x12ac   :  { %v8395_v21 = vmul.f32 -1.442695, %v4479_v44 }
0x12ad   :  { %v8396_v40 = vmul.f32 -1.442695, %v4480_v14  ;;  %v8397_v62 = vmul.f32 -1.442695, %v4482_v49 }
0x12ae   :  { %11173 = vpow2.f32 %v8395_v21 }
0x12af   :  { %11175 = vpow2.f32 %v8396_v40 }
0x12b0   :  { %11177 = vpow2.f32 %v8397_v62 }
0x12b1   :  { %11179 = vtanh.f32 %v4481_v6 }
0x12b8   :  { %v11174_v54 = vpop.eup %11173 }
0x12b9   :  { %v11176_v25 = vpop.eup %11175  ;;  %v4486_v34 = vadd.f32 1.0, %v11174_v54 }
0x12ba   :  { %v4492_v35 = vadd.f32 1.0, %v11176_v25  ;;  %v11178_v17 = vpop.eup %11177 }
0x12bb   :  { %11181 = vrcp.f32 %v4486_v34  ;;  %v11180_v10 = vpop.eup %11179  ;;  %v4499_v27 = vadd.f32 1.0, %v11178_v17 }
0x12bc   :  { %11183 = vrcp.f32 %v4492_v35 }
0x12bd   :  { %11185 = vrcp.f32 %v4499_v27 }
0x12c5   :  { %v11182_v7 = vpop.eup %11181 }
0x12c6   :  { %v11184_v5 = vpop.eup %11183  ;;  %v4506_v57 = vmul.f32 %v11182_v7, %v11180_v10 }
0x12c7   :  { %v4505_v47 = vmul.f32 %v11184_v5, %v4503_v46  ;;  %v11186_v14 = vpop.eup %11185 }
0x12c9   :  { %v13311_v44 = vadd.f32 %v4506_v57, %v4505_v47 }
0x12cb   :  { %11187 = vtanh.f32 %v13311_v44 }
0x12d5   :  { %v11188_v21 = vpop.eup %11187 }
0x12d6   :  { %v4509_v40 = vmul.f32 %v11188_v21, %v11186_v14 }
0x12d8   :  { %4510 = vst [vmem:[#allocation4] sm:$0x2] %v4509_v40  ;;  %v4512_v38 = vrot.slane %v4509_v40, 1 }
0x12da   :  { %4579 = vmatmul.mubr.f32.vlgmr.msra.gmra.mrb[40].mxu0 %v4512_v38  ;;  %4650 = vmatmul.mubr.f32.vlgmr.msra.gmra.mrb[44].mxu1 %v4512_v38 }
0x12db   :  { %10197 = vmatpush1.bf16.msra.mxu0 %v13112_v33  ;;  %10229 = vmatpush1.bf16.msra.mxu1 %v13114_v45 }
0x12dc   :  { %10199 = vmatprep.subr.bf16.mxu0 %v13118_v11  ;;  %10231 = vmatprep.subr.bf16.mxu1 %v13120_v23 }
0x12dd   :  { %4767 = vmatprep.mubr.f32.mxu0 %v11951_v0  ;;  %4838 = vmatprep.mubr.f32.mxu1 %v11951_v0 }
0x12df   :  { %10201 = vmatpush1.bf16.msra.mxu0 %v13128_v51  ;;  %10233 = vmatpush1.bf16.msra.mxu1 %v13130_v2 }
0x12e0   :  { %10203 = vmatprep.subr.bf16.mxu0 %v13134_v59  ;;  %10235 = vmatprep.subr.bf16.mxu1 %v13136_v61 }
0x12e3   :  { %10205 = vmatpush1.bf16.msra.mxu0 %v13142_v39  ;;  %10237 = vmatpush1.bf16.msra.mxu1 %v13144_v24 }
0x12e4   :  { %10207 = vmatprep.subr.bf16.mxu0 %v13148_v53  ;;  %10239 = vmatprep.subr.bf16.mxu1 %v13150_v37 }
0x12e7   :  { %10209 = vmatpush1.bf16.msra.mxu0 %v13154_v29  ;;  %10241 = vmatpush1.bf16.msra.mxu1 %v13156_v42 }
0x12e8   :  { %10211 = vmatprep.subr.bf16.mxu0 %v13160_v19  ;;  %10243 = vmatprep.subr.bf16.mxu1 %v13162_v55 }
0x12eb   :  { %10213 = vmatpush1.bf16.msra.mxu0 %v13166_v58  ;;  %10245 = vmatpush1.bf16.msra.mxu1 %v13168_v3 }
0x12ec   :  { %10215 = vmatprep.subr.bf16.mxu0 %v13172_v16  ;;  %10247 = vmatprep.subr.bf16.mxu1 %v13174_v31 }
0x12ef   :  { %10217 = vmatpush1.bf16.msra.mxu0 %v13178_v43  ;;  %10249 = vmatpush1.bf16.msra.mxu1 %v13180_v4 }
0x12f0   :  { %10219 = vmatprep.subr.bf16.mxu0 %v13184_v12  ;;  %10251 = vmatprep.subr.bf16.mxu1 %v13186_v63 }
0x12f3   :  { %10221 = vmatpush1.bf16.msra.mxu0 %v13190_v56  ;;  %10253 = vmatpush1.bf16.msra.mxu1 %v13192_v36 }
0x12f4   :  { %10223 = vmatprep.subr.bf16.mxu0 %v13196_v8  ;;  %10255 = vmatprep.subr.bf16.mxu1 %v13198_v13 }
0x12f7   :  { %10225 = vmatpush1.bf16.msra.mxu0 %v13202_v1  ;;  %10257 = vmatpush1.bf16.msra.mxu1 %v13204_v26 }
0x12f8   :  { %10259 = vmatprep.subr.bf16.mxu0 %v13107_v9  ;;  %10291 = vmatprep.subr.bf16.mxu1 %v13109_v52 }
0x13ad   :  { %v4580_v60 = vpop.f32.mrb[40].mxu0  ;;  %v4651_v49 = vpop.f32.mrb[44].mxu1 }
0x13ae   :  { %v4660_v30 = vrot.slane %v4580_v60, 6  ;;  %v4582_v62 = vpop.f32.mrb[41].mxu0  ;;  %v4653_v6 = vpop.f32.mrb[45].mxu1  ;;  %v4662_v46 = vrot.slane %v4651_v49, 6 }
0x13af   :  { %v4661_v54 = vrot.slane %v4582_v62, 6  ;;  %v4663_v10 = vrot.slane %v4653_v6, 6 }
0x13b0   :  { %v4668_v25 = vadd.f32 %v4660_v30, %v13255_v15  ;;  %v4670_v57 = vadd.f32 %v4662_v46, %v13266_v32  ;;  %v4692_v30 = vrot.slane %v13311_v44, 7 }
0x13b1   :  { %v4669_v34 = vadd.f32 %v4661_v54, %v13257_v50  ;;  %v4671_v7 = vadd.f32 %v4663_v10, %v13262_v41 }
0x13b2   :  { %v8398_v35 = vmul.f32 -1.442695, %v4668_v25 }
0x13b3   :  { %v8399_v17 = vmul.f32 -1.442695, %v4669_v34  ;;  %v8400_v5 = vmul.f32 -1.442695, %v4671_v7 }
0x13b4   :  { %11189 = vpow2.f32 %v8398_v35 }
0x13b5   :  { %11191 = vpow2.f32 %v8399_v17 }
0x13b6   :  { %11193 = vpow2.f32 %v8400_v5 }
0x13b7   :  { %11195 = vtanh.f32 %v4670_v57 }
0x13be   :  { %v11190_v27 = vpop.eup %11189 }
0x13bf   :  { %v11192_v47 = vpop.eup %11191  ;;  %v4675_v14 = vadd.f32 1.0, %v11190_v27 }
0x13c0   :  { %v4681_v21 = vadd.f32 1.0, %v11192_v47  ;;  %v11194_v40 = vpop.eup %11193 }
0x13c1   :  { %11197 = vrcp.f32 %v4675_v14  ;;  %v11196_v38 = vpop.eup %11195  ;;  %v4688_v54 = vadd.f32 1.0, %v11194_v40 }
0x13c2   :  { %11199 = vrcp.f32 %v4681_v21 }
0x13c3   :  { %11201 = vrcp.f32 %v4688_v54 }
0x13cb   :  { %v11198_v60 = vpop.eup %11197 }
0x13cc   :  { %v11200_v62 = vpop.eup %11199  ;;  %v4695_v6 = vmul.f32 %v11198_v60, %v11196_v38 }
0x13cd   :  { %v4694_v49 = vmul.f32 %v11200_v62, %v4692_v30  ;;  %v11202_v34 = vpop.eup %11201 }
0x13cf   :  { %v13353_v25 = vadd.f32 %v4695_v6, %v4694_v49 }
0x13d1   :  { %11203 = vtanh.f32 %v13353_v25 }
0x13db   :  { %v11204_v35 = vpop.eup %11203 }
0x13dc   :  { %v4698_v17 = vmul.f32 %v11204_v35, %v11202_v34 }
0x13de   :  { %4699 = vst [vmem:[#allocation4] sm:$0x4] %v4698_v17  ;;  %v4701_v10 = vrot.slane %v4698_v17, 2 }
0x13e0   :  { %4768 = vmatmul.mubr.f32.vlgmr.msra.gmra.mrb[42].mxu0 %v4701_v10  ;;  %4839 = vmatmul.mubr.f32.vlgmr.msra.gmra.mrb[46].mxu1 %v4701_v10 }
0x13e1   :  { %10261 = vmatpush1.bf16.msra.mxu0 %v13112_v33  ;;  %10293 = vmatpush1.bf16.msra.mxu1 %v13114_v45 }
0x13e2   :  { %10263 = vmatprep.subr.bf16.mxu0 %v13118_v11  ;;  %10295 = vmatprep.subr.bf16.mxu1 %v13120_v23 }
0x13e3   :  { %4956 = vmatprep.mubr.f32.mxu0 %v11951_v0  ;;  %5027 = vmatprep.mubr.f32.mxu1 %v11951_v0 }
0x13e5   :  { %10265 = vmatpush1.bf16.msra.mxu0 %v13128_v51  ;;  %10297 = vmatpush1.bf16.msra.mxu1 %v13130_v2 }
0x13e6   :  { %10267 = vmatprep.subr.bf16.mxu0 %v13134_v59  ;;  %10299 = vmatprep.subr.bf16.mxu1 %v13136_v61 }
0x13e9   :  { %10269 = vmatpush1.bf16.msra.mxu0 %v13142_v39  ;;  %10301 = vmatpush1.bf16.msra.mxu1 %v13144_v24 }
0x13ea   :  { %10271 = vmatprep.subr.bf16.mxu0 %v13148_v53  ;;  %10303 = vmatprep.subr.bf16.mxu1 %v13150_v37 }
0x13ed   :  { %10273 = vmatpush1.bf16.msra.mxu0 %v13154_v29  ;;  %10305 = vmatpush1.bf16.msra.mxu1 %v13156_v42 }
0x13ee   :  { %10275 = vmatprep.subr.bf16.mxu0 %v13160_v19  ;;  %10307 = vmatprep.subr.bf16.mxu1 %v13162_v55 }
0x13f1   :  { %10277 = vmatpush1.bf16.msra.mxu0 %v13166_v58  ;;  %10309 = vmatpush1.bf16.msra.mxu1 %v13168_v3 }
0x13f2   :  { %10279 = vmatprep.subr.bf16.mxu0 %v13172_v16  ;;  %10311 = vmatprep.subr.bf16.mxu1 %v13174_v31 }
0x13f5   :  { %10281 = vmatpush1.bf16.msra.mxu0 %v13178_v43  ;;  %10313 = vmatpush1.bf16.msra.mxu1 %v13180_v4 }
0x13f6   :  { %10283 = vmatprep.subr.bf16.mxu0 %v13184_v12  ;;  %10315 = vmatprep.subr.bf16.mxu1 %v13186_v63 }
0x13f9   :  { %10285 = vmatpush1.bf16.msra.mxu0 %v13190_v56  ;;  %10317 = vmatpush1.bf16.msra.mxu1 %v13192_v36 }
0x13fa   :  { %10287 = vmatprep.subr.bf16.mxu0 %v13196_v8  ;;  %10319 = vmatprep.subr.bf16.mxu1 %v13198_v13 }
0x13fd   :  { %10289 = vmatpush1.bf16.msra.mxu0 %v13202_v1  ;;  %10321 = vmatpush1.bf16.msra.mxu1 %v13204_v26 }
0x13fe   :  { %10323 = vmatprep.subr.bf16.mxu0 %v13107_v9  ;;  %10355 = vmatprep.subr.bf16.mxu1 %v13109_v52 }
0x14b3   :  { %v4769_v44 = vpop.f32.mrb[42].mxu0  ;;  %v4840_v7 = vpop.f32.mrb[46].mxu1 }
0x14b4   :  { %v4849_v46 = vrot.slane %v4769_v44, 5  ;;  %v4771_v5 = vpop.f32.mrb[43].mxu0  ;;  %v4842_v57 = vpop.f32.mrb[47].mxu1  ;;  %v4851_v30 = vrot.slane %v4840_v7, 5 }
0x14b5   :  { %v4850_v27 = vrot.slane %v4771_v5, 5  ;;  %v4852_v38 = vrot.slane %v4842_v57, 5 }
0x14b6   :  { %v4857_v47 = vadd.f32 %v4849_v46, %v13255_v15  ;;  %v4859_v6 = vadd.f32 %v4851_v30, %v13266_v32  ;;  %v4881_v46 = vrot.slane %v13353_v25, 7 }
0x14b7   :  { %v4858_v14 = vadd.f32 %v4850_v27, %v13257_v50  ;;  %v4860_v60 = vadd.f32 %v4852_v38, %v13262_v41 }
0x14b8   :  { %v8401_v21 = vmul.f32 -1.442695, %v4857_v47 }
0x14b9   :  { %v8402_v40 = vmul.f32 -1.442695, %v4858_v14  ;;  %v8403_v62 = vmul.f32 -1.442695, %v4860_v60 }
0x14ba   :  { %11205 = vpow2.f32 %v8401_v21 }
0x14bb   :  { %11207 = vpow2.f32 %v8402_v40 }
0x14bc   :  { %11209 = vpow2.f32 %v8403_v62 }
0x14bd   :  { %11211 = vtanh.f32 %v4859_v6 }
0x14c4   :  { %v11206_v54 = vpop.eup %11205 }
0x14c5   :  { %v11208_v49 = vpop.eup %11207  ;;  %v4864_v34 = vadd.f32 1.0, %v11206_v54 }
0x14c6   :  { %v4870_v35 = vadd.f32 1.0, %v11208_v49  ;;  %v11210_v17 = vpop.eup %11209 }
0x14c7   :  { %11213 = vrcp.f32 %v4864_v34  ;;  %v11212_v10 = vpop.eup %11211  ;;  %v4877_v27 = vadd.f32 1.0, %v11210_v17 }
0x14c8   :  { %11215 = vrcp.f32 %v4870_v35 }
0x14c9   :  { %11217 = vrcp.f32 %v4877_v27 }
0x14d1   :  { %v11214_v44 = vpop.eup %11213 }
0x14d2   :  { %v11216_v5 = vpop.eup %11215  ;;  %v4884_v57 = vmul.f32 %v11214_v44, %v11212_v10 }
0x14d3   :  { %v4883_v7 = vmul.f32 %v11216_v5, %v4881_v46  ;;  %v11218_v14 = vpop.eup %11217 }
0x14d5   :  { %v13395_v47 = vadd.f32 %v4884_v57, %v4883_v7 }
0x14d7   :  { %11219 = vtanh.f32 %v13395_v47 }
0x14e1   :  { %v11220_v21 = vpop.eup %11219 }
0x14e2   :  { %v4887_v40 = vmul.f32 %v11220_v21, %v11218_v14 }
0x14e4   :  { %4888 = vst [vmem:[#allocation4] sm:$0x8] %v4887_v40  ;;  %v4890_v38 = vrot.slane %v4887_v40, 3 }
0x14e6   :  { %4957 = vmatmul.mubr.f32.vlgmr.msra.gmra.mrb[44].mxu0 %v4890_v38  ;;  %5028 = vmatmul.mubr.f32.vlgmr.msra.gmra.mrb[48].mxu1 %v4890_v38 }
0x14e7   :  { %10325 = vmatpush1.bf16.msra.mxu0 %v13112_v33  ;;  %10357 = vmatpush1.bf16.msra.mxu1 %v13114_v45 }
0x14e8   :  { %10327 = vmatprep.subr.bf16.mxu0 %v13118_v11  ;;  %10359 = vmatprep.subr.bf16.mxu1 %v13120_v23 }
0x14e9   :  { %5145 = vmatprep.mubr.f32.mxu0 %v11951_v0  ;;  %5216 = vmatprep.mubr.f32.mxu1 %v11951_v0 }
0x14eb   :  { %10329 = vmatpush1.bf16.msra.mxu0 %v13128_v51  ;;  %10361 = vmatpush1.bf16.msra.mxu1 %v13130_v2 }
0x14ec   :  { %10331 = vmatprep.subr.bf16.mxu0 %v13134_v59  ;;  %10363 = vmatprep.subr.bf16.mxu1 %v13136_v61 }
0x14ef   :  { %10333 = vmatpush1.bf16.msra.mxu0 %v13142_v39  ;;  %10365 = vmatpush1.bf16.msra.mxu1 %v13144_v24 }
0x14f0   :  { %10335 = vmatprep.subr.bf16.mxu0 %v13148_v53  ;;  %10367 = vmatprep.subr.bf16.mxu1 %v13150_v37 }
0x14f3   :  { %10337 = vmatpush1.bf16.msra.mxu0 %v13154_v29  ;;  %10369 = vmatpush1.bf16.msra.mxu1 %v13156_v42 }
0x14f4   :  { %10339 = vmatprep.subr.bf16.mxu0 %v13160_v19  ;;  %10371 = vmatprep.subr.bf16.mxu1 %v13162_v55 }
0x14f7   :  { %10341 = vmatpush1.bf16.msra.mxu0 %v13166_v58  ;;  %10373 = vmatpush1.bf16.msra.mxu1 %v13168_v3 }
0x14f8   :  { %10343 = vmatprep.subr.bf16.mxu0 %v13172_v16  ;;  %10375 = vmatprep.subr.bf16.mxu1 %v13174_v31 }
0x14fb   :  { %10345 = vmatpush1.bf16.msra.mxu0 %v13178_v43  ;;  %10377 = vmatpush1.bf16.msra.mxu1 %v13180_v4 }
0x14fc   :  { %10347 = vmatprep.subr.bf16.mxu0 %v13184_v12  ;;  %10379 = vmatprep.subr.bf16.mxu1 %v13186_v63 }
0x14ff   :  { %10349 = vmatpush1.bf16.msra.mxu0 %v13190_v56  ;;  %10381 = vmatpush1.bf16.msra.mxu1 %v13192_v36 }
0x1500   :  { %10351 = vmatprep.subr.bf16.mxu0 %v13196_v8  ;;  %10383 = vmatprep.subr.bf16.mxu1 %v13198_v13 }
0x1503   :  { %10353 = vmatpush1.bf16.msra.mxu0 %v13202_v1  ;;  %10385 = vmatpush1.bf16.msra.mxu1 %v13204_v26 }
0x1504   :  { %10387 = vmatprep.subr.bf16.mxu0 %v13107_v9  ;;  %10419 = vmatprep.subr.bf16.mxu1 %v13109_v52 }
0x15b9   :  { %v4958_v25 = vpop.f32.mrb[44].mxu0  ;;  %v5029_v60 = vpop.f32.mrb[48].mxu1 }
0x15ba   :  { %v5038_v30 = vrot.slane %v4958_v25, 4  ;;  %v4960_v62 = vpop.f32.mrb[45].mxu0  ;;  %v5031_v6 = vpop.f32.mrb[49].mxu1  ;;  %v5040_v46 = vrot.slane %v5029_v60, 4 }
0x15bb   :  { %v5039_v54 = vrot.slane %v4960_v62, 4  ;;  %v5041_v10 = vrot.slane %v5031_v6, 4 }
0x15bc   :  { %v5046_v49 = vadd.f32 %v5038_v30, %v13255_v15  ;;  %v5048_v57 = vadd.f32 %v5040_v46, %v13266_v32  ;;  %v5070_v30 = vrot.slane %v13395_v47, 7 }
0x15bd   :  { %v5047_v34 = vadd.f32 %v5039_v54, %v13257_v50  ;;  %v5049_v44 = vadd.f32 %v5041_v10, %v13262_v41 }
0x15be   :  { %v8404_v35 = vmul.f32 -1.442695, %v5046_v49 }
0x15bf   :  { %v8405_v17 = vmul.f32 -1.442695, %v5047_v34  ;;  %v8406_v5 = vmul.f32 -1.442695, %v5049_v44 }
0x15c0   :  { %11221 = vpow2.f32 %v8404_v35 }
0x15c1   :  { %11223 = vpow2.f32 %v8405_v17 }
0x15c2   :  { %11225 = vpow2.f32 %v8406_v5 }
0x15c3   :  { %11227 = vtanh.f32 %v5048_v57 }
0x15ca   :  { %v11222_v27 = vpop.eup %11221 }
0x15cb   :  { %v11224_v7 = vpop.eup %11223  ;;  %v5053_v14 = vadd.f32 1.0, %v11222_v27 }
0x15cc   :  { %v5059_v21 = vadd.f32 1.0, %v11224_v7  ;;  %v11226_v40 = vpop.eup %11225 }
0x15cd   :  { %11229 = vrcp.f32 %v5053_v14  ;;  %v11228_v38 = vpop.eup %11227  ;;  %v5066_v54 = vadd.f32 1.0, %v11226_v40 }
0x15ce   :  { %11231 = vrcp.f32 %v5059_v21 }
0x15cf   :  { %11233 = vrcp.f32 %v5066_v54 }
0x15d7   :  { %v11230_v25 = vpop.eup %11229 }
0x15d8   :  { %v11232_v62 = vpop.eup %11231  ;;  %v5073_v6 = vmul.f32 %v11230_v25, %v11228_v38 }
0x15d9   :  { %v5072_v60 = vmul.f32 %v11232_v62, %v5070_v30  ;;  %v11234_v34 = vpop.eup %11233 }
0x15db   :  { %v13437_v49 = vadd.f32 %v5073_v6, %v5072_v60 }
0x15dd   :  { %11235 = vtanh.f32 %v13437_v49 }
0x15e7   :  { %v11236_v35 = vpop.eup %11235 }
0x15e8   :  { %v5076_v17 = vmul.f32 %v11236_v35, %v11234_v34 }
0x15ea   :  { %5077 = vst [vmem:[#allocation4] sm:$0x10] %v5076_v17  ;;  %v5079_v10 = vrot.slane %v5076_v17, 4 }
0x15ec   :  { %5146 = vmatmul.mubr.f32.vlgmr.msra.gmra.mrb[46].mxu0 %v5079_v10  ;;  %5217 = vmatmul.mubr.f32.vlgmr.msra.gmra.mrb[50].mxu1 %v5079_v10  ;;  %v5259_v10 = vrot.slane %v13437_v49, 7 }
0x15ed   :  { %10389 = vmatpush1.bf16.msra.mxu0 %v13112_v33  ;;  %10421 = vmatpush1.bf16.msra.mxu1 %v13114_v45 }
0x15ee   :  { %10391 = vmatprep.subr.bf16.mxu0 %v13118_v11  ;;  %10423 = vmatprep.subr.bf16.mxu1 %v13120_v23 }
0x15ef   :  { %5334 = vmatprep.mubr.f32.mxu0 %v11951_v0  ;;  %5405 = vmatprep.mubr.f32.mxu1 %v11951_v0 }
0x15f1   :  { %10393 = vmatpush1.bf16.msra.mxu0 %v13128_v51  ;;  %10425 = vmatpush1.bf16.msra.mxu1 %v13130_v2 }
0x15f2   :  { %10395 = vmatprep.subr.bf16.mxu0 %v13134_v59  ;;  %10427 = vmatprep.subr.bf16.mxu1 %v13136_v61 }
0x15f5   :  { %10397 = vmatpush1.bf16.msra.mxu0 %v13142_v39  ;;  %10429 = vmatpush1.bf16.msra.mxu1 %v13144_v24 }
0x15f6   :  { %10399 = vmatprep.subr.bf16.mxu0 %v13148_v53  ;;  %10431 = vmatprep.subr.bf16.mxu1 %v13150_v37 }
0x15f9   :  { %10401 = vmatpush1.bf16.msra.mxu0 %v13154_v29  ;;  %10433 = vmatpush1.bf16.msra.mxu1 %v13156_v42 }
0x15fa   :  { %10403 = vmatprep.subr.bf16.mxu0 %v13160_v19  ;;  %10435 = vmatprep.subr.bf16.mxu1 %v13162_v55 }
0x15fd   :  { %10405 = vmatpush1.bf16.msra.mxu0 %v13166_v58  ;;  %10437 = vmatpush1.bf16.msra.mxu1 %v13168_v3 }
0x15fe   :  { %10407 = vmatprep.subr.bf16.mxu0 %v13172_v16  ;;  %10439 = vmatprep.subr.bf16.mxu1 %v13174_v31 }
0x1601   :  { %10409 = vmatpush1.bf16.msra.mxu0 %v13178_v43  ;;  %10441 = vmatpush1.bf16.msra.mxu1 %v13180_v4 }
0x1602   :  { %10411 = vmatprep.subr.bf16.mxu0 %v13184_v12  ;;  %10443 = vmatprep.subr.bf16.mxu1 %v13186_v63 }
0x1605   :  { %10413 = vmatpush1.bf16.msra.mxu0 %v13190_v56  ;;  %10445 = vmatpush1.bf16.msra.mxu1 %v13192_v36 }
0x1606   :  { %10415 = vmatprep.subr.bf16.mxu0 %v13196_v8  ;;  %10447 = vmatprep.subr.bf16.mxu1 %v13198_v13 }
0x1609   :  { %10417 = vmatpush1.bf16.msra.mxu0 %v13202_v1  ;;  %10449 = vmatpush1.bf16.msra.mxu1 %v13204_v26 }
0x160a   :  { %10451 = vmatprep.subr.bf16.mxu0 %v13107_v9  ;;  %10483 = vmatprep.subr.bf16.mxu1 %v13109_v52 }
0x16bf   :  { %v5147_v47 = vpop.f32.mrb[46].mxu0  ;;  %v5218_v44 = vpop.f32.mrb[50].mxu1 }
0x16c0   :  { %v5227_v46 = vrot.slane %v5147_v47, 3  ;;  %v5149_v5 = vpop.f32.mrb[47].mxu0  ;;  %v5220_v57 = vpop.f32.mrb[51].mxu1  ;;  %v5229_v9 = vrot.slane %v5218_v44, 3 }
0x16c1   :  { %v5228_v27 = vrot.slane %v5149_v5, 3  ;;  %v5230_v38 = vrot.slane %v5220_v57, 3 }
0x16c2   :  { %v5235_v7 = vadd.f32 %v5227_v46, %v13255_v15  ;;  %v5237_v52 = vadd.f32 %v5229_v9, %v13266_v32 }
0x16c3   :  { %v5236_v14 = vadd.f32 %v5228_v27, %v13257_v50  ;;  %v5238_v25 = vadd.f32 %v5230_v38, %v13262_v41  ;;  %v5741_v38 = vld [vmem:[#allocation22] sm:$0xff] }
0x16c4   :  { %v8407_v21 = vmul.f32 -1.442695, %v5235_v7 }
0x16c5   :  { %v8408_v40 = vmul.f32 -1.442695, %v5236_v14  ;;  %v8409_v30 = vmul.f32 -1.442695, %v5238_v25  ;;  %v5742_v25 = vld [vmem:[#allocation22 + $0x8] sm:$0xff] }
0x16c6   :  { %11237 = vpow2.f32 %v8407_v21 }
0x16c7   :  { %11239 = vpow2.f32 %v8408_v40  ;;  %v5647_v40 = vld [vmem:[#allocation19 + $0x8] sm:$0xff] }
0x16c8   :  { %11241 = vpow2.f32 %v8409_v30 }
0x16c9   :  { %11243 = vtanh.f32 %v5237_v52 }
0x16d0   :  { %v11238_v62 = vpop.eup %11237 }
0x16d1   :  { %v11240_v6 = vpop.eup %11239  ;;  %v5242_v54 = vadd.f32 1.0, %v11238_v62  ;;  %v10539_v62 = vpack.c.bf16 %v5742_v25, %v5741_v38  ;;  %v5837_v38 = vld [vmem:[#allocation25 + $0x8] sm:$0xff] }
0x16d2   :  { %v5248_v60 = vadd.f32 1.0, %v11240_v6  ;;  %v11242_v34 = vpop.eup %11241  ;;  %v5648_v6 = vld [vmem:[#allocation19 + $0x10] sm:$0xff] }
0x16d3   :  { %11245 = vrcp.f32 %v5242_v54  ;;  %v11244_v35 = vpop.eup %11243  ;;  %v5255_v5 = vadd.f32 1.0, %v11242_v34  ;;  %v5743_v34 = vld [vmem:[#allocation22 + $0x10] sm:$0xff] }
0x16d4   :  { %11247 = vrcp.f32 %v5248_v60  ;;  %v5649_v60 = vld [vmem:[#allocation19 + $0x18] sm:$0xff] }
0x16d5   :  { %11249 = vrcp.f32 %v5255_v5  ;;  %v5745_v5 = vld [vmem:[#allocation22 + $0x20] sm:$0xff] }
0x16dd   :  { %v11246_v17 = vpop.eup %11245 }
0x16de   :  { %v11248_v47 = vpop.eup %11247  ;;  %v5262_v46 = vmul.f32 %v11246_v17, %v11244_v35  ;;  %v5744_v35 = vld [vmem:[#allocation22 + $0x18] sm:$0xff]  ;;  %v10518_v17 = vpack.c.bf16 %v5649_v60, %v5648_v6  ;;  %v5942_v6 = vld [vmem:[#allocation28 + $0x60] sm:$0xff] }
0x16df   :  { %v5261_v44 = vmul.f32 %v11248_v47, %v5259_v10  ;;  %v11250_v27 = vpop.eup %11249  ;;  %v10542_v10 = vpack.c.bf16 %v5744_v35, %v5743_v34  ;;  %v5650_v47 = vld [vmem:[#allocation19 + $0x20] sm:$0xff] }
0x16e0   :  { %v5930_v60 = vld [vmem:[#allocation28] sm:$0xff]  ;;  %v5941_v34 = vld [vmem:[#allocation28 + $0x58] sm:$0xff] }
0x16e1   :  { %v13479_v57 = vadd.f32 %v5262_v46, %v5261_v44  ;;  %v5651_v46 = vld [vmem:[#allocation19 + $0x28] sm:$0xff]  ;;  %v10588_v35 = vpack.c.bf16 %v5941_v34, %v5930_v60 }
0x16e2   :  { %v5746_v44 = vld [vmem:[#allocation22 + $0x28] sm:$0xff] }
0x16e3   :  { %11251 = vtanh.f32 %v13479_v57  ;;  %v5935_v34 = vld [vmem:[#allocation28 + $0x28] sm:$0xff] }
0x16ed   :  { %v11252_v7 = vpop.eup %11251 }
0x16ee   :  { %v5265_v14 = vmul.f32 %v11252_v7, %v11250_v27  ;;  %v10545_v27 = vpack.c.bf16 %v5746_v44, %v5745_v5  ;;  %v5652_v7 = vld [vmem:[#allocation19 + $0x30] sm:$0xff] }
0x16ef   :  { %v5944_v5 = vld [vmem:[#allocation28 + $0x70] sm:$0xff] }
0x16f0   :  { %5266 = vst [vmem:[#allocation4] sm:$0x20] %v5265_v14  ;;  %v5268_v21 = vrot.slane %v5265_v14, 5  ;;  %v5653_v14 = vld [vmem:[#allocation19 + $0x38] sm:$0xff] }
0x16f2   :  { %5335 = vmatmul.mubr.f32.vlgmr.msra.gmra.mrb[48].mxu0 %v5268_v21  ;;  %5406 = vmatmul.mubr.f32.vlgmr.msra.gmra.mrb[52].mxu1 %v5268_v21  ;;  %v5747_v21 = vld [vmem:[#allocation22 + $0x30] sm:$0xff] }
0x16f3   :  { %10453 = vmatpush1.bf16.msra.mxu0 %v13112_v33  ;;  %10485 = vmatpush1.bf16.msra.mxu1 %v13114_v45  ;;  %v13892_v33 = vmov 0.0|0.0  }
0x16f4   :  { %10455 = vmatprep.subr.bf16.mxu0 %v13118_v11  ;;  %10487 = vmatprep.subr.bf16.mxu1 %v13120_v23 }
0x16f5   :  { %5523 = vmatprep.mubr.f32.mxu0 %v11951_v0  ;;  %5594 = vmatprep.mubr.f32.mxu1 %v11951_v0 }
0x16f7   :  { %10457 = vmatpush1.bf16.msra.mxu0 %v13128_v51  ;;  %10489 = vmatpush1.bf16.msra.mxu1 %v13130_v2 }
0x16f8   :  { %10459 = vmatprep.subr.bf16.mxu0 %v13134_v59  ;;  %10491 = vmatprep.subr.bf16.mxu1 %v13136_v61 }
0x16fb   :  { %10461 = vmatpush1.bf16.msra.mxu0 %v13142_v39  ;;  %10493 = vmatpush1.bf16.msra.mxu1 %v13144_v24 }
0x16fc   :  { %10463 = vmatprep.subr.bf16.mxu0 %v13148_v53  ;;  %10495 = vmatprep.subr.bf16.mxu1 %v13150_v37 }
0x16ff   :  { %10465 = vmatpush1.bf16.msra.mxu0 %v13154_v29  ;;  %10497 = vmatpush1.bf16.msra.mxu1 %v13156_v42 }
0x1700   :  { %10467 = vmatprep.subr.bf16.mxu0 %v13160_v19  ;;  %10499 = vmatprep.subr.bf16.mxu1 %v13162_v55 }
0x1703   :  { %10469 = vmatpush1.bf16.msra.mxu0 %v13166_v58  ;;  %10501 = vmatpush1.bf16.msra.mxu1 %v13168_v3 }
0x1704   :  { %10471 = vmatprep.subr.bf16.mxu0 %v13172_v16  ;;  %10503 = vmatprep.subr.bf16.mxu1 %v13174_v31 }
0x1707   :  { %10473 = vmatpush1.bf16.msra.mxu0 %v13178_v43  ;;  %10505 = vmatpush1.bf16.msra.mxu1 %v13180_v4 }
0x1708   :  { %10475 = vmatprep.subr.bf16.mxu0 %v13184_v12  ;;  %10507 = vmatprep.subr.bf16.mxu1 %v13186_v63  ;;  %v5448_v63 = vrot.slane %v13479_v57, 7  ;;  %v10521_v57 = vpack.c.bf16 %v5651_v46, %v5650_v47  ;;  %v5933_v46 = vld [vmem:[#allocation28 + $0x18] sm:$0xff] }
0x1709   :  { %v10590_v44 = vpack.c.bf16 %v5944_v5, %v5933_v46 }
0x170b   :  { %10477 = vmatpush1.bf16.msra.mxu0 %v13190_v56  ;;  %10509 = vmatpush1.bf16.msra.mxu1 %v13192_v36 }
0x170c   :  { %10479 = vmatprep.subr.bf16.mxu0 %v13196_v8  ;;  %10511 = vmatprep.subr.bf16.mxu1 %v13198_v13 }
0x170f   :  { %10481 = vmatpush1.bf16.msra.mxu0 %v13202_v1  ;;  %10513 = vmatpush1.bf16.msra.mxu1 %v13204_v26  ;;  %v5646_v26 = vld [vmem:[#allocation19] sm:$0xff] }
0x1710   :  { %10514 = vmatprep.subr.bf16.mxu0 %v13892_v33  ;;  %10538 = vmatprep.subr.bf16.mxu1 %v13892_v33  ;;  %v10515_v52 = vpack.c.bf16 %v5647_v40, %v5646_v26  ;;  %v5645_v26 = vld [vmem:[#allocation2] sm:$0xff]  ;;  %v5836_v40 = vld [vmem:[#allocation25] sm:$0xff] }
0x1711   :  { %v10563_v25 = vpack.c.bf16 %v5837_v38, %v5836_v40 }
0x17c5   :  { %v5336_v45 = vpop.f32.mrb[48].mxu0  ;;  %v5407_v11 = vpop.f32.mrb[52].mxu1 }
0x17c6   :  { %v5416_v23 = vrot.slane %v5336_v45, 2  ;;  %v5338_v51 = vpop.f32.mrb[49].mxu0  ;;  %v5409_v2 = vpop.f32.mrb[53].mxu1  ;;  %v5418_v42 = vrot.slane %v5407_v11, 2  ;;  %v5748_v45 = vld [vmem:[#allocation22 + $0x38] sm:$0xff]  ;;  %v10524_v11 = vpack.c.bf16 %v5653_v14, %v5652_v7  ;;  %v5844_v14 = vld [vmem:[#allocation25 + $0x40] sm:$0xff] }
0x17c7   :  { %v5417_v59 = vrot.slane %v5338_v51, 2  ;;  %v5419_v37 = vrot.slane %v5409_v2, 2  ;;  %v5654_v51 = vld [vmem:[#allocation19 + $0x40] sm:$0xff]  ;;  %v5655_v2 = vld [vmem:[#allocation19 + $0x48] sm:$0xff] }
0x17c8   :  { %v5424_v61 = vadd.f32 %v5416_v23, %v13255_v15  ;;  %v5426_v55 = vadd.f32 %v5418_v42, %v13266_v32  ;;  %v10548_v23 = vpack.c.bf16 %v5748_v45, %v5747_v21  ;;  %v5752_v42 = vld [vmem:[#allocation22 + $0x58] sm:$0xff]  ;;  %v5845_v21 = vld [vmem:[#allocation25 + $0x48] sm:$0xff] }
0x17c9   :  { %v5425_v39 = vadd.f32 %v5417_v59, %v13257_v50  ;;  %v5427_v29 = vadd.f32 %v5419_v37, %v13262_v41  ;;  %v5749_v59 = vld [vmem:[#allocation22 + $0x40] sm:$0xff]  ;;  %v5657_v37 = vld [vmem:[#allocation19 + $0x58] sm:$0xff]  ;;  %v10575_v45 = vpack.c.bf16 %v5845_v21, %v5844_v14 }
0x17ca   :  { %v8410_v24 = vmul.f32 -1.442695, %v5424_v61  ;;  %v5750_v61 = vld [vmem:[#allocation22 + $0x48] sm:$0xff]  ;;  %v5948_v14 = vld [vmem:[#allocation28 + $0x90] sm:$0xff] }
0x17cb   :  { %v8411_v53 = vmul.f32 -1.442695, %v5425_v39  ;;  %v8412_v19 = vmul.f32 -1.442695, %v5427_v29  ;;  %v10527_v39 = vpack.c.bf16 %v5655_v2, %v5654_v51  ;;  %v5751_v29 = vld [vmem:[#allocation22 + $0x50] sm:$0xff]  ;;  %v5848_v2 = vld [vmem:[#allocation25 + $0x60] sm:$0xff] }
0x17cc   :  { %11253 = vpow2.f32 %v8410_v24  ;;  %v10551_v24 = vpack.c.bf16 %v5750_v61, %v5749_v59  ;;  %v5849_v59 = vld [vmem:[#allocation25 + $0x68] sm:$0xff] }
0x17cd   :  { %11255 = vpow2.f32 %v8411_v53  ;;  %v5656_v53 = vld [vmem:[#allocation19 + $0x50] sm:$0xff]  ;;  %v10581_v61 = vpack.c.bf16 %v5849_v59, %v5848_v2  ;;  %v5950_v2 = vld [vmem:[#allocation28 + $0xa0] sm:$0xff] }
0x17ce   :  { %11257 = vpow2.f32 %v8412_v19  ;;  %v10530_v19 = vpack.c.bf16 %v5657_v37, %v5656_v53  ;;  %v6444_v37 = vld [vmem:[#allocation29 + $0x28] sm:$0xff] }
0x17cf   :  { %11259 = vtanh.f32 %v5426_v55  ;;  %v10554_v55 = vpack.c.bf16 %v5752_v42, %v5751_v29 }
0x17d6   :  { %v11254_v58 = vpop.eup %11253 }
0x17d7   :  { %v11256_v3 = vpop.eup %11255  ;;  %v5431_v16 = vadd.f32 1.0, %v11254_v58  ;;  %v5658_v58 = vld [vmem:[#allocation19 + $0x60] sm:$0xff] }
0x17d8   :  { %v5437_v31 = vadd.f32 1.0, %v11256_v3  ;;  %v11258_v43 = vpop.eup %11257  ;;  %v5659_v3 = vld [vmem:[#allocation19 + $0x68] sm:$0xff] }
0x17d9   :  { %11261 = vrcp.f32 %v5431_v16  ;;  %v11260_v4 = vpop.eup %11259  ;;  %v5444_v8 = vadd.f32 1.0, %v11258_v43  ;;  %v5753_v16 = vld [vmem:[#allocation22 + $0x60] sm:$0xff]  ;;  %v10533_v43 = vpack.c.bf16 %v5659_v3, %v5658_v58 }
0x17da   :  { %11263 = vrcp.f32 %v5437_v31  ;;  %v5754_v31 = vld [vmem:[#allocation22 + $0x68] sm:$0xff] }
0x17db   :  { %11265 = vrcp.f32 %v5444_v8 }
0x17e3   :  { %v11262_v12 = vpop.eup %11261 }
0x17e4   :  { %v11264_v56 = vpop.eup %11263  ;;  %v5451_v36 = vmul.f32 %v11262_v12, %v11260_v4  ;;  %v10557_v4 = vpack.c.bf16 %v5754_v31, %v5753_v16  ;;  %v5660_v12 = vld [vmem:[#allocation19 + $0x70] sm:$0xff] }
0x17e5   :  { %v5450_v13 = vmul.f32 %v11264_v56, %v5448_v63  ;;  %v11266_v49 = vpop.eup %11265  ;;  %v5661_v63 = vld [vmem:[#allocation19 + $0x78] sm:$0xff] }
0x17e6   :  { %v5755_v56 = vld [vmem:[#allocation22 + $0x70] sm:$0xff]  ;;  %v10536_v8 = vpack.c.bf16 %v5661_v63, %v5660_v12 }
0x17e7   :  { %v13521_v1 = vadd.f32 %v5451_v36, %v5450_v13  ;;  %v5756_v36 = vld [vmem:[#allocation22 + $0x78] sm:$0xff] }
0x17e8   :  { %v10560_v13 = vpack.c.bf16 %v5756_v36, %v5755_v56 }
0x17e9   :  { %11267 = vtanh.f32 %v13521_v1 }
0x17f3   :  { %v11268_v9 = vpop.eup %11267 }
0x17f4   :  { %v5454_v30 = vmul.f32 %v11268_v9, %v11266_v49  ;;  %v5740_v49 = vld [vmem:[#allocation3] sm:$0xff]  ;;  %v5838_v9 = vld [vmem:[#allocation25 + $0x10] sm:$0xff] }
0x17f6   :  { %5455 = vst [vmem:[#allocation4] sm:$0x40] %v5454_v30  ;;  %v5457_v54 = vrot.slane %v5454_v30, 6  ;;  %v5839_v30 = vld [vmem:[#allocation25 + $0x18] sm:$0xff] }
0x17f8   :  { %5524 = vmatmul.mubr.f32.vlgmr.msra.gmra.mrb[50].mxu0 %v5457_v54  ;;  %5595 = vmatmul.mubr.f32.vlgmr.msra.gmra.mrb[54].mxu1 %v5457_v54 }
0x17f9   :  { %10516 = vmatpush3.bf16.msra.mxu0 %v10515_v52  ;;  %10540 = vmatpush3.bf16.msra.mxu1 %v10539_v62  ;;  %v10566_v52 = vpack.c.bf16 %v5839_v30, %v5838_v9  ;;  %v5931_v62 = vld [vmem:[#allocation28 + $0x8] sm:$0xff]  ;;  %v8416_v9 = vld [vmem:[#allocation20] ss:$0 sm:$0xff] }
0x17fa   :  { %10517 = vmatprep.subr.bf16.mxu0 %v13892_v33  ;;  %10541 = vmatprep.subr.bf16.mxu1 %v13892_v33  ;;  %v10586_v54 = vpack.c.bf16 %v5942_v6, %v5931_v62  ;;  %v5932_v62 = vld [vmem:[#allocation28 + $0x10] sm:$0xff]  ;;  %v5943_v6 = vld [vmem:[#allocation28 + $0x68] sm:$0xff] }
0x17fb   :  { %8757 = vmatprep.mubr.msk.f32.mxu0 %vm11953_vm2, %v11951_v0  ;;  %8792 = vmatprep.mubr.msk.f32.mxu1 %vm11953_vm2, %v11951_v0  ;;  %v10592_v5 = vpack.c.bf16 %v5943_v6, %v5932_v62 }
0x17fd   :  { %10519 = vmatpush3.bf16.msra.mxu0 %v10518_v17  ;;  %10543 = vmatpush3.bf16.msra.mxu1 %v10542_v10  ;;  %v5840_v17 = vld [vmem:[#allocation25 + $0x20] sm:$0xff]  ;;  %v5841_v10 = vld [vmem:[#allocation25 + $0x28] sm:$0xff] }
0x17fe   :  { %10520 = vmatprep.subr.bf16.mxu0 %v13892_v33  ;;  %10544 = vmatprep.subr.bf16.mxu1 %v13892_v33  ;;  %v10569_v47 = vpack.c.bf16 %v5841_v10, %v5840_v17 }
0x1801   :  { %10522 = vmatpush3.bf16.msra.mxu0 %v10521_v57  ;;  %10546 = vmatpush3.bf16.msra.mxu1 %v10545_v27  ;;  %v5842_v57 = vld [vmem:[#allocation25 + $0x30] sm:$0xff]  ;;  %v5843_v27 = vld [vmem:[#allocation25 + $0x38] sm:$0xff] }
0x1802   :  { %10523 = vmatprep.subr.bf16.mxu0 %v13892_v33  ;;  %10547 = vmatprep.subr.bf16.mxu1 %v13892_v33  ;;  %v10572_v7 = vpack.c.bf16 %v5843_v27, %v5842_v57  ;;  %v5945_v27 = vld [vmem:[#allocation28 + $0x78] sm:$0xff] }
0x1805   :  { %10525 = vmatpush3.bf16.msra.mxu0 %v10524_v11  ;;  %10549 = vmatpush3.bf16.msra.mxu1 %v10548_v23  ;;  %v5846_v11 = vld [vmem:[#allocation25 + $0x50] sm:$0xff]  ;;  %v5847_v23 = vld [vmem:[#allocation25 + $0x58] sm:$0xff] }
0x1806   :  { %10526 = vmatprep.subr.bf16.mxu0 %v13892_v33  ;;  %10550 = vmatprep.subr.bf16.mxu1 %v13892_v33  ;;  %v10578_v51 = vpack.c.bf16 %v5847_v23, %v5846_v11  ;;  %v5936_v11 = vld [vmem:[#allocation28 + $0x30] sm:$0xff]  ;;  %v5947_v23 = vld [vmem:[#allocation28 + $0x88] sm:$0xff] }
0x1807   :  { %v10600_v59 = vpack.c.bf16 %v5947_v23, %v5936_v11  ;;  %v8418_v11 = vld [vmem:[#allocation26] ss:$0 sm:$0xff]  ;;  %v13635_v23 = vld [vmem:[#allocation31 + $0x8] sm:$0x7] }
0x1809   :  { %10528 = vmatpush3.bf16.msra.mxu0 %v10527_v39  ;;  %10552 = vmatpush3.bf16.msra.mxu1 %v10551_v24  ;;  %v5850_v39 = vld [vmem:[#allocation25 + $0x70] sm:$0xff]  ;;  %v5851_v24 = vld [vmem:[#allocation25 + $0x78] sm:$0xff] }
0x180a   :  { %10529 = vmatprep.subr.bf16.mxu0 %v13892_v33  ;;  %10553 = vmatprep.subr.bf16.mxu1 %v13892_v33  ;;  %v10584_v53 = vpack.c.bf16 %v5851_v24, %v5850_v39  ;;  %v5938_v39 = vld [vmem:[#allocation28 + $0x40] sm:$0xff]  ;;  %v5949_v24 = vld [vmem:[#allocation28 + $0x98] sm:$0xff] }
0x180d   :  { %10531 = vmatpush3.bf16.msra.mxu0 %v10530_v19  ;;  %10555 = vmatpush3.bf16.msra.mxu1 %v10554_v55 }
0x180e   :  { %10532 = vmatprep.subr.bf16.mxu0 %v13892_v33  ;;  %10556 = vmatprep.subr.bf16.mxu1 %v13892_v33 }
0x1811   :  { %10534 = vmatpush3.bf16.msra.mxu0 %v10533_v43  ;;  %10558 = vmatpush3.bf16.msra.mxu1 %v10557_v4 }
0x1812   :  { %10535 = vmatprep.subr.bf16.mxu0 %v13892_v33  ;;  %10559 = vmatprep.subr.bf16.mxu1 %v13892_v33 }
0x1815   :  { %10537 = vmatpush3.bf16.msra.mxu0 %v10536_v8  ;;  %10561 = vmatpush3.bf16.msra.mxu1 %v10560_v13 }
0x1816   :  { %10562 = vmatprep.subr.bf16.mxu0 %v13892_v33  ;;  %10587 = vmatprep.subr.bf16.mxu1 %v10586_v54 }
0x1818   :  { %8758 = vmatmul.mubr.f32.vlgmr.msra.gmra.mrb[52].mxu0 %v5645_v26  ;;  %8793 = vmatmul.mubr.f32.vlgmr.msra.gmra.mrb[56].mxu1 %v5740_v49 }
0x1819   :  { %6078 = vmatprep.mubr.f32.mxu1 %v11951_v0  ;;  %8827 = vmatprep.mubr.msk.f32.mxu0 %vm11953_vm2, %v11951_v0 }
0x181a   :  { %10564 = vmatpush3.bf16.msra.mxu0 %v10563_v25  ;;  %10589 = vmatpush1.bf16.msra.mxu1 %v10588_v35  ;;  %v5637_v25 = vrot.slane %v13521_v1, 7  ;;  %v5946_v35 = vld [vmem:[#allocation28 + $0x80] sm:$0xff] }
0x181b   :  { %10565 = vmatprep.subr.bf16.mxu0 %v13892_v33  ;;  %10591 = vmatprep.subr.bf16.mxu1 %v10590_v44  ;;  %v10594_v57 = vpack.c.bf16 %v5946_v35, %v5935_v34  ;;  %v5934_v1 = vld [vmem:[#allocation28 + $0x20] sm:$0xff] }
0x181c   :  { %v10596_v21 = vpack.c.bf16 %v5945_v27, %v5934_v1  ;;  %v13600_v35 = vld [vmem:[%s13921_s15] sm:$0xff] }
0x181d   :  { %v5963_v1 = vrot.slane %v13600_v35, %v12407_v22 }
0x181e   :  { %10567 = vmatpush3.bf16.msra.mxu0 %v10566_v52 }
0x181f   :  { %10568 = vmatprep.subr.bf16.mxu0 %v13892_v33 }
0x1822   :  { %10570 = vmatpush3.bf16.msra.mxu0 %v10569_v47 }
0x1823   :  { %10571 = vmatprep.subr.bf16.mxu0 %v13892_v33 }
0x1826   :  { %10573 = vmatpush3.bf16.msra.mxu0 %v10572_v7  ;;  %v5937_v7 = vld [vmem:[#allocation28 + $0x38] sm:$0xff] }
0x1827   :  { %10574 = vmatprep.subr.bf16.mxu0 %v13892_v33 }
0x182a   :  { %10576 = vmatpush3.bf16.msra.mxu0 %v10575_v45  ;;  %v10598_v45 = vpack.c.bf16 %v5948_v14, %v5937_v7  ;;  %v13625_v7 = vld [vmem:[#allocation31] sm:$0xff]  ;;  %v5967_v14 = vrot.slane %v13600_v35, %v12422_v48 }
0x182b   :  { %10577 = vmatprep.subr.bf16.mxu0 %v13892_v33 }
0x182e   :  { %10579 = vmatpush3.bf16.msra.mxu0 %v10578_v51  ;;  %v5939_v51 = vld [vmem:[#allocation28 + $0x48] sm:$0xff] }
0x182f   :  { %10580 = vmatprep.subr.bf16.mxu0 %v13892_v33 }
0x1832   :  { %10582 = vmatpush3.bf16.msra.mxu0 %v10581_v61  ;;  %v10602_v61 = vpack.c.bf16 %v5950_v2, %v5939_v51  ;;  %v13637_v51 = vld [vmem:[#allocation35 + $0x80] sm:$0xff] }
0x1833   :  { %10583 = vmatprep.subr.bf16.mxu0 %v13892_v33 }
0x1836   :  { %10585 = vmatpush3.bf16.msra.mxu0 %v10584_v53 }
0x1837   :  { %6655 = vmatprep.subr.mxu0 %v6444_v37 }
0x18cb   :  { %v5525_v29 = vpop.f32.mrb[50].mxu0  ;;  %v5596_v42 = vpop.f32.mrb[54].mxu1 }
0x18cc   :  { %v5605_v19 = vrot.slane %v5525_v29, 1  ;;  %v5527_v55 = vpop.f32.mrb[51].mxu0  ;;  %v5598_v58 = vpop.f32.mrb[55].mxu1  ;;  %v5607_v56 = vrot.slane %v5596_v42, 1  ;;  %v10604_v29 = vpack.c.bf16 %v5949_v24, %v5938_v39  ;;  %v13647_v24 = vld [vmem:[#allocation35 + $0x88] sm:$0xff] }
0x18cd   :  { %v5606_v3 = vrot.slane %v5527_v55, 1  ;;  %v5608_v12 = vrot.slane %v5598_v58, 1  ;;  %v5951_v55 = vld [vmem:[#allocation28 + $0xa8] sm:$0xff] }
0x18ce   :  { %v5613_v16 = vadd.f32 %v5605_v19, %v13255_v15  ;;  %v5615_v8 = vadd.f32 %v5607_v56, %v13266_v32  ;;  %v5940_v19 = vld [vmem:[#allocation28 + $0x50] sm:$0xff]  ;;  %v6448_v56 = vld [vmem:[#allocation29 + $0x48] sm:$0xff] }
0x18cf   :  { %v5614_v31 = vadd.f32 %v5606_v3, %v13257_v50  ;;  %v5616_v63 = vadd.f32 %v5608_v12, %v13262_v41  ;;  %v10607_v58 = vpack.c.bf16 %v5951_v55, %v5940_v19  ;;  %v8417_v3 = vld [vmem:[#allocation23] ss:$0 sm:$0xff]  ;;  %v6443_v12 = vld [vmem:[#allocation29 + $0x20] sm:$0xff]  ;;  %v6457_v55 = vrot.slane %v13625_v7, %v12404_v20 }
0x18d0   :  { %v8413_v43 = vmul.f32 -1.442695, %v5613_v16  ;;  %v6440_v16 = vld [vmem:[#allocation29 + $0x8] sm:$0xff] }
0x18d1   :  { %v8414_v4 = vmul.f32 -1.442695, %v5614_v31  ;;  %v8415_v36 = vmul.f32 -1.442695, %v5616_v63  ;;  %v6442_v63 = vld [vmem:[#allocation29 + $0x18] sm:$0xff] }
0x18d2   :  { %11269 = vpow2.f32 %v8413_v43  ;;  %v6439_v43 = vld [vmem:[#allocation29] sm:$0xff] }
0x18d3   :  { %11271 = vpow2.f32 %v8414_v4 }
0x18d4   :  { %11273 = vpow2.f32 %v8415_v36 }
0x18d5   :  { %11275 = vtanh.f32 %v5615_v8  ;;  %v6441_v8 = vld [vmem:[#allocation29 + $0x10] sm:$0xff] }
0x18dc   :  { %v11270_v13 = vpop.eup %11269 }
0x18dd   :  { %v11272_v26 = vpop.eup %11271  ;;  %v5620_v49 = vadd.f32 1.0, %v11270_v13  ;;  %v6447_v13 = vld [vmem:[#allocation29 + $0x40] sm:$0xff] }
0x18de   :  { %v5626_v40 = vadd.f32 1.0, %v11272_v26  ;;  %v11274_v15 = vpop.eup %11273  ;;  %v6446_v26 = vld [vmem:[#allocation29 + $0x38] sm:$0xff] }
0x18df   :  { %11277 = vrcp.f32 %v5620_v49  ;;  %v11276_v50 = vpop.eup %11275  ;;  %v5633_v52 = vadd.f32 1.0, %v11274_v15  ;;  %v6445_v49 = vld [vmem:[#allocation29 + $0x30] sm:$0xff] }
0x18e0   :  { %11279 = vrcp.f32 %v5626_v40  ;;  %v6449_v40 = vld [vmem:[#allocation29 + $0x50] sm:$0xff] }
0x18e1   :  { %11281 = vrcp.f32 %v5633_v52  ;;  %v6950_v15 = vld [vmem:[#allocation32 + $0x8] sm:$0xff] }
0x18e9   :  { %v11278_v38 = vpop.eup %11277 }
0x18ea   :  { %v11280_v30 = vpop.eup %11279  ;;  %v5640_v41 = vmul.f32 %v11278_v38, %v11276_v50  ;;  %v6949_v50 = vld [vmem:[#allocation32] sm:$0xff]  ;;  %v6952_v38 = vld [vmem:[#allocation32 + $0x18] sm:$0xff] }
0x18eb   :  { %v5639_v32 = vmul.f32 %v11280_v30, %v5637_v25  ;;  %v5735_v54 = vpop.f32.mrb[52].mxu0  ;;  %v5830_v60 = vpop.f32.mrb[56].mxu1  ;;  %v6951_v25 = vld [vmem:[#allocation32 + $0x10] sm:$0xff]  ;;  %v6956_v30 = vld [vmem:[#allocation32 + $0x38] sm:$0xff] }
0x18ec   :  { %v5736_v17 = vadd.f32 %v8416_v9, %v5735_v54  ;;  %v8759_v10 = vpop.f32.mrb[53].mxu0  ;;  %v8794_v47 = vpop.f32.mrb[57].mxu1  ;;  %v5831_v31 = vadd.f32 %v8417_v3, %v5830_v60  ;;  %v6954_v9 = vld [vmem:[#allocation32 + $0x28] sm:$0xff] }
0x18ed   :  { %v5641_v46 = vadd.f32 %v5640_v41, %v5639_v32  ;;  %v11282_v53 = vpop.eup %11281  ;;  %v13606_v10 = vsub.s32 5, %v12401_v18  ;;  %v13609_v47 = vsub.s32 6, %v12401_v18 }
0x18ee   :  { %v5739_v44 = vmax.f32 %v5736_v17, 0.0  ;;  %v5834_v36 = vmax.f32 %v5831_v31, 0.0  ;;  %v13603_v17 = vsub.s32 4, %v12401_v18  ;;  %v13665_v31 = vld [vmem:[#allocation35 + $0x8] sm:$0xff] }
0x18ef   :  { %11283 = vtanh.f32 %v5641_v46  ;;  %v13612_v46 = vsub.s32 7, %v12401_v18  ;;  %v5971_v18 = vrot.slane %v13600_v35, %v12412_v28 }
0x18f0   :  { %8419 = vmatmul.mubr.msk.f32.vlgmr.msra.gmra.mrb[58].mxu1 %vm2213_vm1, %v5739_v44  ;;  %v6473_v3 = vrot.slane %v13625_v7, %v13603_v17 }
0x18f1   :  { %10593 = vmatpush1.bf16.msra.mxu1 %v10592_v5  ;;  %6149 = vmatprep.mubr.f32.mxu1 %v11951_v0  ;;  %v13615_v5 = vld [vmem:[%s13921_s15 + $0x8] sm:$0x7] }
0x18f2   :  { %10595 = vmatprep.subr.bf16.mxu1 %v10594_v57  ;;  %v5959_v57 = vrot.slane %v13600_v35, %v12404_v20 }
0x18f4   :  { %8420 = vmatmul.mubr.msk.f32.vlgmr.msra.gmra.mrb[60].mxu1 %vm2213_vm1, %v5739_v44 }
0x18f5   :  { %10597 = vmatpush1.bf16.msra.mxu1 %v10596_v21  ;;  %6220 = vmatprep.mubr.f32.mxu1 %v11951_v0  ;;  %v5975_v21 = vrot.slane %v13600_v35, %v13603_v17 }
0x18f6   :  { %10599 = vmatprep.subr.bf16.mxu1 %v10598_v45  ;;  %v5979_v45 = vrot.slane %v13600_v35, %v13606_v10 }
0x18f8   :  { %8421 = vmatmul.mubr.msk.f32.vlgmr.msra.gmra.mrb[62].mxu1 %vm2213_vm1, %v5739_v44 }
0x18f9   :  { %v11284_v37 = vpop.eup %11283  ;;  %10601 = vmatpush1.bf16.msra.mxu1 %v10600_v59  ;;  %6291 = vmatprep.mubr.f32.mxu1 %v11951_v0  ;;  %v6955_v59 = vld [vmem:[#allocation32 + $0x30] sm:$0xff] }
0x18fa   :  { %v5643_v42 = vmul.f32 %v11284_v37, %v11282_v53  ;;  %10603 = vmatprep.subr.bf16.mxu1 %v10602_v61  ;;  %v5991_v61 = vrot.slane %v13615_v5, %v12404_v20  ;;  %v13649_v53 = vld [vmem:[#allocation35 + $0x180] sm:$0xff]  ;;  %v13651_v37 = vld [vmem:[#allocation35 + $0x188] sm:$0xff] }
0x18fc   :  { %5644 = vst [vmem:[#allocation4] sm:$0x80] %v5643_v42  ;;  %8422 = vmatmul.mubr.msk.f32.vlgmr.msra.gmra.mrb[64].mxu1 %vm2213_vm1, %v5739_v44 }
0x18fd   :  { %10605 = vmatpush1.bf16.msra.mxu1 %v10604_v29  ;;  %6362 = vmatprep.mubr.f32.mxu1 %v11951_v0 }
0x18fe   :  { %10606 = vmatprep.subr.bf16.mxu1 %v13892_v33 }
0x1900   :  { %8423 = vmatmul.mubr.msk.f32.vlgmr.msra.gmra.mrb[66].mxu1 %vm2213_vm1, %v5739_v44 }
0x1901   :  { %10608 = vmatpush3.bf16.msra.mxu1 %v10607_v58  ;;  %8834 = vmatprep.mubr.msk.f32.mxu1 %vm11953_vm2, %v11951_v0  ;;  %v6461_v58 = vrot.slane %v13625_v7, %v12407_v22 }
0x1902   :  { %6513 = vmatprep.subr.mxu1 %v6440_v16  ;;  %v13663_v16 = vld [vmem:[#allocation35] sm:$0xff] }
0x1903   :  { %v5835_v4 = vld [vmem:[#allocation4] sm:$0xff] }
0x1904   :  { %8835 = vmatmul.mubr.msk.f32.vlgmr.msra.gmra.mrb[68].mxu1 %vm2213_vm1, %v5739_v44  ;;  %8828 = vmatmul.mubr.f32.vlgmr.msra.gmra.mrb[54].mxu0 %v5835_v4 }
0x1905   :  { %6514 = vmatpush1.msra.mxu1 %v6439_v43  ;;  %6577 = vmatprep.mubr.f32.mxu1 %v11951_v0  ;;  %v13667_v43 = vld [vmem:[#allocation35 + $0x100] sm:$0xff] }
0x1906   :  { %6656 = vmatpush1.msra.mxu0 %v6443_v12  ;;  %6719 = vmatprep.mubr.f32.mxu0 %v11951_v0 }
0x1907   :  { %6584 = vmatprep.subr.mxu1 %v6442_v63  ;;  %6797 = vmatprep.subr.mxu0 %v6448_v56  ;;  %v6477_v56 = vrot.slane %v13625_v7, %v13606_v10 }
0x1908   :  { %8425 = vmatmul.mubr.msk.f32.vlgmr.msra.gmra.mrb[70].mxu1 %vm6509_vm3, %v5834_v36  ;;  %8427 = vmatmul.mubr.msk.f32.vlgmr.msra.gmra.mrb[56].mxu0 %vm6509_vm3, %v5834_v36 }
0x1909   :  { %6585 = vmatpush1.msra.mxu1 %v6441_v8  ;;  %6648 = vmatprep.mubr.f32.mxu1 %v11951_v0  ;;  %v6469_v8 = vrot.slane %v13625_v7, %v12412_v28 }
0x190a   :  { %6798 = vmatpush1.msra.mxu0 %v6447_v13  ;;  %6861 = vmatprep.mubr.f32.mxu0 %v11951_v0  ;;  %v13675_v13 = vld [vmem:[#allocation35 + $0x108] sm:$0xff] }
0x190b   :  { %6726 = vmatprep.subr.mxu1 %v6446_v26  ;;  %7022 = vmatprep.subr.mxu0 %v6950_v15  ;;  %v13677_v26 = vld [vmem:[#allocation35 + $0x90] sm:$0xff]  ;;  %v6493_v15 = vrot.slane %v13635_v23, %v12407_v22 }
0x190c   :  { %8426 = vmatmul.mubr.msk.f32.vlgmr.msra.gmra.mrb[72].mxu1 %vm6509_vm3, %v5834_v36  ;;  %8429 = vmatmul.mubr.msk.f32.vlgmr.msra.gmra.mrb[58].mxu0 %vm6509_vm3, %v5834_v36 }
0x190d   :  { %6727 = vmatpush1.msra.mxu1 %v6445_v49  ;;  %6790 = vmatprep.mubr.f32.mxu1 %v11951_v0  ;;  %v13679_v49 = vld [vmem:[#allocation35 + $0x98] sm:$0xff] }
0x190e   :  { %8837 = vmatprep.subr.mxu1 %v11951_v0  ;;  %7086 = vmatprep.mubr.f32.mxu0 %v11951_v0 }
0x190f   :  { %7023 = vmatpush1.msra.mxu0 %v6949_v50 }
0x1910   :  { %8428 = vmatmul.mubr.msk.f32.vlgmr.msra.gmra.mrb[74].mxu1 %vm6509_vm3, %v5834_v36  ;;  %7164 = vmatprep.subr.mxu0 %v6954_v9  ;;  %v6953_v9 = vld [vmem:[#allocation32 + $0x20] sm:$0xff] }
0x1911   :  { %8838 = vmatpush3.msra.mxu1 %v6449_v40  ;;  %8839 = vmatprep.mubr.msk.f32.mxu1 %vm11953_vm2, %v11951_v0  ;;  %v6489_v40 = vrot.slane %v13635_v23, %v12404_v20 }
0x1912   :  { %7093 = vmatprep.subr.mxu1 %v6952_v38  ;;  %v10643_v38 = vpack.c.bf16 %v13675_v13, %v13667_v43  ;;  %v7493_v43 = vld [vmem:[#allocation35 + $0xb8] sm:$0xff]  ;;  %v7524_v13 = vld [vmem:[#allocation35 + $0x1b0] sm:$0xff] }
0x1914   :  { %8840 = vmatmul.mubr.msk.f32.vlgmr.msra.gmra.mrb[76].mxu1 %vm6509_vm3, %v5834_v36  ;;  %v6465_v36 = vrot.slane %v13625_v7, %v12422_v48 }
0x1915   :  { %7157 = vmatprep.mubr.f32.mxu1 %v11951_v0  ;;  %7094 = vmatpush1.msra.mxu1 %v6951_v25 }
0x1916   :  { %7235 = vmatprep.subr.mxu1 %v6956_v30 }
0x19c3   :  { %v6080_v41 = vpop.f32.mrb[58].mxu1 }
0x19c4   :  { %v6082_v52 = vpop.f32.mrb[59].mxu1 }
0x19c7   :  { %v13587_v62 = vpop.f32.mrb[60].mxu1 }
0x19c8   :  { %v13589_v6 = vpop.f32.mrb[61].mxu1 }
0x19cb   :  { %v13591_v32 = vpop.f32.mrb[62].mxu1 }
0x19cc   :  { %v13593_v54 = vpop.f32.mrb[63].mxu1  ;;  %v6223_v50 = vadd.f32 %v13591_v32, %v5975_v21  ;;  %v6152_v32 = vadd.f32 %v13587_v62, %v5967_v14  ;;  %v6959_v62 = vld [vmem:[#allocation32 + $0x50] sm:$0xff] }
0x19cd   :  { %v7520_v14 = vld [vmem:[#allocation35 + $0x190] sm:$0xff] }
0x19cf   :  { %v13595_v60 = vpop.f32.mrb[64].mxu1 }
0x19d0   :  { %v13597_v34 = vpop.f32.mrb[65].mxu1 }
0x19d3   :  { %v13617_v44 = vpop.f32.mrb[66].mxu1 }
0x19d4   :  { %v13623_v27 = vpop.f32.mrb[67].mxu1 }
0x19d7   :  { %v13655_v42 = vpop.f32.mrb[68].mxu1  ;;  %v5925_v19 = vpop.f32.mrb[54].mxu0 }
0x19d8   :  { %v5926_v4 = vadd.f32 %v8418_v11, %v5925_v19  ;;  %v8836_v12 = vpop.f32.mrb[69].mxu1  ;;  %v8829_v63 = vpop.f32.mrb[55].mxu0  ;;  %v10611_v19 = vpack.c.bf16 %v13665_v31, %v13663_v16  ;;  %v7492_v16 = vld [vmem:[#allocation35 + $0xb0] sm:$0xff] }
0x19d9   :  { %v6081_v12 = vadd.f32 %v6080_v41, %v5959_v57  ;;  %v6083_v63 = vadd.f32 %v6082_v52, %v5963_v1  ;;  %v6958_v41 = vld [vmem:[#allocation32 + $0x48] sm:$0xff]  ;;  %v6225_v52 = vadd.f32 %v13593_v54, %v5979_v45  ;;  %v6154_v54 = vadd.f32 %v13589_v6, %v5971_v18 }
0x19da   :  { %v13689_v25 = vmax.f32 %v5926_v4, 0.0  ;;  %v10613_v4 = vpack.c.bf16 %v13679_v49, %v13677_v26 }
0x19db   :  { %v6579_v33 = vpop.f32.mrb[70].mxu1  ;;  %v6721_v29 = vpop.f32.mrb[56].mxu0 }
0x19dc   :  { %v6580_v2 = vadd.f32 %v6579_v33, %v6457_v55  ;;  %v6581_v30 = vpop.f32.mrb[71].mxu1  ;;  %v6722_v39 = vadd.f32 %v6721_v29, %v6473_v3  ;;  %v6723_v11 = vpop.f32.mrb[57].mxu0  ;;  %8431 = vmatmul.mubr.msk.f32.vlgmr.msra.gmra.mrb[60].mxu0 %vm6509_vm3, %v13689_v25  ;;  %8432 = vmatmul.mubr.msk.f32.vlgmr.msra.gmra.mrb[78].mxu1 %vm6509_vm3, %v13689_v25  ;;  %v6957_v29 = vld [vmem:[#allocation32 + $0x40] sm:$0xff] }
0x19dd   :  { %v6582_v57 = vadd.f32 %v6581_v30, %v6461_v58  ;;  %v6724_v1 = vadd.f32 %v6723_v11, %v6477_v56  ;;  %7165 = vmatpush1.msra.mxu0 %v6953_v9  ;;  %7228 = vmatprep.mubr.f32.mxu0 %v11951_v0 }
0x19de   :  { %v13709_v33 = vmul.f32 %v6580_v2, %v6081_v12  ;;  %v13711_v21 = vmul.f32 %v6722_v39, %v6223_v50  ;;  %7236 = vmatpush1.msra.mxu1 %v6955_v59  ;;  %7299 = vmatprep.mubr.f32.mxu1 %v11951_v0  ;;  %v7521_v2 = vld [vmem:[#allocation35 + $0x198] sm:$0xff]  ;;  %v6365_v59 = vadd.f32 %v13617_v44, %v5991_v61  ;;  %v7472_v44 = vld [vmem:[#allocation35 + $0x10] sm:$0xff] }
0x19df   :  { %v13718_v45 = vmul.f32 %v6582_v57, %v6083_v63  ;;  %v13720_v55 = vmul.f32 %v6724_v1, %v6225_v52  ;;  %v6650_v58 = vpop.f32.mrb[72].mxu1  ;;  %v6863_v3 = vpop.f32.mrb[58].mxu0  ;;  %7306 = vmatprep.subr.mxu0 %v6958_v41  ;;  %8842 = vmatprep.subr.mxu1 %v11951_v0  ;;  %v13922_v50 = vrot.slane %v13615_v5, %v12407_v22  ;;  %v7473_v61 = vld [vmem:[#allocation35 + $0x18] sm:$0xff]  ;;  %v7504_v63 = vld [vmem:[#allocation35 + $0x110] sm:$0xff]  ;;  %v7490_v52 = vld [vmem:[#allocation35 + $0xa0] sm:$0xff] }
0x19e0   :  { %v6651_v39 = vadd.f32 %v6650_v58, %v6465_v36  ;;  %v6652_v56 = vpop.f32.mrb[73].mxu1  ;;  %v6864_v6 = vadd.f32 %v6863_v3, %v6489_v40  ;;  %v6865_v18 = vpop.f32.mrb[59].mxu0  ;;  %8433 = vmatmul.mubr.msk.f32.vlgmr.msra.gmra.mrb[62].mxu0 %vm6509_vm3, %v13689_v25  ;;  %8434 = vmatmul.mubr.msk.f32.vlgmr.msra.gmra.mrb[80].mxu1 %vm6509_vm3, %v13689_v25  ;;  %v10645_v12 = vpack.c.bf16 %v7521_v2, %v7520_v14  ;;  %v7505_v41 = vld [vmem:[#allocation35 + $0x118] sm:$0xff]  ;;  %v7522_v58 = vld [vmem:[#allocation35 + $0x1a0] sm:$0xff]  ;;  %v7523_v3 = vld [vmem:[#allocation35 + $0x1a8] sm:$0xff] }
0x19e1   :  { %v6367_v9 = vadd.f32 %v13623_v27, %v13922_v50  ;;  %v6653_v30 = vadd.f32 %v6652_v56, %v6469_v8  ;;  %v6866_v11 = vadd.f32 %v6865_v18, %v6493_v15  ;;  %7307 = vmatpush1.msra.mxu0 %v6957_v29  ;;  %7370 = vmatprep.mubr.f32.mxu0 %v11951_v0  ;;  %v7491_v29 = vld [vmem:[#allocation35 + $0xa8] sm:$0xff] }
0x19e2   :  { %v13736_v36 = vmul.f32 %v6651_v39, %v6152_v32  ;;  %v13738_v40 = vmul.f32 %v6864_v6, %v6365_v59  ;;  %8843 = vmatpush3.msra.mxu1 %v6959_v62  ;;  %8844 = vmatprep.mubr.msk.f32.mxu1 %vm11953_vm2, %v11951_v0  ;;  %v6497_v57 = vrot.slane %v13635_v23, %v12422_v48  ;;  %v7475_v39 = vld [vmem:[#allocation35 + $0x28] sm:$0xff] }
0x19e3   :  { %v13742_v27 = vmul.f32 %v6653_v30, %v6154_v54  ;;  %v13744_v8 = vmul.f32 %v6866_v11, %v6367_v9  ;;  %v6792_v15 = vpop.f32.mrb[74].mxu1  ;;  %v13923_v1 = vpack.c.bf16 %v13647_v24, %v13637_v51  ;;  %v13924_v32 = vpack.c.bf16 %v13651_v37, %v13649_v53  ;;  %v7507_v6 = vld [vmem:[#allocation35 + $0x128] sm:$0xff]  ;;  %v7476_v30 = vld [vmem:[#allocation35 + $0x30] sm:$0xff]  ;;  %v7477_v11 = vld [vmem:[#allocation35 + $0x38] sm:$0xff] }
0x19e4   :  { %v13925_v54 = vrot.slane %v13600_v35, %v13609_v47  ;;  %v13926_v14 = vrot.slane %v13625_v7, %v13609_v47  ;;  %v6794_v2 = vpop.f32.mrb[75].mxu1  ;;  %8435 = vmatmul.mubr.msk.f32.vlgmr.msra.gmra.mrb[64].mxu0 %vm6509_vm3, %v13689_v25  ;;  %8845 = vmatmul.mubr.msk.f32.vlgmr.msra.gmra.mrb[82].mxu1 %vm6509_vm3, %v13689_v25  ;;  %v10615_v51 = vpack.c.bf16 %v7473_v61, %v7472_v44  ;;  %v7474_v25 = vld [vmem:[#allocation35 + $0x20] sm:$0xff] }
0x19e5   :  { %10610 = vmatprep.subr.bf16.mxu0 %v13923_v1  ;;  %10642 = vmatprep.subr.bf16.mxu1 %v13924_v32  ;;  %v13927_v24 = vrot.slane %v13600_v35, %v13612_v46  ;;  %v10647_v59 = vpack.c.bf16 %v7505_v41, %v7504_v63  ;;  %v10649_v35 = vpack.c.bf16 %v7523_v3, %v7522_v58  ;;  %v7508_v63 = vld [vmem:[#allocation35 + $0x130] sm:$0xff]  ;;  %v7509_v41 = vld [vmem:[#allocation35 + $0x138] sm:$0xff]  ;;  %v7478_v32 = vld [vmem:[#allocation35 + $0x40] sm:$0xff] }
0x19e6   :  { %v6294_v62 = vadd.f32 %v13595_v60, %v13925_v54  ;;  %v6793_v23 = vadd.f32 %v6792_v15, %v13926_v14  ;;  %v13928_v60 = vrot.slane %v13625_v7, %v13612_v46  ;;  %10612 = vmatpush3.bf16.msra.mxu0 %v10611_v19  ;;  %10644 = vmatpush3.bf16.msra.mxu1 %v10643_v38  ;;  %v7506_v7 = vld [vmem:[#allocation35 + $0x120] sm:$0xff]  ;;  %v7525_v38 = vld [vmem:[#allocation35 + $0x1b8] sm:$0xff]  ;;  %v7496_v14 = vld [vmem:[#allocation35 + $0xd0] sm:$0xff] }
0x19e7   :  { %v6296_v53 = vadd.f32 %v13597_v34, %v13927_v24  ;;  %10614 = vmatprep.subr.bf16.mxu0 %v10613_v4  ;;  %10646 = vmatprep.subr.bf16.mxu1 %v10645_v12  ;;  %v10617_v34 = vpack.c.bf16 %v7491_v29, %v7490_v52  ;;  %v6934_v19 = vpop.f32.mrb[76].mxu1  ;;  %v13929_v18 = vrot.slane %v13615_v5, %v12422_v48  ;;  %v7494_v52 = vld [vmem:[#allocation35 + $0xc0] sm:$0xff]  ;;  %v7495_v5 = vld [vmem:[#allocation35 + $0xc8] sm:$0xff] }
0x19e8   :  { %v6795_v37 = vadd.f32 %v6794_v2, %v13928_v60  ;;  %v13778_v56 = vmul.f32 %v6793_v23, %v6294_v62  ;;  %v6935_v9 = vadd.f32 %v6934_v19, %v6497_v57  ;;  %v8841_v26 = vpop.f32.mrb[77].mxu1  ;;  %v10619_v49 = vpack.c.bf16 %v7475_v39, %v7474_v25  ;;  %v7526_v15 = vld [vmem:[#allocation35 + $0x1c0] sm:$0xff]  ;;  %v7479_v29 = vld [vmem:[#allocation35 + $0x48] sm:$0xff]  ;;  %v7497_v23 = vld [vmem:[#allocation35 + $0xd8] sm:$0xff] }
0x19e9   :  { %v6436_v50 = vadd.f32 %v13655_v42, %v13929_v18  ;;  %v10651_v4 = vpack.c.bf16 %v7507_v6, %v7506_v7  ;;  %v10621_v61 = vpack.c.bf16 %v7493_v43, %v7492_v16  ;;  %v10653_v12 = vpack.c.bf16 %v7525_v38, %v7524_v13  ;;  %v7527_v42 = vld [vmem:[#allocation35 + $0x1c8] sm:$0xff]  ;;  %v7510_v54 = vld [vmem:[#allocation35 + $0x140] sm:$0xff]  ;;  %v7528_v2 = vld [vmem:[#allocation35 + $0x1d0] sm:$0xff] }
0x19ea   :  { %v13783_v31 = vmul.f32 %v6795_v37, %v6296_v53  ;;  %10616 = vmatpush3.bf16.msra.mxu0 %v10615_v51  ;;  %10648 = vmatpush3.bf16.msra.mxu1 %v10647_v59  ;;  %v10623_v57 = vpack.c.bf16 %v7477_v11, %v7476_v30  ;;  %v10655_v1 = vpack.c.bf16 %v7509_v41, %v7508_v63  ;;  %v7511_v62 = vld [vmem:[#allocation35 + $0x148] sm:$0xff]  ;;  %v7529_v51 = vld [vmem:[#allocation35 + $0x1d8] sm:$0xff]  ;;  %v7480_v60 = vld [vmem:[#allocation35 + $0x50] sm:$0xff] }
0x19eb   :  { %v13789_v44 = vmul.f32 %v6935_v9, %v6436_v50  ;;  %10618 = vmatprep.subr.bf16.mxu0 %v10617_v34  ;;  %10650 = vmatprep.subr.bf16.mxu1 %v10649_v35  ;;  %v10625_v58 = vpack.c.bf16 %v7495_v5, %v7494_v52  ;;  %v10657_v3 = vpack.c.bf16 %v7527_v42, %v7526_v15  ;;  %v7481_v37 = vld [vmem:[#allocation35 + $0x58] sm:$0xff]  ;;  %v7512_v39 = vld [vmem:[#allocation35 + $0x150] sm:$0xff]  ;;  %v7498_v35 = vld [vmem:[#allocation35 + $0xe0] sm:$0xff] }
0x19ec   :  { %v10627_v24 = vpack.c.bf16 %v7479_v29, %v7478_v32  ;;  %v10659_v53 = vpack.c.bf16 %v7511_v62, %v7510_v54  ;;  %v10629_v59 = vpack.c.bf16 %v7497_v23, %v7496_v14  ;;  %v10661_v25 = vpack.c.bf16 %v7529_v51, %v7528_v2  ;;  %v7513_v34 = vld [vmem:[#allocation35 + $0x158] sm:$0xff]  ;;  %v7499_v7 = vld [vmem:[#allocation35 + $0xe8] sm:$0xff]  ;;  %v7530_v6 = vld [vmem:[#allocation35 + $0x1e0] sm:$0xff] }
0x19ed   :  { %v7531_v16 = vld [vmem:[#allocation35 + $0x1e8] sm:$0xff]  ;;  %v10631_v19 = vpack.c.bf16 %v7481_v37, %v7480_v60  ;;  %v10663_v43 = vpack.c.bf16 %v7513_v34, %v7512_v39  ;;  %v7482_v13 = vld [vmem:[#allocation35 + $0x60] sm:$0xff]  ;;  %v10633_v38 = vpack.c.bf16 %v7499_v7, %v7498_v35  ;;  %v7500_v30 = vld [vmem:[#allocation35 + $0xf0] sm:$0xff] }
0x19ee   :  { %10620 = vmatpush3.bf16.msra.mxu0 %v10619_v49  ;;  %10652 = vmatpush3.bf16.msra.mxu1 %v10651_v4  ;;  %v10665_v18 = vpack.c.bf16 %v7531_v16, %v7530_v6  ;;  %v7483_v50 = vld [vmem:[#allocation35 + $0x68] sm:$0xff]  ;;  %v7514_v9 = vld [vmem:[#allocation35 + $0x160] sm:$0xff]  ;;  %v7501_v11 = vld [vmem:[#allocation35 + $0xf8] sm:$0xff] }
0x19ef   :  { %10622 = vmatprep.subr.bf16.mxu0 %v10621_v61  ;;  %10654 = vmatprep.subr.bf16.mxu1 %v10653_v12  ;;  %v7515_v26 = vld [vmem:[#allocation35 + $0x168] sm:$0xff]  ;;  %v10635_v49 = vpack.c.bf16 %v7483_v50, %v7482_v13  ;;  %v7532_v61 = vld [vmem:[#allocation35 + $0x1f0] sm:$0xff]  ;;  %v10637_v12 = vpack.c.bf16 %v7501_v11, %v7500_v30  ;;  %v7533_v63 = vld [vmem:[#allocation35 + $0x1f8] sm:$0xff] }
0x19f0   :  { %v10667_v4 = vpack.c.bf16 %v7515_v26, %v7514_v9  ;;  %v7484_v41 = vld [vmem:[#allocation35 + $0x70] sm:$0xff]  ;;  %v7485_v52 = vld [vmem:[#allocation35 + $0x78] sm:$0xff]  ;;  %v10669_v5 = vpack.c.bf16 %v7533_v63, %v7532_v61  ;;  %v7550_v32 = vld [vmem:[#allocation35 + $0x280] sm:$0xff] }
0x19f1   :  { %v10639_v15 = vpack.c.bf16 %v7485_v52, %v7484_v41  ;;  %v7516_v42 = vld [vmem:[#allocation35 + $0x170] sm:$0xff]  ;;  %v7551_v29 = vld [vmem:[#allocation35 + $0x288] sm:$0xff]  ;;  %v7566_v39 = vld [vmem:[#allocation35 + $0x300] sm:$0xff] }
0x19f2   :  { %10624 = vmatpush3.bf16.msra.mxu0 %v10623_v57  ;;  %10656 = vmatpush3.bf16.msra.mxu1 %v10655_v1  ;;  %v7517_v57 = vld [vmem:[#allocation35 + $0x178] sm:$0xff]  ;;  %v7583_v54 = vld [vmem:[#allocation35 + $0x388] sm:$0xff] }
0x19f3   :  { %10626 = vmatprep.subr.bf16.mxu0 %v10625_v58  ;;  %10658 = vmatprep.subr.bf16.mxu1 %v10657_v3  ;;  %v10671_v1 = vpack.c.bf16 %v7517_v57, %v7516_v42  ;;  %v7582_v58 = vld [vmem:[#allocation35 + $0x380] sm:$0xff]  ;;  %v10673_v3 = vpack.c.bf16 %v7551_v29, %v7550_v32  ;;  %v6960_v14 = vld [vmem:[#allocation34] sm:$0xff]  ;;  %v7535_v60 = vld [vmem:[#allocation35 + $0x208] sm:$0xff] }
0x19f4   :  { %v10705_v62 = vpack.c.bf16 %v7583_v54, %v7582_v58  ;;  %v6967_v23 = vrot.slane %v6960_v14, %v12404_v20  ;;  %v6975_v2 = vrot.slane %v6960_v14, %v12422_v48  ;;  %v6971_v51 = vrot.slane %v6960_v14, %v12407_v22  ;;  %v7567_v34 = vld [vmem:[#allocation35 + $0x308] sm:$0xff]  ;;  %v13796_v35 = vld [vmem:[#allocation34 + $0x8] sm:$0x7]  ;;  %v7554_v32 = vld [vmem:[#allocation35 + $0x2a0] sm:$0xff] }
0x19f5   :  { %v6987_v13 = vrot.slane %v6960_v14, %v13606_v10  ;;  %v6995_v50 = vrot.slane %v6960_v14, %v13612_v46  ;;  %v7553_v26 = vld [vmem:[#allocation35 + $0x298] sm:$0xff]  ;;  %v10707_v11 = vpack.c.bf16 %v7567_v34, %v7566_v39  ;;  %v6999_v61 = vrot.slane %v13796_v35, %v12404_v20  ;;  %v7570_v39 = vld [vmem:[#allocation35 + $0x320] sm:$0xff]  ;;  %v7556_v34 = vld [vmem:[#allocation35 + $0x2b0] sm:$0xff] }
0x19f6   :  { %10628 = vmatpush3.bf16.msra.mxu0 %v10627_v24  ;;  %10660 = vmatpush3.bf16.msra.mxu1 %v10659_v53  ;;  %v6979_v24 = vrot.slane %v6960_v14, %v12412_v28  ;;  %v7534_v53 = vld [vmem:[#allocation35 + $0x200] sm:$0xff]  ;;  %v13807_v10 = vld [vmem:[#allocation35 + $0x218] sm:$0xff]  ;;  %v7007_v52 = vrot.slane %v13796_v35, %v12422_v48 }
0x19f7   :  { %10630 = vmatprep.subr.bf16.mxu0 %v10629_v59  ;;  %10662 = vmatprep.subr.bf16.mxu1 %v10661_v25  ;;  %v6983_v25 = vrot.slane %v6960_v14, %v13603_v17  ;;  %v10675_v9 = vpack.c.bf16 %v7535_v60, %v7534_v53  ;;  %v7584_v17 = vld [vmem:[#allocation35 + $0x390] sm:$0xff]  ;;  %v7586_v48 = vld [vmem:[#allocation35 + $0x3a0] sm:$0xff] }
0x19f8   :  { %v7538_v60 = vld [vmem:[#allocation35 + $0x220] sm:$0xff] }
0x19fa   :  { %10632 = vmatpush3.bf16.msra.mxu0 %v10631_v19  ;;  %10664 = vmatpush3.bf16.msra.mxu1 %v10663_v43  ;;  %v6991_v43 = vrot.slane %v6960_v14, %v13609_v47  ;;  %v13805_v47 = vld [vmem:[#allocation35 + $0x210] sm:$0xff] }
0x19fb   :  { %10634 = vmatprep.subr.bf16.mxu0 %v10633_v38  ;;  %10666 = vmatprep.subr.bf16.mxu1 %v10665_v18  ;;  %v7552_v38 = vld [vmem:[#allocation35 + $0x290] sm:$0xff] }
0x19fe   :  { %10636 = vmatpush3.bf16.msra.mxu0 %v10635_v49  ;;  %10668 = vmatpush3.bf16.msra.mxu1 %v10667_v4  ;;  %v7585_v49 = vld [vmem:[#allocation35 + $0x398] sm:$0xff] }
0x19ff   :  { %10638 = vmatprep.subr.bf16.mxu0 %v10637_v12  ;;  %10670 = vmatprep.subr.bf16.mxu1 %v10669_v5  ;;  %v7569_v5 = vld [vmem:[#allocation35 + $0x318] sm:$0xff] }
0x1a02   :  { %10640 = vmatpush3.bf16.msra.mxu0 %v10639_v15  ;;  %10672 = vmatpush3.bf16.msra.mxu1 %v10671_v1  ;;  %v10677_v1 = vpack.c.bf16 %v7553_v26, %v7552_v38 }
0x1a03   :  { %10674 = vmatprep.subr.bf16.mxu0 %v10673_v3  ;;  %10706 = vmatprep.subr.bf16.mxu1 %v10705_v62  ;;  %v7587_v3 = vld [vmem:[#allocation35 + $0x3a8] sm:$0xff] }
0x1aaf   :  { %v7088_v37 = vpop.f32.mrb[60].mxu0  ;;  %v7159_v59 = vpop.f32.mrb[78].mxu1 }
0x1ab0   :  { %v7089_v7 = vadd.f32 %v7088_v37, %v6967_v23  ;;  %v7160_v6 = vadd.f32 %v7159_v59, %v6975_v2  ;;  %v7090_v16 = vpop.f32.mrb[61].mxu0  ;;  %v7161_v19 = vpop.f32.mrb[79].mxu1  ;;  %v7539_v37 = vld [vmem:[#allocation35 + $0x228] sm:$0xff] }
0x1ab1   :  { %v7091_v28 = vadd.f32 %v7090_v16, %v6971_v51  ;;  %v7162_v18 = vadd.f32 %v7161_v19, %v6979_v24  ;;  %v7589_v16 = vld [vmem:[#allocation35 + $0x3b8] sm:$0xff]  ;;  %v10683_v38 = vpack.c.bf16 %v7539_v37, %v7538_v60  ;;  %v7564_v60 = vld [vmem:[#allocation35 + $0x2f0] sm:$0xff] }
0x1ab2   :  { %v7447_v4 = vmul.f32 %v7089_v7, %v13709_v33  ;;  %v7449_v30 = vmul.f32 %v7160_v6, %v13736_v36  ;;  %v7003_v33 = vrot.slane %v13796_v35, %v12407_v22  ;;  %v7568_v36 = vld [vmem:[#allocation35 + $0x310] sm:$0xff]  ;;  %v10679_v22 = vpack.c.bf16 %v13807_v10, %v13805_v47  ;;  %v7557_v7 = vld [vmem:[#allocation35 + $0x2b8] sm:$0xff]  ;;  %v7543_v47 = vld [vmem:[#allocation35 + $0x248] sm:$0xff] }
0x1ab3   :  { %v7448_v12 = vmul.f32 %v7091_v28, %v13718_v45  ;;  %v7450_v46 = vmul.f32 %v7162_v18, %v13742_v27  ;;  %v7230_v63 = vpop.f32.mrb[62].mxu0  ;;  %v7301_v41 = vpop.f32.mrb[80].mxu1  ;;  %v10709_v45 = vpack.c.bf16 %v7585_v49, %v7584_v17  ;;  %v7555_v27 = vld [vmem:[#allocation35 + $0x2a8] sm:$0xff]  ;;  %v10711_v14 = vpack.c.bf16 %v7569_v5, %v7568_v36  ;;  %v7588_v6 = vld [vmem:[#allocation35 + $0x3b0] sm:$0xff]  ;;  %v7573_v17 = vld [vmem:[#allocation35 + $0x338] sm:$0xff] }
0x1ab4   :  { %7458 = vst [vmem:[#allocation44] sm:$0xff] %v7447_v4  ;;  %7460 = vst [vmem:[#allocation44 + $0x10] sm:$0xff] %v7449_v30  ;;  %v7231_v20 = vadd.f32 %v7230_v63, %v6983_v25  ;;  %v7302_v15 = vadd.f32 %v7301_v41, %v6991_v43  ;;  %v7232_v42 = vpop.f32.mrb[63].mxu0  ;;  %v7303_v57 = vpop.f32.mrb[81].mxu1  ;;  %v10681_v53 = vpack.c.bf16 %v7555_v27, %v7554_v32  ;;  %v7540_v18 = vld [vmem:[#allocation35 + $0x230] sm:$0xff]  ;;  %v7558_v49 = vld [vmem:[#allocation35 + $0x2c0] sm:$0xff] }
0x1ab5   :  { %7459 = vst [vmem:[#allocation44 + $0x8] sm:$0xff] %v7448_v12  ;;  %7461 = vst [vmem:[#allocation44 + $0x18] sm:$0xff] %v7450_v46  ;;  %v7233_v29 = vadd.f32 %v7232_v42, %v6987_v13  ;;  %v7304_v58 = vadd.f32 %v7303_v57, %v6995_v50  ;;  %7721 = vmatprep.mubr.f32.mxu0 %v7448_v12  ;;  %7791 = vmatprep.mubr.f32.mxu1 %v7450_v46  ;;  %v7541_v50 = vld [vmem:[#allocation35 + $0x238] sm:$0xff]  ;;  %v7574_v46 = vld [vmem:[#allocation35 + $0x340] sm:$0xff] }
0x1ab6   :  { %v13818_v54 = vmul.f32 %v7231_v20, %v13711_v21  ;;  %v13821_v62 = vmul.f32 %v7302_v15, %v13778_v56  ;;  %7722 = vmatmul.mubr.f32.vlgmr.msra.gmra.mrb[66].mxu0 %v7447_v4  ;;  %7792 = vmatmul.mubr.f32.vlgmr.msra.gmra.mrb[84].mxu1 %v7449_v30  ;;  %v10717_v26 = vpack.c.bf16 %v7589_v16, %v7588_v6  ;;  %v7591_v4 = vld [vmem:[#allocation35 + $0x3c8] sm:$0xff]  ;;  %v7560_v41 = vld [vmem:[#allocation35 + $0x2d0] sm:$0xff]  ;;  %v7593_v36 = vld [vmem:[#allocation35 + $0x3d8] sm:$0xff] }
0x1ab7   :  { %v7452_v23 = vmul.f32 %v7233_v29, %v13720_v55  ;;  %v7454_v2 = vmul.f32 %v7304_v58, %v13783_v31  ;;  %10676 = vmatpush3.bf16.msra.mxu0 %v10675_v9  ;;  %10708 = vmatpush3.bf16.msra.mxu1 %v10707_v11  ;;  %v7372_v51 = vpop.f32.mrb[64].mxu0  ;;  %v7443_v24 = vpop.f32.mrb[82].mxu1  ;;  %v10713_v55 = vpack.c.bf16 %v7587_v3, %v7586_v48  ;;  %v7571_v31 = vld [vmem:[#allocation35 + $0x328] sm:$0xff]  ;;  %v7544_v15 = vld [vmem:[#allocation35 + $0x250] sm:$0xff]  ;;  %v7545_v42 = vld [vmem:[#allocation35 + $0x258] sm:$0xff] }
0x1ab8   :  { %7462 = vst [vmem:[#allocation44 + $0x20] sm:$0xff] %v13818_v54  ;;  %7464 = vst [vmem:[#allocation44 + $0x30] sm:$0xff] %v13821_v62  ;;  %v7373_v21 = vadd.f32 %v7372_v51, %v6999_v61  ;;  %v7444_v56 = vadd.f32 %v7443_v24, %v7007_v52  ;;  %v7374_v59 = vpop.f32.mrb[65].mxu0  ;;  %v8846_v25 = vpop.f32.mrb[83].mxu1  ;;  %10678 = vmatprep.subr.bf16.mxu0 %v10677_v1  ;;  %10710 = vmatprep.subr.bf16.mxu1 %v10709_v45  ;;  %v7542_v61 = vld [vmem:[#allocation35 + $0x240] sm:$0xff]  ;;  %v7575_v63 = vld [vmem:[#allocation35 + $0x348] sm:$0xff] }
0x1ab9   :  { %7463 = vst [vmem:[#allocation44 + $0x28] sm:$0xff] %v7452_v23  ;;  %7465 = vst [vmem:[#allocation44 + $0x38] sm:$0xff] %v7454_v2  ;;  %v7375_v35 = vadd.f32 %v7374_v59, %v7003_v33  ;;  %7861 = vmatprep.mubr.f32.mxu0 %v7452_v23  ;;  %7931 = vmatprep.mubr.f32.mxu1 %v7454_v2  ;;  %v10715_v28 = vpack.c.bf16 %v7571_v31, %v7570_v39  ;;  %v7561_v52 = vld [vmem:[#allocation35 + $0x2d8] sm:$0xff]  ;;  %v7592_v33 = vld [vmem:[#allocation35 + $0x3d0] sm:$0xff] }
0x1aba   :  { %v13828_v19 = vmul.f32 %v7373_v21, %v13738_v40  ;;  %v13831_v43 = vmul.f32 %v7444_v56, %v13789_v44  ;;  %v10685_v9 = vpack.c.bf16 %v7557_v7, %v7556_v34  ;;  %v7572_v40 = vld [vmem:[#allocation35 + $0x330] sm:$0xff]  ;;  %v7590_v44 = vld [vmem:[#allocation35 + $0x3c0] sm:$0xff]  ;;  %v10687_v30 = vpack.c.bf16 %v7541_v50, %v7540_v18  ;;  %v7577_v32 = vld [vmem:[#allocation35 + $0x358] sm:$0xff] }
0x1abb   :  { %v13834_v13 = vmul.f32 %v7375_v35, %v13744_v8  ;;  %10680 = vmatpush3.bf16.msra.mxu0 %v10679_v22  ;;  %10712 = vmatpush3.bf16.msra.mxu1 %v10711_v14  ;;  %v7559_v8 = vld [vmem:[#allocation35 + $0x2c8] sm:$0xff]  ;;  %v10719_v11 = vpack.c.bf16 %v7573_v17, %v7572_v40  ;;  %v10721_v12 = vpack.c.bf16 %v7591_v4, %v7590_v44  ;;  %v7576_v45 = vld [vmem:[#allocation35 + $0x350] sm:$0xff]  ;;  %v7562_v27 = vld [vmem:[#allocation35 + $0x2e0] sm:$0xff]  ;;  %v13930_v44 = vmov 0.0|0.0  }
0x1abc   :  { %7466 = vst [vmem:[#allocation44 + $0x40] sm:$0xff] %v13828_v19  ;;  %10682 = vmatprep.subr.bf16.mxu0 %v10681_v53  ;;  %10714 = vmatprep.subr.bf16.mxu1 %v10713_v55  ;;  %7469 = vst.msk [vmem:[#allocation44 + $0x50] sm:$0xff] %vm7468_vm4, %v13831_v43  ;;  %v10689_v10 = vpack.c.bf16 %v7559_v8, %v7558_v49  ;;  %v10691_v5 = vpack.c.bf16 %v7543_v47, %v7542_v61  ;;  %v7563_v29 = vld [vmem:[#allocation35 + $0x2e8] sm:$0xff]  ;;  %v7594_v58 = vld [vmem:[#allocation35 + $0x3e0] sm:$0xff] }
0x1abd   :  { %7467 = vst [vmem:[#allocation44 + $0x48] sm:$0xff] %v13834_v13  ;;  %v10723_v20 = vpack.c.bf16 %v7575_v63, %v7574_v46  ;;  %v10693_v57 = vpack.c.bf16 %v7561_v52, %v7560_v41  ;;  %v10725_v1 = vpack.c.bf16 %v7593_v36, %v7592_v33  ;;  %v7595_v22 = vld [vmem:[#allocation35 + $0x3e8] sm:$0xff]  ;;  %v10695_v48 = vpack.c.bf16 %v7545_v42, %v7544_v15  ;;  %v7546_v14 = vld [vmem:[#allocation35 + $0x260] sm:$0xff]  ;;  %v7565_v37 = vld [vmem:[#allocation35 + $0x2f8] sm:$0xff] }
0x1abe   :  { %v10727_v3 = vpack.c.bf16 %v7577_v32, %v7576_v45  ;;  %v7547_v23 = vld [vmem:[#allocation35 + $0x268] sm:$0xff]  ;;  %v10697_v2 = vpack.c.bf16 %v7563_v29, %v7562_v27  ;;  %v10729_v51 = vpack.c.bf16 %v7595_v22, %v7594_v58  ;;  %v7578_v24 = vld [vmem:[#allocation35 + $0x360] sm:$0xff]  ;;  %v7596_v21 = vld [vmem:[#allocation35 + $0x3f0] sm:$0xff]  ;;  %v10701_v39 = vpack.c.bf16 %v7565_v37, %v7564_v60 }
0x1abf   :  { %10684 = vmatpush3.bf16.msra.mxu0 %v10683_v38  ;;  %10716 = vmatpush3.bf16.msra.mxu1 %v10715_v28  ;;  %v7579_v53 = vld [vmem:[#allocation35 + $0x368] sm:$0xff]  ;;  %v7597_v56 = vld [vmem:[#allocation35 + $0x3f8] sm:$0xff]  ;;  %v10699_v59 = vpack.c.bf16 %v7547_v23, %v7546_v14  ;;  %v7548_v55 = vld [vmem:[#allocation35 + $0x270] sm:$0xff] }
0x1ac0   :  { %10686 = vmatprep.subr.bf16.mxu0 %v10685_v9  ;;  %10718 = vmatprep.subr.bf16.mxu1 %v10717_v26  ;;  %v10731_v25 = vpack.c.bf16 %v7579_v53, %v7578_v24  ;;  %v10733_v31 = vpack.c.bf16 %v7597_v56, %v7596_v21  ;;  %v7549_v34 = vld [vmem:[#allocation35 + $0x278] sm:$0xff]  ;;  %v7580_v35 = vld [vmem:[#allocation35 + $0x370] sm:$0xff]  ;;  %v7614_v6 = vld [vmem:[#allocation35 + $0x480] sm:$0xff] }
0x1ac1   :  { %v7581_v7 = vld [vmem:[#allocation35 + $0x378] sm:$0xff]  ;;  %v7615_v16 = vld [vmem:[#allocation35 + $0x488] sm:$0xff]  ;;  %v10703_v38 = vpack.c.bf16 %v7549_v34, %v7548_v55  ;;  %v7598_v50 = vld [vmem:[#allocation35 + $0x400] sm:$0xff] }
0x1ac2   :  { %v10735_v28 = vpack.c.bf16 %v7581_v7, %v7580_v35  ;;  %v10737_v18 = vpack.c.bf16 %v7615_v16, %v7614_v6  ;;  %v7599_v9 = vld [vmem:[#allocation35 + $0x408] sm:$0xff]  ;;  %v7630_v26 = vld [vmem:[#allocation35 + $0x500] sm:$0xff]  ;;  %v7616_v17 = vld [vmem:[#allocation35 + $0x490] sm:$0xff] }
0x1ac3   :  { %10688 = vmatpush3.bf16.msra.mxu0 %v10687_v30  ;;  %10720 = vmatpush3.bf16.msra.mxu1 %v10719_v11  ;;  %v7631_v40 = vld [vmem:[#allocation35 + $0x508] sm:$0xff]  ;;  %v7617_v49 = vld [vmem:[#allocation35 + $0x498] sm:$0xff]  ;;  %v10739_v8 = vpack.c.bf16 %v7599_v9, %v7598_v50  ;;  %v7600_v11 = vld [vmem:[#allocation35 + $0x410] sm:$0xff] }
0x1ac4   :  { %10690 = vmatprep.subr.bf16.mxu0 %v10689_v10  ;;  %10722 = vmatprep.subr.bf16.mxu1 %v10721_v12  ;;  %v10770_v4 = vpack.c.bf16 %v7631_v40, %v7630_v26  ;;  %v10741_v30 = vpack.c.bf16 %v7617_v49, %v7616_v17  ;;  %v7601_v61 = vld [vmem:[#allocation35 + $0x418] sm:$0xff]  ;;  %v7632_v47 = vld [vmem:[#allocation35 + $0x510] sm:$0xff]  ;;  %v7618_v12 = vld [vmem:[#allocation35 + $0x4a0] sm:$0xff] }
0x1ac5   :  { %v7633_v10 = vld [vmem:[#allocation35 + $0x518] sm:$0xff]  ;;  %v7619_v46 = vld [vmem:[#allocation35 + $0x4a8] sm:$0xff]  ;;  %v10743_v63 = vpack.c.bf16 %v7601_v61, %v7600_v11  ;;  %v7602_v33 = vld [vmem:[#allocation35 + $0x420] sm:$0xff] }
0x1ac6   :  { %v10773_v41 = vpack.c.bf16 %v7633_v10, %v7632_v47  ;;  %v10745_v52 = vpack.c.bf16 %v7619_v46, %v7618_v12  ;;  %v7603_v36 = vld [vmem:[#allocation35 + $0x428] sm:$0xff]  ;;  %v7620_v15 = vld [vmem:[#allocation35 + $0x4b0] sm:$0xff]  ;;  %v7621_v42 = vld [vmem:[#allocation35 + $0x4b8] sm:$0xff] }
0x1ac7   :  { %10692 = vmatpush3.bf16.msra.mxu0 %v10691_v5  ;;  %10724 = vmatpush3.bf16.msra.mxu1 %v10723_v20  ;;  %v7634_v5 = vld [vmem:[#allocation35 + $0x520] sm:$0xff]  ;;  %v7635_v20 = vld [vmem:[#allocation35 + $0x528] sm:$0xff]  ;;  %v7636_v45 = vld [vmem:[#allocation35 + $0x530] sm:$0xff] }
0x1ac8   :  { %10694 = vmatprep.subr.bf16.mxu0 %v10693_v57  ;;  %10726 = vmatprep.subr.bf16.mxu1 %v10725_v1  ;;  %v7604_v57 = vld [vmem:[#allocation35 + $0x430] sm:$0xff]  ;;  %v7605_v1 = vld [vmem:[#allocation35 + $0x438] sm:$0xff]  ;;  %v7622_v27 = vld [vmem:[#allocation35 + $0x4c0] sm:$0xff] }
0x1ac9   :  { %v7637_v32 = vld [vmem:[#allocation35 + $0x538] sm:$0xff]  ;;  %v7623_v29 = vld [vmem:[#allocation35 + $0x4c8] sm:$0xff]  ;;  %v10751_v58 = vpack.c.bf16 %v7605_v1, %v7604_v57  ;;  %v7638_v23 = vld [vmem:[#allocation35 + $0x540] sm:$0xff] }
0x1aca   :  { %v10779_v22 = vpack.c.bf16 %v7637_v32, %v7636_v45  ;;  %v7607_v14 = vld [vmem:[#allocation35 + $0x448] sm:$0xff]  ;;  %v7625_v24 = vld [vmem:[#allocation35 + $0x4d8] sm:$0xff]  ;;  %v7608_v21 = vld [vmem:[#allocation35 + $0x450] sm:$0xff] }
0x1acb   :  { %10696 = vmatpush3.bf16.msra.mxu0 %v10695_v48  ;;  %10728 = vmatpush3.bf16.msra.mxu1 %v10727_v3  ;;  %v10753_v48 = vpack.c.bf16 %v7623_v29, %v7622_v27  ;;  %v7606_v3 = vld [vmem:[#allocation35 + $0x440] sm:$0xff]  ;;  %v7609_v56 = vld [vmem:[#allocation35 + $0x458] sm:$0xff]  ;;  %v7611_v6 = vld [vmem:[#allocation35 + $0x468] sm:$0xff] }
0x1acc   :  { %10698 = vmatprep.subr.bf16.mxu0 %v10697_v2  ;;  %10730 = vmatprep.subr.bf16.mxu1 %v10729_v51  ;;  %v7639_v2 = vld [vmem:[#allocation35 + $0x548] sm:$0xff]  ;;  %v7624_v51 = vld [vmem:[#allocation35 + $0x4d0] sm:$0xff]  ;;  %v10755_v53 = vpack.c.bf16 %v7607_v14, %v7606_v3  ;;  %v7626_v55 = vld [vmem:[#allocation35 + $0x4e0] sm:$0xff] }
0x1acd   :  { %v10782_v60 = vpack.c.bf16 %v7639_v2, %v7638_v23  ;;  %v10757_v37 = vpack.c.bf16 %v7625_v24, %v7624_v51  ;;  %v7610_v7 = vld [vmem:[#allocation35 + $0x460] sm:$0xff]  ;;  %v7628_v16 = vld [vmem:[#allocation35 + $0x4f0] sm:$0xff]  ;;  %v7613_v9 = vld [vmem:[#allocation35 + $0x478] sm:$0xff] }
0x1ace   :  { %v7612_v50 = vld [vmem:[#allocation35 + $0x470] sm:$0xff]  ;;  %v7642_v26 = vld [vmem:[#allocation35 + $0x560] sm:$0x1]  ;;  %v8175_v45 = vld [vmem:[#allocation41 + $0x18] sm:$0xff] }
0x1acf   :  { %10700 = vmatpush3.bf16.msra.mxu0 %v10699_v59  ;;  %10732 = vmatpush3.bf16.msra.mxu1 %v10731_v25  ;;  %v7640_v59 = vld [vmem:[#allocation35 + $0x550] sm:$0xff]  ;;  %v7641_v25 = vld [vmem:[#allocation35 + $0x558] sm:$0xff]  ;;  %v10767_v40 = vpack.c.bf16 %v7613_v9, %v7612_v50  ;;  %v8183_v24 = vld [vmem:[#allocation41 + $0x58] sm:$0xff] }
0x1ad0   :  { %10702 = vmatprep.subr.bf16.mxu0 %v10701_v39  ;;  %10734 = vmatprep.subr.bf16.mxu1 %v10733_v31  ;;  %v7627_v39 = vld [vmem:[#allocation35 + $0x4e8] sm:$0xff]  ;;  %v10759_v31 = vpack.c.bf16 %v7609_v56, %v7608_v21  ;;  %v10785_v34 = vpack.c.bf16 %v7641_v25, %v7640_v59  ;;  %v8079_v49 = vld [vmem:[#allocation38 + $0x8] sm:$0xff]  ;;  %v8084_v10 = vld [vmem:[#allocation38 + $0x30] sm:$0xff] }
0x1ad1   :  { %v10761_v35 = vpack.c.bf16 %v7627_v39, %v7626_v55  ;;  %v8078_v17 = vld [vmem:[#allocation38] sm:$0xff]  ;;  %v8083_v61 = vld [vmem:[#allocation38 + $0x28] sm:$0xff]  ;;  %v8174_v57 = vld [vmem:[#allocation41 + $0x10] sm:$0xff] }
0x1ad2   :  { %v8082_v11 = vld [vmem:[#allocation38 + $0x20] sm:$0xff]  ;;  %v8087_v46 = vld [vmem:[#allocation38 + $0x48] sm:$0xff]  ;;  %v10815_v32 = vpack.c.bf16 %v8175_v45, %v8174_v57  ;;  %v8182_v51 = vld [vmem:[#allocation41 + $0x50] sm:$0xff] }
0x1ad3   :  { %10704 = vmatpush3.bf16.msra.mxu0 %v10703_v38  ;;  %10736 = vmatpush3.bf16.msra.mxu1 %v10735_v28  ;;  %v7629_v38 = vld [vmem:[#allocation35 + $0x4f8] sm:$0xff]  ;;  %v10763_v28 = vpack.c.bf16 %v7611_v6, %v7610_v7  ;;  %v10794_v47 = vpack.c.bf16 %v8083_v61, %v8082_v11  ;;  %v8176_v27 = vld [vmem:[#allocation41 + $0x20] sm:$0xff]  ;;  %v8437_v25 = vld [vmem:[#allocation37] ss:$0 sm:$0xff] }
0x1ad4   :  { %10738 = vmatprep.subr.bf16.mxu0 %v10737_v18  ;;  %10769 = vmatprep.subr.bf16.mxu1 %v13930_v44  ;;  %v10765_v18 = vpack.c.bf16 %v7629_v38, %v7628_v16  ;;  %v8177_v29 = vld [vmem:[#allocation41 + $0x28] sm:$0xff]  ;;  %v8180_v14 = vld [vmem:[#allocation41 + $0x40] sm:$0xff]  ;;  %v8186_v11 = vld [vmem:[#allocation41 + $0x70] sm:$0xff] }
0x1ad5   :  { %v8181_v23 = vld [vmem:[#allocation41 + $0x48] sm:$0xff]  ;;  %v8187_v61 = vld [vmem:[#allocation41 + $0x78] sm:$0xff] }
0x1ad6   :  { %7862 = vmatmul.mubr.f32.vlgmr.msra.gmra.mrb[68].mxu0 %v13818_v54  ;;  %7932 = vmatmul.mubr.f32.vlgmr.msra.gmra.mrb[86].mxu1 %v13821_v62  ;;  %v10747_v54 = vpack.c.bf16 %v7603_v36, %v7602_v33  ;;  %v10776_v62 = vpack.c.bf16 %v7635_v20, %v7634_v5  ;;  %v8090_v36 = vld [vmem:[#allocation38 + $0x60] sm:$0xff]  ;;  %v8091_v5 = vld [vmem:[#allocation38 + $0x68] sm:$0xff]  ;;  %v10824_v2 = vpack.c.bf16 %v8181_v23, %v8180_v14 }
0x1ad7   :  { %10740 = vmatpush3.bf16.msra.mxu0 %v10739_v8  ;;  %8001 = vmatprep.mubr.f32.mxu0 %v13834_v13  ;;  %v10749_v13 = vpack.c.bf16 %v7621_v42, %v7620_v15  ;;  %v8080_v8 = vld [vmem:[#allocation38 + $0x10] sm:$0xff]  ;;  %v10806_v20 = vpack.c.bf16 %v8091_v5, %v8090_v36  ;;  %v8093_v42 = vld [vmem:[#allocation38 + $0x78] sm:$0xff] }
0x1ad8   :  { %10771 = vmatpush3.bf16.msra.mxu1 %v10770_v4  ;;  %10742 = vmatprep.subr.bf16.mxu0 %v10741_v30  ;;  %v10788_v4 = vpack.c.bf16 %v8079_v49, %v8078_v17  ;;  %v8081_v30 = vld [vmem:[#allocation38 + $0x18] sm:$0xff]  ;;  %v8092_v15 = vld [vmem:[#allocation38 + $0x70] sm:$0xff] }
0x1ad9   :  { %10772 = vmatprep.subr.bf16.mxu1 %v13930_v44  ;;  %8873 = vmatprep.mubr.msk.f32.mxu1 %vm11953_vm2, %v11951_v0 }
0x1adb   :  { %10744 = vmatpush3.bf16.msra.mxu0 %v10743_v63 }
0x1adc   :  { %10774 = vmatpush3.bf16.msra.mxu1 %v10773_v41  ;;  %10746 = vmatprep.subr.bf16.mxu0 %v10745_v52  ;;  %v8088_v41 = vld [vmem:[#allocation38 + $0x50] sm:$0xff]  ;;  %v8089_v52 = vld [vmem:[#allocation38 + $0x58] sm:$0xff] }
0x1add   :  { %10775 = vmatprep.subr.bf16.mxu1 %v13930_v44  ;;  %v10803_v33 = vpack.c.bf16 %v8089_v52, %v8088_v41 }
0x1adf   :  { %10748 = vmatpush3.bf16.msra.mxu0 %v10747_v54  ;;  %v10809_v54 = vpack.c.bf16 %v8093_v42, %v8092_v15 }
0x1ae0   :  { %10777 = vmatpush3.bf16.msra.mxu1 %v10776_v62  ;;  %10750 = vmatprep.subr.bf16.mxu0 %v10749_v13  ;;  %v8172_v62 = vld [vmem:[#allocation41] sm:$0xff]  ;;  %v8173_v13 = vld [vmem:[#allocation41 + $0x8] sm:$0xff] }
0x1ae1   :  { %10778 = vmatprep.subr.bf16.mxu1 %v13930_v44  ;;  %v10812_v1 = vpack.c.bf16 %v8173_v13, %v8172_v62 }
0x1ae3   :  { %10752 = vmatpush3.bf16.msra.mxu0 %v10751_v58  ;;  %v10818_v58 = vpack.c.bf16 %v8177_v29, %v8176_v27 }
0x1ae4   :  { %10780 = vmatpush3.bf16.msra.mxu1 %v10779_v22  ;;  %10754 = vmatprep.subr.bf16.mxu0 %v10753_v48  ;;  %v8178_v22 = vld [vmem:[#allocation41 + $0x30] sm:$0xff]  ;;  %v8179_v48 = vld [vmem:[#allocation41 + $0x38] sm:$0xff] }
0x1ae5   :  { %10781 = vmatprep.subr.bf16.mxu1 %v13930_v44  ;;  %v10821_v3 = vpack.c.bf16 %v8179_v48, %v8178_v22 }
0x1ae7   :  { %10756 = vmatpush3.bf16.msra.mxu0 %v10755_v53  ;;  %v10827_v53 = vpack.c.bf16 %v8183_v24, %v8182_v51 }
0x1ae8   :  { %10783 = vmatpush3.bf16.msra.mxu1 %v10782_v60  ;;  %10758 = vmatprep.subr.bf16.mxu0 %v10757_v37  ;;  %v8184_v60 = vld [vmem:[#allocation41 + $0x60] sm:$0xff]  ;;  %v8185_v37 = vld [vmem:[#allocation41 + $0x68] sm:$0xff] }
0x1ae9   :  { %10784 = vmatprep.subr.bf16.mxu1 %v13930_v44  ;;  %v10830_v21 = vpack.c.bf16 %v8185_v37, %v8184_v60 }
0x1aeb   :  { %10760 = vmatpush3.bf16.msra.mxu0 %v10759_v31 }
0x1aec   :  { %10786 = vmatpush3.bf16.msra.mxu1 %v10785_v34  ;;  %10762 = vmatprep.subr.bf16.mxu0 %v10761_v35 }
0x1aed   :  { %8871 = vmatprep.subr.mxu1 %v11951_v0 }
0x1aef   :  { %10764 = vmatpush3.bf16.msra.mxu0 %v10763_v28 }
0x1af0   :  { %8872 = vmatpush3.msk.msra.mxu1 %vm7653_vm5, %v7642_v26  ;;  %10766 = vmatprep.subr.bf16.mxu0 %v10765_v18 }
0x1af1   :  { %8874 = vmatmul.mubr.msk.f32.vlgmr.msra.gmra.mrb[88].mxu1 %vm7468_vm4, %v13831_v43  ;;  %10787 = vmatprep.subr.bf16.mxu1 %v13930_v44  ;;  %v10791_v43 = vpack.c.bf16 %v8081_v30, %v8080_v8 }
0x1af2   :  { %8908 = vmatprep.mubr.msk.f32.mxu1 %vm11953_vm2, %v11951_v0  ;;  %10789 = vmatpush3.bf16.msra.mxu1 %v10788_v4 }
0x1af3   :  { %10768 = vmatpush3.bf16.msra.mxu0 %v10767_v40  ;;  %10790 = vmatprep.subr.bf16.mxu1 %v13930_v44 }
0x1af4   :  { %10811 = vmatprep.subr.bf16.mxu0 %v13930_v44 }
0x1af6   :  { %8002 = vmatmul.mubr.f32.vlgmr.msra.gmra.mrb[70].mxu0 %v13828_v19  ;;  %10792 = vmatpush3.bf16.msra.mxu1 %v10791_v43  ;;  %v8085_v19 = vld [vmem:[#allocation38 + $0x38] sm:$0xff] }
0x1af7   :  { %8943 = vmatprep.mubr.msk.f32.mxu0 %vm11953_vm2, %v11951_v0  ;;  %10793 = vmatprep.subr.bf16.mxu1 %v13930_v44  ;;  %v10797_v12 = vpack.c.bf16 %v8085_v19, %v8084_v10  ;;  %v8086_v0 = vld [vmem:[#allocation38 + $0x40] sm:$0xff] }
0x1af8   :  { %v10800_v63 = vpack.c.bf16 %v8087_v46, %v8086_v0  ;;  %10813 = vmatpush3.bf16.msra.mxu0 %v10812_v1  ;;  %v8440_v10 = vld [vmem:[#allocation40] ss:$0 sm:$0xff] }
0x1af9   :  { %10814 = vmatprep.subr.bf16.mxu0 %v13930_v44 }
0x1afa   :  { %10795 = vmatpush3.bf16.msra.mxu1 %v10794_v47  ;;  %v10833_v47 = vpack.c.bf16 %v8187_v61, %v8186_v11 }
0x1afb   :  { %10796 = vmatprep.subr.bf16.mxu1 %v13930_v44 }
0x1afc   :  { %10816 = vmatpush3.bf16.msra.mxu0 %v10815_v32 }
0x1afd   :  { %10817 = vmatprep.subr.bf16.mxu0 %v13930_v44 }
0x1afe   :  { %10798 = vmatpush3.bf16.msra.mxu1 %v10797_v12 }
0x1aff   :  { %10799 = vmatprep.subr.bf16.mxu1 %v13930_v44 }
0x1b00   :  { %10819 = vmatpush3.bf16.msra.mxu0 %v10818_v58 }
0x1b01   :  { %10820 = vmatprep.subr.bf16.mxu0 %v13930_v44 }
0x1b02   :  { %10801 = vmatpush3.bf16.msra.mxu1 %v10800_v63 }
0x1b03   :  { %10802 = vmatprep.subr.bf16.mxu1 %v13930_v44 }
0x1b04   :  { %10822 = vmatpush3.bf16.msra.mxu0 %v10821_v3 }
0x1b05   :  { %10823 = vmatprep.subr.bf16.mxu0 %v13930_v44 }
0x1b06   :  { %10804 = vmatpush3.bf16.msra.mxu1 %v10803_v33 }
0x1b07   :  { %10805 = vmatprep.subr.bf16.mxu1 %v13930_v44 }
0x1b08   :  { %10825 = vmatpush3.bf16.msra.mxu0 %v10824_v2 }
0x1b09   :  { %10826 = vmatprep.subr.bf16.mxu0 %v13930_v44 }
0x1b0a   :  { %10807 = vmatpush3.bf16.msra.mxu1 %v10806_v20 }
0x1b0b   :  { %10808 = vmatprep.subr.bf16.mxu1 %v13930_v44 }
0x1b0c   :  { %10828 = vmatpush3.bf16.msra.mxu0 %v10827_v53 }
0x1b0d   :  { %10829 = vmatprep.subr.bf16.mxu0 %v13930_v44 }
0x1b0e   :  { %10810 = vmatpush3.bf16.msra.mxu1 %v10809_v54 }
0x1b10   :  { %10831 = vmatpush3.bf16.msra.mxu0 %v10830_v21 }
0x1b11   :  { %10832 = vmatprep.subr.bf16.mxu0 %v13930_v44 }
0x1b14   :  { %10834 = vmatpush3.bf16.msra.mxu0 %v10833_v47 }
0x1b89   :  { %v8534_v56 = vpop.f32.mrb[66].mxu0  ;;  %v8569_v59 = vpop.f32.mrb[84].mxu1 }
0x1b8a   :  { %v8535_v55 = vpop.f32.mrb[67].mxu0  ;;  %v8570_v39 = vpop.f32.mrb[85].mxu1 }
0x1b8b   :  { %v8536_v31 = vadd.f32 %v8535_v55, %v8534_v56  ;;  %v8571_v34 = vadd.f32 %v8570_v39, %v8569_v59 }
0x1b8d   :  { %v7724_v35 = vadd.f32 %v8536_v31, %v8437_v25 }
0x1b8f   :  { %v7794_v7 = vadd.f32 %v8571_v34, %v7724_v35 }
0x1ba9   :  { %v8604_v6 = vpop.f32.mrb[68].mxu0  ;;  %v8639_v16 = vpop.f32.mrb[86].mxu1 }
0x1baa   :  { %v8605_v38 = vpop.f32.mrb[69].mxu0  ;;  %v8640_v28 = vpop.f32.mrb[87].mxu1 }
0x1bab   :  { %v8606_v18 = vadd.f32 %v8605_v38, %v8604_v6  ;;  %v8641_v50 = vadd.f32 %v8640_v28, %v8639_v16 }
0x1bad   :  { %v7864_v9 = vadd.f32 %v8606_v18, %v7794_v7 }
0x1baf   :  { %v7934_v26 = vadd.f32 %v8641_v50, %v7864_v9 }
0x1bc4   :  { %v8073_v40 = vpop.f32.mrb[88].mxu1 }
0x1bc5   :  { %v8875_v17 = vpop.f32.mrb[89].mxu1 }
0x1bc9   :  { %v8674_v44 = vpop.f32.mrb[70].mxu0 }
0x1bca   :  { %v8675_v49 = vpop.f32.mrb[71].mxu0 }
0x1bcb   :  { %v8676_v8 = vadd.f32 %v8675_v49, %v8674_v44 }
0x1bcd   :  { %v8004_v4 = vadd.f32 %v8676_v8, %v7934_v26 }
0x1bcf   :  { %v8074_v30 = vadd.f32 %v8073_v40, %v8004_v4 }
0x1bd1   :  { %v8077_v43 = vmax.f32 %v8074_v30, 0.0 }
0x1bd3   :  { %8909 = vmatmul.mubr.f32.vlgmr.msra.gmra.mrb[90].mxu1 %v8077_v43 }
0x1ca6   :  { %v8167_v19 = vpop.f32.mrb[90].mxu1 }
0x1ca7   :  { %v8168_v12 = vadd.f32 %v8440_v10, %v8167_v19  ;;  %v8910_v0 = vpop.f32.mrb[91].mxu1 }
0x1ca9   :  { %v8171_v46 = vmax.f32 %v8168_v12, 0.0 }
0x1cab   :  { %8944 = vmatmul.mubr.f32.vlgmr.msra.gmra.mrb[72].mxu0 %v8171_v46 }
0x1cac   :  { %11850 = shalt.err (!%p11847_p8)
}
0x1cad   :  { %s11851_s8 = scalar_lea.hbm %s12118_s9, 1408 }
0x1cae   :  { %p11852_p9 = scmp.ne.s32.totalorder %s12118_s9, %s11851_s8  ;;  %p11855_p10 = scmp.lt.u32.totalorder %s11851_s8, %s12118_s9 }
0x1cb0   :  { %p11857_p11 = pnand %p11855_p10, %p11852_p9 }
0x1cb2   :  { %11860 = shalt.err (!%p11857_p11)
}
0x1cb3   :  { %8287 = dma.vmem_to_hbm [thread:$0]  %s8285_s6, 1408, %s12118_s9, [#allocation7]   ;;  %v8441_v63 = vld [vmem:[#allocation43] ss:$0 sm:$0xff]  ;;  %vm8274_vm6 = vcmask 7168  }
0x1d7e   :  { %v8261_v41 = vpop.f32.mrb[72].mxu0 }
0x1d7f   :  { %v8262_v52 = vadd.f32 %v8441_v63, %v8261_v41  ;;  %v8945_v33 = vpop.f32.mrb[73].mxu0 }
0x1d81   :  { %v8265_v36 = vmax.f32 %v8262_v52, 0.0 }
0x1d83   :  { %v8442_v5 = vmul.f32 -1.442695, %v8265_v36 }
0x1d85   :  { %11285 = vpow2.f32 %v8442_v5 }
0x1d8f   :  { %v11286_v20 = vpop.eup %11285 }
0x1d90   :  { %v8269_v15 = vadd.f32 1.0, %v11286_v20 }
0x1d92   :  { %11287 = vrcp.f32 %v8269_v15 }
0x1d9c   :  { %v11288_v42 = vpop.eup %11287 }
0x1d9d   :  { %v8272_v54 = vmul.f32 6.0, %v11288_v42 }
0x1d9f   :  { %v8443_v62 = vadd.f32 -3.0, %v8272_v54 }
0x1da1   :  { %8275 = vst.msk [vmem:[%s12113_s19] sm:$0xff] %vm8274_vm6, %v8443_v62 }
0x1da2   :  { %11887 = dma.done.wait [#allocation7], 1408  }
0x1da3   :  { %11888 = vsyncadd [#allocation7], 4294965888 }
0x1da4   :  { %8293 = vsyncpa [#allocation6], 1 }
0x1da5   :  { %8294 = vsyncpa [#allocation9], 1 }
0x1da6   :  { %8295 = vsyncpa [#allocation12], 1 }
0x1da7   :  { %8296 = vsyncpa [#allocation15], 1 }
0x1da8   :  { %8297 = vsyncpa [#allocation18], 1 }
0x1da9   :  { %8298 = vsyncpa [#allocation21], 1 }
0x1daa   :  { %8299 = vsyncpa [#allocation24], 1 }
0x1dab   :  { %8300 = vsyncpa [#allocation27], 1 }
0x1dac   :  { %8301 = vsyncpa [#allocation30], 1 }
0x1dad   :  { %8302 = vsyncpa [#allocation33], 1 }
0x1dae   :  { %8303 = vsyncpa [#allocation36], 1 }
0x1daf   :  { %8304 = vsyncpa [#allocation39], 1 }
0x1db0   :  { %8305 = vsyncpa [#allocation42], 1 }
0x1db1   :  { %8306 = vsyncpa [#allocation7], 1 }

</bundles_post_ra>
